<compile_context>
chip_gen: v7x
topology: tpu7x:2x2x1
jax: 0.10.0
libtpu: 0.0.40
codegen_flags: <defaults>
</compile_context>

<pallas_src>
import functools

import jax
import jax.numpy as jnp
from jax.experimental import pallas as pl
from jax.experimental.pallas import tpu as pltpu

BN_EPS = 1e-5
TM = 512                      # row tile (sublane-major) for the fused GEMMs
VMEM_LIMIT = 32 * 1024 * 1024  # explicit scoped-VMEM budget (safe on v5e/v6e/v7x)

IMAGENET_MEAN = jnp.asarray([0.485, 0.456, 0.406], jnp.float32)
IMAGENET_STD = jnp.asarray([0.229, 0.224, 0.225], jnp.float32)


def _round_up(x, m):
    return ((x + m - 1) // m) * m


# ----------------------------------------------------------------------------
# Pallas kernels
# ----------------------------------------------------------------------------
def _fused_gemm_kernel(*refs, prologue, epilogue, prologue_relu):
    """(TM, K) @ (K, N) on the MXU with optional fused BN prologue/epilogue.

    refs layout: a, b, [pscale(1,K), pbias(1,K)], [ebias(1,N)], out
    prologue:  a := relu?( f32(a) * pscale + pbias )   (per input channel / K)
    epilogue:  out := relu( acc + ebias )               (per output channel / N)
    All affine math in f32 (v5e-safe); MXU operands bf16; accumulation f32.
    """
    a_ref, b_ref = refs[0], refs[1]
    i = 2
    if prologue:
        ps_ref, pb_ref = refs[i], refs[i + 1]
        i += 2
    if epilogue:
        eb_ref = refs[i]
        i += 1
    o_ref = refs[i]

    a = a_ref[...]
    if prologue:
        a = a.astype(jnp.float32) * ps_ref[...] + pb_ref[...]
        if prologue_relu:
            a = jnp.maximum(a, 0.0)
        a = a.astype(jnp.bfloat16)

    acc = jnp.dot(a, b_ref[...], preferred_element_type=jnp.float32)

    if epilogue:
        acc = jnp.maximum(acc + eb_ref[...], 0.0)
    o_ref[...] = acc.astype(o_ref.dtype)


def _gap_bn_relu_kernel(x_ref, s_ref, b_ref, o_ref):
    # fused: relu(bn(x)) then global average pool  (N, H*W, C) -> (N, C)
    x = x_ref[...].astype(jnp.float32)
    y = jnp.maximum(x * s_ref[...] + b_ref[...], 0.0)
    o_ref[...] = jnp.mean(y, axis=1)


# ----------------------------------------------------------------------------
# Pallas wrappers
# ----------------------------------------------------------------------------
def pallas_gemm(a, b, *, pscale=None, pbias=None, ebias=None,
                prologue_relu=True, out_dtype=jnp.bfloat16):
    """Fused (M, K) @ (K, N) -> (M, N), tiled over M with pl.cdiv grid."""
    m, k = a.shape
    n = b.shape[1]
    prologue = pscale is not None
    epilogue = ebias is not None

    tm = min(TM, _round_up(m, 8))
    grid = (pl.cdiv(m, tm),)

    in_specs = [pl.BlockSpec((tm, k), lambda i: (i, 0)),
                pl.BlockSpec((k, n), lambda i: (0, 0))]
    args = [a.astype(jnp.bfloat16), b.astype(jnp.bfloat16)]
    if prologue:
        in_specs += [pl.BlockSpec((1, k), lambda i: (0, 0)),
                     pl.BlockSpec((1, k), lambda i: (0, 0))]
        args += [pscale.reshape(1, k).astype(jnp.float32),
                 pbias.reshape(1, k).astype(jnp.float32)]
    if epilogue:
        in_specs += [pl.BlockSpec((1, n), lambda i: (0, 0))]
        args += [ebias.reshape(1, n).astype(jnp.float32)]

    kernel = functools.partial(_fused_gemm_kernel, prologue=prologue,
                               epilogue=epilogue, prologue_relu=prologue_relu)
    return pl.pallas_call(
        kernel,
        out_shape=jax.ShapeDtypeStruct((m, n), out_dtype),
        grid=grid,
        in_specs=in_specs,
        out_specs=pl.BlockSpec((tm, n), lambda i: (i, 0)),
        compiler_params=pltpu.CompilerParams(
            dimension_semantics=("parallel",),   # shards across v7x's 2 TCs
            vmem_limit_bytes=VMEM_LIMIT),
    )(*args)


def pallas_gap_bn_relu(x_nhwc, bn_params):
    """Fused norm5 + ReLU + adaptive_avg_pool2d((1,1)) + flatten -> (N, C) f32."""
    n, h, w, c = x_nhwc.shape
    scale, bias = _bn_fold(bn_params)
    x3 = x_nhwc.reshape(n, h * w, c)   # contiguous reshape, no copy
    return pl.pallas_call(
        _gap_bn_relu_kernel,
        out_shape=jax.ShapeDtypeStruct((n, c), jnp.float32),
        grid=(1,),
        in_specs=[pl.BlockSpec((n, h * w, c), lambda i: (0, 0, 0)),
                  pl.BlockSpec((1, 1, c), lambda i: (0, 0, 0)),
                  pl.BlockSpec((1, 1, c), lambda i: (0, 0, 0))],
        out_specs=pl.BlockSpec((n, c), lambda i: (0, 0)),
        compiler_params=pltpu.CompilerParams(vmem_limit_bytes=VMEM_LIMIT),
    )(x3,
      scale.reshape(1, 1, c).astype(jnp.float32),
      bias.reshape(1, 1, c).astype(jnp.float32))


# ----------------------------------------------------------------------------
# Conv / BN building blocks (GEMM + all affine work runs inside Pallas)
# ----------------------------------------------------------------------------
def _bn_fold(bn_params):
    gamma, beta, mean, var = bn_params
    scale = gamma / jnp.sqrt(var + BN_EPS)
    bias = beta - mean * scale
    return scale, bias


def _im2col(x_nhwc, kh, kw, stride, pad, pad_value=None):
    # Patch extraction (data-movement glue); the GEMM itself is in Pallas.
    # pad_value (per channel) lets a fused normalization prologue map the
    # padding back to exactly zero (see conv0).
    n, h, w, c = x_nhwc.shape
    if pad > 0:
        if pad_value is None:
            xp = jnp.pad(x_nhwc, ((0, 0), (pad, pad), (pad, pad), (0, 0)))
        else:
            xp = (jnp.zeros((n, h + 2 * pad, w + 2 * pad, c), x_nhwc.dtype)
                  + pad_value.reshape(1, 1, 1, c).astype(x_nhwc.dtype))
            xp = xp.at[:, pad:pad + h, pad:pad + w, :].set(x_nhwc)
    else:
        xp = x_nhwc
    ho = (h + 2 * pad - kh) // stride + 1
    wo = (w + 2 * pad - kw) // stride + 1
    cols = []
    for i in range(kh):
        for j in range(kw):
            cols.append(xp[:, i:i + stride * ho:stride, j:j + stride * wo:stride, :])
    patches = cols[0] if len(cols) == 1 else jnp.concatenate(cols, axis=-1)
    return patches.reshape(n * ho * wo, kh * kw * c), (n, ho, wo)


def conv2d_fused(x_nhwc, w_oihw, *, stride=1, pad=0, pad_value=None,
                 pre_scale=None, pre_bias=None, pre_relu=True,
                 post_bn=None, out_dtype=jnp.bfloat16):
    """Conv2d (no bias), PyTorch OIHW weights, with optional fused
    per-input-channel affine(+ReLU) prologue and folded-BN(+ReLU) epilogue."""
    cout, cin, kh, kw = w_oihw.shape
    cols, (n, ho, wo) = _im2col(x_nhwc, kh, kw, stride, pad, pad_value)
    wm = jnp.transpose(w_oihw, (2, 3, 1, 0)).reshape(kh * kw * cin, cout)
    wm = wm.astype(jnp.float32)

    ebias = None
    if post_bn is not None:
        s, b = _bn_fold(post_bn)
        wm = wm * s[None, :]          # fold BN scale into weights (host-side)
        ebias = b                     # bias + ReLU applied in-kernel epilogue

    pscale = pbias = None
    if pre_scale is not None:
        # im2col K layout is [tap0: C chans, tap1: C chans, ...]
        pscale = jnp.tile(pre_scale.astype(jnp.float32), kh * kw)
        pbias = jnp.tile(pre_bias.astype(jnp.float32), kh * kw)

    y = pallas_gemm(cols, wm, pscale=pscale, pbias=pbias, ebias=ebias,
                    prologue_relu=pre_relu, out_dtype=out_dtype)
    return y.reshape(n, ho, wo, cout)


def maxpool_3x3_s2_p1(x_nhwc):
    # -inf padding matches PyTorch semantics.
    init = jnp.array(-jnp.inf, dtype=x_nhwc.dtype)
    return jax.lax.reduce_window(
        x_nhwc, init, jax.lax.max,
        window_dimensions=(1, 3, 3, 1), window_strides=(1, 2, 2, 1),
        padding=((0, 0), (1, 1), (1, 1), (0, 0)))


def avgpool_2x2(x_nhwc):
    n, h, w, c = x_nhwc.shape
    y = x_nhwc.astype(jnp.float32).reshape(n, h // 2, 2, w // 2, 2, c)
    return y.mean(axis=(2, 4)).astype(x_nhwc.dtype)


# ----------------------------------------------------------------------------
# DenseNet definition
# ----------------------------------------------------------------------------
def _dense_layer(x, p):
    # relu2(norm2(conv1(relu1(norm1(x))))) fused into ONE pallas_call:
    s1, b1 = _bn_fold(p["norm1"])
    out = conv2d_fused(x, p["conv1"],
                       pre_scale=s1, pre_bias=b1, pre_relu=True,
                       post_bn=p["norm2"])
    # conv2 (3x3, pad 1): plain GEMM — its BN+ReLU input was produced above.
    out = conv2d_fused(out, p["conv2"], stride=1, pad=1)
    return jnp.concatenate([x, out], axis=-1)   # dense concat (channels last)


def _transition(x, p):
    s, b = _bn_fold(p["norm"])
    out = conv2d_fused(x, p["conv"], pre_scale=s, pre_bias=b, pre_relu=True)
    return avgpool_2x2(out)


def densenet_forward(params, x_nchw, normalize=True):
    x = jnp.transpose(x_nchw, (0, 2, 3, 1)).astype(jnp.bfloat16)  # NCHW->NHWC

    # Stem: (x-mean)/std fused as conv0 prologue; norm0+ReLU folded as epilogue.
    if normalize:
        x = conv2d_fused(
            x, params["conv0"], stride=2, pad=3,
            pad_value=IMAGENET_MEAN,             # prologue maps pad -> ~0
            pre_scale=1.0 / IMAGENET_STD,
            pre_bias=-IMAGENET_MEAN / IMAGENET_STD,
            pre_relu=False,
            post_bn=params["norm0"])
    else:
        x = conv2d_fused(x, params["conv0"], stride=2, pad=3,
                         post_bn=params["norm0"])
    x = maxpool_3x3_s2_p1(x)

    # Dense blocks + transitions.
    for bi, block in enumerate(params["blocks"]):
        for layer in block:
            x = _dense_layer(x, layer)
        if bi < len(params["blocks"]) - 1:
            x = _transition(x, params["transitions"][bi])

    # Final norm5 + F.relu (from forward()) + adaptive_avg_pool2d + flatten.
    return pallas_gap_bn_relu(x, params["norm5"])


# ----------------------------------------------------------------------------
# Deterministic parameter initialization (synthetic; no checkpoint load)
# ----------------------------------------------------------------------------
def _conv_init(key, cout, cin, kh, kw):
    fan_in = cin * kh * kw
    return (jax.random.normal(key, (cout, cin, kh, kw), jnp.float32)
            * (2.0 / fan_in) ** 0.5)


def _bn_init(key, c):
    k1, k2, k3, k4 = jax.random.split(key, 4)
    gamma = (1.0 + 0.1 * jax.random.normal(k1, (c,))).astype(jnp.float32)
    beta = (0.1 * jax.random.normal(k2, (c,))).astype(jnp.float32)
    mean = (0.1 * jax.random.normal(k3, (c,))).astype(jnp.float32)
    var = (1.0 + 0.1 * jax.random.uniform(k4, (c,))).astype(jnp.float32)
    return (gamma, beta, mean, var)


def build_densenet_params(key, growth_rate=8, block_config=(2, 2, 2, 2),
                          num_init_features=16, bn_size=4):
    keys = iter(jax.random.split(key, 4096))
    params = {
        "conv0": _conv_init(next(keys), num_init_features, 3, 7, 7),
        "norm0": _bn_init(next(keys), num_init_features),
        "blocks": [],
        "transitions": [],
    }
    nf = num_init_features
    for bi, n_layers in enumerate(block_config):
        block = []
        for _ in range(n_layers):
            bneck = bn_size * growth_rate
            block.append({
                "norm1": _bn_init(next(keys), nf),
                "conv1": _conv_init(next(keys), bneck, nf, 1, 1),
                "norm2": _bn_init(next(keys), bneck),
                "conv2": _conv_init(next(keys), growth_rate, bneck, 3, 3),
            })
            nf += growth_rate
        params["blocks"].append(block)
        if bi < len(block_config) - 1:
            params["transitions"].append({
                "norm": _bn_init(next(keys), nf),
                "conv": _conv_init(next(keys), nf // 2, nf, 1, 1),
            })
            nf = nf // 2
    params["norm5"] = _bn_init(next(keys), nf)
    params["num_features"] = nf   # == DenseNet.output_num()
    return params


# ----------------------------------------------------------------------------
if __name__ == "__main__":
    # deterministic small example input (NCHW, like PyTorch):
    # 64x64 spatial so all 4 dense blocks + 3 transitions have valid spatial dims.
    x = jax.random.uniform(jax.random.PRNGKey(0), (2, 3, 64, 64), jnp.float32)

    params = build_densenet_params(jax.random.PRNGKey(42))
    num_features = params.pop("num_features")

    fwd = jax.jit(functools.partial(densenet_forward, normalize=True))
    feats = jax.block_until_ready(fwd(params, x))

    assert feats.shape == (2, num_features), feats.shape
    assert feats.dtype == jnp.float32
    assert bool(jnp.all(jnp.isfinite(feats)))
    print("KERNEL_OK")
</pallas_src>

<mosaic_0001>
module attributes {stable_mosaic.version = 11 : i64} {
  func.func @_fused_gemm_kernel(%arg0: i32, %arg1: memref<512x16xbf16, #tpu.memory_space<vmem>>, %arg2: memref<16x32xbf16, #tpu.memory_space<vmem>>, %arg3: memref<1x16xf32, #tpu.memory_space<vmem>>, %arg4: memref<1x16xf32, #tpu.memory_space<vmem>>, %arg5: memref<1x32xf32, #tpu.memory_space<vmem>>, %arg6: memref<512x32xbf16, #tpu.memory_space<vmem>>) attributes {dimension_semantics = [#tpu.dimension_semantics<parallel>], iteration_bounds = array<i64: 1>, scalar_prefetch = 0 : i64, scratch_operands = 0 : i64, tpu.core_type = #tpu.core_type<tc>, window_params = [{transform_indices = @transform_0, window_bounds = array<i64: 512, 16>}, {pipeline_mode = #tpu.pipeline_mode<synchronous>, transform_indices = @transform_1, window_bounds = array<i64: 16, 32>}, {pipeline_mode = #tpu.pipeline_mode<synchronous>, transform_indices = @transform_2, window_bounds = array<i64: 1, 16>}, {pipeline_mode = #tpu.pipeline_mode<synchronous>, transform_indices = @transform_3, window_bounds = array<i64: 1, 16>}, {pipeline_mode = #tpu.pipeline_mode<synchronous>, transform_indices = @transform_4, window_bounds = array<i64: 1, 32>}, {transform_indices = @transform_5, window_bounds = array<i64: 512, 32>}]} {
    %c0 = arith.constant 0 : index
    %c0_0 = arith.constant 0 : index
    %0 = vector.load %arg1[%c0, %c0_0] : memref<512x16xbf16, #tpu.memory_space<vmem>>, vector<512x16xbf16>
    %1 = arith.extf %0 : vector<512x16xbf16> to vector<512x16xf32>
    %c0_1 = arith.constant 0 : index
    %c0_2 = arith.constant 0 : index
    %2 = vector.load %arg3[%c0_1, %c0_2] : memref<1x16xf32, #tpu.memory_space<vmem>>, vector<1x16xf32>
    %3 = vector.broadcast %2 : vector<1x16xf32> to vector<512x16xf32>
    %4 = arith.mulf %1, %3 : vector<512x16xf32>
    %c0_3 = arith.constant 0 : index
    %c0_4 = arith.constant 0 : index
    %5 = vector.load %arg4[%c0_3, %c0_4] : memref<1x16xf32, #tpu.memory_space<vmem>>, vector<1x16xf32>
    %6 = vector.broadcast %5 : vector<1x16xf32> to vector<512x16xf32>
    %7 = arith.addf %4, %6 : vector<512x16xf32>
    %cst = arith.constant 0.000000e+00 : f32
    %8 = vector.broadcast %cst : f32 to vector<512x16xf32>
    %9 = arith.maximumf %7, %8 : vector<512x16xf32>
    %10 = arith.truncf %9 : vector<512x16xf32> to vector<512x16xbf16>
    %c0_5 = arith.constant 0 : index
    %c0_6 = arith.constant 0 : index
    %11 = vector.load %arg2[%c0_5, %c0_6] : memref<16x32xbf16, #tpu.memory_space<vmem>>, vector<16x32xbf16>
    %cst_7 = arith.constant dense<0.000000e+00> : vector<512x32xf32>
    %12 = tpu.matmul %10, %11, %cst_7 {dimension_numbers = #tpu.dot_dimension_numbers<[1], [0], [0], [1], [0, 0, 1, 1], [], []>} : vector<512x16xbf16>, vector<16x32xbf16>, vector<512x32xf32> -> vector<512x32xf32>
    %c0_8 = arith.constant 0 : index
    %c0_9 = arith.constant 0 : index
    %13 = vector.load %arg5[%c0_8, %c0_9] : memref<1x32xf32, #tpu.memory_space<vmem>>, vector<1x32xf32>
    %14 = vector.broadcast %13 : vector<1x32xf32> to vector<512x32xf32>
    %15 = arith.addf %12, %14 : vector<512x32xf32>
    %cst_10 = arith.constant 0.000000e+00 : f32
    %16 = vector.broadcast %cst_10 : f32 to vector<512x32xf32>
    %17 = arith.maximumf %15, %16 : vector<512x32xf32>
    %18 = arith.truncf %17 : vector<512x32xf32> to vector<512x32xbf16>
    %c0_11 = arith.constant 0 : index
    %c0_12 = arith.constant 0 : index
    %19 = vector.load %arg6[%c0_11, %c0_12] : memref<512x32xbf16, #tpu.memory_space<vmem>>, vector<512x32xbf16>
    tpu.vector_store %arg6[%c0_11, %c0_12], %18 {strides = array<i32>} : memref<512x32xbf16, #tpu.memory_space<vmem>>, vector<512x32xbf16>,
    return
  }
  func.func @transform_0(%arg0: i32) -> (i32, i32) {
    %c0_i32 = arith.constant 0 : i32
    %c0_i32_0 = arith.constant 0 : i32
    return %arg0, %c0_i32 : i32, i32
  }
  func.func @transform_1(%arg0: i32) -> (i32, i32) {
    %c0_i32 = arith.constant 0 : i32
    %c0_i32_0 = arith.constant 0 : i32
    %c0_i32_1 = arith.constant 0 : i32
    return %c0_i32, %c0_i32_0 : i32, i32
  }
  func.func @transform_2(%arg0: i32) -> (i32, i32) {
    %c0_i32 = arith.constant 0 : i32
    %c0_i32_0 = arith.constant 0 : i32
    %c0_i32_1 = arith.constant 0 : i32
    return %c0_i32, %c0_i32_0 : i32, i32
  }
  func.func @transform_3(%arg0: i32) -> (i32, i32) {
    %c0_i32 = arith.constant 0 : i32
    %c0_i32_0 = arith.constant 0 : i32
    %c0_i32_1 = arith.constant 0 : i32
    return %c0_i32, %c0_i32_0 : i32, i32
  }
  func.func @transform_4(%arg0: i32) -> (i32, i32) {
    %c0_i32 = arith.constant 0 : i32
    %c0_i32_0 = arith.constant 0 : i32
    %c0_i32_1 = arith.constant 0 : i32
    return %c0_i32, %c0_i32_0 : i32, i32
  }
  func.func @transform_5(%arg0: i32) -> (i32, i32) {
    %c0_i32 = arith.constant 0 : i32
    %c0_i32_0 = arith.constant 0 : i32
    return %arg0, %c0_i32 : i32, i32
  }
}

module attributes {stable_mosaic.version = 11 : i64} {
  func.func @_fused_gemm_kernel(%arg0: i32, %arg1: memref<512x147xbf16, #tpu.memory_space<vmem>>, %arg2: memref<147x16xbf16, #tpu.memory_space<vmem>>, %arg3: memref<1x147xf32, #tpu.memory_space<vmem>>, %arg4: memref<1x147xf32, #tpu.memory_space<vmem>>, %arg5: memref<1x16xf32, #tpu.memory_space<vmem>>, %arg6: memref<512x16xbf16, #tpu.memory_space<vmem>>) attributes {dimension_semantics = [#tpu.dimension_semantics<parallel>], iteration_bounds = array<i64: 4>, scalar_prefetch = 0 : i64, scratch_operands = 0 : i64, tpu.core_type = #tpu.core_type<tc>, window_params = [{transform_indices = @transform_0, window_bounds = array<i64: 512, 147>}, {pipeline_mode = #tpu.pipeline_mode<synchronous>, transform_indices = @transform_1, window_bounds = array<i64: 147, 16>}, {pipeline_mode = #tpu.pipeline_mode<synchronous>, transform_indices = @transform_2, window_bounds = array<i64: 1, 147>}, {pipeline_mode = #tpu.pipeline_mode<synchronous>, transform_indices = @transform_3, window_bounds = array<i64: 1, 147>}, {pipeline_mode = #tpu.pipeline_mode<synchronous>, transform_indices = @transform_4, window_bounds = array<i64: 1, 16>}, {transform_indices = @transform_5, window_bounds = array<i64: 512, 16>}]} {
    %c0 = arith.constant 0 : index
    %c0_0 = arith.constant 0 : index
    %0 = vector.load %arg1[%c0, %c0_0] : memref<512x147xbf16, #tpu.memory_space<vmem>>, vector<512x147xbf16>
    %1 = arith.extf %0 : vector<512x147xbf16> to vector<512x147xf32>
    %c0_1 = arith.constant 0 : index
    %c0_2 = arith.constant 0 : index
    %2 = vector.load %arg3[%c0_1, %c0_2] : memref<1x147xf32, #tpu.memory_space<vmem>>, vector<1x147xf32>
    %3 = vector.broadcast %2 : vector<1x147xf32> to vector<512x147xf32>
    %4 = arith.mulf %1, %3 : vector<512x147xf32>
    %c0_3 = arith.constant 0 : index
    %c0_4 = arith.constant 0 : index
    %5 = vector.load %arg4[%c0_3, %c0_4] : memref<1x147xf32, #tpu.memory_space<vmem>>, vector<1x147xf32>
    %6 = vector.broadcast %5 : vector<1x147xf32> to vector<512x147xf32>
    %7 = arith.addf %4, %6 : vector<512x147xf32>
    %8 = arith.truncf %7 : vector<512x147xf32> to vector<512x147xbf16>
    %c0_5 = arith.constant 0 : index
    %c0_6 = arith.constant 0 : index
    %9 = vector.load %arg2[%c0_5, %c0_6] : memref<147x16xbf16, #tpu.memory_space<vmem>>, vector<147x16xbf16>
    %cst = arith.constant dense<0.000000e+00> : vector<512x16xf32>
    %10 = tpu.matmul %8, %9, %cst {dimension_numbers = #tpu.dot_dimension_numbers<[1], [0], [0], [1], [0, 0, 1, 1], [], []>} : vector<512x147xbf16>, vector<147x16xbf16>, vector<512x16xf32> -> vector<512x16xf32>
    %c0_7 = arith.constant 0 : index
    %c0_8 = arith.constant 0 : index
    %11 = vector.load %arg5[%c0_7, %c0_8] : memref<1x16xf32, #tpu.memory_space<vmem>>, vector<1x16xf32>
    %12 = vector.broadcast %11 : vector<1x16xf32> to vector<512x16xf32>
    %13 = arith.addf %10, %12 : vector<512x16xf32>
    %cst_9 = arith.constant 0.000000e+00 : f32
    %14 = vector.broadcast %cst_9 : f32 to vector<512x16xf32>
    %15 = arith.maximumf %13, %14 : vector<512x16xf32>
    %16 = arith.truncf %15 : vector<512x16xf32> to vector<512x16xbf16>
    %c0_10 = arith.constant 0 : index
    %c0_11 = arith.constant 0 : index
    %17 = vector.load %arg6[%c0_10, %c0_11] : memref<512x16xbf16, #tpu.memory_space<vmem>>, vector<512x16xbf16>
    tpu.vector_store %arg6[%c0_10, %c0_11], %16 {strides = array<i32>} : memref<512x16xbf16, #tpu.memory_space<vmem>>, vector<512x16xbf16>,
    return
  }
  func.func @transform_0(%arg0: i32) -> (i32, i32) {
    %c0_i32 = arith.constant 0 : i32
    %c0_i32_0 = arith.constant 0 : i32
    return %arg0, %c0_i32 : i32, i32
  }
  func.func @transform_1(%arg0: i32) -> (i32, i32) {
    %c0_i32 = arith.constant 0 : i32
    %c0_i32_0 = arith.constant 0 : i32
    %c0_i32_1 = arith.constant 0 : i32
    return %c0_i32, %c0_i32_0 : i32, i32
  }
  func.func @transform_2(%arg0: i32) -> (i32, i32) {
    %c0_i32 = arith.constant 0 : i32
    %c0_i32_0 = arith.constant 0 : i32
    %c0_i32_1 = arith.constant 0 : i32
    return %c0_i32, %c0_i32_0 : i32, i32
  }
  func.func @transform_3(%arg0: i32) -> (i32, i32) {
    %c0_i32 = arith.constant 0 : i32
    %c0_i32_0 = arith.constant 0 : i32
    %c0_i32_1 = arith.constant 0 : i32
    return %c0_i32, %c0_i32_0 : i32, i32
  }
  func.func @transform_4(%arg0: i32) -> (i32, i32) {
    %c0_i32 = arith.constant 0 : i32
    %c0_i32_0 = arith.constant 0 : i32
    %c0_i32_1 = arith.constant 0 : i32
    return %c0_i32, %c0_i32_0 : i32, i32
  }
  func.func @transform_5(%arg0: i32) -> (i32, i32) {
    %c0_i32 = arith.constant 0 : i32
    %c0_i32_0 = arith.constant 0 : i32
    return %arg0, %c0_i32 : i32, i32
  }
}

module attributes {stable_mosaic.version = 11 : i64} {
  func.func @_fused_gemm_kernel(%arg0: i32, %arg1: memref<512x288xbf16, #tpu.memory_space<vmem>>, %arg2: memref<288x8xbf16, #tpu.memory_space<vmem>>, %arg3: memref<512x8xbf16, #tpu.memory_space<vmem>>) attributes {dimension_semantics = [#tpu.dimension_semantics<parallel>], iteration_bounds = array<i64: 1>, scalar_prefetch = 0 : i64, scratch_operands = 0 : i64, tpu.core_type = #tpu.core_type<tc>, window_params = [{transform_indices = @transform_0, window_bounds = array<i64: 512, 288>}, {pipeline_mode = #tpu.pipeline_mode<synchronous>, transform_indices = @transform_1, window_bounds = array<i64: 288, 8>}, {transform_indices = @transform_2, window_bounds = array<i64: 512, 8>}]} {
    %c0 = arith.constant 0 : index
    %c0_0 = arith.constant 0 : index
    %0 = vector.load %arg1[%c0, %c0_0] : memref<512x288xbf16, #tpu.memory_space<vmem>>, vector<512x288xbf16>
    %c0_1 = arith.constant 0 : index
    %c0_2 = arith.constant 0 : index
    %1 = vector.load %arg2[%c0_1, %c0_2] : memref<288x8xbf16, #tpu.memory_space<vmem>>, vector<288x8xbf16>
    %cst = arith.constant dense<0.000000e+00> : vector<512x8xf32>
    %2 = tpu.matmul %0, %1, %cst {dimension_numbers = #tpu.dot_dimension_numbers<[1], [0], [0], [1], [0, 0, 1, 1], [], []>} : vector<512x288xbf16>, vector<288x8xbf16>, vector<512x8xf32> -> vector<512x8xf32>
    %3 = arith.truncf %2 : vector<512x8xf32> to vector<512x8xbf16>
    %c0_3 = arith.constant 0 : index
    %c0_4 = arith.constant 0 : index
    %4 = vector.load %arg3[%c0_3, %c0_4] : memref<512x8xbf16, #tpu.memory_space<vmem>>, vector<512x8xbf16>
    tpu.vector_store %arg3[%c0_3, %c0_4], %3 {strides = array<i32>} : memref<512x8xbf16, #tpu.memory_space<vmem>>, vector<512x8xbf16>,
    return
  }
  func.func @transform_0(%arg0: i32) -> (i32, i32) {
    %c0_i32 = arith.constant 0 : i32
    %c0_i32_0 = arith.constant 0 : i32
    return %arg0, %c0_i32 : i32, i32
  }
  func.func @transform_1(%arg0: i32) -> (i32, i32) {
    %c0_i32 = arith.constant 0 : i32
    %c0_i32_0 = arith.constant 0 : i32
    %c0_i32_1 = arith.constant 0 : i32
    return %c0_i32, %c0_i32_0 : i32, i32
  }
  func.func @transform_2(%arg0: i32) -> (i32, i32) {
    %c0_i32 = arith.constant 0 : i32
    %c0_i32_0 = arith.constant 0 : i32
    return %arg0, %c0_i32 : i32, i32
  }
}

module attributes {stable_mosaic.version = 11 : i64} {
  func.func @_fused_gemm_kernel(%arg0: i32, %arg1: memref<512x24xbf16, #tpu.memory_space<vmem>>, %arg2: memref<24x32xbf16, #tpu.memory_space<vmem>>, %arg3: memref<1x24xf32, #tpu.memory_space<vmem>>, %arg4: memref<1x24xf32, #tpu.memory_space<vmem>>, %arg5: memref<1x32xf32, #tpu.memory_space<vmem>>, %arg6: memref<512x32xbf16, #tpu.memory_space<vmem>>) attributes {dimension_semantics = [#tpu.dimension_semantics<parallel>], iteration_bounds = array<i64: 1>, scalar_prefetch = 0 : i64, scratch_operands = 0 : i64, tpu.core_type = #tpu.core_type<tc>, window_params = [{transform_indices = @transform_0, window_bounds = array<i64: 512, 24>}, {pipeline_mode = #tpu.pipeline_mode<synchronous>, transform_indices = @transform_1, window_bounds = array<i64: 24, 32>}, {pipeline_mode = #tpu.pipeline_mode<synchronous>, transform_indices = @transform_2, window_bounds = array<i64: 1, 24>}, {pipeline_mode = #tpu.pipeline_mode<synchronous>, transform_indices = @transform_3, window_bounds = array<i64: 1, 24>}, {pipeline_mode = #tpu.pipeline_mode<synchronous>, transform_indices = @transform_4, window_bounds = array<i64: 1, 32>}, {transform_indices = @transform_5, window_bounds = array<i64: 512, 32>}]} {
    %c0 = arith.constant 0 : index
    %c0_0 = arith.constant 0 : index
    %0 = vector.load %arg1[%c0, %c0_0] : memref<512x24xbf16, #tpu.memory_space<vmem>>, vector<512x24xbf16>
    %1 = arith.extf %0 : vector<512x24xbf16> to vector<512x24xf32>
    %c0_1 = arith.constant 0 : index
    %c0_2 = arith.constant 0 : index
    %2 = vector.load %arg3[%c0_1, %c0_2] : memref<1x24xf32, #tpu.memory_space<vmem>>, vector<1x24xf32>
    %3 = vector.broadcast %2 : vector<1x24xf32> to vector<512x24xf32>
    %4 = arith.mulf %1, %3 : vector<512x24xf32>
    %c0_3 = arith.constant 0 : index
    %c0_4 = arith.constant 0 : index
    %5 = vector.load %arg4[%c0_3, %c0_4] : memref<1x24xf32, #tpu.memory_space<vmem>>, vector<1x24xf32>
    %6 = vector.broadcast %5 : vector<1x24xf32> to vector<512x24xf32>
    %7 = arith.addf %4, %6 : vector<512x24xf32>
    %cst = arith.constant 0.000000e+00 : f32
    %8 = vector.broadcast %cst : f32 to vector<512x24xf32>
    %9 = arith.maximumf %7, %8 : vector<512x24xf32>
    %10 = arith.truncf %9 : vector<512x24xf32> to vector<512x24xbf16>
    %c0_5 = arith.constant 0 : index
    %c0_6 = arith.constant 0 : index
    %11 = vector.load %arg2[%c0_5, %c0_6] : memref<24x32xbf16, #tpu.memory_space<vmem>>, vector<24x32xbf16>
    %cst_7 = arith.constant dense<0.000000e+00> : vector<512x32xf32>
    %12 = tpu.matmul %10, %11, %cst_7 {dimension_numbers = #tpu.dot_dimension_numbers<[1], [0], [0], [1], [0, 0, 1, 1], [], []>} : vector<512x24xbf16>, vector<24x32xbf16>, vector<512x32xf32> -> vector<512x32xf32>
    %c0_8 = arith.constant 0 : index
    %c0_9 = arith.constant 0 : index
    %13 = vector.load %arg5[%c0_8, %c0_9] : memref<1x32xf32, #tpu.memory_space<vmem>>, vector<1x32xf32>
    %14 = vector.broadcast %13 : vector<1x32xf32> to vector<512x32xf32>
    %15 = arith.addf %12, %14 : vector<512x32xf32>
    %cst_10 = arith.constant 0.000000e+00 : f32
    %16 = vector.broadcast %cst_10 : f32 to vector<512x32xf32>
    %17 = arith.maximumf %15, %16 : vector<512x32xf32>
    %18 = arith.truncf %17 : vector<512x32xf32> to vector<512x32xbf16>
    %c0_11 = arith.constant 0 : index
    %c0_12 = arith.constant 0 : index
    %19 = vector.load %arg6[%c0_11, %c0_12] : memref<512x32xbf16, #tpu.memory_space<vmem>>, vector<512x32xbf16>
    tpu.vector_store %arg6[%c0_11, %c0_12], %18 {strides = array<i32>} : memref<512x32xbf16, #tpu.memory_space<vmem>>, vector<512x32xbf16>,
    return
  }
  func.func @transform_0(%arg0: i32) -> (i32, i32) {
    %c0_i32 = arith.constant 0 : i32
    %c0_i32_0 = arith.constant 0 : i32
    return %arg0, %c0_i32 : i32, i32
  }
  func.func @transform_1(%arg0: i32) -> (i32, i32) {
    %c0_i32 = arith.constant 0 : i32
    %c0_i32_0 = arith.constant 0 : i32
    %c0_i32_1 = arith.constant 0 : i32
    return %c0_i32, %c0_i32_0 : i32, i32
  }
  func.func @transform_2(%arg0: i32) -> (i32, i32) {
    %c0_i32 = arith.constant 0 : i32
    %c0_i32_0 = arith.constant 0 : i32
    %c0_i32_1 = arith.constant 0 : i32
    return %c0_i32, %c0_i32_0 : i32, i32
  }
  func.func @transform_3(%arg0: i32) -> (i32, i32) {
    %c0_i32 = arith.constant 0 : i32
    %c0_i32_0 = arith.constant 0 : i32
    %c0_i32_1 = arith.constant 0 : i32
    return %c0_i32, %c0_i32_0 : i32, i32
  }
  func.func @transform_4(%arg0: i32) -> (i32, i32) {
    %c0_i32 = arith.constant 0 : i32
    %c0_i32_0 = arith.constant 0 : i32
    %c0_i32_1 = arith.constant 0 : i32
    return %c0_i32, %c0_i32_0 : i32, i32
  }
  func.func @transform_5(%arg0: i32) -> (i32, i32) {
    %c0_i32 = arith.constant 0 : i32
    %c0_i32_0 = arith.constant 0 : i32
    return %arg0, %c0_i32 : i32, i32
  }
}

module attributes {stable_mosaic.version = 11 : i64} {
  func.func @_fused_gemm_kernel(%arg0: i32, %arg1: memref<512x32xbf16, #tpu.memory_space<vmem>>, %arg2: memref<32x16xbf16, #tpu.memory_space<vmem>>, %arg3: memref<1x32xf32, #tpu.memory_space<vmem>>, %arg4: memref<1x32xf32, #tpu.memory_space<vmem>>, %arg5: memref<512x16xbf16, #tpu.memory_space<vmem>>) attributes {dimension_semantics = [#tpu.dimension_semantics<parallel>], iteration_bounds = array<i64: 1>, scalar_prefetch = 0 : i64, scratch_operands = 0 : i64, tpu.core_type = #tpu.core_type<tc>, window_params = [{transform_indices = @transform_0, window_bounds = array<i64: 512, 32>}, {pipeline_mode = #tpu.pipeline_mode<synchronous>, transform_indices = @transform_1, window_bounds = array<i64: 32, 16>}, {pipeline_mode = #tpu.pipeline_mode<synchronous>, transform_indices = @transform_2, window_bounds = array<i64: 1, 32>}, {pipeline_mode = #tpu.pipeline_mode<synchronous>, transform_indices = @transform_3, window_bounds = array<i64: 1, 32>}, {transform_indices = @transform_4, window_bounds = array<i64: 512, 16>}]} {
    %c0 = arith.constant 0 : index
    %c0_0 = arith.constant 0 : index
    %0 = vector.load %arg1[%c0, %c0_0] : memref<512x32xbf16, #tpu.memory_space<vmem>>, vector<512x32xbf16>
    %1 = arith.extf %0 : vector<512x32xbf16> to vector<512x32xf32>
    %c0_1 = arith.constant 0 : index
    %c0_2 = arith.constant 0 : index
    %2 = vector.load %arg3[%c0_1, %c0_2] : memref<1x32xf32, #tpu.memory_space<vmem>>, vector<1x32xf32>
    %3 = vector.broadcast %2 : vector<1x32xf32> to vector<512x32xf32>
    %4 = arith.mulf %1, %3 : vector<512x32xf32>
    %c0_3 = arith.constant 0 : index
    %c0_4 = arith.constant 0 : index
    %5 = vector.load %arg4[%c0_3, %c0_4] : memref<1x32xf32, #tpu.memory_space<vmem>>, vector<1x32xf32>
    %6 = vector.broadcast %5 : vector<1x32xf32> to vector<512x32xf32>
    %7 = arith.addf %4, %6 : vector<512x32xf32>
    %cst = arith.constant 0.000000e+00 : f32
    %8 = vector.broadcast %cst : f32 to vector<512x32xf32>
    %9 = arith.maximumf %7, %8 : vector<512x32xf32>
    %10 = arith.truncf %9 : vector<512x32xf32> to vector<512x32xbf16>
    %c0_5 = arith.constant 0 : index
    %c0_6 = arith.constant 0 : index
    %11 = vector.load %arg2[%c0_5, %c0_6] : memref<32x16xbf16, #tpu.memory_space<vmem>>, vector<32x16xbf16>
    %cst_7 = arith.constant dense<0.000000e+00> : vector<512x16xf32>
    %12 = tpu.matmul %10, %11, %cst_7 {dimension_numbers = #tpu.dot_dimension_numbers<[1], [0], [0], [1], [0, 0, 1, 1], [], []>} : vector<512x32xbf16>, vector<32x16xbf16>, vector<512x16xf32> -> vector<512x16xf32>
    %13 = arith.truncf %12 : vector<512x16xf32> to vector<512x16xbf16>
    %c0_8 = arith.constant 0 : index
    %c0_9 = arith.constant 0 : index
    %14 = vector.load %arg5[%c0_8, %c0_9] : memref<512x16xbf16, #tpu.memory_space<vmem>>, vector<512x16xbf16>
    tpu.vector_store %arg5[%c0_8, %c0_9], %13 {strides = array<i32>} : memref<512x16xbf16, #tpu.memory_space<vmem>>, vector<512x16xbf16>,
    return
  }
  func.func @transform_0(%arg0: i32) -> (i32, i32) {
    %c0_i32 = arith.constant 0 : i32
    %c0_i32_0 = arith.constant 0 : i32
    return %arg0, %c0_i32 : i32, i32
  }
  func.func @transform_1(%arg0: i32) -> (i32, i32) {
    %c0_i32 = arith.constant 0 : i32
    %c0_i32_0 = arith.constant 0 : i32
    %c0_i32_1 = arith.constant 0 : i32
    return %c0_i32, %c0_i32_0 : i32, i32
  }
  func.func @transform_2(%arg0: i32) -> (i32, i32) {
    %c0_i32 = arith.constant 0 : i32
    %c0_i32_0 = arith.constant 0 : i32
    %c0_i32_1 = arith.constant 0 : i32
    return %c0_i32, %c0_i32_0 : i32, i32
  }
  func.func @transform_3(%arg0: i32) -> (i32, i32) {
    %c0_i32 = arith.constant 0 : i32
    %c0_i32_0 = arith.constant 0 : i32
    %c0_i32_1 = arith.constant 0 : i32
    return %c0_i32, %c0_i32_0 : i32, i32
  }
  func.func @transform_4(%arg0: i32) -> (i32, i32) {
    %c0_i32 = arith.constant 0 : i32
    %c0_i32_0 = arith.constant 0 : i32
    return %arg0, %c0_i32 : i32, i32
  }
}

module attributes {stable_mosaic.version = 11 : i64} {
  func.func @_fused_gemm_kernel(%arg0: i32, %arg1: memref<128x16xbf16, #tpu.memory_space<vmem>>, %arg2: memref<16x32xbf16, #tpu.memory_space<vmem>>, %arg3: memref<1x16xf32, #tpu.memory_space<vmem>>, %arg4: memref<1x16xf32, #tpu.memory_space<vmem>>, %arg5: memref<1x32xf32, #tpu.memory_space<vmem>>, %arg6: memref<128x32xbf16, #tpu.memory_space<vmem>>) attributes {dimension_semantics = [#tpu.dimension_semantics<parallel>], iteration_bounds = array<i64: 1>, scalar_prefetch = 0 : i64, scratch_operands = 0 : i64, tpu.core_type = #tpu.core_type<tc>, window_params = [{transform_indices = @transform_0, window_bounds = array<i64: 128, 16>}, {pipeline_mode = #tpu.pipeline_mode<synchronous>, transform_indices = @transform_1, window_bounds = array<i64: 16, 32>}, {pipeline_mode = #tpu.pipeline_mode<synchronous>, transform_indices = @transform_2, window_bounds = array<i64: 1, 16>}, {pipeline_mode = #tpu.pipeline_mode<synchronous>, transform_indices = @transform_3, window_bounds = array<i64: 1, 16>}, {pipeline_mode = #tpu.pipeline_mode<synchronous>, transform_indices = @transform_4, window_bounds = array<i64: 1, 32>}, {transform_indices = @transform_5, window_bounds = array<i64: 128, 32>}]} {
    %c0 = arith.constant 0 : index
    %c0_0 = arith.constant 0 : index
    %0 = vector.load %arg1[%c0, %c0_0] : memref<128x16xbf16, #tpu.memory_space<vmem>>, vector<128x16xbf16>
    %1 = arith.extf %0 : vector<128x16xbf16> to vector<128x16xf32>
    %c0_1 = arith.constant 0 : index
    %c0_2 = arith.constant 0 : index
    %2 = vector.load %arg3[%c0_1, %c0_2] : memref<1x16xf32, #tpu.memory_space<vmem>>, vector<1x16xf32>
    %3 = vector.broadcast %2 : vector<1x16xf32> to vector<128x16xf32>
    %4 = arith.mulf %1, %3 : vector<128x16xf32>
    %c0_3 = arith.constant 0 : index
    %c0_4 = arith.constant 0 : index
    %5 = vector.load %arg4[%c0_3, %c0_4] : memref<1x16xf32, #tpu.memory_space<vmem>>, vector<1x16xf32>
    %6 = vector.broadcast %5 : vector<1x16xf32> to vector<128x16xf32>
    %7 = arith.addf %4, %6 : vector<128x16xf32>
    %cst = arith.constant 0.000000e+00 : f32
    %8 = vector.broadcast %cst : f32 to vector<128x16xf32>
    %9 = arith.maximumf %7, %8 : vector<128x16xf32>
    %10 = arith.truncf %9 : vector<128x16xf32> to vector<128x16xbf16>
    %c0_5 = arith.constant 0 : index
    %c0_6 = arith.constant 0 : index
    %11 = vector.load %arg2[%c0_5, %c0_6] : memref<16x32xbf16, #tpu.memory_space<vmem>>, vector<16x32xbf16>
    %cst_7 = arith.constant dense<0.000000e+00> : vector<128x32xf32>
    %12 = tpu.matmul %10, %11, %cst_7 {dimension_numbers = #tpu.dot_dimension_numbers<[1], [0], [0], [1], [0, 0, 1, 1], [], []>} : vector<128x16xbf16>, vector<16x32xbf16>, vector<128x32xf32> -> vector<128x32xf32>
    %c0_8 = arith.constant 0 : index
    %c0_9 = arith.constant 0 : index
    %13 = vector.load %arg5[%c0_8, %c0_9] : memref<1x32xf32, #tpu.memory_space<vmem>>, vector<1x32xf32>
    %14 = vector.broadcast %13 : vector<1x32xf32> to vector<128x32xf32>
    %15 = arith.addf %12, %14 : vector<128x32xf32>
    %cst_10 = arith.constant 0.000000e+00 : f32
    %16 = vector.broadcast %cst_10 : f32 to vector<128x32xf32>
    %17 = arith.maximumf %15, %16 : vector<128x32xf32>
    %18 = arith.truncf %17 : vector<128x32xf32> to vector<128x32xbf16>
    %c0_11 = arith.constant 0 : index
    %c0_12 = arith.constant 0 : index
    %19 = vector.load %arg6[%c0_11, %c0_12] : memref<128x32xbf16, #tpu.memory_space<vmem>>, vector<128x32xbf16>
    tpu.vector_store %arg6[%c0_11, %c0_12], %18 {strides = array<i32>} : memref<128x32xbf16, #tpu.memory_space<vmem>>, vector<128x32xbf16>,
    return
  }
  func.func @transform_0(%arg0: i32) -> (i32, i32) {
    %c0_i32 = arith.constant 0 : i32
    %c0_i32_0 = arith.constant 0 : i32
    return %arg0, %c0_i32 : i32, i32
  }
  func.func @transform_1(%arg0: i32) -> (i32, i32) {
    %c0_i32 = arith.constant 0 : i32
    %c0_i32_0 = arith.constant 0 : i32
    %c0_i32_1 = arith.constant 0 : i32
    return %c0_i32, %c0_i32_0 : i32, i32
  }
  func.func @transform_2(%arg0: i32) -> (i32, i32) {
    %c0_i32 = arith.constant 0 : i32
    %c0_i32_0 = arith.constant 0 : i32
    %c0_i32_1 = arith.constant 0 : i32
    return %c0_i32, %c0_i32_0 : i32, i32
  }
  func.func @transform_3(%arg0: i32) -> (i32, i32) {
    %c0_i32 = arith.constant 0 : i32
    %c0_i32_0 = arith.constant 0 : i32
    %c0_i32_1 = arith.constant 0 : i32
    return %c0_i32, %c0_i32_0 : i32, i32
  }
  func.func @transform_4(%arg0: i32) -> (i32, i32) {
    %c0_i32 = arith.constant 0 : i32
    %c0_i32_0 = arith.constant 0 : i32
    %c0_i32_1 = arith.constant 0 : i32
    return %c0_i32, %c0_i32_0 : i32, i32
  }
  func.func @transform_5(%arg0: i32) -> (i32, i32) {
    %c0_i32 = arith.constant 0 : i32
    %c0_i32_0 = arith.constant 0 : i32
    return %arg0, %c0_i32 : i32, i32
  }
}

module attributes {stable_mosaic.version = 11 : i64} {
  func.func @_fused_gemm_kernel(%arg0: i32, %arg1: memref<128x288xbf16, #tpu.memory_space<vmem>>, %arg2: memref<288x8xbf16, #tpu.memory_space<vmem>>, %arg3: memref<128x8xbf16, #tpu.memory_space<vmem>>) attributes {dimension_semantics = [#tpu.dimension_semantics<parallel>], iteration_bounds = array<i64: 1>, scalar_prefetch = 0 : i64, scratch_operands = 0 : i64, tpu.core_type = #tpu.core_type<tc>, window_params = [{transform_indices = @transform_0, window_bounds = array<i64: 128, 288>}, {pipeline_mode = #tpu.pipeline_mode<synchronous>, transform_indices = @transform_1, window_bounds = array<i64: 288, 8>}, {transform_indices = @transform_2, window_bounds = array<i64: 128, 8>}]} {
    %c0 = arith.constant 0 : index
    %c0_0 = arith.constant 0 : index
    %0 = vector.load %arg1[%c0, %c0_0] : memref<128x288xbf16, #tpu.memory_space<vmem>>, vector<128x288xbf16>
    %c0_1 = arith.constant 0 : index
    %c0_2 = arith.constant 0 : index
    %1 = vector.load %arg2[%c0_1, %c0_2] : memref<288x8xbf16, #tpu.memory_space<vmem>>, vector<288x8xbf16>
    %cst = arith.constant dense<0.000000e+00> : vector<128x8xf32>
    %2 = tpu.matmul %0, %1, %cst {dimension_numbers = #tpu.dot_dimension_numbers<[1], [0], [0], [1], [0, 0, 1, 1], [], []>} : vector<128x288xbf16>, vector<288x8xbf16>, vector<128x8xf32> -> vector<128x8xf32>
    %3 = arith.truncf %2 : vector<128x8xf32> to vector<128x8xbf16>
    %c0_3 = arith.constant 0 : index
    %c0_4 = arith.constant 0 : index
    %4 = vector.load %arg3[%c0_3, %c0_4] : memref<128x8xbf16, #tpu.memory_space<vmem>>, vector<128x8xbf16>
    tpu.vector_store %arg3[%c0_3, %c0_4], %3 {strides = array<i32>} : memref<128x8xbf16, #tpu.memory_space<vmem>>, vector<128x8xbf16>,
    return
  }
  func.func @transform_0(%arg0: i32) -> (i32, i32) {
    %c0_i32 = arith.constant 0 : i32
    %c0_i32_0 = arith.constant 0 : i32
    return %arg0, %c0_i32 : i32, i32
  }
  func.func @transform_1(%arg0: i32) -> (i32, i32) {
    %c0_i32 = arith.constant 0 : i32
    %c0_i32_0 = arith.constant 0 : i32
    %c0_i32_1 = arith.constant 0 : i32
    return %c0_i32, %c0_i32_0 : i32, i32
  }
  func.func @transform_2(%arg0: i32) -> (i32, i32) {
    %c0_i32 = arith.constant 0 : i32
    %c0_i32_0 = arith.constant 0 : i32
    return %arg0, %c0_i32 : i32, i32
  }
}

module attributes {stable_mosaic.version = 11 : i64} {
  func.func @_fused_gemm_kernel(%arg0: i32, %arg1: memref<128x24xbf16, #tpu.memory_space<vmem>>, %arg2: memref<24x32xbf16, #tpu.memory_space<vmem>>, %arg3: memref<1x24xf32, #tpu.memory_space<vmem>>, %arg4: memref<1x24xf32, #tpu.memory_space<vmem>>, %arg5: memref<1x32xf32, #tpu.memory_space<vmem>>, %arg6: memref<128x32xbf16, #tpu.memory_space<vmem>>) attributes {dimension_semantics = [#tpu.dimension_semantics<parallel>], iteration_bounds = array<i64: 1>, scalar_prefetch = 0 : i64, scratch_operands = 0 : i64, tpu.core_type = #tpu.core_type<tc>, window_params = [{transform_indices = @transform_0, window_bounds = array<i64: 128, 24>}, {pipeline_mode = #tpu.pipeline_mode<synchronous>, transform_indices = @transform_1, window_bounds = array<i64: 24, 32>}, {pipeline_mode = #tpu.pipeline_mode<synchronous>, transform_indices = @transform_2, window_bounds = array<i64: 1, 24>}, {pipeline_mode = #tpu.pipeline_mode<synchronous>, transform_indices = @transform_3, window_bounds = array<i64: 1, 24>}, {pipeline_mode = #tpu.pipeline_mode<synchronous>, transform_indices = @transform_4, window_bounds = array<i64: 1, 32>}, {transform_indices = @transform_5, window_bounds = array<i64: 128, 32>}]} {
    %c0 = arith.constant 0 : index
    %c0_0 = arith.constant 0 : index
    %0 = vector.load %arg1[%c0, %c0_0] : memref<128x24xbf16, #tpu.memory_space<vmem>>, vector<128x24xbf16>
    %1 = arith.extf %0 : vector<128x24xbf16> to vector<128x24xf32>
    %c0_1 = arith.constant 0 : index
    %c0_2 = arith.constant 0 : index
    %2 = vector.load %arg3[%c0_1, %c0_2] : memref<1x24xf32, #tpu.memory_space<vmem>>, vector<1x24xf32>
    %3 = vector.broadcast %2 : vector<1x24xf32> to vector<128x24xf32>
    %4 = arith.mulf %1, %3 : vector<128x24xf32>
    %c0_3 = arith.constant 0 : index
    %c0_4 = arith.constant 0 : index
    %5 = vector.load %arg4[%c0_3, %c0_4] : memref<1x24xf32, #tpu.memory_space<vmem>>, vector<1x24xf32>
    %6 = vector.broadcast %5 : vector<1x24xf32> to vector<128x24xf32>
    %7 = arith.addf %4, %6 : vector<128x24xf32>
    %cst = arith.constant 0.000000e+00 : f32
    %8 = vector.broadcast %cst : f32 to vector<128x24xf32>
    %9 = arith.maximumf %7, %8 : vector<128x24xf32>
    %10 = arith.truncf %9 : vector<128x24xf32> to vector<128x24xbf16>
    %c0_5 = arith.constant 0 : index
    %c0_6 = arith.constant 0 : index
    %11 = vector.load %arg2[%c0_5, %c0_6] : memref<24x32xbf16, #tpu.memory_space<vmem>>, vector<24x32xbf16>
    %cst_7 = arith.constant dense<0.000000e+00> : vector<128x32xf32>
    %12 = tpu.matmul %10, %11, %cst_7 {dimension_numbers = #tpu.dot_dimension_numbers<[1], [0], [0], [1], [0, 0, 1, 1], [], []>} : vector<128x24xbf16>, vector<24x32xbf16>, vector<128x32xf32> -> vector<128x32xf32>
    %c0_8 = arith.constant 0 : index
    %c0_9 = arith.constant 0 : index
    %13 = vector.load %arg5[%c0_8, %c0_9] : memref<1x32xf32, #tpu.memory_space<vmem>>, vector<1x32xf32>
    %14 = vector.broadcast %13 : vector<1x32xf32> to vector<128x32xf32>
    %15 = arith.addf %12, %14 : vector<128x32xf32>
    %cst_10 = arith.constant 0.000000e+00 : f32
    %16 = vector.broadcast %cst_10 : f32 to vector<128x32xf32>
    %17 = arith.maximumf %15, %16 : vector<128x32xf32>
    %18 = arith.truncf %17 : vector<128x32xf32> to vector<128x32xbf16>
    %c0_11 = arith.constant 0 : index
    %c0_12 = arith.constant 0 : index
    %19 = vector.load %arg6[%c0_11, %c0_12] : memref<128x32xbf16, #tpu.memory_space<vmem>>, vector<128x32xbf16>
    tpu.vector_store %arg6[%c0_11, %c0_12], %18 {strides = array<i32>} : memref<128x32xbf16, #tpu.memory_space<vmem>>, vector<128x32xbf16>,
    return
  }
  func.func @transform_0(%arg0: i32) -> (i32, i32) {
    %c0_i32 = arith.constant 0 : i32
    %c0_i32_0 = arith.constant 0 : i32
    return %arg0, %c0_i32 : i32, i32
  }
  func.func @transform_1(%arg0: i32) -> (i32, i32) {
    %c0_i32 = arith.constant 0 : i32
    %c0_i32_0 = arith.constant 0 : i32
    %c0_i32_1 = arith.constant 0 : i32
    return %c0_i32, %c0_i32_0 : i32, i32
  }
  func.func @transform_2(%arg0: i32) -> (i32, i32) {
    %c0_i32 = arith.constant 0 : i32
    %c0_i32_0 = arith.constant 0 : i32
    %c0_i32_1 = arith.constant 0 : i32
    return %c0_i32, %c0_i32_0 : i32, i32
  }
  func.func @transform_3(%arg0: i32) -> (i32, i32) {
    %c0_i32 = arith.constant 0 : i32
    %c0_i32_0 = arith.constant 0 : i32
    %c0_i32_1 = arith.constant 0 : i32
    return %c0_i32, %c0_i32_0 : i32, i32
  }
  func.func @transform_4(%arg0: i32) -> (i32, i32) {
    %c0_i32 = arith.constant 0 : i32
    %c0_i32_0 = arith.constant 0 : i32
    %c0_i32_1 = arith.constant 0 : i32
    return %c0_i32, %c0_i32_0 : i32, i32
  }
  func.func @transform_5(%arg0: i32) -> (i32, i32) {
    %c0_i32 = arith.constant 0 : i32
    %c0_i32_0 = arith.constant 0 : i32
    return %arg0, %c0_i32 : i32, i32
  }
}

module attributes {stable_mosaic.version = 11 : i64} {
  func.func @_fused_gemm_kernel(%arg0: i32, %arg1: memref<128x32xbf16, #tpu.memory_space<vmem>>, %arg2: memref<32x16xbf16, #tpu.memory_space<vmem>>, %arg3: memref<1x32xf32, #tpu.memory_space<vmem>>, %arg4: memref<1x32xf32, #tpu.memory_space<vmem>>, %arg5: memref<128x16xbf16, #tpu.memory_space<vmem>>) attributes {dimension_semantics = [#tpu.dimension_semantics<parallel>], iteration_bounds = array<i64: 1>, scalar_prefetch = 0 : i64, scratch_operands = 0 : i64, tpu.core_type = #tpu.core_type<tc>, window_params = [{transform_indices = @transform_0, window_bounds = array<i64: 128, 32>}, {pipeline_mode = #tpu.pipeline_mode<synchronous>, transform_indices = @transform_1, window_bounds = array<i64: 32, 16>}, {pipeline_mode = #tpu.pipeline_mode<synchronous>, transform_indices = @transform_2, window_bounds = array<i64: 1, 32>}, {pipeline_mode = #tpu.pipeline_mode<synchronous>, transform_indices = @transform_3, window_bounds = array<i64: 1, 32>}, {transform_indices = @transform_4, window_bounds = array<i64: 128, 16>}]} {
    %c0 = arith.constant 0 : index
    %c0_0 = arith.constant 0 : index
    %0 = vector.load %arg1[%c0, %c0_0] : memref<128x32xbf16, #tpu.memory_space<vmem>>, vector<128x32xbf16>
    %1 = arith.extf %0 : vector<128x32xbf16> to vector<128x32xf32>
    %c0_1 = arith.constant 0 : index
    %c0_2 = arith.constant 0 : index
    %2 = vector.load %arg3[%c0_1, %c0_2] : memref<1x32xf32, #tpu.memory_space<vmem>>, vector<1x32xf32>
    %3 = vector.broadcast %2 : vector<1x32xf32> to vector<128x32xf32>
    %4 = arith.mulf %1, %3 : vector<128x32xf32>
    %c0_3 = arith.constant 0 : index
    %c0_4 = arith.constant 0 : index
    %5 = vector.load %arg4[%c0_3, %c0_4] : memref<1x32xf32, #tpu.memory_space<vmem>>, vector<1x32xf32>
    %6 = vector.broadcast %5 : vector<1x32xf32> to vector<128x32xf32>
    %7 = arith.addf %4, %6 : vector<128x32xf32>
    %cst = arith.constant 0.000000e+00 : f32
    %8 = vector.broadcast %cst : f32 to vector<128x32xf32>
    %9 = arith.maximumf %7, %8 : vector<128x32xf32>
    %10 = arith.truncf %9 : vector<128x32xf32> to vector<128x32xbf16>
    %c0_5 = arith.constant 0 : index
    %c0_6 = arith.constant 0 : index
    %11 = vector.load %arg2[%c0_5, %c0_6] : memref<32x16xbf16, #tpu.memory_space<vmem>>, vector<32x16xbf16>
    %cst_7 = arith.constant dense<0.000000e+00> : vector<128x16xf32>
    %12 = tpu.matmul %10, %11, %cst_7 {dimension_numbers = #tpu.dot_dimension_numbers<[1], [0], [0], [1], [0, 0, 1, 1], [], []>} : vector<128x32xbf16>, vector<32x16xbf16>, vector<128x16xf32> -> vector<128x16xf32>
    %13 = arith.truncf %12 : vector<128x16xf32> to vector<128x16xbf16>
    %c0_8 = arith.constant 0 : index
    %c0_9 = arith.constant 0 : index
    %14 = vector.load %arg5[%c0_8, %c0_9] : memref<128x16xbf16, #tpu.memory_space<vmem>>, vector<128x16xbf16>
    tpu.vector_store %arg5[%c0_8, %c0_9], %13 {strides = array<i32>} : memref<128x16xbf16, #tpu.memory_space<vmem>>, vector<128x16xbf16>,
    return
  }
  func.func @transform_0(%arg0: i32) -> (i32, i32) {
    %c0_i32 = arith.constant 0 : i32
    %c0_i32_0 = arith.constant 0 : i32
    return %arg0, %c0_i32 : i32, i32
  }
  func.func @transform_1(%arg0: i32) -> (i32, i32) {
    %c0_i32 = arith.constant 0 : i32
    %c0_i32_0 = arith.constant 0 : i32
    %c0_i32_1 = arith.constant 0 : i32
    return %c0_i32, %c0_i32_0 : i32, i32
  }
  func.func @transform_2(%arg0: i32) -> (i32, i32) {
    %c0_i32 = arith.constant 0 : i32
    %c0_i32_0 = arith.constant 0 : i32
    %c0_i32_1 = arith.constant 0 : i32
    return %c0_i32, %c0_i32_0 : i32, i32
  }
  func.func @transform_3(%arg0: i32) -> (i32, i32) {
    %c0_i32 = arith.constant 0 : i32
    %c0_i32_0 = arith.constant 0 : i32
    %c0_i32_1 = arith.constant 0 : i32
    return %c0_i32, %c0_i32_0 : i32, i32
  }
  func.func @transform_4(%arg0: i32) -> (i32, i32) {
    %c0_i32 = arith.constant 0 : i32
    %c0_i32_0 = arith.constant 0 : i32
    return %arg0, %c0_i32 : i32, i32
  }
}

module attributes {stable_mosaic.version = 11 : i64} {
  func.func @_fused_gemm_kernel(%arg0: i32, %arg1: memref<32x16xbf16, #tpu.memory_space<vmem>>, %arg2: memref<16x32xbf16, #tpu.memory_space<vmem>>, %arg3: memref<1x16xf32, #tpu.memory_space<vmem>>, %arg4: memref<1x16xf32, #tpu.memory_space<vmem>>, %arg5: memref<1x32xf32, #tpu.memory_space<vmem>>, %arg6: memref<32x32xbf16, #tpu.memory_space<vmem>>) attributes {dimension_semantics = [#tpu.dimension_semantics<parallel>], iteration_bounds = array<i64: 1>, scalar_prefetch = 0 : i64, scratch_operands = 0 : i64, tpu.core_type = #tpu.core_type<tc>, window_params = [{transform_indices = @transform_0, window_bounds = array<i64: 32, 16>}, {pipeline_mode = #tpu.pipeline_mode<synchronous>, transform_indices = @transform_1, window_bounds = array<i64: 16, 32>}, {pipeline_mode = #tpu.pipeline_mode<synchronous>, transform_indices = @transform_2, window_bounds = array<i64: 1, 16>}, {pipeline_mode = #tpu.pipeline_mode<synchronous>, transform_indices = @transform_3, window_bounds = array<i64: 1, 16>}, {pipeline_mode = #tpu.pipeline_mode<synchronous>, transform_indices = @transform_4, window_bounds = array<i64: 1, 32>}, {transform_indices = @transform_5, window_bounds = array<i64: 32, 32>}]} {
    %c0 = arith.constant 0 : index
    %c0_0 = arith.constant 0 : index
    %0 = vector.load %arg1[%c0, %c0_0] : memref<32x16xbf16, #tpu.memory_space<vmem>>, vector<32x16xbf16>
    %1 = arith.extf %0 : vector<32x16xbf16> to vector<32x16xf32>
    %c0_1 = arith.constant 0 : index
    %c0_2 = arith.constant 0 : index
    %2 = vector.load %arg3[%c0_1, %c0_2] : memref<1x16xf32, #tpu.memory_space<vmem>>, vector<1x16xf32>
    %3 = vector.broadcast %2 : vector<1x16xf32> to vector<32x16xf32>
    %4 = arith.mulf %1, %3 : vector<32x16xf32>
    %c0_3 = arith.constant 0 : index
    %c0_4 = arith.constant 0 : index
    %5 = vector.load %arg4[%c0_3, %c0_4] : memref<1x16xf32, #tpu.memory_space<vmem>>, vector<1x16xf32>
    %6 = vector.broadcast %5 : vector<1x16xf32> to vector<32x16xf32>
    %7 = arith.addf %4, %6 : vector<32x16xf32>
    %cst = arith.constant 0.000000e+00 : f32
    %8 = vector.broadcast %cst : f32 to vector<32x16xf32>
    %9 = arith.maximumf %7, %8 : vector<32x16xf32>
    %10 = arith.truncf %9 : vector<32x16xf32> to vector<32x16xbf16>
    %c0_5 = arith.constant 0 : index
    %c0_6 = arith.constant 0 : index
    %11 = vector.load %arg2[%c0_5, %c0_6] : memref<16x32xbf16, #tpu.memory_space<vmem>>, vector<16x32xbf16>
    %cst_7 = arith.constant dense<0.000000e+00> : vector<32x32xf32>
    %12 = tpu.matmul %10, %11, %cst_7 {dimension_numbers = #tpu.dot_dimension_numbers<[1], [0], [0], [1], [0, 0, 1, 1], [], []>} : vector<32x16xbf16>, vector<16x32xbf16>, vector<32x32xf32> -> vector<32x32xf32>
    %c0_8 = arith.constant 0 : index
    %c0_9 = arith.constant 0 : index
    %13 = vector.load %arg5[%c0_8, %c0_9] : memref<1x32xf32, #tpu.memory_space<vmem>>, vector<1x32xf32>
    %14 = vector.broadcast %13 : vector<1x32xf32> to vector<32x32xf32>
    %15 = arith.addf %12, %14 : vector<32x32xf32>
    %cst_10 = arith.constant 0.000000e+00 : f32
    %16 = vector.broadcast %cst_10 : f32 to vector<32x32xf32>
    %17 = arith.maximumf %15, %16 : vector<32x32xf32>
    %18 = arith.truncf %17 : vector<32x32xf32> to vector<32x32xbf16>
    %c0_11 = arith.constant 0 : index
    %c0_12 = arith.constant 0 : index
    %19 = vector.load %arg6[%c0_11, %c0_12] : memref<32x32xbf16, #tpu.memory_space<vmem>>, vector<32x32xbf16>
    tpu.vector_store %arg6[%c0_11, %c0_12], %18 {strides = array<i32>} : memref<32x32xbf16, #tpu.memory_space<vmem>>, vector<32x32xbf16>,
    return
  }
  func.func @transform_0(%arg0: i32) -> (i32, i32) {
    %c0_i32 = arith.constant 0 : i32
    %c0_i32_0 = arith.constant 0 : i32
    return %arg0, %c0_i32 : i32, i32
  }
  func.func @transform_1(%arg0: i32) -> (i32, i32) {
    %c0_i32 = arith.constant 0 : i32
    %c0_i32_0 = arith.constant 0 : i32
    %c0_i32_1 = arith.constant 0 : i32
    return %c0_i32, %c0_i32_0 : i32, i32
  }
  func.func @transform_2(%arg0: i32) -> (i32, i32) {
    %c0_i32 = arith.constant 0 : i32
    %c0_i32_0 = arith.constant 0 : i32
    %c0_i32_1 = arith.constant 0 : i32
    return %c0_i32, %c0_i32_0 : i32, i32
  }
  func.func @transform_3(%arg0: i32) -> (i32, i32) {
    %c0_i32 = arith.constant 0 : i32
    %c0_i32_0 = arith.constant 0 : i32
    %c0_i32_1 = arith.constant 0 : i32
    return %c0_i32, %c0_i32_0 : i32, i32
  }
  func.func @transform_4(%arg0: i32) -> (i32, i32) {
    %c0_i32 = arith.constant 0 : i32
    %c0_i32_0 = arith.constant 0 : i32
    %c0_i32_1 = arith.constant 0 : i32
    return %c0_i32, %c0_i32_0 : i32, i32
  }
  func.func @transform_5(%arg0: i32) -> (i32, i32) {
    %c0_i32 = arith.constant 0 : i32
    %c0_i32_0 = arith.constant 0 : i32
    return %arg0, %c0_i32 : i32, i32
  }
}

module attributes {stable_mosaic.version = 11 : i64} {
  func.func @_fused_gemm_kernel(%arg0: i32, %arg1: memref<32x288xbf16, #tpu.memory_space<vmem>>, %arg2: memref<288x8xbf16, #tpu.memory_space<vmem>>, %arg3: memref<32x8xbf16, #tpu.memory_space<vmem>>) attributes {dimension_semantics = [#tpu.dimension_semantics<parallel>], iteration_bounds = array<i64: 1>, scalar_prefetch = 0 : i64, scratch_operands = 0 : i64, tpu.core_type = #tpu.core_type<tc>, window_params = [{transform_indices = @transform_0, window_bounds = array<i64: 32, 288>}, {pipeline_mode = #tpu.pipeline_mode<synchronous>, transform_indices = @transform_1, window_bounds = array<i64: 288, 8>}, {transform_indices = @transform_2, window_bounds = array<i64: 32, 8>}]} {
    %c0 = arith.constant 0 : index
    %c0_0 = arith.constant 0 : index
    %0 = vector.load %arg1[%c0, %c0_0] : memref<32x288xbf16, #tpu.memory_space<vmem>>, vector<32x288xbf16>
    %c0_1 = arith.constant 0 : index
    %c0_2 = arith.constant 0 : index
    %1 = vector.load %arg2[%c0_1, %c0_2] : memref<288x8xbf16, #tpu.memory_space<vmem>>, vector<288x8xbf16>
    %cst = arith.constant dense<0.000000e+00> : vector<32x8xf32>
    %2 = tpu.matmul %0, %1, %cst {dimension_numbers = #tpu.dot_dimension_numbers<[1], [0], [0], [1], [0, 0, 1, 1], [], []>} : vector<32x288xbf16>, vector<288x8xbf16>, vector<32x8xf32> -> vector<32x8xf32>
    %3 = arith.truncf %2 : vector<32x8xf32> to vector<32x8xbf16>
    %c0_3 = arith.constant 0 : index
    %c0_4 = arith.constant 0 : index
    %4 = vector.load %arg3[%c0_3, %c0_4] : memref<32x8xbf16, #tpu.memory_space<vmem>>, vector<32x8xbf16>
    tpu.vector_store %arg3[%c0_3, %c0_4], %3 {strides = array<i32>} : memref<32x8xbf16, #tpu.memory_space<vmem>>, vector<32x8xbf16>,
    return
  }
  func.func @transform_0(%arg0: i32) -> (i32, i32) {
    %c0_i32 = arith.constant 0 : i32
    %c0_i32_0 = arith.constant 0 : i32
    return %arg0, %c0_i32 : i32, i32
  }
  func.func @transform_1(%arg0: i32) -> (i32, i32) {
    %c0_i32 = arith.constant 0 : i32
    %c0_i32_0 = arith.constant 0 : i32
    %c0_i32_1 = arith.constant 0 : i32
    return %c0_i32, %c0_i32_0 : i32, i32
  }
  func.func @transform_2(%arg0: i32) -> (i32, i32) {
    %c0_i32 = arith.constant 0 : i32
    %c0_i32_0 = arith.constant 0 : i32
    return %arg0, %c0_i32 : i32, i32
  }
}

module attributes {stable_mosaic.version = 11 : i64} {
  func.func @_fused_gemm_kernel(%arg0: i32, %arg1: memref<32x24xbf16, #tpu.memory_space<vmem>>, %arg2: memref<24x32xbf16, #tpu.memory_space<vmem>>, %arg3: memref<1x24xf32, #tpu.memory_space<vmem>>, %arg4: memref<1x24xf32, #tpu.memory_space<vmem>>, %arg5: memref<1x32xf32, #tpu.memory_space<vmem>>, %arg6: memref<32x32xbf16, #tpu.memory_space<vmem>>) attributes {dimension_semantics = [#tpu.dimension_semantics<parallel>], iteration_bounds = array<i64: 1>, scalar_prefetch = 0 : i64, scratch_operands = 0 : i64, tpu.core_type = #tpu.core_type<tc>, window_params = [{transform_indices = @transform_0, window_bounds = array<i64: 32, 24>}, {pipeline_mode = #tpu.pipeline_mode<synchronous>, transform_indices = @transform_1, window_bounds = array<i64: 24, 32>}, {pipeline_mode = #tpu.pipeline_mode<synchronous>, transform_indices = @transform_2, window_bounds = array<i64: 1, 24>}, {pipeline_mode = #tpu.pipeline_mode<synchronous>, transform_indices = @transform_3, window_bounds = array<i64: 1, 24>}, {pipeline_mode = #tpu.pipeline_mode<synchronous>, transform_indices = @transform_4, window_bounds = array<i64: 1, 32>}, {transform_indices = @transform_5, window_bounds = array<i64: 32, 32>}]} {
    %c0 = arith.constant 0 : index
    %c0_0 = arith.constant 0 : index
    %0 = vector.load %arg1[%c0, %c0_0] : memref<32x24xbf16, #tpu.memory_space<vmem>>, vector<32x24xbf16>
    %1 = arith.extf %0 : vector<32x24xbf16> to vector<32x24xf32>
    %c0_1 = arith.constant 0 : index
    %c0_2 = arith.constant 0 : index
    %2 = vector.load %arg3[%c0_1, %c0_2] : memref<1x24xf32, #tpu.memory_space<vmem>>, vector<1x24xf32>
    %3 = vector.broadcast %2 : vector<1x24xf32> to vector<32x24xf32>
    %4 = arith.mulf %1, %3 : vector<32x24xf32>
    %c0_3 = arith.constant 0 : index
    %c0_4 = arith.constant 0 : index
    %5 = vector.load %arg4[%c0_3, %c0_4] : memref<1x24xf32, #tpu.memory_space<vmem>>, vector<1x24xf32>
    %6 = vector.broadcast %5 : vector<1x24xf32> to vector<32x24xf32>
    %7 = arith.addf %4, %6 : vector<32x24xf32>
    %cst = arith.constant 0.000000e+00 : f32
    %8 = vector.broadcast %cst : f32 to vector<32x24xf32>
    %9 = arith.maximumf %7, %8 : vector<32x24xf32>
    %10 = arith.truncf %9 : vector<32x24xf32> to vector<32x24xbf16>
    %c0_5 = arith.constant 0 : index
    %c0_6 = arith.constant 0 : index
    %11 = vector.load %arg2[%c0_5, %c0_6] : memref<24x32xbf16, #tpu.memory_space<vmem>>, vector<24x32xbf16>
    %cst_7 = arith.constant dense<0.000000e+00> : vector<32x32xf32>
    %12 = tpu.matmul %10, %11, %cst_7 {dimension_numbers = #tpu.dot_dimension_numbers<[1], [0], [0], [1], [0, 0, 1, 1], [], []>} : vector<32x24xbf16>, vector<24x32xbf16>, vector<32x32xf32> -> vector<32x32xf32>
    %c0_8 = arith.constant 0 : index
    %c0_9 = arith.constant 0 : index
    %13 = vector.load %arg5[%c0_8, %c0_9] : memref<1x32xf32, #tpu.memory_space<vmem>>, vector<1x32xf32>
    %14 = vector.broadcast %13 : vector<1x32xf32> to vector<32x32xf32>
    %15 = arith.addf %12, %14 : vector<32x32xf32>
    %cst_10 = arith.constant 0.000000e+00 : f32
    %16 = vector.broadcast %cst_10 : f32 to vector<32x32xf32>
    %17 = arith.maximumf %15, %16 : vector<32x32xf32>
    %18 = arith.truncf %17 : vector<32x32xf32> to vector<32x32xbf16>
    %c0_11 = arith.constant 0 : index
    %c0_12 = arith.constant 0 : index
    %19 = vector.load %arg6[%c0_11, %c0_12] : memref<32x32xbf16, #tpu.memory_space<vmem>>, vector<32x32xbf16>
    tpu.vector_store %arg6[%c0_11, %c0_12], %18 {strides = array<i32>} : memref<32x32xbf16, #tpu.memory_space<vmem>>, vector<32x32xbf16>,
    return
  }
  func.func @transform_0(%arg0: i32) -> (i32, i32) {
    %c0_i32 = arith.constant 0 : i32
    %c0_i32_0 = arith.constant 0 : i32
    return %arg0, %c0_i32 : i32, i32
  }
  func.func @transform_1(%arg0: i32) -> (i32, i32) {
    %c0_i32 = arith.constant 0 : i32
    %c0_i32_0 = arith.constant 0 : i32
    %c0_i32_1 = arith.constant 0 : i32
    return %c0_i32, %c0_i32_0 : i32, i32
  }
  func.func @transform_2(%arg0: i32) -> (i32, i32) {
    %c0_i32 = arith.constant 0 : i32
    %c0_i32_0 = arith.constant 0 : i32
    %c0_i32_1 = arith.constant 0 : i32
    return %c0_i32, %c0_i32_0 : i32, i32
  }
  func.func @transform_3(%arg0: i32) -> (i32, i32) {
    %c0_i32 = arith.constant 0 : i32
    %c0_i32_0 = arith.constant 0 : i32
    %c0_i32_1 = arith.constant 0 : i32
    return %c0_i32, %c0_i32_0 : i32, i32
  }
  func.func @transform_4(%arg0: i32) -> (i32, i32) {
    %c0_i32 = arith.constant 0 : i32
    %c0_i32_0 = arith.constant 0 : i32
    %c0_i32_1 = arith.constant 0 : i32
    return %c0_i32, %c0_i32_0 : i32, i32
  }
  func.func @transform_5(%arg0: i32) -> (i32, i32) {
    %c0_i32 = arith.constant 0 : i32
    %c0_i32_0 = arith.constant 0 : i32
    return %arg0, %c0_i32 : i32, i32
  }
}

module attributes {stable_mosaic.version = 11 : i64} {
  func.func @_fused_gemm_kernel(%arg0: i32, %arg1: memref<32x32xbf16, #tpu.memory_space<vmem>>, %arg2: memref<32x16xbf16, #tpu.memory_space<vmem>>, %arg3: memref<1x32xf32, #tpu.memory_space<vmem>>, %arg4: memref<1x32xf32, #tpu.memory_space<vmem>>, %arg5: memref<32x16xbf16, #tpu.memory_space<vmem>>) attributes {dimension_semantics = [#tpu.dimension_semantics<parallel>], iteration_bounds = array<i64: 1>, scalar_prefetch = 0 : i64, scratch_operands = 0 : i64, tpu.core_type = #tpu.core_type<tc>, window_params = [{transform_indices = @transform_0, window_bounds = array<i64: 32, 32>}, {pipeline_mode = #tpu.pipeline_mode<synchronous>, transform_indices = @transform_1, window_bounds = array<i64: 32, 16>}, {pipeline_mode = #tpu.pipeline_mode<synchronous>, transform_indices = @transform_2, window_bounds = array<i64: 1, 32>}, {pipeline_mode = #tpu.pipeline_mode<synchronous>, transform_indices = @transform_3, window_bounds = array<i64: 1, 32>}, {transform_indices = @transform_4, window_bounds = array<i64: 32, 16>}]} {
    %c0 = arith.constant 0 : index
    %c0_0 = arith.constant 0 : index
    %0 = vector.load %arg1[%c0, %c0_0] : memref<32x32xbf16, #tpu.memory_space<vmem>>, vector<32x32xbf16>
    %1 = arith.extf %0 : vector<32x32xbf16> to vector<32x32xf32>
    %c0_1 = arith.constant 0 : index
    %c0_2 = arith.constant 0 : index
    %2 = vector.load %arg3[%c0_1, %c0_2] : memref<1x32xf32, #tpu.memory_space<vmem>>, vector<1x32xf32>
    %3 = vector.broadcast %2 : vector<1x32xf32> to vector<32x32xf32>
    %4 = arith.mulf %1, %3 : vector<32x32xf32>
    %c0_3 = arith.constant 0 : index
    %c0_4 = arith.constant 0 : index
    %5 = vector.load %arg4[%c0_3, %c0_4] : memref<1x32xf32, #tpu.memory_space<vmem>>, vector<1x32xf32>
    %6 = vector.broadcast %5 : vector<1x32xf32> to vector<32x32xf32>
    %7 = arith.addf %4, %6 : vector<32x32xf32>
    %cst = arith.constant 0.000000e+00 : f32
    %8 = vector.broadcast %cst : f32 to vector<32x32xf32>
    %9 = arith.maximumf %7, %8 : vector<32x32xf32>
    %10 = arith.truncf %9 : vector<32x32xf32> to vector<32x32xbf16>
    %c0_5 = arith.constant 0 : index
    %c0_6 = arith.constant 0 : index
    %11 = vector.load %arg2[%c0_5, %c0_6] : memref<32x16xbf16, #tpu.memory_space<vmem>>, vector<32x16xbf16>
    %cst_7 = arith.constant dense<0.000000e+00> : vector<32x16xf32>
    %12 = tpu.matmul %10, %11, %cst_7 {dimension_numbers = #tpu.dot_dimension_numbers<[1], [0], [0], [1], [0, 0, 1, 1], [], []>} : vector<32x32xbf16>, vector<32x16xbf16>, vector<32x16xf32> -> vector<32x16xf32>
    %13 = arith.truncf %12 : vector<32x16xf32> to vector<32x16xbf16>
    %c0_8 = arith.constant 0 : index
    %c0_9 = arith.constant 0 : index
    %14 = vector.load %arg5[%c0_8, %c0_9] : memref<32x16xbf16, #tpu.memory_space<vmem>>, vector<32x16xbf16>
    tpu.vector_store %arg5[%c0_8, %c0_9], %13 {strides = array<i32>} : memref<32x16xbf16, #tpu.memory_space<vmem>>, vector<32x16xbf16>,
    return
  }
  func.func @transform_0(%arg0: i32) -> (i32, i32) {
    %c0_i32 = arith.constant 0 : i32
    %c0_i32_0 = arith.constant 0 : i32
    return %arg0, %c0_i32 : i32, i32
  }
  func.func @transform_1(%arg0: i32) -> (i32, i32) {
    %c0_i32 = arith.constant 0 : i32
    %c0_i32_0 = arith.constant 0 : i32
    %c0_i32_1 = arith.constant 0 : i32
    return %c0_i32, %c0_i32_0 : i32, i32
  }
  func.func @transform_2(%arg0: i32) -> (i32, i32) {
    %c0_i32 = arith.constant 0 : i32
    %c0_i32_0 = arith.constant 0 : i32
    %c0_i32_1 = arith.constant 0 : i32
    return %c0_i32, %c0_i32_0 : i32, i32
  }
  func.func @transform_3(%arg0: i32) -> (i32, i32) {
    %c0_i32 = arith.constant 0 : i32
    %c0_i32_0 = arith.constant 0 : i32
    %c0_i32_1 = arith.constant 0 : i32
    return %c0_i32, %c0_i32_0 : i32, i32
  }
  func.func @transform_4(%arg0: i32) -> (i32, i32) {
    %c0_i32 = arith.constant 0 : i32
    %c0_i32_0 = arith.constant 0 : i32
    return %arg0, %c0_i32 : i32, i32
  }
}

module attributes {stable_mosaic.version = 11 : i64} {
  func.func @_fused_gemm_kernel(%arg0: i32, %arg1: memref<8x16xbf16, #tpu.memory_space<vmem>>, %arg2: memref<16x32xbf16, #tpu.memory_space<vmem>>, %arg3: memref<1x16xf32, #tpu.memory_space<vmem>>, %arg4: memref<1x16xf32, #tpu.memory_space<vmem>>, %arg5: memref<1x32xf32, #tpu.memory_space<vmem>>, %arg6: memref<8x32xbf16, #tpu.memory_space<vmem>>) attributes {dimension_semantics = [#tpu.dimension_semantics<parallel>], iteration_bounds = array<i64: 1>, scalar_prefetch = 0 : i64, scratch_operands = 0 : i64, tpu.core_type = #tpu.core_type<tc>, window_params = [{transform_indices = @transform_0, window_bounds = array<i64: 8, 16>}, {pipeline_mode = #tpu.pipeline_mode<synchronous>, transform_indices = @transform_1, window_bounds = array<i64: 16, 32>}, {pipeline_mode = #tpu.pipeline_mode<synchronous>, transform_indices = @transform_2, window_bounds = array<i64: 1, 16>}, {pipeline_mode = #tpu.pipeline_mode<synchronous>, transform_indices = @transform_3, window_bounds = array<i64: 1, 16>}, {pipeline_mode = #tpu.pipeline_mode<synchronous>, transform_indices = @transform_4, window_bounds = array<i64: 1, 32>}, {transform_indices = @transform_5, window_bounds = array<i64: 8, 32>}]} {
    %c0 = arith.constant 0 : index
    %c0_0 = arith.constant 0 : index
    %0 = vector.load %arg1[%c0, %c0_0] : memref<8x16xbf16, #tpu.memory_space<vmem>>, vector<8x16xbf16>
    %1 = arith.extf %0 : vector<8x16xbf16> to vector<8x16xf32>
    %c0_1 = arith.constant 0 : index
    %c0_2 = arith.constant 0 : index
    %2 = vector.load %arg3[%c0_1, %c0_2] : memref<1x16xf32, #tpu.memory_space<vmem>>, vector<1x16xf32>
    %3 = vector.broadcast %2 : vector<1x16xf32> to vector<8x16xf32>
    %4 = arith.mulf %1, %3 : vector<8x16xf32>
    %c0_3 = arith.constant 0 : index
    %c0_4 = arith.constant 0 : index
    %5 = vector.load %arg4[%c0_3, %c0_4] : memref<1x16xf32, #tpu.memory_space<vmem>>, vector<1x16xf32>
    %6 = vector.broadcast %5 : vector<1x16xf32> to vector<8x16xf32>
    %7 = arith.addf %4, %6 : vector<8x16xf32>
    %cst = arith.constant 0.000000e+00 : f32
    %8 = vector.broadcast %cst : f32 to vector<8x16xf32>
    %9 = arith.maximumf %7, %8 : vector<8x16xf32>
    %10 = arith.truncf %9 : vector<8x16xf32> to vector<8x16xbf16>
    %c0_5 = arith.constant 0 : index
    %c0_6 = arith.constant 0 : index
    %11 = vector.load %arg2[%c0_5, %c0_6] : memref<16x32xbf16, #tpu.memory_space<vmem>>, vector<16x32xbf16>
    %cst_7 = arith.constant dense<0.000000e+00> : vector<8x32xf32>
    %12 = tpu.matmul %10, %11, %cst_7 {dimension_numbers = #tpu.dot_dimension_numbers<[1], [0], [0], [1], [0, 0, 1, 1], [], []>} : vector<8x16xbf16>, vector<16x32xbf16>, vector<8x32xf32> -> vector<8x32xf32>
    %c0_8 = arith.constant 0 : index
    %c0_9 = arith.constant 0 : index
    %13 = vector.load %arg5[%c0_8, %c0_9] : memref<1x32xf32, #tpu.memory_space<vmem>>, vector<1x32xf32>
    %14 = vector.broadcast %13 : vector<1x32xf32> to vector<8x32xf32>
    %15 = arith.addf %12, %14 : vector<8x32xf32>
    %cst_10 = arith.constant 0.000000e+00 : f32
    %16 = vector.broadcast %cst_10 : f32 to vector<8x32xf32>
    %17 = arith.maximumf %15, %16 : vector<8x32xf32>
    %18 = arith.truncf %17 : vector<8x32xf32> to vector<8x32xbf16>
    %c0_11 = arith.constant 0 : index
    %c0_12 = arith.constant 0 : index
    %19 = vector.load %arg6[%c0_11, %c0_12] : memref<8x32xbf16, #tpu.memory_space<vmem>>, vector<8x32xbf16>
    tpu.vector_store %arg6[%c0_11, %c0_12], %18 {strides = array<i32>} : memref<8x32xbf16, #tpu.memory_space<vmem>>, vector<8x32xbf16>,
    return
  }
  func.func @transform_0(%arg0: i32) -> (i32, i32) {
    %c0_i32 = arith.constant 0 : i32
    %c0_i32_0 = arith.constant 0 : i32
    return %arg0, %c0_i32 : i32, i32
  }
  func.func @transform_1(%arg0: i32) -> (i32, i32) {
    %c0_i32 = arith.constant 0 : i32
    %c0_i32_0 = arith.constant 0 : i32
    %c0_i32_1 = arith.constant 0 : i32
    return %c0_i32, %c0_i32_0 : i32, i32
  }
  func.func @transform_2(%arg0: i32) -> (i32, i32) {
    %c0_i32 = arith.constant 0 : i32
    %c0_i32_0 = arith.constant 0 : i32
    %c0_i32_1 = arith.constant 0 : i32
    return %c0_i32, %c0_i32_0 : i32, i32
  }
  func.func @transform_3(%arg0: i32) -> (i32, i32) {
    %c0_i32 = arith.constant 0 : i32
    %c0_i32_0 = arith.constant 0 : i32
    %c0_i32_1 = arith.constant 0 : i32
    return %c0_i32, %c0_i32_0 : i32, i32
  }
  func.func @transform_4(%arg0: i32) -> (i32, i32) {
    %c0_i32 = arith.constant 0 : i32
    %c0_i32_0 = arith.constant 0 : i32
    %c0_i32_1 = arith.constant 0 : i32
    return %c0_i32, %c0_i32_0 : i32, i32
  }
  func.func @transform_5(%arg0: i32) -> (i32, i32) {
    %c0_i32 = arith.constant 0 : i32
    %c0_i32_0 = arith.constant 0 : i32
    return %arg0, %c0_i32 : i32, i32
  }
}

module attributes {stable_mosaic.version = 11 : i64} {
  func.func @_fused_gemm_kernel(%arg0: i32, %arg1: memref<8x288xbf16, #tpu.memory_space<vmem>>, %arg2: memref<288x8xbf16, #tpu.memory_space<vmem>>, %arg3: memref<8x8xbf16, #tpu.memory_space<vmem>>) attributes {dimension_semantics = [#tpu.dimension_semantics<parallel>], iteration_bounds = array<i64: 1>, scalar_prefetch = 0 : i64, scratch_operands = 0 : i64, tpu.core_type = #tpu.core_type<tc>, window_params = [{transform_indices = @transform_0, window_bounds = array<i64: 8, 288>}, {pipeline_mode = #tpu.pipeline_mode<synchronous>, transform_indices = @transform_1, window_bounds = array<i64: 288, 8>}, {transform_indices = @transform_2, window_bounds = array<i64: 8, 8>}]} {
    %c0 = arith.constant 0 : index
    %c0_0 = arith.constant 0 : index
    %0 = vector.load %arg1[%c0, %c0_0] : memref<8x288xbf16, #tpu.memory_space<vmem>>, vector<8x288xbf16>
    %c0_1 = arith.constant 0 : index
    %c0_2 = arith.constant 0 : index
    %1 = vector.load %arg2[%c0_1, %c0_2] : memref<288x8xbf16, #tpu.memory_space<vmem>>, vector<288x8xbf16>
    %cst = arith.constant dense<0.000000e+00> : vector<8x8xf32>
    %2 = tpu.matmul %0, %1, %cst {dimension_numbers = #tpu.dot_dimension_numbers<[1], [0], [0], [1], [0, 0, 1, 1], [], []>} : vector<8x288xbf16>, vector<288x8xbf16>, vector<8x8xf32> -> vector<8x8xf32>
    %3 = arith.truncf %2 : vector<8x8xf32> to vector<8x8xbf16>
    %c0_3 = arith.constant 0 : index
    %c0_4 = arith.constant 0 : index
    %4 = vector.load %arg3[%c0_3, %c0_4] : memref<8x8xbf16, #tpu.memory_space<vmem>>, vector<8x8xbf16>
    tpu.vector_store %arg3[%c0_3, %c0_4], %3 {strides = array<i32>} : memref<8x8xbf16, #tpu.memory_space<vmem>>, vector<8x8xbf16>,
    return
  }
  func.func @transform_0(%arg0: i32) -> (i32, i32) {
    %c0_i32 = arith.constant 0 : i32
    %c0_i32_0 = arith.constant 0 : i32
    return %arg0, %c0_i32 : i32, i32
  }
  func.func @transform_1(%arg0: i32) -> (i32, i32) {
    %c0_i32 = arith.constant 0 : i32
    %c0_i32_0 = arith.constant 0 : i32
    %c0_i32_1 = arith.constant 0 : i32
    return %c0_i32, %c0_i32_0 : i32, i32
  }
  func.func @transform_2(%arg0: i32) -> (i32, i32) {
    %c0_i32 = arith.constant 0 : i32
    %c0_i32_0 = arith.constant 0 : i32
    return %arg0, %c0_i32 : i32, i32
  }
}

module attributes {stable_mosaic.version = 11 : i64} {
  func.func @_fused_gemm_kernel(%arg0: i32, %arg1: memref<8x24xbf16, #tpu.memory_space<vmem>>, %arg2: memref<24x32xbf16, #tpu.memory_space<vmem>>, %arg3: memref<1x24xf32, #tpu.memory_space<vmem>>, %arg4: memref<1x24xf32, #tpu.memory_space<vmem>>, %arg5: memref<1x32xf32, #tpu.memory_space<vmem>>, %arg6: memref<8x32xbf16, #tpu.memory_space<vmem>>) attributes {dimension_semantics = [#tpu.dimension_semantics<parallel>], iteration_bounds = array<i64: 1>, scalar_prefetch = 0 : i64, scratch_operands = 0 : i64, tpu.core_type = #tpu.core_type<tc>, window_params = [{transform_indices = @transform_0, window_bounds = array<i64: 8, 24>}, {pipeline_mode = #tpu.pipeline_mode<synchronous>, transform_indices = @transform_1, window_bounds = array<i64: 24, 32>}, {pipeline_mode = #tpu.pipeline_mode<synchronous>, transform_indices = @transform_2, window_bounds = array<i64: 1, 24>}, {pipeline_mode = #tpu.pipeline_mode<synchronous>, transform_indices = @transform_3, window_bounds = array<i64: 1, 24>}, {pipeline_mode = #tpu.pipeline_mode<synchronous>, transform_indices = @transform_4, window_bounds = array<i64: 1, 32>}, {transform_indices = @transform_5, window_bounds = array<i64: 8, 32>}]} {
    %c0 = arith.constant 0 : index
    %c0_0 = arith.constant 0 : index
    %0 = vector.load %arg1[%c0, %c0_0] : memref<8x24xbf16, #tpu.memory_space<vmem>>, vector<8x24xbf16>
    %1 = arith.extf %0 : vector<8x24xbf16> to vector<8x24xf32>
    %c0_1 = arith.constant 0 : index
    %c0_2 = arith.constant 0 : index
    %2 = vector.load %arg3[%c0_1, %c0_2] : memref<1x24xf32, #tpu.memory_space<vmem>>, vector<1x24xf32>
    %3 = vector.broadcast %2 : vector<1x24xf32> to vector<8x24xf32>
    %4 = arith.mulf %1, %3 : vector<8x24xf32>
    %c0_3 = arith.constant 0 : index
    %c0_4 = arith.constant 0 : index
    %5 = vector.load %arg4[%c0_3, %c0_4] : memref<1x24xf32, #tpu.memory_space<vmem>>, vector<1x24xf32>
    %6 = vector.broadcast %5 : vector<1x24xf32> to vector<8x24xf32>
    %7 = arith.addf %4, %6 : vector<8x24xf32>
    %cst = arith.constant 0.000000e+00 : f32
    %8 = vector.broadcast %cst : f32 to vector<8x24xf32>
    %9 = arith.maximumf %7, %8 : vector<8x24xf32>
    %10 = arith.truncf %9 : vector<8x24xf32> to vector<8x24xbf16>
    %c0_5 = arith.constant 0 : index
    %c0_6 = arith.constant 0 : index
    %11 = vector.load %arg2[%c0_5, %c0_6] : memref<24x32xbf16, #tpu.memory_space<vmem>>, vector<24x32xbf16>
    %cst_7 = arith.constant dense<0.000000e+00> : vector<8x32xf32>
    %12 = tpu.matmul %10, %11, %cst_7 {dimension_numbers = #tpu.dot_dimension_numbers<[1], [0], [0], [1], [0, 0, 1, 1], [], []>} : vector<8x24xbf16>, vector<24x32xbf16>, vector<8x32xf32> -> vector<8x32xf32>
    %c0_8 = arith.constant 0 : index
    %c0_9 = arith.constant 0 : index
    %13 = vector.load %arg5[%c0_8, %c0_9] : memref<1x32xf32, #tpu.memory_space<vmem>>, vector<1x32xf32>
    %14 = vector.broadcast %13 : vector<1x32xf32> to vector<8x32xf32>
    %15 = arith.addf %12, %14 : vector<8x32xf32>
    %cst_10 = arith.constant 0.000000e+00 : f32
    %16 = vector.broadcast %cst_10 : f32 to vector<8x32xf32>
    %17 = arith.maximumf %15, %16 : vector<8x32xf32>
    %18 = arith.truncf %17 : vector<8x32xf32> to vector<8x32xbf16>
    %c0_11 = arith.constant 0 : index
    %c0_12 = arith.constant 0 : index
    %19 = vector.load %arg6[%c0_11, %c0_12] : memref<8x32xbf16, #tpu.memory_space<vmem>>, vector<8x32xbf16>
    tpu.vector_store %arg6[%c0_11, %c0_12], %18 {strides = array<i32>} : memref<8x32xbf16, #tpu.memory_space<vmem>>, vector<8x32xbf16>,
    return
  }
  func.func @transform_0(%arg0: i32) -> (i32, i32) {
    %c0_i32 = arith.constant 0 : i32
    %c0_i32_0 = arith.constant 0 : i32
    return %arg0, %c0_i32 : i32, i32
  }
  func.func @transform_1(%arg0: i32) -> (i32, i32) {
    %c0_i32 = arith.constant 0 : i32
    %c0_i32_0 = arith.constant 0 : i32
    %c0_i32_1 = arith.constant 0 : i32
    return %c0_i32, %c0_i32_0 : i32, i32
  }
  func.func @transform_2(%arg0: i32) -> (i32, i32) {
    %c0_i32 = arith.constant 0 : i32
    %c0_i32_0 = arith.constant 0 : i32
    %c0_i32_1 = arith.constant 0 : i32
    return %c0_i32, %c0_i32_0 : i32, i32
  }
  func.func @transform_3(%arg0: i32) -> (i32, i32) {
    %c0_i32 = arith.constant 0 : i32
    %c0_i32_0 = arith.constant 0 : i32
    %c0_i32_1 = arith.constant 0 : i32
    return %c0_i32, %c0_i32_0 : i32, i32
  }
  func.func @transform_4(%arg0: i32) -> (i32, i32) {
    %c0_i32 = arith.constant 0 : i32
    %c0_i32_0 = arith.constant 0 : i32
    %c0_i32_1 = arith.constant 0 : i32
    return %c0_i32, %c0_i32_0 : i32, i32
  }
  func.func @transform_5(%arg0: i32) -> (i32, i32) {
    %c0_i32 = arith.constant 0 : i32
    %c0_i32_0 = arith.constant 0 : i32
    return %arg0, %c0_i32 : i32, i32
  }
}

module attributes {stable_mosaic.version = 11 : i64} {
  func.func @_gap_bn_relu_kernel(%arg0: i32, %arg1: memref<2x4x32xbf16, #tpu.memory_space<vmem>>, %arg2: memref<1x1x32xf32, #tpu.memory_space<vmem>>, %arg3: memref<1x1x32xf32, #tpu.memory_space<vmem>>, %arg4: memref<2x32xf32, #tpu.memory_space<vmem>>) attributes {dimension_semantics = [#tpu.dimension_semantics<arbitrary>], iteration_bounds = array<i64: 1>, scalar_prefetch = 0 : i64, scratch_operands = 0 : i64, tpu.core_type = #tpu.core_type<tc>, window_params = [{pipeline_mode = #tpu.pipeline_mode<synchronous>, transform_indices = @transform_0, window_bounds = array<i64: 2, 4, 32>}, {pipeline_mode = #tpu.pipeline_mode<synchronous>, transform_indices = @transform_1, window_bounds = array<i64: 1, 1, 32>}, {pipeline_mode = #tpu.pipeline_mode<synchronous>, transform_indices = @transform_2, window_bounds = array<i64: 1, 1, 32>}, {pipeline_mode = #tpu.pipeline_mode<synchronous>, transform_indices = @transform_3, window_bounds = array<i64: 2, 32>}]} {
    %c0 = arith.constant 0 : index
    %c0_0 = arith.constant 0 : index
    %c0_1 = arith.constant 0 : index
    %0 = vector.load %arg1[%c0, %c0_0, %c0_1] : memref<2x4x32xbf16, #tpu.memory_space<vmem>>, vector<2x4x32xbf16>
    %1 = arith.extf %0 : vector<2x4x32xbf16> to vector<2x4x32xf32>
    %c0_2 = arith.constant 0 : index
    %c0_3 = arith.constant 0 : index
    %c0_4 = arith.constant 0 : index
    %2 = vector.load %arg2[%c0_2, %c0_3, %c0_4] : memref<1x1x32xf32, #tpu.memory_space<vmem>>, vector<1x1x32xf32>
    %3 = vector.broadcast %2 : vector<1x1x32xf32> to vector<2x4x32xf32>
    %4 = arith.mulf %1, %3 : vector<2x4x32xf32>
    %c0_5 = arith.constant 0 : index
    %c0_6 = arith.constant 0 : index
    %c0_7 = arith.constant 0 : index
    %5 = vector.load %arg3[%c0_5, %c0_6, %c0_7] : memref<1x1x32xf32, #tpu.memory_space<vmem>>, vector<1x1x32xf32>
    %6 = vector.broadcast %5 : vector<1x1x32xf32> to vector<2x4x32xf32>
    %7 = arith.addf %4, %6 : vector<2x4x32xf32>
    %cst = arith.constant 0.000000e+00 : f32
    %8 = vector.broadcast %cst : f32 to vector<2x4x32xf32>
    %9 = arith.maximumf %7, %8 : vector<2x4x32xf32>
    %cst_8 = arith.constant dense<0.000000e+00> : vector<2x32xf32>
    %10 = vector.multi_reduction <add>, %9, %cst_8 [1] : vector<2x4x32xf32> to vector<2x32xf32>
    %cst_9 = arith.constant 4.000000e+00 : f32
    %11 = vector.broadcast %cst_9 : f32 to vector<2x32xf32>
    %12 = arith.divf %10, %11 : vector<2x32xf32>
    %c0_10 = arith.constant 0 : index
    %c0_11 = arith.constant 0 : index
    %13 = vector.load %arg4[%c0_10, %c0_11] : memref<2x32xf32, #tpu.memory_space<vmem>>, vector<2x32xf32>
    tpu.vector_store %arg4[%c0_10, %c0_11], %12 {strides = array<i32>} : memref<2x32xf32, #tpu.memory_space<vmem>>, vector<2x32xf32>,
    return
  }
  func.func @transform_0(%arg0: i32) -> (i32, i32, i32) {
    %c0_i32 = arith.constant 0 : i32
    %c0_i32_0 = arith.constant 0 : i32
    %c0_i32_1 = arith.constant 0 : i32
    %c0_i32_2 = arith.constant 0 : i32
    return %c0_i32, %c0_i32_0, %c0_i32_1 : i32, i32, i32
  }
  func.func @transform_1(%arg0: i32) -> (i32, i32, i32) {
    %c0_i32 = arith.constant 0 : i32
    %c0_i32_0 = arith.constant 0 : i32
    %c0_i32_1 = arith.constant 0 : i32
    %c0_i32_2 = arith.constant 0 : i32
    return %c0_i32, %c0_i32_0, %c0_i32_1 : i32, i32, i32
  }
  func.func @transform_2(%arg0: i32) -> (i32, i32, i32) {
    %c0_i32 = arith.constant 0 : i32
    %c0_i32_0 = arith.constant 0 : i32
    %c0_i32_1 = arith.constant 0 : i32
    %c0_i32_2 = arith.constant 0 : i32
    return %c0_i32, %c0_i32_0, %c0_i32_1 : i32, i32, i32
  }
  func.func @transform_3(%arg0: i32) -> (i32, i32) {
    %c0_i32 = arith.constant 0 : i32
    %c0_i32_0 = arith.constant 0 : i32
    %c0_i32_1 = arith.constant 0 : i32
    return %c0_i32, %c0_i32_0 : i32, i32
  }
}

</mosaic_0001>

<bundles_post_ra>
// kernel: tile.32
= control target key start
LH: loop header
LB: loop body
LE: loop exit
PB: predicated region body
PF: predicated region fallthrough
CT: control target
= control target key end

     0   :  { %s58_s0 = inlined_call_operand.vmem [shape: f32[3], index: 0, kind: input, shape index: {}]   ;;  %s59_s1 = inlined_call_operand.vmem [shape: f32[49,3], index: 1, kind: output, shape index: {}]  }
   0x1   :  { %v4_v0 = vld [vmem:[%s58_s0] ss:$0 sm:$0xff] }
   0x2   :  { %5 = vst [vmem:[%s59_s1] sm:$0xff] %v4_v0  ;;  %18 = vst [vmem:[%s59_s1 + $0x8] sm:$0xff] %v4_v0 }
   0x3   :  { %19 = vst [vmem:[%s59_s1 + $0x10] sm:$0xff] %v4_v0  ;;  %20 = vst [vmem:[%s59_s1 + $0x18] sm:$0xff] %v4_v0 }
   0x4   :  { %21 = vst [vmem:[%s59_s1 + $0x20] sm:$0xff] %v4_v0  ;;  %22 = vst [vmem:[%s59_s1 + $0x28] sm:$0xff] %v4_v0 }
   0x5   :  { %23 = vst [vmem:[%s59_s1 + $0x30] sm:$0xff] %v4_v0 }

// kernel: tile.36
= control target key start
LH: loop header
LB: loop body
LE: loop exit
PB: predicated region body
PF: predicated region fallthrough
CT: control target
= control target key end

     0   :  { %vm9_vm0 = vcmask 15360   ;;  %s415_s10 = smov 120   ;;  %s416_s15 = smov 126   ;;  %vm3_vm1 = vcmask 23552   ;;  %vm13_vm2 = vcmask 7168   ;;  %vm16_vm3 = vcmask 1048560   ;;  %s629_s0 = inlined_call_operand.vmem [shape: f32[49,3], index: 0, kind: input, shape index: {}]   ;;  %s630_s1 = inlined_call_operand.vmem [shape: f32[1,147], index: 1, kind: output, shape index: {}]  }
   0x1   :  { %v320_v0 = vld [vmem:[%s629_s0 + $0x28] sm:$0x1]   ;;  %v317_v1 = vld [vmem:[%s629_s0 + $0x2a] sm:$0x1]   ;;  %v321_v4 = vld [vmem:[%s629_s0 + $0x27] sm:$0x1]  }
   0x2   :  { %26 = vrot.lane.b32.xlu1 %v320_v0, %s415_s10  ;;  %v318_v2 = vld [vmem:[%s629_s0 + $0x2a] sm:$0x1]   ;;  %v319_v5 = vld [vmem:[%s629_s0 + $0x29] sm:$0x1]   ;;  %s417_s18 = smov 117   ;;  %s418_s21 = smov 123  }
   0x3   :  { %v10_v3 = vsel %vm9_vm0, %v318_v2, %v317_v1  ;;  %v323_v6 = vld [vmem:[%s629_s0 + $0x25] sm:$0x1]   ;;  %v322_v7 = vld [vmem:[%s629_s0 + $0x26] sm:$0x1]   ;;  %s419_s24 = smov 111   ;;  %s420_s27 = smov 114  }
   0x4   :  { %11 = vrot.lane.b32.xlu0 %v10_v3, %s416_s15  ;;  %v325_v8 = vld [vmem:[%s629_s0 + $0x23] sm:$0x1]   ;;  %v324_v9 = vld [vmem:[%s629_s0 + $0x24] sm:$0x1]   ;;  %s421_s30 = smov 105   ;;  %s422_s4 = smov 108  }
   0x5   :  { %v327_v10 = vld [vmem:[%s629_s0 + $0x21] sm:$0x1]   ;;  %v326_v11 = vld [vmem:[%s629_s0 + $0x22] sm:$0x1]   ;;  %s423_s7 = smov 99   ;;  %s424_s10 = smov 102  }
   0x6   :  { %32 = vrot.lane.b32.xlu1 %v321_v4, %s417_s18  ;;  %v329_v12 = vld [vmem:[%s629_s0 + $0x1f] sm:$0x1]   ;;  %v328_v13 = vld [vmem:[%s629_s0 + $0x20] sm:$0x1]   ;;  %s425_s13 = smov 93   ;;  %s426_s16 = smov 96  }
   0x7   :  { %v331_v14 = vld [vmem:[%s629_s0 + $0x1d] sm:$0x1]   ;;  %v330_v15 = vld [vmem:[%s629_s0 + $0x1e] sm:$0x1]   ;;  %s427_s19 = smov 87   ;;  %s437_s22 = smov 57  }
   0x8   :  { %20 = vrot.lane.b32.xlu0 %v319_v5, %s418_s21  ;;  %v2_v16 = vld [vmem:[%s629_s0] sm:$0x1]   ;;  %v333_v17 = vld [vmem:[%s629_s0 + $0x1b] sm:$0x1]   ;;  %v332_v18 = vld [vmem:[%s629_s0 + $0x1c] sm:$0x1]  }
   0x9   :  { %4 = vst.msk [vmem:[#allocation0] sm:$0x1] %vm3_vm1, %v2_v16   ;;  %v335_v19 = vld [vmem:[%s629_s0 + $0x19] sm:$0x1]   ;;  %v334_v20 = vld [vmem:[%s629_s0 + $0x1a] sm:$0x1]  }
   0xa   :  { %44 = vrot.lane.b32.xlu1 %v323_v6, %s419_s24  ;;  %s428_s24 = smov 90   ;;  %v337_v21 = vld [vmem:[%s629_s0 + $0x17] sm:$0x1]   ;;  %v336_v22 = vld [vmem:[%s629_s0 + $0x18] sm:$0x1]   ;;  %s438_s25 = smov 60  }
   0xb   :  { %v339_v23 = vld [vmem:[%s629_s0 + $0x15] sm:$0x1]   ;;  %v338_v24 = vld [vmem:[%s629_s0 + $0x16] sm:$0x1]   ;;  %v341_v25 = vld [vmem:[%s629_s0 + $0x13] sm:$0x1]  }
   0xc   :  { %38 = vrot.lane.b32.xlu0 %v322_v7, %s420_s27  ;;  %s429_s27 = smov 81   ;;  %v340_v26 = vld [vmem:[%s629_s0 + $0x14] sm:$0x1]   ;;  %v343_v27 = vld [vmem:[%s629_s0 + $0x11] sm:$0x1]   ;;  %s439_s28 = smov 51  }
   0xd   :  { %v342_v28 = vld [vmem:[%s629_s0 + $0x12] sm:$0x1]   ;;  %v345_v29 = vld [vmem:[%s629_s0 + $0xf] sm:$0x1]   ;;  %s440_s2 = smov 54   ;;  %s441_s5 = smov 45  }
   0xe   :  { %56 = vrot.lane.b32.xlu1 %v325_v8, %s421_s30  ;;  %s430_s30 = smov 84   ;;  %v344_v30 = vld [vmem:[%s629_s0 + $0x10] sm:$0x1]   ;;  %v347_v31 = vld [vmem:[%s629_s0 + $0xd] sm:$0x1]   ;;  %s442_s8 = smov 48  }
   0xf   :  { %v346_v32 = vld [vmem:[%s629_s0 + $0xe] sm:$0x1]   ;;  %s443_s11 = smov 39   ;;  %v349_v33 = vld [vmem:[%s629_s0 + $0xb] sm:$0x1]   ;;  %s444_s14 = smov 42  }
  0x10   :  { %50 = vrot.lane.b32.xlu0 %v324_v9, %s422_s4  ;;  %s431_s4 = smov 75   ;;  %v348_v34 = vld [vmem:[%s629_s0 + $0xc] sm:$0x1]   ;;  %s445_s17 = smov 33   ;;  %v351_v35 = vld [vmem:[%s629_s0 + $0x9] sm:$0x1]  }
  0x11   :  { %s446_s20 = smov 36   ;;  %v350_v36 = vld [vmem:[%s629_s0 + $0xa] sm:$0x1]   ;;  %s447_s23 = smov 27   ;;  %v353_v37 = vld [vmem:[%s629_s0 + $0x7] sm:$0x1]  }
  0x12   :  { %68 = vrot.lane.b32.xlu1 %v327_v10, %s423_s7  ;;  %s432_s7 = smov 78   ;;  %s448_s26 = smov 30   ;;  %v352_v38 = vld [vmem:[%s629_s0 + $0x8] sm:$0x1]   ;;  %v355_v39 = vld [vmem:[%s629_s0 + $0x30] sm:$0x1]  }
  0x13   :  { %s449_s29 = smov 21   ;;  %s450_s3 = smov 24   ;;  %v354_v40 = vld [vmem:[%s629_s0 + $0x6] sm:$0x1]   ;;  %v357_v41 = vld [vmem:[%s629_s0 + $0x2f] sm:$0x1]  }
  0x14   :  { %62 = vrot.lane.b32.xlu0 %v326_v11, %s424_s10  ;;  %s433_s10 = smov 69   ;;  %s451_s6 = smov 16   ;;  %v356_v42 = vld [vmem:[%s629_s0 + $0x5] sm:$0x1]   ;;  %v359_v43 = vld [vmem:[%s629_s0 + $0x2e] sm:$0x1]  }
  0x15   :  { %s452_s9 = smov 18   ;;  %s453_s12 = smov 13   ;;  %v358_v44 = vld [vmem:[%s629_s0 + $0x4] sm:$0x1]   ;;  %v361_v45 = vld [vmem:[%s629_s0 + $0x2d] sm:$0x1]  }
  0x16   :  { %80 = vrot.lane.b32.xlu1 %v329_v12, %s425_s13  ;;  %s434_s13 = smov 72   ;;  %s454_s15 = smov 15   ;;  %v360_v46 = vld [vmem:[%s629_s0 + $0x3] sm:$0x1]   ;;  %v363_v47 = vld [vmem:[%s629_s0 + $0x2c] sm:$0x1]  }
  0x17   :  { %s455_s18 = smov 10   ;;  %s456_s21 = smov 12   ;;  %v362_v48 = vld [vmem:[%s629_s0 + $0x2] sm:$0x1]   ;;  %v365_v49 = vld [vmem:[%s629_s0 + $0x2b] sm:$0x1]  }
  0x18   :  { %74 = vrot.lane.b32.xlu0 %v328_v13, %s426_s16  ;;  %s435_s16 = smov 63   ;;  %v364_v50 = vld [vmem:[%s629_s0 + $0x1] sm:$0x1]   ;;  %s461_s0 = smov 1   ;;  %vm22_vm4 = vcmask 1032152   ;;  %vm28_vm5 = vcmask 1007552  }
  0x19   :  { %vm34_vm6 = vcmask 982952   ;;  %vm40_vm7 = vcmask 958352   ;;  %vm46_vm8 = vcmask 933752   ;;  %vm52_vm9 = vcmask 909152  }
  0x1a   :  { %92 = vrot.lane.b32.xlu1 %v331_v14, %s427_s19  ;;  %s436_s19 = smov 66   ;;  %vm58_vm10 = vcmask 884552   ;;  %vm64_vm11 = vcmask 859952   ;;  %vm70_vm12 = vcmask 835352   ;;  %vm76_vm13 = vcmask 810752  }
  0x1b   :  { %vm82_vm14 = vcmask 786152   ;;  %vm88_vm15 = vcmask 761552   ;;  %vm94_vm0 = vcmask 736952   ;;  %vm100_vm1 = vcmask 712352  }
  0x1c   :  { %86 = vrot.lane.b32.xlu0 %v330_v15, %s428_s24  ;;  %s457_s24 = smov 7  }
  0x1e   :  { %104 = vrot.lane.b32.xlu1 %v333_v17, %s429_s27  ;;  %s458_s27 = smov 9  }
  0x20   :  { %98 = vrot.lane.b32.xlu0 %v332_v18, %s430_s30  ;;  %s459_s30 = smov 4  }
  0x22   :  { %116 = vrot.lane.b32.xlu1 %v335_v19, %s431_s4  ;;  %s460_s4 = smov 6  }
  0x24   :  { %110 = vrot.lane.b32.xlu0 %v334_v20, %s432_s7  ;;  %s462_s7 = smov 3  }
  0x26   :  { %128 = vrot.lane.b32.xlu1 %v337_v21, %s433_s10 }
  0x28   :  { %122 = vrot.lane.b32.xlu0 %v336_v22, %s434_s13 }
  0x2a   :  { %140 = vrot.lane.b32.xlu1 %v339_v23, %s435_s16 }
  0x2c   :  { %134 = vrot.lane.b32.xlu0 %v338_v24, %s436_s19 }
  0x2e   :  { %152 = vrot.lane.b32.xlu1 %v341_v25, %s437_s22 }
  0x30   :  { %146 = vrot.lane.b32.xlu0 %v340_v26, %s438_s25 }
  0x32   :  { %164 = vrot.lane.b32.xlu1 %v343_v27, %s439_s28 }
  0x34   :  { %158 = vrot.lane.b32.xlu0 %v342_v28, %s440_s2 }
  0x36   :  { %176 = vrot.lane.b32.xlu1 %v345_v29, %s441_s5 }
  0x38   :  { %170 = vrot.lane.b32.xlu0 %v344_v30, %s442_s8 }
  0x3a   :  { %188 = vrot.lane.b32.xlu1 %v347_v31, %s443_s11 }
  0x3c   :  { %182 = vrot.lane.b32.xlu0 %v346_v32, %s444_s14 }
  0x3e   :  { %200 = vrot.lane.b32.xlu1 %v349_v33, %s445_s17 }
  0x40   :  { %194 = vrot.lane.b32.xlu0 %v348_v34, %s446_s20 }
  0x42   :  { %212 = vrot.lane.b32.xlu1 %v351_v35, %s447_s23 }
  0x44   :  { %206 = vrot.lane.b32.xlu0 %v350_v36, %s448_s26 }
  0x46   :  { %224 = vrot.lane.b32.xlu1 %v353_v37, %s449_s29 }
  0x48   :  { %218 = vrot.lane.b32.xlu0 %v352_v38, %s450_s3 }
  0x4a   :  { %236 = vrot.lane.b32.xlu1 %v355_v39, %s451_s6 }
  0x4c   :  { %230 = vrot.lane.b32.xlu0 %v354_v40, %s452_s9 }
  0x4e   :  { %249 = vrot.lane.b32.xlu1 %v357_v41, %s453_s12 }
  0x50   :  { %243 = vrot.lane.b32.xlu0 %v356_v42, %s454_s15 }
  0x52   :  { %262 = vrot.lane.b32.xlu1 %v359_v43, %s455_s18 }
  0x54   :  { %256 = vrot.lane.b32.xlu0 %v358_v44, %s456_s21 }
  0x56   :  { %275 = vrot.lane.b32.xlu1 %v361_v45, %s457_s24 }
  0x58   :  { %269 = vrot.lane.b32.xlu0 %v360_v46, %s458_s27 }
  0x5a   :  { %288 = vrot.lane.b32.xlu1 %v363_v47, %s459_s30 }
  0x5c   :  { %282 = vrot.lane.b32.xlu0 %v362_v48, %s460_s4 }
  0x5e   :  { %301 = vrot.lane.b32.xlu1 %v365_v49, %s461_s0 }
  0x60   :  { %295 = vrot.lane.b32.xlu0 %v364_v50, %s462_s7 }
  0x74   :  { %v27_v51 = vpop.permute.xlu1 %26  }
  0x76   :  { %v12_v52 = vpop.permute.xlu0 %11  }
  0x77   :  { %15 = vst.msk [vmem:[#allocation0 + $0x8] sm:$0x1] %vm13_vm2, %v12_v52   ;;  %vm106_vm2 = vcmask 687752  }
  0x78   :  { %17 = vst.msk [vmem:[#allocation0] sm:$0x1] %vm16_vm3, %v12_v52   ;;  %v33_v53 = vpop.permute.xlu1 %32   ;;  %vm112_vm3 = vcmask 663152  }
  0x7a   :  { %v21_v54 = vpop.permute.xlu0 %20  }
  0x7b   :  { %23 = vst.msk [vmem:[#allocation0] sm:$0x1] %vm22_vm4, %v21_v54   ;;  %vm118_vm4 = vcmask 638552  }
  0x7c   :  { %29 = vst.msk [vmem:[#allocation0] sm:$0x1] %vm28_vm5, %v27_v51   ;;  %v45_v55 = vpop.permute.xlu1 %44   ;;  %vm124_vm5 = vcmask 613952  }
  0x7d   :  { %35 = vst.msk [vmem:[#allocation0] sm:$0x1] %vm34_vm6, %v33_v53   ;;  %vm130_vm6 = vcmask 589352  }
  0x7e   :  { %v39_v56 = vpop.permute.xlu0 %38  }
  0x7f   :  { %41 = vst.msk [vmem:[#allocation0] sm:$0x1] %vm40_vm7, %v39_v56   ;;  %vm136_vm7 = vcmask 564752  }
  0x80   :  { %47 = vst.msk [vmem:[#allocation0] sm:$0x1] %vm46_vm8, %v45_v55   ;;  %v57_v57 = vpop.permute.xlu1 %56   ;;  %vm142_vm8 = vcmask 540152  }
  0x82   :  { %v51_v58 = vpop.permute.xlu0 %50  }
  0x83   :  { %53 = vst.msk [vmem:[#allocation0] sm:$0x1] %vm52_vm9, %v51_v58   ;;  %vm148_vm9 = vcmask 515552  }
  0x84   :  { %59 = vst.msk [vmem:[#allocation0] sm:$0x1] %vm58_vm10, %v57_v57   ;;  %v69_v59 = vpop.permute.xlu1 %68   ;;  %vm154_vm10 = vcmask 490952  }
  0x86   :  { %v63_v60 = vpop.permute.xlu0 %62  }
  0x87   :  { %65 = vst.msk [vmem:[#allocation0] sm:$0x1] %vm64_vm11, %v63_v60   ;;  %vm160_vm11 = vcmask 466352  }
  0x88   :  { %71 = vst.msk [vmem:[#allocation0] sm:$0x1] %vm70_vm12, %v69_v59   ;;  %v81_v61 = vpop.permute.xlu1 %80   ;;  %vm166_vm12 = vcmask 441752  }
  0x8a   :  { %v75_v62 = vpop.permute.xlu0 %74  }
  0x8b   :  { %77 = vst.msk [vmem:[#allocation0] sm:$0x1] %vm76_vm13, %v75_v62   ;;  %vm172_vm13 = vcmask 417152  }
  0x8c   :  { %83 = vst.msk [vmem:[#allocation0] sm:$0x1] %vm82_vm14, %v81_v61   ;;  %v93_v63 = vpop.permute.xlu1 %92   ;;  %vm178_vm14 = vcmask 392552  }
  0x8e   :  { %v87_v0 = vpop.permute.xlu0 %86  }
  0x8f   :  { %89 = vst.msk [vmem:[#allocation0] sm:$0x1] %vm88_vm15, %v87_v0   ;;  %vm184_vm15 = vcmask 367952  }
  0x90   :  { %95 = vst.msk [vmem:[#allocation0] sm:$0x1] %vm94_vm0, %v93_v63   ;;  %v105_v1 = vpop.permute.xlu1 %104   ;;  %vm190_vm0 = vcmask 343352  }
  0x92   :  { %v99_v2 = vpop.permute.xlu0 %98  }
  0x93   :  { %101 = vst.msk [vmem:[#allocation0] sm:$0x1] %vm100_vm1, %v99_v2   ;;  %vm196_vm1 = vcmask 318752  }
  0x94   :  { %107 = vst.msk [vmem:[#allocation0] sm:$0x1] %vm106_vm2, %v105_v1   ;;  %v117_v3 = vpop.permute.xlu1 %116   ;;  %vm202_vm2 = vcmask 294152  }
  0x96   :  { %v111_v4 = vpop.permute.xlu0 %110  }
  0x97   :  { %113 = vst.msk [vmem:[#allocation0] sm:$0x1] %vm112_vm3, %v111_v4   ;;  %vm208_vm3 = vcmask 269552  }
  0x98   :  { %119 = vst.msk [vmem:[#allocation0] sm:$0x1] %vm118_vm4, %v117_v3   ;;  %v129_v5 = vpop.permute.xlu1 %128   ;;  %vm214_vm4 = vcmask 244952  }
  0x9a   :  { %v123_v6 = vpop.permute.xlu0 %122  }
  0x9b   :  { %125 = vst.msk [vmem:[#allocation0] sm:$0x1] %vm124_vm5, %v123_v6   ;;  %vm220_vm5 = vcmask 220352  }
  0x9c   :  { %131 = vst.msk [vmem:[#allocation0] sm:$0x1] %vm130_vm6, %v129_v5   ;;  %v141_v7 = vpop.permute.xlu1 %140   ;;  %vm226_vm6 = vcmask 195752  }
  0x9e   :  { %v135_v8 = vpop.permute.xlu0 %134  }
  0x9f   :  { %137 = vst.msk [vmem:[#allocation0] sm:$0x1] %vm136_vm7, %v135_v8   ;;  %vm238_vm7 = vcmask 154752  }
  0xa0   :  { %143 = vst.msk [vmem:[#allocation0] sm:$0x1] %vm142_vm8, %v141_v7   ;;  %v153_v9 = vpop.permute.xlu1 %152   ;;  %vm232_vm8 = vcmask 171152  }
  0xa2   :  { %v147_v10 = vpop.permute.xlu0 %146  }
  0xa3   :  { %149 = vst.msk [vmem:[#allocation0] sm:$0x1] %vm148_vm9, %v147_v10   ;;  %vm251_vm9 = vcmask 130152  }
  0xa4   :  { %155 = vst.msk [vmem:[#allocation0] sm:$0x1] %vm154_vm10, %v153_v9   ;;  %v165_v11 = vpop.permute.xlu1 %164   ;;  %vm245_vm10 = vcmask 146552  }
  0xa6   :  { %v159_v12 = vpop.permute.xlu0 %158  }
  0xa7   :  { %161 = vst.msk [vmem:[#allocation0] sm:$0x1] %vm160_vm11, %v159_v12   ;;  %vm264_vm11 = vcmask 105552  }
  0xa8   :  { %167 = vst.msk [vmem:[#allocation0] sm:$0x1] %vm166_vm12, %v165_v11   ;;  %v177_v13 = vpop.permute.xlu1 %176   ;;  %vm258_vm12 = vcmask 121952  }
  0xaa   :  { %v171_v14 = vpop.permute.xlu0 %170  }
  0xab   :  { %173 = vst.msk [vmem:[#allocation0] sm:$0x1] %vm172_vm13, %v171_v14   ;;  %vm277_vm13 = vcmask 80952  }
  0xac   :  { %179 = vst.msk [vmem:[#allocation0] sm:$0x1] %vm178_vm14, %v177_v13   ;;  %v189_v15 = vpop.permute.xlu1 %188   ;;  %vm271_vm14 = vcmask 97352  }
  0xae   :  { %v183_v16 = vpop.permute.xlu0 %182  }
  0xaf   :  { %185 = vst.msk [vmem:[#allocation0] sm:$0x1] %vm184_vm15, %v183_v16   ;;  %vm290_vm15 = vcmask 56352  }
  0xb0   :  { %191 = vst.msk [vmem:[#allocation0] sm:$0x1] %vm190_vm0, %v189_v15   ;;  %v201_v17 = vpop.permute.xlu1 %200   ;;  %vm284_vm0 = vcmask 72752  }
  0xb2   :  { %v195_v18 = vpop.permute.xlu0 %194  }
  0xb3   :  { %197 = vst.msk [vmem:[#allocation0] sm:$0x1] %vm196_vm1, %v195_v18   ;;  %vm303_vm1 = vcmask 31752  }
  0xb4   :  { %203 = vst.msk [vmem:[#allocation0] sm:$0x1] %vm202_vm2, %v201_v17   ;;  %v213_v19 = vpop.permute.xlu1 %212   ;;  %vm297_vm2 = vcmask 48152  }
  0xb6   :  { %v207_v20 = vpop.permute.xlu0 %206  }
  0xb7   :  { %209 = vst.msk [vmem:[#allocation0] sm:$0x1] %vm208_vm3, %v207_v20  }
  0xb8   :  { %215 = vst.msk [vmem:[#allocation0] sm:$0x1] %vm214_vm4, %v213_v19   ;;  %v225_v21 = vpop.permute.xlu1 %224  }
  0xba   :  { %v219_v22 = vpop.permute.xlu0 %218  }
  0xbb   :  { %221 = vst.msk [vmem:[#allocation0] sm:$0x1] %vm220_vm5, %v219_v22  }
  0xbc   :  { %227 = vst.msk [vmem:[#allocation0] sm:$0x1] %vm226_vm6, %v225_v21   ;;  %v237_v23 = vpop.permute.xlu1 %236  }
  0xbd   :  { %240 = vst.msk [vmem:[#allocation0 + $0x8] sm:$0x1] %vm238_vm7, %v237_v23  }
  0xbe   :  { %v231_v24 = vpop.permute.xlu0 %230  }
  0xbf   :  { %233 = vst.msk [vmem:[#allocation0] sm:$0x1] %vm232_vm8, %v231_v24  }
  0xc0   :  { %v250_v25 = vpop.permute.xlu1 %249  }
  0xc1   :  { %253 = vst.msk [vmem:[#allocation0 + $0x8] sm:$0x1] %vm251_vm9, %v250_v25  }
  0xc2   :  { %v244_v26 = vpop.permute.xlu0 %243  }
  0xc3   :  { %246 = vst.msk [vmem:[#allocation0] sm:$0x1] %vm245_vm10, %v244_v26  }
  0xc4   :  { %v263_v27 = vpop.permute.xlu1 %262  }
  0xc5   :  { %266 = vst.msk [vmem:[#allocation0 + $0x8] sm:$0x1] %vm264_vm11, %v263_v27  }
  0xc6   :  { %v257_v28 = vpop.permute.xlu0 %256  }
  0xc7   :  { %259 = vst.msk [vmem:[#allocation0] sm:$0x1] %vm258_vm12, %v257_v28  }
  0xc8   :  { %v276_v29 = vpop.permute.xlu1 %275  }
  0xc9   :  { %279 = vst.msk [vmem:[#allocation0 + $0x8] sm:$0x1] %vm277_vm13, %v276_v29  }
  0xca   :  { %v270_v30 = vpop.permute.xlu0 %269  }
  0xcb   :  { %272 = vst.msk [vmem:[#allocation0] sm:$0x1] %vm271_vm14, %v270_v30  }
  0xcc   :  { %v289_v31 = vpop.permute.xlu1 %288  }
  0xcd   :  { %292 = vst.msk [vmem:[#allocation0 + $0x8] sm:$0x1] %vm290_vm15, %v289_v31  }
  0xce   :  { %v283_v32 = vpop.permute.xlu0 %282  }
  0xcf   :  { %285 = vst.msk [vmem:[#allocation0] sm:$0x1] %vm284_vm0, %v283_v32  }
  0xd0   :  { %v302_v33 = vpop.permute.xlu1 %301  }
  0xd1   :  { %305 = vst.msk [vmem:[#allocation0 + $0x8] sm:$0x1] %vm303_vm1, %v302_v33  }
  0xd2   :  { %v296_v34 = vpop.permute.xlu0 %295  }
  0xd3   :  { %298 = vst.msk [vmem:[#allocation0] sm:$0x1] %vm297_vm2, %v296_v34  }
  0xd8   :  { %v313_v35 = vld [vmem:[#allocation0 + $0x8] sm:$0x1] }
  0xd9   :  { %366 = vst [vmem:[%s630_s1 + $0x1] sm:$0x1] %v313_v35 }
  0xda   :  { %v309_v36 = vld [vmem:[#allocation0] sm:$0x1] }
  0xdb   :  { %311 = vst [vmem:[%s630_s1] sm:$0x1] %v309_v36 }

// kernel: densenet_forward.22
= control target key start
LH: loop header
LB: loop body
LE: loop exit
PB: predicated region body
PF: predicated region fallthrough
CT: control target
= control target key end

     0   :  { %vm402_vm0 = vcmask 130048   ;;  %vm1108_vm1 = vcmask 257024   ;;  %s2226_s1 = inlined_call_operand.vmem [shape: bf16[16,32], index: 1, kind: input, shape index: {}]   ;;  %s2227_s0 = inlined_call_operand.vmem [shape: bf16[512,16], index: 0, kind: input, shape index: {}]   ;;  %s2228_s2 = inlined_call_operand.vmem [shape: f32[1,16], index: 2, kind: input, shape index: {}]   ;;  %s2229_s3 = inlined_call_operand.vmem [shape: f32[1,16], index: 3, kind: input, shape index: {}]   ;;  %s2230_s4 = inlined_call_operand.vmem [shape: f32[1,32], index: 4, kind: input, shape index: {}]   ;;  %s2231_s5 = inlined_call_operand.vmem [shape: bf16[512,32], index: 5, kind: output, shape index: {}]  }
   0x1   :  { %v1601_v0 = vld [vmem:[%s2226_s1] sm:$0xff]   ;;  %v1469_v6 = vld [vmem:[%s2227_s0 + $0x8] sm:$0xff]   ;;  %v1470_v29 = vld [vmem:[%s2227_s0 + $0x10] sm:$0xff]  }
   0x2   :  { %v1342_v1 = vld [vmem:[%s2227_s0] sm:$0xff]   ;;  %1533 = vmatprep.subr.bf16.mxu0 %v1601_v0  ;;  %1599 = vmatprep.subr.bf16.mxu1 %v1601_v0  ;;  %v1485_v7 = vld [vmem:[%s2227_s0 + $0x88] sm:$0xff]   ;;  %v1347_v11 = vunpack.c.l.bf16 %v1469_v6  ;;  %v1348_v12 = vunpack.c.h.bf16 %v1469_v6  ;;  %v1486_v34 = vld [vmem:[%s2227_s0 + $0x90] sm:$0xff]   ;;  %v1351_v43 = vunpack.c.l.bf16 %v1470_v29  ;;  %v1352_v47 = vunpack.c.h.bf16 %v1470_v29 }
   0x3   :  { %v1641_v2 = vld [vmem:[%s2228_s2] ss:$0 sm:$0xff]  ;;  %v1343_v3 = vunpack.c.l.bf16 %v1342_v1  ;;  %v1344_v4 = vunpack.c.h.bf16 %v1342_v1  ;;  %1534 = vmatpush3.bf16.msra.mxu0 %v1601_v0  ;;  %1600 = vmatpush3.bf16.msra.mxu1 %v1601_v0  ;;  %v1411_v15 = vunpack.c.l.bf16 %v1485_v7  ;;  %v1412_v16 = vunpack.c.h.bf16 %v1485_v7  ;;  %v1471_v39 = vld [vmem:[%s2227_s0 + $0x18] sm:$0xff]  }
   0x4   :  { %v1484_v5 = vld [vmem:[%s2227_s0 + $0x80] sm:$0xff]   ;;  %v158_v19 = vmul.f32 %v1347_v11, %v1641_v2  ;;  %v159_v20 = vmul.f32 %v1348_v12, %v1641_v2  ;;  %v1487_v44 = vld [vmem:[%s2227_s0 + $0x98] sm:$0xff]   ;;  %v1415_v48 = vunpack.c.l.bf16 %v1486_v34  ;;  %v160_v50 = vmul.f32 %v1351_v43, %v1641_v2 }
   0x5   :  { %v1655_v8 = vld [vmem:[%s2229_s3] ss:$0 sm:$0xff]  ;;  %v1407_v9 = vunpack.c.l.bf16 %v1484_v5  ;;  %v1408_v10 = vunpack.c.h.bf16 %v1484_v5  ;;  %v156_v13 = vmul.f32 %v1343_v3, %v1641_v2  ;;  %v157_v14 = vmul.f32 %v1344_v4, %v1641_v2 }
   0x6   :  { %v190_v23 = vmul.f32 %v1411_v15, %v1641_v2  ;;  %v191_v24 = vmul.f32 %v1412_v16, %v1641_v2  ;;  %v229_v27 = vadd.f32 %v1655_v8, %v158_v19  ;;  %v230_v28 = vadd.f32 %v1655_v8, %v159_v20  ;;  %v1472_v1 = vld [vmem:[%s2227_s0 + $0x20] sm:$0xff]  }
   0x7   :  { %v188_v17 = vmul.f32 %v1407_v9, %v1641_v2  ;;  %v189_v18 = vmul.f32 %v1408_v10, %v1641_v2  ;;  %v227_v21 = vadd.f32 %v1655_v8, %v156_v13  ;;  %v228_v22 = vadd.f32 %v1655_v8, %v157_v14  ;;  %v1488_v12 = vld [vmem:[%s2227_s0 + $0xa0] sm:$0xff]  }
   0x8   :  { %v261_v32 = vadd.f32 %v1655_v8, %v190_v23  ;;  %v262_v33 = vadd.f32 %v1655_v8, %v191_v24  ;;  %v293_v37 = vmax.f32 %v229_v27, 0.0  ;;  %v294_v38 = vmax.f32 %v230_v28, 0.0 }
   0x9   :  { %v259_v25 = vadd.f32 %v1655_v8, %v188_v17  ;;  %v260_v26 = vadd.f32 %v1655_v8, %v189_v18  ;;  %v291_v30 = vmax.f32 %v227_v21, 0.0  ;;  %v292_v31 = vmax.f32 %v228_v22, 0.0  ;;  %v1473_v17 = vld [vmem:[%s2227_s0 + $0x28] sm:$0xff]  }
   0xa   :  { %v325_v41 = vmax.f32 %v261_v32, 0.0  ;;  %v326_v42 = vmax.f32 %v262_v33, 0.0  ;;  %v356_v46 = vpack.c.bf16 %v294_v38, %v293_v37  ;;  %v1416_v51 = vunpack.c.h.bf16 %v1486_v34 }
   0xb   :  { %v323_v35 = vmax.f32 %v259_v25, 0.0  ;;  %v324_v36 = vmax.f32 %v260_v26, 0.0  ;;  %v355_v40 = vpack.c.bf16 %v292_v31, %v291_v30  ;;  %v1355_v52 = vunpack.c.l.bf16 %v1471_v39  ;;  %v1489_v26 = vld [vmem:[%s2227_s0 + $0xa8] sm:$0xff]  }
   0xc   :  { %v372_v49 = vpack.c.bf16 %v326_v42, %v325_v41  ;;  %v161_v53 = vmul.f32 %v1352_v47, %v1641_v2  ;;  %v192_v54 = vmul.f32 %v1415_v48, %v1641_v2  ;;  %v1356_v55 = vunpack.c.h.bf16 %v1471_v39  ;;  %v1474_v39 = vld [vmem:[%s2227_s0 + $0x30] sm:$0xff]  }
   0xd   :  { %v371_v45 = vpack.c.bf16 %v324_v36, %v323_v35  ;;  %1535 = vmatprep.mubr.msk.bf16.mxu0 %vm402_vm0, %v355_v40  ;;  %v1419_v56 = vunpack.c.l.bf16 %v1487_v44  ;;  %v231_v57 = vadd.f32 %v1655_v8, %v160_v50  ;;  %v193_v58 = vmul.f32 %v1416_v51, %v1641_v2 }
   0xe   :  { %1536 = vmatmul.mubr.msk.bf16.vlgmr.msra.gmra.mrb[0].mxu0 %vm402_vm0, %v356_v46  ;;  %v162_v59 = vmul.f32 %v1355_v52, %v1641_v2  ;;  %v1420_v60 = vunpack.c.h.bf16 %v1487_v44  ;;  %v232_v61 = vadd.f32 %v1655_v8, %v161_v53  ;;  %v263_v62 = vadd.f32 %v1655_v8, %v192_v54  ;;  %v1490_v52 = vld [vmem:[%s2227_s0 + $0xb0] sm:$0xff]  }
   0xf   :  { %1567 = vmatprep.mubr.msk.bf16.mxu1 %vm402_vm0, %v371_v45  ;;  %v163_v63 = vmul.f32 %v1356_v55, %v1641_v2  ;;  %v194_v0 = vmul.f32 %v1419_v56, %v1641_v2  ;;  %v295_v3 = vmax.f32 %v231_v57, 0.0  ;;  %v264_v4 = vadd.f32 %v1655_v8, %v193_v58 }
  0x10   :  { %1568 = vmatmul.mubr.msk.bf16.vlgmr.msra.gmra.mrb[0].mxu1 %vm402_vm0, %v372_v49  ;;  %v233_v5 = vadd.f32 %v1655_v8, %v162_v59  ;;  %v195_v6 = vmul.f32 %v1420_v60, %v1641_v2  ;;  %v296_v7 = vmax.f32 %v232_v61, 0.0  ;;  %v327_v9 = vmax.f32 %v263_v62, 0.0  ;;  %v1475_v61 = vld [vmem:[%s2227_s0 + $0x38] sm:$0xff]  }
  0x11   :  { %v234_v10 = vadd.f32 %v1655_v8, %v163_v63  ;;  %v265_v11 = vadd.f32 %v1655_v8, %v194_v0  ;;  %v328_v13 = vmax.f32 %v264_v4, 0.0  ;;  %v1359_v16 = vunpack.c.l.bf16 %v1472_v1 }
  0x12   :  { %v297_v14 = vmax.f32 %v233_v5, 0.0  ;;  %v266_v15 = vadd.f32 %v1655_v8, %v195_v6  ;;  %v357_v18 = vpack.c.bf16 %v296_v7, %v295_v3  ;;  %v1360_v21 = vunpack.c.h.bf16 %v1472_v1  ;;  %v1491_v3 = vld [vmem:[%s2227_s0 + $0xb8] sm:$0xff]  }
  0x13   :  { %v298_v19 = vmax.f32 %v234_v10, 0.0  ;;  %v329_v20 = vmax.f32 %v265_v11, 0.0  ;;  %v373_v22 = vpack.c.bf16 %v328_v13, %v327_v9  ;;  %v164_v24 = vmul.f32 %v1359_v16, %v1641_v2  ;;  %v1476_v13 = vld [vmem:[%s2227_s0 + $0x40] sm:$0xff]  }
  0x14   :  { %v330_v23 = vmax.f32 %v266_v15, 0.0  ;;  %v1423_v25 = vunpack.c.l.bf16 %v1488_v12  ;;  %1539 = vmatprep.mubr.msk.bf16.mxu0 %vm402_vm0, %v357_v18  ;;  %v165_v28 = vmul.f32 %v1360_v21, %v1641_v2  ;;  %v1424_v29 = vunpack.c.h.bf16 %v1488_v12 }
  0x15   :  { %v358_v27 = vpack.c.bf16 %v298_v19, %v297_v14  ;;  %v1363_v30 = vunpack.c.l.bf16 %v1473_v17  ;;  %1571 = vmatprep.mubr.msk.bf16.mxu1 %vm402_vm0, %v373_v22  ;;  %v235_v32 = vadd.f32 %v1655_v8, %v164_v24  ;;  %v1364_v34 = vunpack.c.h.bf16 %v1473_v17 }
  0x16   :  { %v374_v31 = vpack.c.bf16 %v330_v23, %v329_v20  ;;  %v196_v33 = vmul.f32 %v1423_v25, %v1641_v2  ;;  %v236_v35 = vadd.f32 %v1655_v8, %v165_v28  ;;  %v197_v36 = vmul.f32 %v1424_v29, %v1641_v2 }
  0x17   :  { %1540 = vmatmul.mubr.msk.bf16.gmra.mrb[4].mxu0 %vm402_vm0, %v358_v27  ;;  %v166_v37 = vmul.f32 %v1363_v30, %v1641_v2  ;;  %v1427_v38 = vunpack.c.l.bf16 %v1489_v26  ;;  %v299_v40 = vmax.f32 %v235_v32, 0.0  ;;  %v167_v42 = vmul.f32 %v1364_v34, %v1641_v2  ;;  %v1492_v30 = vld [vmem:[%s2227_s0 + $0xc0] sm:$0xff]  }
  0x18   :  { %1572 = vmatmul.mubr.msk.bf16.gmra.mrb[4].mxu1 %vm402_vm0, %v374_v31  ;;  %v267_v41 = vadd.f32 %v1655_v8, %v196_v33  ;;  %v1428_v43 = vunpack.c.h.bf16 %v1489_v26  ;;  %v300_v44 = vmax.f32 %v236_v35, 0.0  ;;  %v268_v45 = vadd.f32 %v1655_v8, %v197_v36  ;;  %v1477_v35 = vld [vmem:[%s2227_s0 + $0x48] sm:$0xff]  }
  0x19   :  { %v237_v46 = vadd.f32 %v1655_v8, %v166_v37  ;;  %v198_v47 = vmul.f32 %v1427_v38, %v1641_v2  ;;  %v238_v49 = vadd.f32 %v1655_v8, %v167_v42  ;;  %v1367_v51 = vunpack.c.l.bf16 %v1474_v39 }
  0x1a   :  { %v331_v48 = vmax.f32 %v267_v41, 0.0  ;;  %v199_v50 = vmul.f32 %v1428_v43, %v1641_v2  ;;  %v359_v53 = vpack.c.bf16 %v300_v44, %v299_v40  ;;  %v332_v54 = vmax.f32 %v268_v45, 0.0  ;;  %v1493_v44 = vld [vmem:[%s2227_s0 + $0xc8] sm:$0xff]  }
  0x1b   :  { %v301_v55 = vmax.f32 %v237_v46, 0.0  ;;  %v269_v56 = vadd.f32 %v1655_v8, %v198_v47  ;;  %v302_v57 = vmax.f32 %v238_v49, 0.0  ;;  %v1368_v59 = vunpack.c.h.bf16 %v1474_v39 }
  0x1c   :  { %v270_v58 = vadd.f32 %v1655_v8, %v199_v50  ;;  %v168_v60 = vmul.f32 %v1367_v51, %v1641_v2  ;;  %1543 = vmatprep.mubr.msk.bf16.mxu0 %vm402_vm0, %v359_v53  ;;  %v375_v62 = vpack.c.bf16 %v332_v54, %v331_v48  ;;  %v1431_v0 = vunpack.c.l.bf16 %v1490_v52 }
  0x1d   :  { %v333_v63 = vmax.f32 %v269_v56, 0.0  ;;  %v1432_v1 = vunpack.c.h.bf16 %v1490_v52  ;;  %v360_v4 = vpack.c.bf16 %v302_v57, %v301_v55  ;;  %v169_v6 = vmul.f32 %v1368_v59, %v1641_v2  ;;  %v1478_v57 = vld [vmem:[%s2227_s0 + $0x50] sm:$0xff]  }
  0x1e   :  { %v334_v5 = vmax.f32 %v270_v58, 0.0  ;;  %v239_v7 = vadd.f32 %v1655_v8, %v168_v60  ;;  %1575 = vmatprep.mubr.msk.bf16.mxu1 %vm402_vm0, %v375_v62  ;;  %v200_v9 = vmul.f32 %v1431_v0, %v1641_v2  ;;  %v1371_v11 = vunpack.c.l.bf16 %v1475_v61 }
  0x1f   :  { %v201_v10 = vmul.f32 %v1432_v1, %v1641_v2  ;;  %v1372_v12 = vunpack.c.h.bf16 %v1475_v61  ;;  %1544 = vmatmul.mubr.msk.bf16.gmra.mrb[8].mxu0 %vm402_vm0, %v360_v4  ;;  %v240_v15 = vadd.f32 %v1655_v8, %v169_v6  ;;  %v1435_v17 = vunpack.c.l.bf16 %v1491_v3 }
  0x20   :  { %v376_v14 = vpack.c.bf16 %v334_v5, %v333_v63  ;;  %v303_v16 = vmax.f32 %v239_v7, 0.0  ;;  %v271_v18 = vadd.f32 %v1655_v8, %v200_v9  ;;  %v170_v20 = vmul.f32 %v1371_v11, %v1641_v2 }
  0x21   :  { %v272_v19 = vadd.f32 %v1655_v8, %v201_v10  ;;  %v171_v21 = vmul.f32 %v1372_v12, %v1641_v2  ;;  %v304_v22 = vmax.f32 %v240_v15, 0.0  ;;  %v1436_v23 = vunpack.c.h.bf16 %v1491_v3  ;;  %v1494_v3 = vld [vmem:[%s2227_s0 + $0xd0] sm:$0xff]  }
  0x22   :  { %1576 = vmatmul.mubr.msk.bf16.gmra.mrb[8].mxu1 %vm402_vm0, %v376_v14  ;;  %v202_v24 = vmul.f32 %v1435_v17, %v1641_v2  ;;  %v1375_v25 = vunpack.c.l.bf16 %v1476_v13  ;;  %v335_v26 = vmax.f32 %v271_v18, 0.0  ;;  %v241_v28 = vadd.f32 %v1655_v8, %v170_v20  ;;  %v1479_v17 = vld [vmem:[%s2227_s0 + $0x58] sm:$0xff]  }
  0x23   :  { %v336_v27 = vmax.f32 %v272_v19, 0.0  ;;  %v242_v29 = vadd.f32 %v1655_v8, %v171_v21  ;;  %v361_v31 = vpack.c.bf16 %v304_v22, %v303_v16  ;;  %v203_v32 = vmul.f32 %v1436_v23, %v1641_v2  ;;  %v1495_v22 = vld [vmem:[%s2227_s0 + $0xd8] sm:$0xff]  }
  0x24   :  { %v273_v33 = vadd.f32 %v1655_v8, %v202_v24  ;;  %v1376_v34 = vunpack.c.h.bf16 %v1476_v13  ;;  %v305_v37 = vmax.f32 %v241_v28, 0.0  ;;  %v172_v39 = vmul.f32 %v1375_v25, %v1641_v2 }
  0x25   :  { %v377_v36 = vpack.c.bf16 %v336_v27, %v335_v26  ;;  %v306_v38 = vmax.f32 %v242_v29, 0.0  ;;  %1547 = vmatprep.mubr.msk.bf16.mxu0 %vm402_vm0, %v361_v31  ;;  %v274_v40 = vadd.f32 %v1655_v8, %v203_v32  ;;  %v1439_v43 = vunpack.c.l.bf16 %v1492_v30 }
  0x26   :  { %v337_v41 = vmax.f32 %v273_v33, 0.0  ;;  %v173_v42 = vmul.f32 %v1376_v34, %v1641_v2  ;;  %v243_v46 = vadd.f32 %v1655_v8, %v172_v39  ;;  %v1440_v47 = vunpack.c.h.bf16 %v1492_v30 }
  0x27   :  { %1579 = vmatprep.mubr.msk.bf16.mxu1 %vm402_vm0, %v377_v36  ;;  %v362_v45 = vpack.c.bf16 %v306_v38, %v305_v37  ;;  %v1379_v48 = vunpack.c.l.bf16 %v1477_v35  ;;  %v338_v49 = vmax.f32 %v274_v40, 0.0  ;;  %v204_v51 = vmul.f32 %v1439_v43, %v1641_v2 }
  0x28   :  { %v244_v50 = vadd.f32 %v1655_v8, %v173_v42  ;;  %v1380_v52 = vunpack.c.h.bf16 %v1477_v35  ;;  %v307_v53 = vmax.f32 %v243_v46, 0.0  ;;  %v205_v54 = vmul.f32 %v1440_v47, %v1641_v2  ;;  %v1480_v35 = vld [vmem:[%s2227_s0 + $0x60] sm:$0xff]  }
  0x29   :  { %1548 = vmatmul.mubr.msk.bf16.gmra.mrb[12].mxu0 %vm402_vm0, %v362_v45  ;;  %v174_v55 = vmul.f32 %v1379_v48, %v1641_v2  ;;  %v1443_v56 = vunpack.c.l.bf16 %v1493_v44  ;;  %v378_v58 = vpack.c.bf16 %v338_v49, %v337_v41  ;;  %v275_v60 = vadd.f32 %v1655_v8, %v204_v51  ;;  %v1496_v48 = vld [vmem:[%s2227_s0 + $0xe0] sm:$0xff]  }
  0x2a   :  { %v308_v59 = vmax.f32 %v244_v50, 0.0  ;;  %v175_v61 = vmul.f32 %v1380_v52, %v1641_v2  ;;  %v276_v62 = vadd.f32 %v1655_v8, %v205_v54  ;;  %v1444_v0 = vunpack.c.h.bf16 %v1493_v44 }
  0x2b   :  { %v245_v63 = vadd.f32 %v1655_v8, %v174_v55  ;;  %v206_v1 = vmul.f32 %v1443_v56, %v1641_v2  ;;  %1580 = vmatmul.mubr.msk.bf16.gmra.mrb[12].mxu1 %vm402_vm0, %v378_v58  ;;  %v339_v5 = vmax.f32 %v275_v60, 0.0  ;;  %v1383_v7 = vunpack.c.l.bf16 %v1478_v57 }
  0x2c   :  { %v363_v4 = vpack.c.bf16 %v308_v59, %v307_v53  ;;  %v246_v6 = vadd.f32 %v1655_v8, %v175_v61  ;;  %v340_v9 = vmax.f32 %v276_v62, 0.0  ;;  %v207_v11 = vmul.f32 %v1444_v0, %v1641_v2  ;;  %v1481_v53 = vld [vmem:[%s2227_s0 + $0x68] sm:$0xff]  }
  0x2d   :  { %v309_v10 = vmax.f32 %v245_v63, 0.0  ;;  %v277_v12 = vadd.f32 %v1655_v8, %v206_v1  ;;  %v1384_v14 = vunpack.c.h.bf16 %v1478_v57  ;;  %v176_v15 = vmul.f32 %v1383_v7, %v1641_v2  ;;  %v1497_v62 = vld [vmem:[%s2227_s0 + $0xe8] sm:$0xff]  }
  0x2e   :  { %1551 = vmatprep.mubr.msk.bf16.mxu0 %vm402_vm0, %v363_v4  ;;  %v310_v13 = vmax.f32 %v246_v6, 0.0  ;;  %v1447_v16 = vunpack.c.l.bf16 %v1494_v3  ;;  %v379_v18 = vpack.c.bf16 %v340_v9, %v339_v5  ;;  %v278_v19 = vadd.f32 %v1655_v8, %v207_v11 }
  0x2f   :  { %v341_v20 = vmax.f32 %v277_v12, 0.0  ;;  %v1448_v21 = vunpack.c.h.bf16 %v1494_v3  ;;  %v177_v24 = vmul.f32 %v1384_v14, %v1641_v2  ;;  %v247_v25 = vadd.f32 %v1655_v8, %v176_v15 }
  0x30   :  { %v364_v23 = vpack.c.bf16 %v310_v13, %v309_v10  ;;  %v208_v26 = vmul.f32 %v1447_v16, %v1641_v2  ;;  %1583 = vmatprep.mubr.msk.bf16.mxu1 %vm402_vm0, %v379_v18  ;;  %v342_v27 = vmax.f32 %v278_v19, 0.0  ;;  %v1387_v29 = vunpack.c.l.bf16 %v1479_v17  ;;  %v1482_v13 = vld [vmem:[%s2227_s0 + $0x70] sm:$0xff]  }
  0x31   :  { %v209_v28 = vmul.f32 %v1448_v21, %v1641_v2  ;;  %v1388_v30 = vunpack.c.h.bf16 %v1479_v17  ;;  %v248_v31 = vadd.f32 %v1655_v8, %v177_v24  ;;  %v311_v32 = vmax.f32 %v247_v25, 0.0 }
  0x32   :  { %1552 = vmatmul.mubr.msk.bf16.gmra.mrb[16].mxu0 %vm402_vm0, %v364_v23  ;;  %v279_v33 = vadd.f32 %v1655_v8, %v208_v26  ;;  %v1451_v34 = vunpack.c.l.bf16 %v1495_v22  ;;  %v380_v36 = vpack.c.bf16 %v342_v27, %v341_v20  ;;  %v178_v38 = vmul.f32 %v1387_v29, %v1641_v2 }
  0x33   :  { %v280_v37 = vadd.f32 %v1655_v8, %v209_v28  ;;  %v179_v39 = vmul.f32 %v1388_v30, %v1641_v2  ;;  %v312_v40 = vmax.f32 %v248_v31, 0.0  ;;  %v1452_v42 = vunpack.c.h.bf16 %v1495_v22  ;;  %v1498_v22 = vld [vmem:[%s2227_s0 + $0xf0] sm:$0xff]  }
  0x34   :  { %v343_v41 = vmax.f32 %v279_v33, 0.0  ;;  %v210_v43 = vmul.f32 %v1451_v34, %v1641_v2  ;;  %1584 = vmatmul.mubr.msk.bf16.gmra.mrb[16].mxu1 %vm402_vm0, %v380_v36  ;;  %v249_v45 = vadd.f32 %v1655_v8, %v178_v38  ;;  %v1391_v47 = vunpack.c.l.bf16 %v1480_v35 }
  0x35   :  { %v344_v44 = vmax.f32 %v280_v37, 0.0  ;;  %v250_v46 = vadd.f32 %v1655_v8, %v179_v39  ;;  %v365_v49 = vpack.c.bf16 %v312_v40, %v311_v32  ;;  %v211_v50 = vmul.f32 %v1452_v42, %v1641_v2  ;;  %v1499_v40 = vld [vmem:[%s2227_s0 + $0xf8] sm:$0xff]  }
  0x36   :  { %v281_v51 = vadd.f32 %v1655_v8, %v210_v43  ;;  %v1392_v52 = vunpack.c.h.bf16 %v1480_v35  ;;  %v313_v55 = vmax.f32 %v249_v45, 0.0  ;;  %v180_v57 = vmul.f32 %v1391_v47, %v1641_v2  ;;  %v1483_v35 = vld [vmem:[%s2227_s0 + $0x78] sm:$0xff]  }
  0x37   :  { %v381_v54 = vpack.c.bf16 %v344_v44, %v343_v41  ;;  %v314_v56 = vmax.f32 %v250_v46, 0.0  ;;  %1555 = vmatprep.mubr.msk.bf16.mxu0 %vm402_vm0, %v365_v49  ;;  %v282_v58 = vadd.f32 %v1655_v8, %v211_v50  ;;  %v1455_v61 = vunpack.c.l.bf16 %v1496_v48 }
  0x38   :  { %v345_v59 = vmax.f32 %v281_v51, 0.0  ;;  %v181_v60 = vmul.f32 %v1392_v52, %v1641_v2  ;;  %v251_v0 = vadd.f32 %v1655_v8, %v180_v57  ;;  %v1456_v1 = vunpack.c.h.bf16 %v1496_v48 }
  0x39   :  { %1587 = vmatprep.mubr.msk.bf16.mxu1 %vm402_vm0, %v381_v54  ;;  %v366_v63 = vpack.c.bf16 %v314_v56, %v313_v55  ;;  %v1395_v3 = vunpack.c.l.bf16 %v1481_v53  ;;  %v346_v4 = vmax.f32 %v282_v58, 0.0  ;;  %v212_v6 = vmul.f32 %v1455_v61, %v1641_v2 }
  0x3a   :  { %v252_v5 = vadd.f32 %v1655_v8, %v181_v60  ;;  %v1396_v7 = vunpack.c.h.bf16 %v1481_v53  ;;  %v315_v9 = vmax.f32 %v251_v0, 0.0  ;;  %v213_v10 = vmul.f32 %v1456_v1, %v1641_v2 }
  0x3b   :  { %1556 = vmatmul.mubr.msk.bf16.gmra.mrb[20].mxu0 %vm402_vm0, %v366_v63  ;;  %v182_v11 = vmul.f32 %v1395_v3, %v1641_v2  ;;  %v1459_v12 = vunpack.c.l.bf16 %v1497_v62  ;;  %v382_v14 = vpack.c.bf16 %v346_v4, %v345_v59  ;;  %v283_v16 = vadd.f32 %v1655_v8, %v212_v6 }
  0x3c   :  { %v316_v15 = vmax.f32 %v252_v5, 0.0  ;;  %v183_v17 = vmul.f32 %v1396_v7, %v1641_v2  ;;  %v284_v18 = vadd.f32 %v1655_v8, %v213_v10  ;;  %v1460_v20 = vunpack.c.h.bf16 %v1497_v62 }
  0x3d   :  { %v253_v19 = vadd.f32 %v1655_v8, %v182_v11  ;;  %v214_v21 = vmul.f32 %v1459_v12, %v1641_v2  ;;  %1588 = vmatmul.mubr.msk.bf16.gmra.mrb[20].mxu1 %vm402_vm0, %v382_v14  ;;  %v347_v24 = vmax.f32 %v283_v16, 0.0  ;;  %v1399_v26 = vunpack.c.l.bf16 %v1482_v13 }
  0x3e   :  { %v367_v23 = vpack.c.bf16 %v316_v15, %v315_v9  ;;  %v254_v25 = vadd.f32 %v1655_v8, %v183_v17  ;;  %v348_v27 = vmax.f32 %v284_v18, 0.0  ;;  %v215_v29 = vmul.f32 %v1460_v20, %v1641_v2 }
  0x3f   :  { %v317_v28 = vmax.f32 %v253_v19, 0.0  ;;  %v285_v30 = vadd.f32 %v1655_v8, %v214_v21  ;;  %v1400_v32 = vunpack.c.h.bf16 %v1482_v13  ;;  %v184_v33 = vmul.f32 %v1399_v26, %v1641_v2 }
  0x40   :  { %1559 = vmatprep.mubr.msk.bf16.mxu0 %vm402_vm0, %v367_v23  ;;  %v318_v31 = vmax.f32 %v254_v25, 0.0  ;;  %v1463_v34 = vunpack.c.l.bf16 %v1498_v22  ;;  %v383_v36 = vpack.c.bf16 %v348_v27, %v347_v24  ;;  %v286_v37 = vadd.f32 %v1655_v8, %v215_v29 }
  0x41   :  { %v349_v38 = vmax.f32 %v285_v30, 0.0  ;;  %v1464_v39 = vunpack.c.h.bf16 %v1498_v22  ;;  %v185_v42 = vmul.f32 %v1400_v32, %v1641_v2  ;;  %v255_v43 = vadd.f32 %v1655_v8, %v184_v33 }
  0x42   :  { %v368_v41 = vpack.c.bf16 %v318_v31, %v317_v28  ;;  %v216_v44 = vmul.f32 %v1463_v34, %v1641_v2  ;;  %1591 = vmatprep.mubr.msk.bf16.mxu1 %vm402_vm0, %v383_v36  ;;  %v350_v45 = vmax.f32 %v286_v37, 0.0  ;;  %v1403_v47 = vunpack.c.l.bf16 %v1483_v35 }
  0x43   :  { %v217_v46 = vmul.f32 %v1464_v39, %v1641_v2  ;;  %v1404_v48 = vunpack.c.h.bf16 %v1483_v35  ;;  %v256_v49 = vadd.f32 %v1655_v8, %v185_v42  ;;  %v319_v50 = vmax.f32 %v255_v43, 0.0 }
  0x44   :  { %1560 = vmatmul.mubr.msk.bf16.gmra.mrb[24].mxu0 %vm402_vm0, %v368_v41  ;;  %v287_v51 = vadd.f32 %v1655_v8, %v216_v44  ;;  %v1467_v52 = vunpack.c.l.bf16 %v1499_v40  ;;  %v384_v53 = vpack.c.bf16 %v350_v45, %v349_v38  ;;  %v186_v55 = vmul.f32 %v1403_v47, %v1641_v2 }
  0x45   :  { %v288_v54 = vadd.f32 %v1655_v8, %v217_v46  ;;  %v187_v56 = vmul.f32 %v1404_v48, %v1641_v2  ;;  %v320_v57 = vmax.f32 %v256_v49, 0.0  ;;  %v1468_v59 = vunpack.c.h.bf16 %v1499_v40 }
  0x46   :  { %v351_v58 = vmax.f32 %v287_v51, 0.0  ;;  %v218_v60 = vmul.f32 %v1467_v52, %v1641_v2  ;;  %1592 = vmatmul.mubr.msk.bf16.gmra.mrb[24].mxu1 %vm402_vm0, %v384_v53  ;;  %v257_v62 = vadd.f32 %v1655_v8, %v186_v55 }
  0x47   :  { %v352_v61 = vmax.f32 %v288_v54, 0.0  ;;  %v258_v63 = vadd.f32 %v1655_v8, %v187_v56  ;;  %v369_v0 = vpack.c.bf16 %v320_v57, %v319_v50  ;;  %v219_v1 = vmul.f32 %v1468_v59, %v1641_v2  ;;  %v1904_v2 = vld [vmem:[%s2230_s4] ss:$0 sm:$0xff] }
  0x48   :  { %v289_v3 = vadd.f32 %v1655_v8, %v218_v60  ;;  %v321_v5 = vmax.f32 %v257_v62, 0.0 }
  0x49   :  { %v385_v4 = vpack.c.bf16 %v352_v61, %v351_v58  ;;  %v322_v6 = vmax.f32 %v258_v63, 0.0  ;;  %1563 = vmatprep.mubr.msk.bf16.mxu0 %vm402_vm0, %v369_v0  ;;  %v290_v7 = vadd.f32 %v1655_v8, %v219_v1 }
  0x4a   :  { %v353_v9 = vmax.f32 %v289_v3, 0.0 }
  0x4b   :  { %1595 = vmatprep.mubr.msk.bf16.mxu1 %vm402_vm0, %v385_v4  ;;  %v370_v10 = vpack.c.bf16 %v322_v6, %v321_v5  ;;  %v354_v11 = vmax.f32 %v290_v7, 0.0 }
  0x4d   :  { %1564 = vmatmul.mubr.msk.bf16.gmra.mrb[28].mxu0 %vm402_vm0, %v370_v10  ;;  %v386_v12 = vpack.c.bf16 %v354_v11, %v353_v9 }
  0x4f   :  { %1596 = vmatmul.mubr.msk.bf16.gmra.mrb[28].mxu1 %vm402_vm0, %v386_v12 }
  0xe1   :  { %v1537_v13 = vpop.f32.mrb[0].mxu0 }
  0xe2   :  { %v542_v14 = vadd.f32 %v1537_v13, %v1904_v2  ;;  %v533_v8 = vpop.f32.mrb[1].mxu0 }
  0xe3   :  { %v1569_v15 = vpop.f32.mrb[0].mxu1  ;;  %v534_v17 = vadd.f32 %v1904_v2, %v533_v8  ;;  %v1538_v19 = vpop.f32.mrb[2].mxu0 }
  0xe4   :  { %v670_v16 = vadd.f32 %v1569_v15, %v1904_v2  ;;  %v661_v18 = vpop.f32.mrb[1].mxu1  ;;  %v790_v20 = vmax.f32 %v542_v14, 0.0  ;;  %v545_v22 = vadd.f32 %v1538_v19, %v1904_v2  ;;  %v536_v24 = vpop.f32.mrb[3].mxu0 }
  0xe5   :  { %v662_v21 = vadd.f32 %v1904_v2, %v661_v18  ;;  %v1570_v23 = vpop.f32.mrb[2].mxu1  ;;  %v788_v26 = vmax.f32 %v534_v17, 0.0  ;;  %v537_v28 = vadd.f32 %v1904_v2, %v536_v24 }
  0xe6   :  { %v822_v25 = vmax.f32 %v670_v16, 0.0  ;;  %v673_v27 = vadd.f32 %v1570_v23, %v1904_v2  ;;  %v664_v29 = vpop.f32.mrb[3].mxu1  ;;  %v1279_v30 = vpack.c.bf16 %v790_v20, %v790_v20  ;;  %v791_v32 = vmax.f32 %v545_v22, 0.0 }
  0xe7   :  { %v820_v31 = vmax.f32 %v662_v21, 0.0  ;;  %v665_v33 = vadd.f32 %v1904_v2, %v664_v29  ;;  %v1277_v35 = vpack.c.bf16 %v788_v26, %v788_v26  ;;  %v789_v37 = vmax.f32 %v537_v28, 0.0 }
  0xe8   :  { %v1311_v34 = vpack.c.bf16 %v822_v25, %v822_v25  ;;  %v823_v36 = vmax.f32 %v673_v27, 0.0  ;;  %1111 = vst.msk [vmem:[%s2231_s5 + $0x8] sm:$0xf] %vm1108_vm1, %v1279_v30  ;;  %v1280_v39 = vpack.c.bf16 %v791_v32, %v791_v32 }
  0xe9   :  { %v1309_v38 = vpack.c.bf16 %v820_v31, %v820_v31  ;;  %v821_v40 = vmax.f32 %v665_v33, 0.0  ;;  %1109 = vst.msk [vmem:[%s2231_s5] sm:$0xf] %vm1108_vm1, %v1277_v35  ;;  %v1278_v42 = vpack.c.bf16 %v789_v37, %v789_v37 }
  0xea   :  { %1143 = vst.msk [vmem:[%s2231_s5 + $0x88] sm:$0xf] %vm1108_vm1, %v1311_v34  ;;  %v1312_v41 = vpack.c.bf16 %v823_v36, %v823_v36  ;;  %1112 = vst.msk [vmem:[%s2231_s5 + $0xc] sm:$0xf] %vm1108_vm1, %v1280_v39  ;;  %v1541_v44 = vpop.f32.mrb[4].mxu0 }
  0xeb   :  { %1141 = vst.msk [vmem:[%s2231_s5 + $0x80] sm:$0xf] %vm1108_vm1, %v1309_v38  ;;  %v1310_v43 = vpack.c.bf16 %v821_v40, %v821_v40  ;;  %1110 = vst.msk [vmem:[%s2231_s5 + $0x4] sm:$0xf] %vm1108_vm1, %v1278_v42  ;;  %v558_v45 = vadd.f32 %v1541_v44, %v1904_v2  ;;  %v1573_v46 = vpop.f32.mrb[4].mxu1  ;;  %v549_v47 = vpop.f32.mrb[5].mxu0 }
  0xec   :  { %1144 = vst.msk [vmem:[%s2231_s5 + $0x8c] sm:$0xf] %vm1108_vm1, %v1312_v41  ;;  %v686_v48 = vadd.f32 %v1573_v46, %v1904_v2  ;;  %v550_v49 = vadd.f32 %v1904_v2, %v549_v47  ;;  %v677_v50 = vpop.f32.mrb[5].mxu1  ;;  %v1542_v51 = vpop.f32.mrb[6].mxu0 }
  0xed   :  { %1142 = vst.msk [vmem:[%s2231_s5 + $0x84] sm:$0xf] %vm1108_vm1, %v1310_v43  ;;  %v794_v52 = vmax.f32 %v558_v45, 0.0  ;;  %v678_v53 = vadd.f32 %v1904_v2, %v677_v50  ;;  %v561_v54 = vadd.f32 %v1542_v51, %v1904_v2  ;;  %v1574_v55 = vpop.f32.mrb[6].mxu1  ;;  %v552_v56 = vpop.f32.mrb[7].mxu0 }
  0xee   :  { %v826_v57 = vmax.f32 %v686_v48, 0.0  ;;  %v792_v58 = vmax.f32 %v550_v49, 0.0  ;;  %v689_v59 = vadd.f32 %v1574_v55, %v1904_v2  ;;  %v553_v60 = vadd.f32 %v1904_v2, %v552_v56  ;;  %v680_v61 = vpop.f32.mrb[7].mxu1 }
  0xef   :  { %v1283_v62 = vpack.c.bf16 %v794_v52, %v794_v52  ;;  %v824_v63 = vmax.f32 %v678_v53, 0.0  ;;  %v795_v0 = vmax.f32 %v561_v54, 0.0  ;;  %v681_v1 = vadd.f32 %v1904_v2, %v680_v61 }
  0xf0   :  { %v1315_v3 = vpack.c.bf16 %v826_v57, %v826_v57  ;;  %v1281_v4 = vpack.c.bf16 %v792_v58, %v792_v58  ;;  %v827_v5 = vmax.f32 %v689_v59, 0.0  ;;  %v793_v6 = vmax.f32 %v553_v60, 0.0 }
  0xf1   :  { %1115 = vst.msk [vmem:[%s2231_s5 + $0x18] sm:$0xf] %vm1108_vm1, %v1283_v62  ;;  %v1313_v7 = vpack.c.bf16 %v824_v63, %v824_v63  ;;  %v1284_v9 = vpack.c.bf16 %v795_v0, %v795_v0  ;;  %v825_v10 = vmax.f32 %v681_v1, 0.0 }
  0xf2   :  { %1147 = vst.msk [vmem:[%s2231_s5 + $0x98] sm:$0xf] %vm1108_vm1, %v1315_v3  ;;  %1113 = vst.msk [vmem:[%s2231_s5 + $0x10] sm:$0xf] %vm1108_vm1, %v1281_v4  ;;  %v1316_v11 = vpack.c.bf16 %v827_v5, %v827_v5  ;;  %v1282_v12 = vpack.c.bf16 %v793_v6, %v793_v6  ;;  %v1545_v14 = vpop.f32.mrb[8].mxu0 }
  0xf3   :  { %1145 = vst.msk [vmem:[%s2231_s5 + $0x90] sm:$0xf] %vm1108_vm1, %v1313_v7  ;;  %1116 = vst.msk [vmem:[%s2231_s5 + $0x1c] sm:$0xf] %vm1108_vm1, %v1284_v9  ;;  %v1314_v13 = vpack.c.bf16 %v825_v10, %v825_v10  ;;  %v574_v15 = vadd.f32 %v1545_v14, %v1904_v2  ;;  %v565_v8 = vpop.f32.mrb[9].mxu0 }
  0xf4   :  { %1148 = vst.msk [vmem:[%s2231_s5 + $0x9c] sm:$0xf] %vm1108_vm1, %v1316_v11  ;;  %1114 = vst.msk [vmem:[%s2231_s5 + $0x14] sm:$0xf] %vm1108_vm1, %v1282_v12  ;;  %v566_v17 = vadd.f32 %v1904_v2, %v565_v8  ;;  %v1546_v18 = vpop.f32.mrb[10].mxu0 }
  0xf5   :  { %1146 = vst.msk [vmem:[%s2231_s5 + $0x94] sm:$0xf] %vm1108_vm1, %v1314_v13  ;;  %v1577_v16 = vpop.f32.mrb[8].mxu1  ;;  %v798_v19 = vmax.f32 %v574_v15, 0.0  ;;  %v577_v22 = vadd.f32 %v1546_v18, %v1904_v2  ;;  %v568_v23 = vpop.f32.mrb[11].mxu0 }
  0xf6   :  { %v702_v20 = vadd.f32 %v1577_v16, %v1904_v2  ;;  %v693_v21 = vpop.f32.mrb[9].mxu1  ;;  %v796_v24 = vmax.f32 %v566_v17, 0.0  ;;  %v569_v27 = vadd.f32 %v1904_v2, %v568_v23 }
  0xf7   :  { %v694_v25 = vadd.f32 %v1904_v2, %v693_v21  ;;  %v1578_v26 = vpop.f32.mrb[10].mxu1  ;;  %v1287_v28 = vpack.c.bf16 %v798_v19, %v798_v19  ;;  %v799_v30 = vmax.f32 %v577_v22, 0.0 }
  0xf8   :  { %v830_v29 = vmax.f32 %v702_v20, 0.0  ;;  %v705_v31 = vadd.f32 %v1578_v26, %v1904_v2  ;;  %v696_v32 = vpop.f32.mrb[11].mxu1  ;;  %v1285_v33 = vpack.c.bf16 %v796_v24, %v796_v24  ;;  %v797_v35 = vmax.f32 %v569_v27, 0.0 }
  0xf9   :  { %v828_v34 = vmax.f32 %v694_v25, 0.0  ;;  %v697_v36 = vadd.f32 %v1904_v2, %v696_v32  ;;  %1119 = vst.msk [vmem:[%s2231_s5 + $0x28] sm:$0xf] %vm1108_vm1, %v1287_v28  ;;  %v1288_v38 = vpack.c.bf16 %v799_v30, %v799_v30 }
  0xfa   :  { %v1319_v37 = vpack.c.bf16 %v830_v29, %v830_v29  ;;  %v831_v39 = vmax.f32 %v705_v31, 0.0  ;;  %1117 = vst.msk [vmem:[%s2231_s5 + $0x20] sm:$0xf] %vm1108_vm1, %v1285_v33  ;;  %v1286_v41 = vpack.c.bf16 %v797_v35, %v797_v35 }
  0xfb   :  { %v1317_v40 = vpack.c.bf16 %v828_v34, %v828_v34  ;;  %v829_v42 = vmax.f32 %v697_v36, 0.0  ;;  %1120 = vst.msk [vmem:[%s2231_s5 + $0x2c] sm:$0xf] %vm1108_vm1, %v1288_v38 }
  0xfc   :  { %1151 = vst.msk [vmem:[%s2231_s5 + $0xa8] sm:$0xf] %vm1108_vm1, %v1319_v37  ;;  %v1320_v43 = vpack.c.bf16 %v831_v39, %v831_v39  ;;  %v1549_v44 = vpop.f32.mrb[12].mxu0  ;;  %1118 = vst.msk [vmem:[%s2231_s5 + $0x24] sm:$0xf] %vm1108_vm1, %v1286_v41 }
  0xfd   :  { %1149 = vst.msk [vmem:[%s2231_s5 + $0xa0] sm:$0xf] %vm1108_vm1, %v1317_v40  ;;  %v1318_v45 = vpack.c.bf16 %v829_v42, %v829_v42  ;;  %v590_v46 = vadd.f32 %v1549_v44, %v1904_v2  ;;  %v581_v47 = vpop.f32.mrb[13].mxu0 }
  0xfe   :  { %1152 = vst.msk [vmem:[%s2231_s5 + $0xac] sm:$0xf] %vm1108_vm1, %v1320_v43  ;;  %v582_v48 = vadd.f32 %v1904_v2, %v581_v47  ;;  %v1550_v49 = vpop.f32.mrb[14].mxu0  ;;  %v1581_v51 = vpop.f32.mrb[12].mxu1 }
  0xff   :  { %1150 = vst.msk [vmem:[%s2231_s5 + $0xa4] sm:$0xf] %vm1108_vm1, %v1318_v45  ;;  %v802_v50 = vmax.f32 %v590_v46, 0.0  ;;  %v593_v52 = vadd.f32 %v1550_v49, %v1904_v2  ;;  %v584_v53 = vpop.f32.mrb[15].mxu0  ;;  %v718_v54 = vadd.f32 %v1581_v51, %v1904_v2  ;;  %v709_v56 = vpop.f32.mrb[13].mxu1 }
 0x100   :  { %v800_v55 = vmax.f32 %v582_v48, 0.0  ;;  %v585_v57 = vadd.f32 %v1904_v2, %v584_v53  ;;  %v710_v59 = vadd.f32 %v1904_v2, %v709_v56  ;;  %v1582_v61 = vpop.f32.mrb[14].mxu1 }
 0x101   :  { %v1291_v58 = vpack.c.bf16 %v802_v50, %v802_v50  ;;  %v803_v60 = vmax.f32 %v593_v52, 0.0  ;;  %v834_v62 = vmax.f32 %v718_v54, 0.0  ;;  %v721_v0 = vadd.f32 %v1582_v61, %v1904_v2  ;;  %v712_v3 = vpop.f32.mrb[15].mxu1 }
 0x102   :  { %v1289_v63 = vpack.c.bf16 %v800_v55, %v800_v55  ;;  %v801_v1 = vmax.f32 %v585_v57, 0.0  ;;  %v832_v4 = vmax.f32 %v710_v59, 0.0  ;;  %v713_v6 = vadd.f32 %v1904_v2, %v712_v3 }
 0x103   :  { %1123 = vst.msk [vmem:[%s2231_s5 + $0x38] sm:$0xf] %vm1108_vm1, %v1291_v58  ;;  %v1292_v5 = vpack.c.bf16 %v803_v60, %v803_v60  ;;  %v1323_v7 = vpack.c.bf16 %v834_v62, %v834_v62  ;;  %v835_v9 = vmax.f32 %v721_v0, 0.0 }
 0x104   :  { %1121 = vst.msk [vmem:[%s2231_s5 + $0x30] sm:$0xf] %vm1108_vm1, %v1289_v63  ;;  %v1290_v10 = vpack.c.bf16 %v801_v1, %v801_v1  ;;  %v1321_v11 = vpack.c.bf16 %v832_v4, %v832_v4  ;;  %v833_v12 = vmax.f32 %v713_v6, 0.0 }
 0x105   :  { %1124 = vst.msk [vmem:[%s2231_s5 + $0x3c] sm:$0xf] %vm1108_vm1, %v1292_v5  ;;  %v1553_v13 = vpop.f32.mrb[16].mxu0  ;;  %1155 = vst.msk [vmem:[%s2231_s5 + $0xb8] sm:$0xf] %vm1108_vm1, %v1323_v7  ;;  %v1324_v14 = vpack.c.bf16 %v835_v9, %v835_v9 }
 0x106   :  { %1122 = vst.msk [vmem:[%s2231_s5 + $0x34] sm:$0xf] %vm1108_vm1, %v1290_v10  ;;  %v606_v15 = vadd.f32 %v1553_v13, %v1904_v2  ;;  %v597_v8 = vpop.f32.mrb[17].mxu0  ;;  %1153 = vst.msk [vmem:[%s2231_s5 + $0xb0] sm:$0xf] %vm1108_vm1, %v1321_v11  ;;  %v1322_v16 = vpack.c.bf16 %v833_v12, %v833_v12 }
 0x107   :  { %v598_v17 = vadd.f32 %v1904_v2, %v597_v8  ;;  %v1554_v18 = vpop.f32.mrb[18].mxu0  ;;  %1156 = vst.msk [vmem:[%s2231_s5 + $0xbc] sm:$0xf] %vm1108_vm1, %v1324_v14  ;;  %v1585_v20 = vpop.f32.mrb[16].mxu1 }
 0x108   :  { %v806_v19 = vmax.f32 %v606_v15, 0.0  ;;  %v609_v21 = vadd.f32 %v1554_v18, %v1904_v2  ;;  %v600_v22 = vpop.f32.mrb[19].mxu0  ;;  %1154 = vst.msk [vmem:[%s2231_s5 + $0xb4] sm:$0xf] %vm1108_vm1, %v1322_v16  ;;  %v734_v23 = vadd.f32 %v1585_v20, %v1904_v2  ;;  %v725_v25 = vpop.f32.mrb[17].mxu1 }
 0x109   :  { %v804_v24 = vmax.f32 %v598_v17, 0.0  ;;  %v601_v26 = vadd.f32 %v1904_v2, %v600_v22  ;;  %v726_v28 = vadd.f32 %v1904_v2, %v725_v25  ;;  %v1586_v30 = vpop.f32.mrb[18].mxu1 }
 0x10a   :  { %v1295_v27 = vpack.c.bf16 %v806_v19, %v806_v19  ;;  %v807_v29 = vmax.f32 %v609_v21, 0.0  ;;  %v838_v31 = vmax.f32 %v734_v23, 0.0  ;;  %v737_v33 = vadd.f32 %v1586_v30, %v1904_v2  ;;  %v728_v35 = vpop.f32.mrb[19].mxu1 }
 0x10b   :  { %v1293_v32 = vpack.c.bf16 %v804_v24, %v804_v24  ;;  %v805_v34 = vmax.f32 %v601_v26, 0.0  ;;  %v836_v36 = vmax.f32 %v726_v28, 0.0  ;;  %v729_v38 = vadd.f32 %v1904_v2, %v728_v35 }
 0x10c   :  { %1127 = vst.msk [vmem:[%s2231_s5 + $0x48] sm:$0xf] %vm1108_vm1, %v1295_v27  ;;  %v1296_v37 = vpack.c.bf16 %v807_v29, %v807_v29  ;;  %v1327_v39 = vpack.c.bf16 %v838_v31, %v838_v31  ;;  %v839_v40 = vmax.f32 %v737_v33, 0.0 }
 0x10d   :  { %1125 = vst.msk [vmem:[%s2231_s5 + $0x40] sm:$0xf] %vm1108_vm1, %v1293_v32  ;;  %v1294_v41 = vpack.c.bf16 %v805_v34, %v805_v34  ;;  %v1325_v42 = vpack.c.bf16 %v836_v36, %v836_v36  ;;  %v837_v43 = vmax.f32 %v729_v38, 0.0 }
 0x10e   :  { %1128 = vst.msk [vmem:[%s2231_s5 + $0x4c] sm:$0xf] %vm1108_vm1, %v1296_v37  ;;  %v1557_v44 = vpop.f32.mrb[20].mxu0  ;;  %1159 = vst.msk [vmem:[%s2231_s5 + $0xc8] sm:$0xf] %vm1108_vm1, %v1327_v39  ;;  %v1328_v45 = vpack.c.bf16 %v839_v40, %v839_v40 }
 0x10f   :  { %1126 = vst.msk [vmem:[%s2231_s5 + $0x44] sm:$0xf] %vm1108_vm1, %v1294_v41  ;;  %v622_v46 = vadd.f32 %v1557_v44, %v1904_v2  ;;  %v613_v47 = vpop.f32.mrb[21].mxu0  ;;  %1157 = vst.msk [vmem:[%s2231_s5 + $0xc0] sm:$0xf] %vm1108_vm1, %v1325_v42  ;;  %v1326_v48 = vpack.c.bf16 %v837_v43, %v837_v43 }
 0x110   :  { %v614_v49 = vadd.f32 %v1904_v2, %v613_v47  ;;  %v1558_v50 = vpop.f32.mrb[22].mxu0  ;;  %1160 = vst.msk [vmem:[%s2231_s5 + $0xcc] sm:$0xf] %vm1108_vm1, %v1328_v45  ;;  %v1589_v52 = vpop.f32.mrb[20].mxu1 }
 0x111   :  { %v810_v51 = vmax.f32 %v622_v46, 0.0  ;;  %v625_v53 = vadd.f32 %v1558_v50, %v1904_v2  ;;  %v616_v54 = vpop.f32.mrb[23].mxu0  ;;  %1158 = vst.msk [vmem:[%s2231_s5 + $0xc4] sm:$0xf] %vm1108_vm1, %v1326_v48  ;;  %v750_v55 = vadd.f32 %v1589_v52, %v1904_v2  ;;  %v741_v57 = vpop.f32.mrb[21].mxu1 }
 0x112   :  { %v808_v56 = vmax.f32 %v614_v49, 0.0  ;;  %v617_v58 = vadd.f32 %v1904_v2, %v616_v54  ;;  %v742_v60 = vadd.f32 %v1904_v2, %v741_v57  ;;  %v1590_v62 = vpop.f32.mrb[22].mxu1 }
 0x113   :  { %v1299_v59 = vpack.c.bf16 %v810_v51, %v810_v51  ;;  %v811_v61 = vmax.f32 %v625_v53, 0.0  ;;  %v842_v63 = vmax.f32 %v750_v55, 0.0  ;;  %v753_v1 = vadd.f32 %v1590_v62, %v1904_v2  ;;  %v744_v4 = vpop.f32.mrb[23].mxu1 }
 0x114   :  { %v1297_v0 = vpack.c.bf16 %v808_v56, %v808_v56  ;;  %v809_v3 = vmax.f32 %v617_v58, 0.0  ;;  %v840_v5 = vmax.f32 %v742_v60, 0.0  ;;  %v745_v7 = vadd.f32 %v1904_v2, %v744_v4 }
 0x115   :  { %1131 = vst.msk [vmem:[%s2231_s5 + $0x58] sm:$0xf] %vm1108_vm1, %v1299_v59  ;;  %v1300_v6 = vpack.c.bf16 %v811_v61, %v811_v61  ;;  %v1331_v9 = vpack.c.bf16 %v842_v63, %v842_v63  ;;  %v843_v10 = vmax.f32 %v753_v1, 0.0 }
 0x116   :  { %1129 = vst.msk [vmem:[%s2231_s5 + $0x50] sm:$0xf] %vm1108_vm1, %v1297_v0  ;;  %v1298_v11 = vpack.c.bf16 %v809_v3, %v809_v3  ;;  %v1329_v12 = vpack.c.bf16 %v840_v5, %v840_v5  ;;  %v841_v13 = vmax.f32 %v745_v7, 0.0 }
 0x117   :  { %1132 = vst.msk [vmem:[%s2231_s5 + $0x5c] sm:$0xf] %vm1108_vm1, %v1300_v6  ;;  %v1561_v14 = vpop.f32.mrb[24].mxu0  ;;  %1163 = vst.msk [vmem:[%s2231_s5 + $0xd8] sm:$0xf] %vm1108_vm1, %v1331_v9  ;;  %v1332_v15 = vpack.c.bf16 %v843_v10, %v843_v10 }
 0x118   :  { %1130 = vst.msk [vmem:[%s2231_s5 + $0x54] sm:$0xf] %vm1108_vm1, %v1298_v11  ;;  %v638_v8 = vadd.f32 %v1561_v14, %v1904_v2  ;;  %v629_v16 = vpop.f32.mrb[25].mxu0  ;;  %1161 = vst.msk [vmem:[%s2231_s5 + $0xd0] sm:$0xf] %vm1108_vm1, %v1329_v12  ;;  %v1330_v17 = vpack.c.bf16 %v841_v13, %v841_v13 }
 0x119   :  { %v630_v18 = vadd.f32 %v1904_v2, %v629_v16  ;;  %v1562_v19 = vpop.f32.mrb[26].mxu0  ;;  %1164 = vst.msk [vmem:[%s2231_s5 + $0xdc] sm:$0xf] %vm1108_vm1, %v1332_v15  ;;  %v1593_v21 = vpop.f32.mrb[24].mxu1 }
 0x11a   :  { %v814_v20 = vmax.f32 %v638_v8, 0.0  ;;  %v641_v22 = vadd.f32 %v1562_v19, %v1904_v2  ;;  %v632_v23 = vpop.f32.mrb[27].mxu0  ;;  %1162 = vst.msk [vmem:[%s2231_s5 + $0xd4] sm:$0xf] %vm1108_vm1, %v1330_v17  ;;  %v766_v24 = vadd.f32 %v1593_v21, %v1904_v2  ;;  %v757_v26 = vpop.f32.mrb[25].mxu1 }
 0x11b   :  { %v812_v25 = vmax.f32 %v630_v18, 0.0  ;;  %v633_v27 = vadd.f32 %v1904_v2, %v632_v23  ;;  %v758_v29 = vadd.f32 %v1904_v2, %v757_v26  ;;  %v1594_v31 = vpop.f32.mrb[26].mxu1 }
 0x11c   :  { %v1303_v28 = vpack.c.bf16 %v814_v20, %v814_v20  ;;  %v815_v30 = vmax.f32 %v641_v22, 0.0  ;;  %v846_v32 = vmax.f32 %v766_v24, 0.0  ;;  %v769_v34 = vadd.f32 %v1594_v31, %v1904_v2  ;;  %v760_v36 = vpop.f32.mrb[27].mxu1 }
 0x11d   :  { %v1301_v33 = vpack.c.bf16 %v812_v25, %v812_v25  ;;  %v813_v35 = vmax.f32 %v633_v27, 0.0  ;;  %v844_v37 = vmax.f32 %v758_v29, 0.0  ;;  %v761_v39 = vadd.f32 %v1904_v2, %v760_v36 }
 0x11e   :  { %1135 = vst.msk [vmem:[%s2231_s5 + $0x68] sm:$0xf] %vm1108_vm1, %v1303_v28  ;;  %v1304_v38 = vpack.c.bf16 %v815_v30, %v815_v30  ;;  %v1335_v40 = vpack.c.bf16 %v846_v32, %v846_v32  ;;  %v847_v41 = vmax.f32 %v769_v34, 0.0 }
 0x11f   :  { %1133 = vst.msk [vmem:[%s2231_s5 + $0x60] sm:$0xf] %vm1108_vm1, %v1301_v33  ;;  %v1302_v42 = vpack.c.bf16 %v813_v35, %v813_v35  ;;  %v1333_v43 = vpack.c.bf16 %v844_v37, %v844_v37  ;;  %v845_v44 = vmax.f32 %v761_v39, 0.0 }
 0x120   :  { %1136 = vst.msk [vmem:[%s2231_s5 + $0x6c] sm:$0xf] %vm1108_vm1, %v1304_v38  ;;  %v1565_v45 = vpop.f32.mrb[28].mxu0  ;;  %1167 = vst.msk [vmem:[%s2231_s5 + $0xe8] sm:$0xf] %vm1108_vm1, %v1335_v40  ;;  %v1336_v46 = vpack.c.bf16 %v847_v41, %v847_v41 }
 0x121   :  { %1134 = vst.msk [vmem:[%s2231_s5 + $0x64] sm:$0xf] %vm1108_vm1, %v1302_v42  ;;  %v654_v47 = vadd.f32 %v1565_v45, %v1904_v2  ;;  %v645_v48 = vpop.f32.mrb[29].mxu0  ;;  %1165 = vst.msk [vmem:[%s2231_s5 + $0xe0] sm:$0xf] %vm1108_vm1, %v1333_v43  ;;  %v1334_v49 = vpack.c.bf16 %v845_v44, %v845_v44 }
 0x122   :  { %v646_v50 = vadd.f32 %v1904_v2, %v645_v48  ;;  %v1566_v51 = vpop.f32.mrb[30].mxu0  ;;  %1168 = vst.msk [vmem:[%s2231_s5 + $0xec] sm:$0xf] %vm1108_vm1, %v1336_v46  ;;  %v1597_v53 = vpop.f32.mrb[28].mxu1 }
 0x123   :  { %v818_v52 = vmax.f32 %v654_v47, 0.0  ;;  %v657_v54 = vadd.f32 %v1566_v51, %v1904_v2  ;;  %v648_v55 = vpop.f32.mrb[31].mxu0  ;;  %1166 = vst.msk [vmem:[%s2231_s5 + $0xe4] sm:$0xf] %vm1108_vm1, %v1334_v49  ;;  %v782_v56 = vadd.f32 %v1597_v53, %v1904_v2  ;;  %v773_v58 = vpop.f32.mrb[29].mxu1 }
 0x124   :  { %v816_v57 = vmax.f32 %v646_v50, 0.0  ;;  %v649_v59 = vadd.f32 %v1904_v2, %v648_v55  ;;  %v774_v61 = vadd.f32 %v1904_v2, %v773_v58  ;;  %v1598_v63 = vpop.f32.mrb[30].mxu1 }
 0x125   :  { %v1307_v60 = vpack.c.bf16 %v818_v52, %v818_v52  ;;  %v819_v62 = vmax.f32 %v657_v54, 0.0  ;;  %v850_v0 = vmax.f32 %v782_v56, 0.0  ;;  %v785_v3 = vadd.f32 %v1598_v63, %v1904_v2  ;;  %v776_v5 = vpop.f32.mrb[31].mxu1 }
 0x126   :  { %v1305_v1 = vpack.c.bf16 %v816_v57, %v816_v57  ;;  %v817_v4 = vmax.f32 %v649_v59, 0.0  ;;  %v848_v6 = vmax.f32 %v774_v61, 0.0  ;;  %v777_v9 = vadd.f32 %v1904_v2, %v776_v5 }
 0x127   :  { %1139 = vst.msk [vmem:[%s2231_s5 + $0x78] sm:$0xf] %vm1108_vm1, %v1307_v60  ;;  %v1308_v7 = vpack.c.bf16 %v819_v62, %v819_v62  ;;  %v1339_v10 = vpack.c.bf16 %v850_v0, %v850_v0  ;;  %v851_v11 = vmax.f32 %v785_v3, 0.0 }
 0x128   :  { %1137 = vst.msk [vmem:[%s2231_s5 + $0x70] sm:$0xf] %vm1108_vm1, %v1305_v1  ;;  %v1306_v12 = vpack.c.bf16 %v817_v4, %v817_v4  ;;  %v1337_v13 = vpack.c.bf16 %v848_v6, %v848_v6  ;;  %v849_v14 = vmax.f32 %v777_v9, 0.0 }
 0x129   :  { %1140 = vst.msk [vmem:[%s2231_s5 + $0x7c] sm:$0xf] %vm1108_vm1, %v1308_v7  ;;  %1171 = vst.msk [vmem:[%s2231_s5 + $0xf8] sm:$0xf] %vm1108_vm1, %v1339_v10  ;;  %v1340_v2 = vpack.c.bf16 %v851_v11, %v851_v11 }
 0x12a   :  { %1138 = vst.msk [vmem:[%s2231_s5 + $0x74] sm:$0xf] %vm1108_vm1, %v1306_v12  ;;  %1169 = vst.msk [vmem:[%s2231_s5 + $0xf0] sm:$0xf] %vm1108_vm1, %v1337_v13  ;;  %v1338_v15 = vpack.c.bf16 %v849_v14, %v849_v14 }
 0x12b   :  { %1172 = vst.msk [vmem:[%s2231_s5 + $0xfc] sm:$0xf] %vm1108_vm1, %v1340_v2 }
 0x12c   :  { %1170 = vst.msk [vmem:[%s2231_s5 + $0xf4] sm:$0xf] %vm1108_vm1, %v1338_v15 }

// kernel: densenet_forward.21
= control target key start
LH: loop header
LB: loop body
LE: loop exit
PB: predicated region body
PF: predicated region fallthrough
CT: control target
= control target key end

     0   :  { %s1949_s18 = smov 0   ;;  %s2624_s0 = inlined_call_operand.vmem [shape: bf16[2048,147], index: 0, kind: input, shape index: {}]   ;;  %s2625_s1 = inlined_call_operand.vmem [shape: bf16[147,16], index: 1, kind: input, shape index: {}]   ;;  %s2626_s2 = inlined_call_operand.vmem [shape: f32[1,147], index: 2, kind: input, shape index: {}]   ;;  %s2627_s3 = inlined_call_operand.vmem [shape: f32[1,147], index: 3, kind: input, shape index: {}]   ;;  %s2628_s4 = inlined_call_operand.vmem [shape: f32[1,16], index: 4, kind: input, shape index: {}]   ;;  %s2629_s5 = inlined_call_operand.vmem [shape: bf16[2048,16], index: 5, kind: output, shape index: {}]  }
   0x1 LB: > { %s1685_s19 = sadd.s32 4294967295, %s1915_s18   ;;  %p1689_p0 = scmp.ge.s32.totalorder %s1915_s18, 1  ;;  %s1915_s18 = sphi %s1949_s18, %s15_s18  }
   0x2   : > { %p189_p1 = scmp.lt.s32.totalorder %s1915_s18, 5 }
   0x4   : > { %p190_p2 = pnand %p1689_p0, %p189_p1 }
   0x5   : > { %v1899_v0 = vld [vmem:[%s2625_s1] sm:$0xff] (!%p190_p2)   ;;  %v1917_v1 = vmov (!%p190_p2), 0   ;;  %v1900_v2 = vld [vmem:[%s2625_s1 + $0x8] sm:$0xff] (!%p190_p2)   ;;  %v426_v3 = vlaneseq (!%p190_p2)  ;;  %v1901_v4 = vld [vmem:[%s2625_s1 + $0x10] sm:$0xff] (!%p190_p2)   ;;  %s1690_s26 = sshll.u32 (!%p190_p2), %s1685_s19, 6  ;;  %vm948_vm0 = vcmask (!%p190_p2), 1040384  }
   0x6   : > { %193 = sbr.rel (%p190_p2) target bundleno = 387 (0x183), region = 40  ;;  %955 = vmatprep.subr.bf16.mxu0 (!%p190_p2), %v1917_v1  ;;  %1869 = vmatprep.subr.bf16.mxu1 (!%p190_p2), %v1917_v1  ;;  %p219_p3 = scmp.lt.s32.totalorder (!%p190_p2), %s1690_s26, 255  ;;  %v1902_v6 = vld [vmem:[%s2625_s1 + $0x18] sm:$0xff] (!%p190_p2)   ;;  %v424_v7 = vld [vmem:[%s2626_s2] sm:$0x3] (!%p190_p2)  ;;  %v1904_v25 = vld [vmem:[%s2625_s1 + $0x28] sm:$0xff] (!%p190_p2)  }
   0x7   : > { %956 = vmatpush1.bf16.msra.mxu0 (!%p190_p2), %v1899_v0  ;;  %1879 = vmatpush1.bf16.msra.mxu1 (!%p190_p2), %v1899_v0  ;;  %v1972_v5 = vshrl.u32 (!%p190_p2), %v426_v3, 7  ;;  %v1989_v9 = vld [vmem:[%s2627_s3] sm:$0x3] (!%p190_p2)  ;;  %vm851_vm1 = vcmask (!%p190_p2), 154624   ;;  %v1905_v33 = vld [vmem:[%s2625_s1 + $0x30] sm:$0xff] (!%p190_p2)   ;;  %vm949_vm2 = vcmask (!%p190_p2), 1041408  }
   0x8   : > { %957 = vmatprep.subr.bf16.mxu0 (!%p190_p2), %v1917_v1  ;;  %1870 = vmatprep.subr.bf16.mxu1 (!%p190_p2), %v1917_v1  ;;  %v1903_v14 = vld [vmem:[%s2625_s1 + $0x20] sm:$0xff] (!%p190_p2)   ;;  %v1918_v35 = vmov (!%p190_p2), 65535   ;;  %v1908_v45 = vld [vmem:[%s2625_s1 + $0x48] ss:$0 sps:$4 sm:$0x33] (!%p190_p2)   ;;  %v1906_v47 = vld [vmem:[%s2625_s1 + $0x38] sm:$0xff] (!%p190_p2)  }
   0x9   : > { %v432_v8 = vsub.s32 (!%p190_p2), 1, %v1972_v5  ;;  %v428_v28 = vsub.s32 (!%p190_p2), 0, %v1972_v5  ;;  %v950_v36 = vsel (!%p190_p2), %vm948_vm0, 4294967295, %v1918_v35  ;;  %v1907_v57 = vld [vmem:[%s2625_s1 + $0x40] sm:$0xff] (!%p190_p2)   ;;  %vm1564_vm3 = vcmask (!%p190_p2), 125952  }
   0xa   : > { %v951_v48 = vsel (!%p190_p2), %vm949_vm2, %v950_v36, 0 }
   0xb   : > { %958 = vmatpush1.bf16.msra.mxu0 (!%p190_p2), %v1900_v2  ;;  %1880 = vmatpush1.bf16.msra.mxu1 (!%p190_p2), %v1900_v2  ;;  %v1996_v10 = vrot.slane (!%p190_p2), %v424_v7, %v432_v8  ;;  %v2013_v17 = vrot.slane (!%p190_p2), %v1989_v9, %v432_v8  ;;  %v2042_v38 = vrot.slane (!%p190_p2), %v424_v7, %v428_v28 }
   0xc   : > { %959 = vmatprep.subr.bf16.mxu0 (!%p190_p2), %v1917_v1  ;;  %1871 = vmatprep.subr.bf16.mxu1 (!%p190_p2), %v1917_v1  ;;  %v2062_v52 = vrot.slane (!%p190_p2), %v1989_v9, %v428_v28  ;;  %v953_v58 = vand.u32 (!%p190_p2), %v1908_v45, %v951_v48 }
   0xd   : > { %s2631_s26 = smov (!%p219_p3, %s1690_s26), 255 }
   0xe   : > { %s1804_s6 = sshll.u32 %s2631_s26, 3  ;;  %s1694_s28 = sshll.u32 %s2631_s26, 2 }
   0xf   : > { %960 = vmatpush1.bf16.msra.mxu0 %v1901_v4  ;;  %1881 = vmatpush1.bf16.msra.mxu1 %v1901_v4  ;;  %s1994_s11 = scalar_lea.vmem %s2624_s0, %s1804_s6  ;;  %s2431_s26 = scalar_lea.vmem %s2629_s5, %s1694_s28 }
  0x10   : > { %961 = vmatprep.subr.bf16.mxu0 %v1917_v1  ;;  %1872 = vmatprep.subr.bf16.mxu1 %v1917_v1  ;;  %v1999_v11 = vld [vmem:[%s1994_s11] sm:$0xff]  ;;  %v2002_v12 = vld [vmem:[%s1994_s11 + $0x8] sm:$0xff]  ;;  %v2037_v34 = vld [vmem:[%s1994_s11 + $0x10] sm:$0xff] }
  0x11   : > { %v2005_v13 = vld [vmem:[%s1994_s11 + $0x100] sm:$0xff]  ;;  %v297_v15 = vunpack.c.h.bf16 %v1999_v11  ;;  %v299_v16 = vunpack.c.h.bf16 %v2002_v12  ;;  %v265_v18 = vld [vmem:[%s1994_s11 + $0x108] sm:$0xff]  ;;  %v296_v37 = vunpack.c.l.bf16 %v1999_v11  ;;  %v235_v39 = vld [vmem:[%s1994_s11 + $0x18] sm:$0xff]  ;;  %v298_v42 = vunpack.c.l.bf16 %v2002_v12 }
  0x12   : > { %v361_v19 = vunpack.c.h.bf16 %v2005_v13  ;;  %v363_v20 = vunpack.c.h.bf16 %v265_v18  ;;  %v266_v40 = vld [vmem:[%s1994_s11 + $0x110] sm:$0xff]  ;;  %v267_v41 = vld [vmem:[%s1994_s11 + $0x118] sm:$0xff]  ;;  %v360_v43 = vunpack.c.l.bf16 %v2005_v13  ;;  %v362_v44 = vunpack.c.l.bf16 %v265_v18  ;;  %v2076_v63 = vld [vmem:[%s1994_s11 + $0x20] sm:$0xff] }
  0x13   : > { %962 = vmatpush1.bf16.msra.mxu0 %v1902_v6  ;;  %1882 = vmatpush1.bf16.msra.mxu1 %v1902_v6  ;;  %v437_v21 = vmul.f32 %v1996_v10, %v297_v15  ;;  %v439_v22 = vmul.f32 %v1996_v10, %v299_v16  ;;  %v301_v46 = vunpack.c.h.bf16 %v2037_v34  ;;  %v303_v49 = vunpack.c.h.bf16 %v235_v39  ;;  %v2079_v0 = vld [vmem:[%s1994_s11 + $0x28] sm:$0xff]  ;;  %v2082_v2 = vld [vmem:[%s1994_s11 + $0x120] sm:$0xff] }
  0x14   : > { %963 = vmatprep.subr.bf16.mxu0 %v1917_v1  ;;  %1873 = vmatprep.subr.bf16.mxu1 %v1917_v1  ;;  %v501_v23 = vmul.f32 %v1996_v10, %v361_v19  ;;  %v503_v24 = vmul.f32 %v1996_v10, %v363_v20  ;;  %v365_v50 = vunpack.c.h.bf16 %v266_v40  ;;  %v367_v51 = vunpack.c.h.bf16 %v267_v41  ;;  %v269_v7 = vld [vmem:[%s1994_s11 + $0x128] sm:$0xff] }
  0x15   : > { %v577_v26 = vadd.f32 %v2013_v17, %v437_v21  ;;  %v579_v27 = vadd.f32 %v2013_v17, %v439_v22  ;;  %v436_v53 = vmul.f32 %v2042_v38, %v296_v37  ;;  %v438_v54 = vmul.f32 %v2042_v38, %v298_v42 }
  0x16   : > { %v641_v29 = vadd.f32 %v2013_v17, %v501_v23  ;;  %v643_v30 = vadd.f32 %v2013_v17, %v503_v24  ;;  %v500_v55 = vmul.f32 %v2042_v38, %v360_v43  ;;  %v502_v56 = vmul.f32 %v2042_v38, %v362_v44 }
  0x17   : > { %964 = vmatpush1.bf16.msra.mxu0 %v1903_v14  ;;  %1883 = vmatpush1.bf16.msra.mxu1 %v1903_v14  ;;  %v705_v31 = vpack.c.bf16 %v579_v27, %v577_v26  ;;  %v441_v59 = vmul.f32 %v1996_v10, %v301_v46  ;;  %v443_v60 = vmul.f32 %v1996_v10, %v303_v49  ;;  %v300_v4 = vunpack.c.l.bf16 %v2037_v34 }
  0x18   : > { %965 = vmatprep.subr.bf16.mxu0 %v1917_v1  ;;  %1874 = vmatprep.subr.bf16.mxu1 %v1917_v1  ;;  %v737_v32 = vpack.c.bf16 %v643_v30, %v641_v29  ;;  %v505_v61 = vmul.f32 %v1996_v10, %v365_v50  ;;  %v507_v62 = vmul.f32 %v1996_v10, %v367_v51  ;;  %v302_v5 = vunpack.c.l.bf16 %v235_v39  ;;  %v239_v39 = vld [vmem:[%s1994_s11 + $0x38] sm:$0xff] }
  0x19   : > { %1706 = vmatprep.mubr.msk.bf16.mxu0 %vm851_vm1, %v705_v31  ;;  %v576_v3 = vadd.f32 %v2062_v52, %v436_v53  ;;  %v364_v6 = vunpack.c.l.bf16 %v266_v40  ;;  %v578_v8 = vadd.f32 %v2062_v52, %v438_v54  ;;  %v640_v9 = vadd.f32 %v2062_v52, %v500_v55  ;;  %v270_v40 = vld [vmem:[%s1994_s11 + $0x130] sm:$0xff] }
  0x1a   : > { %1722 = vmatprep.mubr.msk.bf16.mxu1 %vm851_vm1, %v737_v32  ;;  %v642_v11 = vadd.f32 %v2062_v52, %v502_v56  ;;  %v366_v12 = vunpack.c.l.bf16 %v267_v41  ;;  %v581_v13 = vadd.f32 %v2013_v17, %v441_v59  ;;  %v305_v14 = vunpack.c.h.bf16 %v2076_v63  ;;  %v271_v41 = vld [vmem:[%s1994_s11 + $0x138] sm:$0xff] }
  0x1b   : > { %966 = vmatpush1.bf16.msra.mxu0 %v1904_v25  ;;  %1884 = vmatpush1.bf16.msra.mxu1 %v1904_v25  ;;  %v307_v15 = vunpack.c.h.bf16 %v2079_v0  ;;  %v369_v16 = vunpack.c.h.bf16 %v2082_v2  ;;  %v583_v18 = vadd.f32 %v2013_v17, %v443_v60  ;;  %v645_v19 = vadd.f32 %v2013_v17, %v505_v61 }
  0x1c   : > { %967 = vmatprep.subr.bf16.mxu0 %v1917_v1  ;;  %1875 = vmatprep.subr.bf16.mxu1 %v1917_v1  ;;  %v647_v20 = vadd.f32 %v2013_v17, %v507_v62  ;;  %v371_v21 = vunpack.c.h.bf16 %v269_v7  ;;  %v440_v22 = vmul.f32 %v2042_v38, %v300_v4  ;;  %v442_v23 = vmul.f32 %v2042_v38, %v302_v5  ;;  %v240_v4 = vld [vmem:[%s1994_s11 + $0x40] sm:$0xff]  ;;  %v241_v5 = vld [vmem:[%s1994_s11 + $0x48] sm:$0xff] }
  0x1d   : > { %v504_v24 = vmul.f32 %v2042_v38, %v364_v6  ;;  %v704_v25 = vpack.c.bf16 %v578_v8, %v576_v3  ;;  %v506_v26 = vmul.f32 %v2042_v38, %v366_v12  ;;  %v736_v27 = vpack.c.bf16 %v642_v11, %v640_v9  ;;  %v272_v6 = vld [vmem:[%s1994_s11 + $0x140] sm:$0xff]  ;;  %v273_v12 = vld [vmem:[%s1994_s11 + $0x148] sm:$0xff] }
  0x1e   : > { %v445_v28 = vmul.f32 %v1996_v10, %v305_v14  ;;  %v447_v29 = vmul.f32 %v1996_v10, %v307_v15  ;;  %v509_v30 = vmul.f32 %v1996_v10, %v369_v16  ;;  %v739_v31 = vpack.c.bf16 %v647_v20, %v645_v19 }
  0x1f   : > { %968 = vmatpush1.bf16.msra.mxu0 %v1905_v33  ;;  %1885 = vmatpush1.bf16.msra.mxu1 %v1905_v33  ;;  %v511_v32 = vmul.f32 %v1996_v10, %v371_v21  ;;  %v238_v33 = vld [vmem:[%s1994_s11 + $0x30] sm:$0xff]  ;;  %v580_v34 = vadd.f32 %v2062_v52, %v440_v22  ;;  %v582_v35 = vadd.f32 %v2062_v52, %v442_v23  ;;  %v304_v37 = vunpack.c.l.bf16 %v2076_v63 }
  0x20   : > { %969 = vmatprep.subr.bf16.mxu0 %v1917_v1  ;;  %1876 = vmatprep.subr.bf16.mxu1 %v1917_v1  ;;  %v644_v36 = vadd.f32 %v2062_v52, %v504_v24  ;;  %v646_v42 = vadd.f32 %v2062_v52, %v506_v26  ;;  %v306_v43 = vunpack.c.l.bf16 %v2079_v0  ;;  %v368_v44 = vunpack.c.l.bf16 %v2082_v2 }
  0x21   : > { %v370_v45 = vunpack.c.l.bf16 %v269_v7  ;;  %v585_v46 = vadd.f32 %v2013_v17, %v445_v28  ;;  %v649_v48 = vadd.f32 %v2013_v17, %v509_v30  ;;  %v309_v49 = vunpack.c.h.bf16 %v238_v33 }
  0x22   : > { %v651_v50 = vadd.f32 %v2013_v17, %v511_v32  ;;  %v311_v51 = vunpack.c.h.bf16 %v239_v39  ;;  %v373_v53 = vunpack.c.h.bf16 %v270_v40  ;;  %v375_v54 = vunpack.c.h.bf16 %v271_v41 }
  0x23   : > { %970 = vmatpush1.bf16.msra.mxu0 %v1906_v47  ;;  %1886 = vmatpush1.bf16.msra.mxu1 %v1906_v47  ;;  %v587_v47 = vadd.f32 %v2013_v17, %v447_v29  ;;  %v444_v55 = vmul.f32 %v2042_v38, %v304_v37  ;;  %v446_v56 = vmul.f32 %v2042_v38, %v306_v43  ;;  %v308_v8 = vunpack.c.l.bf16 %v238_v33  ;;  %v242_v37 = vld [vmem:[%s1994_s11 + $0x50] sm:$0xff]  ;;  %v243_v43 = vld [vmem:[%s1994_s11 + $0x58] sm:$0xff] }
  0x24   : > { %971 = vmatprep.subr.bf16.mxu0 %v1917_v1  ;;  %1877 = vmatprep.subr.bf16.mxu1 %v1917_v1  ;;  %v706_v59 = vpack.c.bf16 %v582_v35, %v580_v34  ;;  %v738_v60 = vpack.c.bf16 %v646_v42, %v644_v36  ;;  %v449_v62 = vmul.f32 %v1996_v10, %v309_v49  ;;  %v310_v9 = vunpack.c.l.bf16 %v239_v39 }
  0x25   : > { %v709_v61 = vpack.c.bf16 %v587_v47, %v585_v46  ;;  %v741_v63 = vpack.c.bf16 %v651_v50, %v649_v48  ;;  %v451_v0 = vmul.f32 %v1996_v10, %v311_v51  ;;  %v513_v2 = vmul.f32 %v1996_v10, %v373_v53 }
  0x26   : > { %v515_v3 = vmul.f32 %v1996_v10, %v375_v54  ;;  %v584_v7 = vadd.f32 %v2062_v52, %v444_v55  ;;  %v372_v11 = vunpack.c.l.bf16 %v270_v40  ;;  %v374_v16 = vunpack.c.l.bf16 %v271_v41 }
  0x27   : > { %972 = vmatpush1.bf16.msra.mxu0 %v1907_v57  ;;  %1887 = vmatpush1.bf16.msra.mxu1 %v1907_v57  ;;  %v508_v57 = vmul.f32 %v2042_v38, %v368_v44  ;;  %v313_v19 = vunpack.c.h.bf16 %v240_v4  ;;  %v315_v20 = vunpack.c.h.bf16 %v241_v5  ;;  %v377_v21 = vunpack.c.h.bf16 %v272_v6  ;;  %v274_v44 = vld [vmem:[%s1994_s11 + $0x150] sm:$0xff] }
  0x28   : > { %973 = vmatprep.subr.bf16.mxu0 %v1917_v1  ;;  %1878 = vmatprep.subr.bf16.mxu1 %v1917_v1  ;;  %v707_v1 = vpack.c.bf16 %v583_v18, %v581_v13  ;;  %v586_v13 = vadd.f32 %v2062_v52, %v446_v56  ;;  %v589_v18 = vadd.f32 %v2013_v17, %v449_v62  ;;  %v312_v42 = vunpack.c.l.bf16 %v240_v4 }
  0x29   : > { %v648_v14 = vadd.f32 %v2062_v52, %v508_v57  ;;  %v591_v22 = vadd.f32 %v2013_v17, %v451_v0  ;;  %v653_v23 = vadd.f32 %v2013_v17, %v513_v2  ;;  %v655_v24 = vadd.f32 %v2013_v17, %v515_v3 }
  0x2a   : > { %v448_v26 = vmul.f32 %v2042_v38, %v308_v8  ;;  %v512_v28 = vmul.f32 %v2042_v38, %v372_v11  ;;  %v708_v29 = vpack.c.bf16 %v586_v13, %v584_v7  ;;  %v514_v30 = vmul.f32 %v2042_v38, %v374_v16  ;;  %v244_v8 = vld [vmem:[%s1994_s11 + $0x60] sm:$0xff]  ;;  %v277_v16 = vld [vmem:[%s1994_s11 + $0x168] sm:$0xff] }
  0x2b   : > { %974 = vmatpush1.bf16.msra.mxu0 %v953_v58  ;;  %1888 = vmatpush1.bf16.msra.mxu1 %v953_v58  ;;  %v510_v58 = vmul.f32 %v2042_v38, %v370_v45  ;;  %v455_v32 = vmul.f32 %v1996_v10, %v315_v20  ;;  %v517_v33 = vmul.f32 %v1996_v10, %v377_v21  ;;  %v275_v45 = vld [vmem:[%s1994_s11 + $0x158] sm:$0xff]  ;;  %v314_v47 = vunpack.c.l.bf16 %v241_v5  ;;  %v276_v11 = vld [vmem:[%s1994_s11 + $0x160] sm:$0xff] }
  0x2c   : > { %v711_v34 = vpack.c.bf16 %v591_v22, %v589_v18  ;;  %v743_v35 = vpack.c.bf16 %v655_v24, %v653_v23  ;;  %v588_v39 = vadd.f32 %v2062_v52, %v448_v26  ;;  %v652_v41 = vadd.f32 %v2062_v52, %v512_v28 }
  0x2d   : > { %v650_v15 = vadd.f32 %v2062_v52, %v510_v58  ;;  %v654_v46 = vadd.f32 %v2062_v52, %v514_v30  ;;  %v376_v48 = vunpack.c.l.bf16 %v272_v6  ;;  %v378_v49 = vunpack.c.l.bf16 %v273_v12 }
  0x2e   : > { %988 = vmatmul.mubr.bf16.vlgmr.msra.gmra.mrb[0].mxu0 %v704_v25  ;;  %1116 = vmatmul.mubr.bf16.vlgmr.msra.gmra.mrb[0].mxu1 %v736_v27  ;;  %v379_v25 = vunpack.c.h.bf16 %v273_v12  ;;  %v450_v27 = vmul.f32 %v2042_v38, %v310_v9  ;;  %v595_v51 = vadd.f32 %v2013_v17, %v455_v32  ;;  %v657_v53 = vadd.f32 %v2013_v17, %v517_v33  ;;  %v245_v9 = vld [vmem:[%s1994_s11 + $0x68] sm:$0xff] }
  0x2f   : > { %1707 = vmatprep.mubr.msk.bf16.mxu0 %vm851_vm1, %v707_v1  ;;  %1723 = vmatprep.mubr.msk.bf16.mxu1 %vm851_vm1, %v739_v31  ;;  %v740_v1 = vpack.c.bf16 %v650_v15, %v648_v14  ;;  %v453_v31 = vmul.f32 %v1996_v10, %v313_v19  ;;  %v317_v54 = vunpack.c.h.bf16 %v242_v37  ;;  %v319_v56 = vunpack.c.h.bf16 %v243_v43 }
  0x30   : > { %v519_v36 = vmul.f32 %v1996_v10, %v379_v25  ;;  %v590_v40 = vadd.f32 %v2062_v52, %v450_v27  ;;  %v381_v57 = vunpack.c.h.bf16 %v274_v44  ;;  %v383_v58 = vunpack.c.h.bf16 %v275_v45 }
  0x31   : > { %v593_v50 = vadd.f32 %v2013_v17, %v453_v31  ;;  %v518_v62 = vmul.f32 %v2042_v38, %v378_v49  ;;  %v742_v0 = vpack.c.bf16 %v654_v46, %v652_v41  ;;  %v457_v3 = vmul.f32 %v1996_v10, %v317_v54  ;;  %v279_v49 = vld [vmem:[%s1994_s11 + $0x178] sm:$0xff] }
  0x32   : > { %v659_v55 = vadd.f32 %v2013_v17, %v519_v36  ;;  %v459_v5 = vmul.f32 %v1996_v10, %v319_v56  ;;  %v521_v6 = vmul.f32 %v1996_v10, %v381_v57  ;;  %v523_v7 = vmul.f32 %v1996_v10, %v383_v58 }
  0x33   : > { %v713_v2 = vpack.c.bf16 %v595_v51, %v593_v50  ;;  %v316_v13 = vunpack.c.l.bf16 %v242_v37  ;;  %v318_v14 = vunpack.c.l.bf16 %v243_v43  ;;  %v380_v15 = vunpack.c.l.bf16 %v274_v44 }
  0x34   : > { %v745_v4 = vpack.c.bf16 %v659_v55, %v657_v53  ;;  %v658_v20 = vadd.f32 %v2062_v52, %v518_v62  ;;  %v382_v21 = vunpack.c.l.bf16 %v275_v45  ;;  %v597_v22 = vadd.f32 %v2013_v17, %v457_v3 }
  0x35   : > { %v321_v23 = vunpack.c.h.bf16 %v244_v8  ;;  %v323_v24 = vunpack.c.h.bf16 %v245_v9  ;;  %v385_v25 = vunpack.c.h.bf16 %v276_v11  ;;  %v599_v26 = vadd.f32 %v2013_v17, %v459_v5 }
  0x36   : > { %996 = vmatmul.mubr.bf16.gmra.mrb[4].mxu0 %v706_v59  ;;  %1124 = vmatmul.mubr.bf16.gmra.mrb[4].mxu1 %v738_v60  ;;  %v452_v59 = vmul.f32 %v2042_v38, %v312_v42  ;;  %v454_v60 = vmul.f32 %v2042_v38, %v314_v47  ;;  %v661_v27 = vadd.f32 %v2013_v17, %v521_v6  ;;  %v246_v42 = vld [vmem:[%s1994_s11 + $0x70] sm:$0xff]  ;;  %v320_v46 = vunpack.c.l.bf16 %v244_v8  ;;  %v247_v47 = vld [vmem:[%s1994_s11 + $0x78] sm:$0xff] }
  0x37   : > { %1708 = vmatprep.mubr.msk.bf16.mxu0 %vm851_vm1, %v709_v61  ;;  %1724 = vmatprep.mubr.msk.bf16.mxu1 %vm851_vm1, %v741_v63  ;;  %v516_v61 = vmul.f32 %v2042_v38, %v376_v48  ;;  %v710_v63 = vpack.c.bf16 %v590_v40, %v588_v39  ;;  %v663_v28 = vadd.f32 %v2013_v17, %v523_v7  ;;  %v278_v48 = vld [vmem:[%s1994_s11 + $0x170] sm:$0xff]  ;;  %v322_v51 = vunpack.c.l.bf16 %v245_v9 }
  0x38   : > { %v592_v12 = vadd.f32 %v2062_v52, %v452_v59  ;;  %v594_v18 = vadd.f32 %v2062_v52, %v454_v60  ;;  %v456_v30 = vmul.f32 %v2042_v38, %v316_v13  ;;  %v520_v31 = vmul.f32 %v2042_v38, %v380_v15  ;;  %v248_v13 = vld [vmem:[%s1994_s11 + $0x80] sm:$0xff] }
  0x39   : > { %v656_v19 = vadd.f32 %v2062_v52, %v516_v61  ;;  %v522_v33 = vmul.f32 %v2042_v38, %v382_v21  ;;  %v463_v36 = vmul.f32 %v1996_v10, %v323_v24  ;;  %v525_v37 = vmul.f32 %v1996_v10, %v385_v25  ;;  %v280_v15 = vld [vmem:[%s1994_s11 + $0x180] sm:$0xff]  ;;  %v281_v21 = vld [vmem:[%s1994_s11 + $0x188] sm:$0xff] }
  0x3a   : > { %v712_v32 = vpack.c.bf16 %v594_v18, %v592_v12  ;;  %v715_v39 = vpack.c.bf16 %v599_v26, %v597_v22  ;;  %v747_v40 = vpack.c.bf16 %v663_v28, %v661_v27  ;;  %v596_v43 = vadd.f32 %v2062_v52, %v456_v30 }
  0x3b   : > { %v660_v45 = vadd.f32 %v2062_v52, %v520_v31  ;;  %v662_v50 = vadd.f32 %v2062_v52, %v522_v33  ;;  %v384_v53 = vunpack.c.l.bf16 %v276_v11  ;;  %v386_v54 = vunpack.c.l.bf16 %v277_v16 }
  0x3c   : > { %v603_v56 = vadd.f32 %v2013_v17, %v463_v36  ;;  %v665_v57 = vadd.f32 %v2013_v17, %v525_v37  ;;  %v325_v58 = vunpack.c.h.bf16 %v246_v42  ;;  %v327_v60 = vunpack.c.h.bf16 %v247_v47 }
  0x3d   : > { %v389_v61 = vunpack.c.h.bf16 %v278_v48  ;;  %v391_v62 = vunpack.c.h.bf16 %v279_v49  ;;  %v526_v3 = vmul.f32 %v2042_v38, %v386_v54  ;;  %v746_v5 = vpack.c.bf16 %v662_v50, %v660_v45  ;;  %v283_v54 = vld [vmem:[%s1994_s11 + $0x198] sm:$0xff] }
  0x3e   : > { %1004 = vmatmul.mubr.bf16.gmra.mrb[8].mxu0 %v708_v29  ;;  %1132 = vmatmul.mubr.bf16.gmra.mrb[8].mxu1 %v740_v1  ;;  %v387_v29 = vunpack.c.h.bf16 %v277_v16  ;;  %v458_v1 = vmul.f32 %v2042_v38, %v318_v14  ;;  %v465_v7 = vmul.f32 %v1996_v10, %v325_v58  ;;  %v467_v9 = vmul.f32 %v1996_v10, %v327_v60  ;;  %v249_v14 = vld [vmem:[%s1994_s11 + $0x88] sm:$0xff] }
  0x3f   : > { %1709 = vmatprep.mubr.msk.bf16.mxu0 %vm851_vm1, %v711_v34  ;;  %1725 = vmatprep.mubr.msk.bf16.mxu1 %vm851_vm1, %v743_v35  ;;  %v744_v34 = vpack.c.bf16 %v658_v20, %v656_v19  ;;  %v461_v35 = vmul.f32 %v1996_v10, %v321_v23  ;;  %v529_v11 = vmul.f32 %v1996_v10, %v389_v61  ;;  %v324_v18 = vunpack.c.l.bf16 %v246_v42 }
  0x40   : > { %v527_v41 = vmul.f32 %v1996_v10, %v387_v29  ;;  %v598_v44 = vadd.f32 %v2062_v52, %v458_v1  ;;  %v531_v12 = vmul.f32 %v1996_v10, %v391_v62  ;;  %v326_v19 = vunpack.c.l.bf16 %v247_v47 }
  0x41   : > { %v601_v55 = vadd.f32 %v2013_v17, %v461_v35  ;;  %v388_v20 = vunpack.c.l.bf16 %v278_v48  ;;  %v666_v24 = vadd.f32 %v2062_v52, %v526_v3  ;;  %v390_v25 = vunpack.c.l.bf16 %v279_v49 }
  0x42   : > { %v667_v59 = vadd.f32 %v2013_v17, %v527_v41  ;;  %v605_v26 = vadd.f32 %v2013_v17, %v465_v7  ;;  %v329_v27 = vunpack.c.h.bf16 %v248_v13  ;;  %v331_v28 = vunpack.c.h.bf16 %v249_v14 }
  0x43   : > { %v717_v6 = vpack.c.bf16 %v603_v56, %v601_v55  ;;  %v393_v29 = vunpack.c.h.bf16 %v280_v15  ;;  %v607_v30 = vadd.f32 %v2013_v17, %v467_v9  ;;  %v669_v1 = vadd.f32 %v2013_v17, %v529_v11 }
  0x44   : > { %v749_v8 = vpack.c.bf16 %v667_v59, %v665_v57  ;;  %v671_v31 = vadd.f32 %v2013_v17, %v531_v12  ;;  %v464_v33 = vmul.f32 %v2042_v38, %v324_v18  ;;  %v528_v35 = vmul.f32 %v2042_v38, %v388_v20  ;;  %v252_v18 = vld [vmem:[%s1994_s11 + $0xa0] sm:$0xff] }
  0x45   : > { %v530_v37 = vmul.f32 %v2042_v38, %v390_v25  ;;  %v471_v41 = vmul.f32 %v1996_v10, %v331_v28  ;;  %v533_v42 = vmul.f32 %v1996_v10, %v393_v29  ;;  %v328_v50 = vunpack.c.l.bf16 %v248_v13  ;;  %v284_v20 = vld [vmem:[%s1994_s11 + $0x1a0] sm:$0xff]  ;;  %v285_v25 = vld [vmem:[%s1994_s11 + $0x1a8] sm:$0xff] }
  0x46   : > { %1012 = vmatmul.mubr.bf16.gmra.mrb[12].mxu0 %v710_v63  ;;  %1140 = vmatmul.mubr.bf16.gmra.mrb[12].mxu1 %v742_v0  ;;  %v460_v63 = vmul.f32 %v2042_v38, %v320_v46  ;;  %v462_v0 = vmul.f32 %v2042_v38, %v322_v51  ;;  %v250_v46 = vld [vmem:[%s1994_s11 + $0x90] sm:$0xff]  ;;  %v604_v47 = vadd.f32 %v2062_v52, %v464_v33  ;;  %v251_v51 = vld [vmem:[%s1994_s11 + $0x98] sm:$0xff]  ;;  %v330_v56 = vunpack.c.l.bf16 %v249_v14 }
  0x47   : > { %1710 = vmatprep.mubr.msk.bf16.mxu0 %vm851_vm1, %v713_v2  ;;  %1726 = vmatprep.mubr.msk.bf16.mxu1 %vm851_vm1, %v745_v4  ;;  %v524_v2 = vmul.f32 %v2042_v38, %v384_v53  ;;  %v714_v4 = vpack.c.bf16 %v598_v44, %v596_v43  ;;  %v719_v43 = vpack.c.bf16 %v607_v30, %v605_v26  ;;  %v282_v53 = vld [vmem:[%s1994_s11 + $0x190] sm:$0xff]  ;;  %v392_v57 = vunpack.c.l.bf16 %v280_v15 }
  0x48   : > { %v600_v16 = vadd.f32 %v2062_v52, %v460_v63  ;;  %v602_v22 = vadd.f32 %v2062_v52, %v462_v0  ;;  %v751_v44 = vpack.c.bf16 %v671_v31, %v669_v1  ;;  %v668_v49 = vadd.f32 %v2062_v52, %v528_v35 }
  0x49   : > { %v664_v23 = vadd.f32 %v2062_v52, %v524_v2  ;;  %v670_v55 = vadd.f32 %v2062_v52, %v530_v37  ;;  %v394_v58 = vunpack.c.l.bf16 %v281_v21  ;;  %v611_v60 = vadd.f32 %v2013_v17, %v471_v41 }
  0x4a   : > { %v716_v36 = vpack.c.bf16 %v602_v22, %v600_v16  ;;  %v673_v61 = vadd.f32 %v2013_v17, %v533_v42  ;;  %v333_v62 = vunpack.c.h.bf16 %v250_v46  ;;  %v335_v0 = vunpack.c.h.bf16 %v251_v51 }
  0x4b   : > { %v397_v2 = vunpack.c.h.bf16 %v282_v53  ;;  %v399_v3 = vunpack.c.h.bf16 %v283_v54  ;;  %v534_v7 = vmul.f32 %v2042_v38, %v394_v58  ;;  %v750_v9 = vpack.c.bf16 %v670_v55, %v668_v49  ;;  %v287_v58 = vld [vmem:[%s1994_s11 + $0x1b8] sm:$0xff] }
  0x4c   : > { %v473_v12 = vmul.f32 %v1996_v10, %v333_v62  ;;  %v475_v14 = vmul.f32 %v1996_v10, %v335_v0  ;;  %v332_v22 = vunpack.c.l.bf16 %v250_v46  ;;  %v398_v29 = vunpack.c.l.bf16 %v283_v54 }
  0x4d   : > { %v537_v15 = vmul.f32 %v1996_v10, %v397_v2  ;;  %v539_v16 = vmul.f32 %v1996_v10, %v399_v3  ;;  %v674_v28 = vadd.f32 %v2062_v52, %v534_v7  ;;  %v337_v1 = vunpack.c.h.bf16 %v252_v18 }
  0x4e   : > { %1020 = vmatmul.mubr.bf16.gmra.mrb[16].mxu0 %v712_v32  ;;  %1148 = vmatmul.mubr.bf16.gmra.mrb[16].mxu1 %v744_v34  ;;  %v395_v32 = vunpack.c.h.bf16 %v281_v21  ;;  %v466_v34 = vmul.f32 %v2042_v38, %v326_v19  ;;  %v253_v19 = vld [vmem:[%s1994_s11 + $0xa8] sm:$0xff]  ;;  %v613_v30 = vadd.f32 %v2013_v17, %v473_v12  ;;  %v615_v33 = vadd.f32 %v2013_v17, %v475_v14 }
  0x4f   : > { %1711 = vmatprep.mubr.msk.bf16.mxu0 %vm851_vm1, %v715_v39  ;;  %1727 = vmatprep.mubr.msk.bf16.mxu1 %vm851_vm1, %v747_v40  ;;  %v748_v39 = vpack.c.bf16 %v666_v24, %v664_v23  ;;  %v469_v40 = vmul.f32 %v1996_v10, %v329_v27  ;;  %v334_v23 = vunpack.c.l.bf16 %v251_v51  ;;  %v396_v24 = vunpack.c.l.bf16 %v282_v53 }
  0x50   : > { %v535_v45 = vmul.f32 %v1996_v10, %v395_v32  ;;  %v606_v48 = vadd.f32 %v2062_v52, %v466_v34  ;;  %v339_v31 = vunpack.c.h.bf16 %v253_v19  ;;  %v401_v32 = vunpack.c.h.bf16 %v284_v20 }
  0x51   : > { %v609_v59 = vadd.f32 %v2013_v17, %v469_v40  ;;  %v677_v34 = vadd.f32 %v2013_v17, %v537_v15  ;;  %v679_v35 = vadd.f32 %v2013_v17, %v539_v16  ;;  %v472_v37 = vmul.f32 %v2042_v38, %v332_v22  ;;  %v256_v22 = vld [vmem:[%s1994_s11 + $0xc0] sm:$0xff] }
  0x52   : > { %v675_v63 = vadd.f32 %v2013_v17, %v535_v45  ;;  %v536_v40 = vmul.f32 %v2042_v38, %v396_v24  ;;  %v538_v42 = vmul.f32 %v2042_v38, %v398_v29  ;;  %v479_v45 = vmul.f32 %v1996_v10, %v339_v31  ;;  %v288_v24 = vld [vmem:[%s1994_s11 + $0x1c0] sm:$0xff]  ;;  %v289_v29 = vld [vmem:[%s1994_s11 + $0x1c8] sm:$0xff] }
  0x53   : > { %v721_v11 = vpack.c.bf16 %v611_v60, %v609_v59  ;;  %v541_v46 = vmul.f32 %v1996_v10, %v401_v32  ;;  %v612_v51 = vadd.f32 %v2062_v52, %v472_v37  ;;  %v336_v55 = vunpack.c.l.bf16 %v252_v18 }
  0x54   : > { %v753_v13 = vpack.c.bf16 %v675_v63, %v673_v61  ;;  %v676_v54 = vadd.f32 %v2062_v52, %v536_v40  ;;  %v678_v59 = vadd.f32 %v2062_v52, %v538_v42  ;;  %v338_v60 = vunpack.c.l.bf16 %v253_v19 }
  0x55   : > { %v400_v61 = vunpack.c.l.bf16 %v284_v20  ;;  %v402_v62 = vunpack.c.l.bf16 %v285_v25  ;;  %v619_v0 = vadd.f32 %v2013_v17, %v479_v45  ;;  %v681_v2 = vadd.f32 %v2013_v17, %v541_v46 }
  0x56   : > { %1028 = vmatmul.mubr.bf16.gmra.mrb[20].mxu0 %v714_v4  ;;  %1156 = vmatmul.mubr.bf16.gmra.mrb[20].mxu1 %v746_v5  ;;  %v468_v4 = vmul.f32 %v2042_v38, %v328_v50  ;;  %v470_v5 = vmul.f32 %v2042_v38, %v330_v56  ;;  %v254_v50 = vld [vmem:[%s1994_s11 + $0xb0] sm:$0xff]  ;;  %v255_v56 = vld [vmem:[%s1994_s11 + $0xb8] sm:$0xff]  ;;  %v407_v7 = vunpack.c.h.bf16 %v287_v58  ;;  %v754_v14 = vpack.c.bf16 %v678_v59, %v676_v54 }
  0x57   : > { %1712 = vmatprep.mubr.msk.bf16.mxu0 %vm851_vm1, %v717_v6  ;;  %1728 = vmatprep.mubr.msk.bf16.mxu1 %vm851_vm1, %v749_v8  ;;  %v532_v6 = vmul.f32 %v2042_v38, %v392_v57  ;;  %v718_v8 = vpack.c.bf16 %v606_v48, %v604_v47  ;;  %v723_v47 = vpack.c.bf16 %v615_v33, %v613_v30  ;;  %v286_v57 = vld [vmem:[%s1994_s11 + $0x1b0] sm:$0xff]  ;;  %v341_v3 = vunpack.c.h.bf16 %v254_v50 }
  0x58   : > { %v608_v21 = vadd.f32 %v2062_v52, %v468_v4  ;;  %v610_v26 = vadd.f32 %v2062_v52, %v470_v5  ;;  %v755_v48 = vpack.c.bf16 %v679_v35, %v677_v34  ;;  %v343_v5 = vunpack.c.h.bf16 %v255_v56 }
  0x59   : > { %v672_v27 = vadd.f32 %v2062_v52, %v532_v6  ;;  %v405_v6 = vunpack.c.h.bf16 %v286_v57  ;;  %v542_v12 = vmul.f32 %v2042_v38, %v402_v62  ;;  %v481_v16 = vmul.f32 %v1996_v10, %v341_v3  ;;  %v291_v62 = vld [vmem:[%s1994_s11 + $0x1d8] sm:$0xff] }
  0x5a   : > { %v720_v41 = vpack.c.bf16 %v610_v26, %v608_v21  ;;  %v483_v19 = vmul.f32 %v1996_v10, %v343_v5  ;;  %v547_v21 = vmul.f32 %v1996_v10, %v407_v7  ;;  %v340_v26 = vunpack.c.l.bf16 %v254_v50 }
  0x5b   : > { %v545_v20 = vmul.f32 %v1996_v10, %v405_v6  ;;  %v682_v31 = vadd.f32 %v2062_v52, %v542_v12  ;;  %v406_v32 = vunpack.c.l.bf16 %v287_v58  ;;  %v621_v33 = vadd.f32 %v2013_v17, %v481_v16 }
  0x5c   : > { %v345_v34 = vunpack.c.h.bf16 %v256_v22  ;;  %v623_v37 = vadd.f32 %v2013_v17, %v483_v19  ;;  %v687_v40 = vadd.f32 %v2013_v17, %v547_v21  ;;  %v480_v42 = vmul.f32 %v2042_v38, %v340_v26  ;;  %v260_v26 = vld [vmem:[%s1994_s11 + $0xe0] sm:$0xff] }
  0x5d   : > { %v546_v46 = vmul.f32 %v2042_v38, %v406_v32  ;;  %v344_v59 = vunpack.c.l.bf16 %v256_v22  ;;  %v410_v3 = vunpack.c.l.bf16 %v289_v29  ;;  %v415_v12 = vunpack.c.h.bf16 %v291_v62  ;;  %v293_v32 = vld [vmem:[%s1994_s11 + $0x1e8] sm:$0xff] }
  0x5e   : > { %1036 = vmatmul.mubr.bf16.gmra.mrb[24].mxu0 %v716_v36  ;;  %1164 = vmatmul.mubr.bf16.gmra.mrb[24].mxu1 %v748_v39  ;;  %v403_v36 = vunpack.c.h.bf16 %v285_v25  ;;  %v474_v39 = vmul.f32 %v2042_v38, %v334_v23  ;;  %v257_v23 = vld [vmem:[%s1994_s11 + $0xc8] sm:$0xff] }
  0x5f   : > { %1713 = vmatprep.mubr.msk.bf16.mxu0 %vm851_vm1, %v719_v43  ;;  %1729 = vmatprep.mubr.msk.bf16.mxu1 %vm851_vm1, %v751_v44  ;;  %v752_v43 = vpack.c.bf16 %v674_v28, %v672_v27  ;;  %v477_v44 = vmul.f32 %v1996_v10, %v337_v1  ;;  %v342_v27 = vunpack.c.l.bf16 %v255_v56  ;;  %v404_v28 = vunpack.c.l.bf16 %v286_v57 }
  0x60   : > { %v543_v49 = vmul.f32 %v1996_v10, %v403_v36  ;;  %v614_v53 = vadd.f32 %v2062_v52, %v474_v39  ;;  %v347_v35 = vunpack.c.h.bf16 %v257_v23  ;;  %v409_v36 = vunpack.c.h.bf16 %v288_v24 }
  0x61   : > { %v617_v63 = vadd.f32 %v2013_v17, %v477_v44  ;;  %v685_v39 = vadd.f32 %v2013_v17, %v545_v20  ;;  %v544_v44 = vmul.f32 %v2042_v38, %v404_v28  ;;  %v620_v56 = vadd.f32 %v2062_v52, %v480_v42  ;;  %v292_v28 = vld [vmem:[%s1994_s11 + $0x1e0] sm:$0xff] }
  0x62   : > { %v683_v4 = vadd.f32 %v2013_v17, %v543_v49  ;;  %v487_v49 = vmul.f32 %v1996_v10, %v347_v35  ;;  %v549_v50 = vmul.f32 %v1996_v10, %v409_v36  ;;  %v550_v16 = vmul.f32 %v2042_v38, %v410_v3  ;;  %v295_v3 = vld [vmem:[%s1994_s11 + $0x1f8] sm:$0xff] }
  0x63   : > { %v725_v15 = vpack.c.bf16 %v619_v0, %v617_v63  ;;  %v684_v58 = vadd.f32 %v2062_v52, %v544_v44  ;;  %v686_v63 = vadd.f32 %v2062_v52, %v546_v46  ;;  %v346_v0 = vunpack.c.l.bf16 %v257_v23 }
  0x64   : > { %v757_v18 = vpack.c.bf16 %v683_v4, %v681_v2  ;;  %v408_v2 = vunpack.c.l.bf16 %v288_v24  ;;  %v627_v5 = vadd.f32 %v2013_v17, %v487_v49  ;;  %v689_v6 = vadd.f32 %v2013_v17, %v549_v50 }
  0x65   : > { %v758_v19 = vpack.c.bf16 %v686_v63, %v684_v58  ;;  %v690_v35 = vadd.f32 %v2062_v52, %v550_v16  ;;  %v414_v36 = vunpack.c.l.bf16 %v291_v62  ;;  %v352_v63 = vunpack.c.l.bf16 %v260_v26 }
  0x66   : > { %1044 = vmatmul.mubr.bf16.gmra.mrb[28].mxu0 %v718_v8  ;;  %1172 = vmatmul.mubr.bf16.gmra.mrb[28].mxu1 %v750_v9  ;;  %v476_v8 = vmul.f32 %v2042_v38, %v336_v55  ;;  %v478_v9 = vmul.f32 %v2042_v38, %v338_v60  ;;  %v258_v55 = vld [vmem:[%s1994_s11 + $0xd0] sm:$0xff]  ;;  %v259_v60 = vld [vmem:[%s1994_s11 + $0xd8] sm:$0xff]  ;;  %v423_v16 = vunpack.c.h.bf16 %v295_v3 }
  0x67   : > { %1714 = vmatprep.mubr.msk.bf16.mxu0 %vm851_vm1, %v721_v11  ;;  %1730 = vmatprep.mubr.msk.bf16.mxu1 %vm851_vm1, %v753_v13  ;;  %v540_v11 = vmul.f32 %v2042_v38, %v400_v61  ;;  %v722_v13 = vpack.c.bf16 %v614_v53, %v612_v51  ;;  %v727_v51 = vpack.c.bf16 %v623_v37, %v621_v33  ;;  %v290_v61 = vld [vmem:[%s1994_s11 + $0x1d0] sm:$0xff]  ;;  %v349_v7 = vunpack.c.h.bf16 %v258_v55 }
  0x68   : > { %v616_v25 = vadd.f32 %v2062_v52, %v476_v8  ;;  %v618_v30 = vadd.f32 %v2062_v52, %v478_v9  ;;  %v759_v53 = vpack.c.bf16 %v687_v40, %v685_v39  ;;  %v351_v9 = vunpack.c.h.bf16 %v259_v60 }
  0x69   : > { %v680_v1 = vadd.f32 %v2062_v52, %v540_v11  ;;  %v413_v11 = vunpack.c.h.bf16 %v290_v61  ;;  %v489_v21 = vmul.f32 %v1996_v10, %v349_v7  ;;  %v353_v39 = vunpack.c.h.bf16 %v260_v26 }
  0x6a   : > { %v724_v45 = vpack.c.bf16 %v618_v30, %v616_v25  ;;  %v491_v23 = vmul.f32 %v1996_v10, %v351_v9  ;;  %v555_v25 = vmul.f32 %v1996_v10, %v415_v12  ;;  %v348_v30 = vunpack.c.l.bf16 %v258_v55 }
  0x6b   : > { %v553_v24 = vmul.f32 %v1996_v10, %v413_v11  ;;  %v629_v37 = vadd.f32 %v2013_v17, %v489_v21  ;;  %v554_v50 = vmul.f32 %v2042_v38, %v414_v36  ;;  %v418_v7 = vunpack.c.l.bf16 %v293_v32 }
  0x6c   : > { %v631_v42 = vadd.f32 %v2013_v17, %v491_v23  ;;  %v695_v44 = vadd.f32 %v2013_v17, %v555_v25  ;;  %v488_v46 = vmul.f32 %v2042_v38, %v348_v30 }
  0x6d   : > { %v558_v21 = vmul.f32 %v2042_v38, %v418_v7 }
  0x6e   : > { %1052 = vmatmul.mubr.bf16.gmra.mrb[32].mxu0 %v720_v41  ;;  %1180 = vmatmul.mubr.bf16.gmra.mrb[32].mxu1 %v752_v43  ;;  %v411_v41 = vunpack.c.h.bf16 %v289_v29  ;;  %v482_v43 = vmul.f32 %v2042_v38, %v342_v27  ;;  %v261_v27 = vld [vmem:[%s1994_s11 + $0xe8] sm:$0xff] }
  0x6f   : > { %1715 = vmatprep.mubr.msk.bf16.mxu0 %vm851_vm1, %v723_v47  ;;  %1731 = vmatprep.mubr.msk.bf16.mxu1 %vm851_vm1, %v755_v48  ;;  %v756_v47 = vpack.c.bf16 %v682_v31, %v680_v1  ;;  %v485_v48 = vmul.f32 %v1996_v10, %v345_v34  ;;  %v350_v1 = vunpack.c.l.bf16 %v259_v60  ;;  %v412_v31 = vunpack.c.l.bf16 %v290_v61 }
  0x70   : > { %v551_v54 = vmul.f32 %v1996_v10, %v411_v41  ;;  %v622_v57 = vadd.f32 %v2062_v52, %v482_v43  ;;  %v355_v40 = vunpack.c.h.bf16 %v261_v27  ;;  %v417_v41 = vunpack.c.h.bf16 %v292_v28 }
  0x71   : > { %v625_v4 = vadd.f32 %v2013_v17, %v485_v48  ;;  %v693_v43 = vadd.f32 %v2013_v17, %v553_v24  ;;  %v552_v48 = vmul.f32 %v2042_v38, %v412_v31  ;;  %v628_v60 = vadd.f32 %v2062_v52, %v488_v46 }
  0x72   : > { %v691_v8 = vadd.f32 %v2013_v17, %v551_v54  ;;  %v495_v54 = vmul.f32 %v1996_v10, %v355_v40  ;;  %v557_v55 = vmul.f32 %v1996_v10, %v417_v41 }
  0x73   : > { %v729_v20 = vpack.c.bf16 %v627_v5, %v625_v4  ;;  %v692_v62 = vadd.f32 %v2062_v52, %v552_v48  ;;  %v694_v4 = vadd.f32 %v2062_v52, %v554_v50  ;;  %v354_v5 = vunpack.c.l.bf16 %v261_v27 }
  0x74   : > { %v761_v22 = vpack.c.bf16 %v691_v8, %v689_v6  ;;  %v416_v6 = vunpack.c.l.bf16 %v292_v28  ;;  %v635_v9 = vadd.f32 %v2013_v17, %v495_v54  ;;  %v697_v11 = vadd.f32 %v2013_v17, %v557_v55 }
  0x75   : > { %v762_v23 = vpack.c.bf16 %v694_v4, %v692_v62 }
  0x76   : > { %1060 = vmatmul.mubr.bf16.gmra.mrb[36].mxu0 %v722_v13  ;;  %1188 = vmatmul.mubr.bf16.gmra.mrb[36].mxu1 %v754_v14  ;;  %v484_v13 = vmul.f32 %v2042_v38, %v344_v59  ;;  %v486_v14 = vmul.f32 %v2042_v38, %v346_v0  ;;  %v262_v59 = vld [vmem:[%s1994_s11 + $0xf0] sm:$0xff]  ;;  %v263_v0 = vld [vmem:[%s1994_s11 + $0xf8] sm:$0xff] }
  0x77   : > { %1716 = vmatprep.mubr.msk.bf16.mxu0 %vm851_vm1, %v725_v15  ;;  %1732 = vmatprep.mubr.msk.bf16.mxu1 %vm851_vm1, %v757_v18  ;;  %v548_v15 = vmul.f32 %v2042_v38, %v408_v2  ;;  %v726_v18 = vpack.c.bf16 %v622_v57, %v620_v56  ;;  %v731_v56 = vpack.c.bf16 %v631_v42, %v629_v37  ;;  %v294_v2 = vld [vmem:[%s1994_s11 + $0x1f0] sm:$0xff]  ;;  %v357_v12 = vunpack.c.h.bf16 %v262_v59 }
  0x78   : > { %v624_v29 = vadd.f32 %v2062_v52, %v484_v13  ;;  %v626_v33 = vadd.f32 %v2062_v52, %v486_v14  ;;  %v763_v57 = vpack.c.bf16 %v695_v44, %v693_v43  ;;  %v359_v14 = vunpack.c.h.bf16 %v263_v0 }
  0x79   : > { %v688_v34 = vadd.f32 %v2062_v52, %v548_v15  ;;  %v421_v15 = vunpack.c.h.bf16 %v294_v2  ;;  %v497_v25 = vmul.f32 %v1996_v10, %v357_v12  ;;  %v420_v36 = vunpack.c.l.bf16 %v294_v2 }
  0x7a   : > { %v728_v49 = vpack.c.bf16 %v626_v33, %v624_v29  ;;  %v499_v27 = vmul.f32 %v1996_v10, %v359_v14  ;;  %v563_v29 = vmul.f32 %v1996_v10, %v423_v16  ;;  %v356_v33 = vunpack.c.l.bf16 %v262_v59 }
  0x7b   : > { %v561_v28 = vmul.f32 %v1996_v10, %v421_v15  ;;  %v422_v37 = vunpack.c.l.bf16 %v295_v3 }
  0x7c   : > { %v703_v40 = vadd.f32 %v2013_v17, %v563_v29  ;;  %v496_v42 = vmul.f32 %v2042_v38, %v356_v33 }
  0x7d   : > { %v562_v46 = vmul.f32 %v2042_v38, %v422_v37 }
  0x7e   : > { %1068 = vmatmul.mubr.bf16.gmra.mrb[40].mxu0 %v724_v45  ;;  %1196 = vmatmul.mubr.bf16.gmra.mrb[40].mxu1 %v756_v47  ;;  %v419_v45 = vunpack.c.h.bf16 %v293_v32  ;;  %v490_v47 = vmul.f32 %v2042_v38, %v350_v1  ;;  %v698_v32 = vadd.f32 %v2062_v52, %v558_v21 }
  0x7f   : > { %1717 = vmatprep.mubr.msk.bf16.mxu0 %vm851_vm1, %v727_v51  ;;  %1733 = vmatprep.mubr.msk.bf16.mxu1 %vm851_vm1, %v759_v53  ;;  %v760_v51 = vpack.c.bf16 %v690_v35, %v688_v34  ;;  %v493_v53 = vmul.f32 %v1996_v10, %v353_v39  ;;  %v637_v34 = vadd.f32 %v2013_v17, %v497_v25  ;;  %v358_v35 = vunpack.c.l.bf16 %v263_v0 }
  0x80   : > { %v559_v58 = vmul.f32 %v1996_v10, %v419_v45  ;;  %v630_v61 = vadd.f32 %v2062_v52, %v490_v47  ;;  %v639_v10 = vadd.f32 %v2013_v17, %v499_v27  ;;  %v701_v39 = vadd.f32 %v2013_v17, %v561_v28 }
  0x81   : > { %v633_v8 = vadd.f32 %v2013_v17, %v493_v53  ;;  %v498_v44 = vmul.f32 %v2042_v38, %v358_v35  ;;  %v560_v45 = vmul.f32 %v2042_v38, %v420_v36 }
  0x82   : > { %v699_v13 = vadd.f32 %v2013_v17, %v559_v58  ;;  %v735_v47 = vpack.c.bf16 %v639_v10, %v637_v34  ;;  %v767_v48 = vpack.c.bf16 %v703_v40, %v701_v39 }
  0x83   : > { %v733_v24 = vpack.c.bf16 %v635_v9, %v633_v8  ;;  %v638_v50 = vadd.f32 %v2062_v52, %v498_v44  ;;  %v700_v17 = vadd.f32 %v2062_v52, %v560_v45 }
  0x84   : > { %v765_v26 = vpack.c.bf16 %v699_v13, %v697_v11 }
  0x86   : > { %1076 = vmatmul.mubr.bf16.gmra.mrb[44].mxu0 %v726_v18  ;;  %1204 = vmatmul.mubr.bf16.gmra.mrb[44].mxu1 %v758_v19  ;;  %v492_v18 = vmul.f32 %v2042_v38, %v352_v63  ;;  %v494_v19 = vmul.f32 %v2042_v38, %v354_v5 }
  0x87   : > { %1718 = vmatprep.mubr.msk.bf16.mxu0 %vm851_vm1, %v729_v20  ;;  %1734 = vmatprep.mubr.msk.bf16.mxu1 %vm851_vm1, %v761_v22  ;;  %v556_v20 = vmul.f32 %v2042_v38, %v416_v6  ;;  %v730_v22 = vpack.c.bf16 %v630_v61, %v628_v60  ;;  %v2421_v38 = vld [vmem:[%s2628_s4] ss:$0 sm:$0xff] }
  0x88   : > { %v632_v30 = vadd.f32 %v2062_v52, %v492_v18  ;;  %v634_v1 = vadd.f32 %v2062_v52, %v494_v19 }
  0x89   : > { %v696_v31 = vadd.f32 %v2062_v52, %v556_v20 }
  0x8a   : > { %v732_v41 = vpack.c.bf16 %v634_v1, %v632_v30 }
  0x8b   : > { %v764_v43 = vpack.c.bf16 %v698_v32, %v696_v31 }
  0x8e   : > { %1084 = vmatmul.mubr.bf16.gmra.mrb[48].mxu0 %v728_v49  ;;  %1212 = vmatmul.mubr.bf16.gmra.mrb[48].mxu1 %v760_v51  ;;  %v636_v49 = vadd.f32 %v2062_v52, %v496_v42  ;;  %v702_v51 = vadd.f32 %v2062_v52, %v562_v46 }
  0x8f   : > { %1719 = vmatprep.mubr.msk.bf16.mxu0 %vm851_vm1, %v731_v56  ;;  %1735 = vmatprep.mubr.msk.bf16.mxu1 %vm851_vm1, %v763_v57 }
  0x90   : > { %v734_v53 = vpack.c.bf16 %v638_v50, %v636_v49  ;;  %v766_v54 = vpack.c.bf16 %v702_v51, %v700_v17 }
  0x96   : > { %1092 = vmatmul.mubr.bf16.gmra.mrb[52].mxu0 %v730_v22  ;;  %1220 = vmatmul.mubr.bf16.gmra.mrb[52].mxu1 %v762_v23 }
  0x97   : > { %1720 = vmatprep.mubr.msk.bf16.mxu0 %vm851_vm1, %v733_v24  ;;  %1736 = vmatprep.mubr.msk.bf16.mxu1 %vm851_vm1, %v765_v26 }
  0x9e   : > { %1100 = vmatmul.mubr.bf16.gmra.mrb[56].mxu0 %v732_v41  ;;  %1228 = vmatmul.mubr.bf16.gmra.mrb[56].mxu1 %v764_v43 }
  0x9f   : > { %1721 = vmatprep.mubr.msk.bf16.mxu0 %vm851_vm1, %v735_v47  ;;  %1737 = vmatprep.mubr.msk.bf16.mxu1 %vm851_vm1, %v767_v48 }
  0xa6   : > { %1108 = vmatmul.mubr.bf16.gmra.mrb[60].mxu0 %v734_v53  ;;  %1236 = vmatmul.mubr.bf16.gmra.mrb[60].mxu1 %v766_v54 }
 0x101   : > { %v989_v55 = vpop.f32.mrb[0].mxu0  ;;  %v1117_v56 = vpop.f32.mrb[0].mxu1 }
 0x102   : > { %v990_v57 = vadd.f32 %v2421_v38, %v989_v55  ;;  %v1118_v52 = vadd.f32 %v2421_v38, %v1117_v56  ;;  %v991_v58 = vpop.f32.mrb[1].mxu0  ;;  %v1119_v59 = vpop.f32.mrb[1].mxu1 }
 0x103   : > { %v992_v60 = vpop.f32.mrb[2].mxu0  ;;  %v1120_v61 = vpop.f32.mrb[2].mxu1 }
 0x104   : > { %v1244_v62 = vmax.f32 %v990_v57, 0.0  ;;  %v1276_v63 = vmax.f32 %v1118_v52, 0.0  ;;  %v993_v0 = vadd.f32 %v2421_v38, %v992_v60  ;;  %v1121_v2 = vadd.f32 %v2421_v38, %v1120_v61  ;;  %v994_v3 = vpop.f32.mrb[3].mxu0  ;;  %v1122_v4 = vpop.f32.mrb[3].mxu1 }
 0x106   : > { %v1805_v5 = vpack.c.bf16 %v1244_v62, %v1244_v62  ;;  %v1837_v6 = vpack.c.bf16 %v1276_v63, %v1276_v63  ;;  %v1245_v7 = vmax.f32 %v993_v0, 0.0  ;;  %v1277_v8 = vmax.f32 %v1121_v2, 0.0 }
 0x108   : > { %1565 = vst.msk [vmem:[%s2431_s26] sm:$0xf] %vm1564_vm3, %v1805_v5  ;;  %1597 = vst.msk [vmem:[%s2431_s26 + $0x80] sm:$0xf] %vm1564_vm3, %v1837_v6  ;;  %v1806_v9 = vpack.c.bf16 %v1245_v7, %v1245_v7  ;;  %v1838_v11 = vpack.c.bf16 %v1277_v8, %v1277_v8 }
 0x109   : > { %v997_v12 = vpop.f32.mrb[4].mxu0  ;;  %v1125_v13 = vpop.f32.mrb[4].mxu1 }
 0x10a   : > { %1566 = vst.msk [vmem:[%s2431_s26 + $0x4] sm:$0xf] %vm1564_vm3, %v1806_v9  ;;  %1598 = vst.msk [vmem:[%s2431_s26 + $0x84] sm:$0xf] %vm1564_vm3, %v1838_v11  ;;  %v998_v14 = vadd.f32 %v2421_v38, %v997_v12  ;;  %v1126_v15 = vadd.f32 %v2421_v38, %v1125_v13  ;;  %v999_v16 = vpop.f32.mrb[5].mxu0  ;;  %v1127_v18 = vpop.f32.mrb[5].mxu1 }
 0x10b   : > { %v1000_v19 = vpop.f32.mrb[6].mxu0  ;;  %v1128_v20 = vpop.f32.mrb[6].mxu1 }
 0x10c   : > { %v1246_v21 = vmax.f32 %v998_v14, 0.0  ;;  %v1278_v22 = vmax.f32 %v1126_v15, 0.0  ;;  %v1001_v23 = vadd.f32 %v2421_v38, %v1000_v19  ;;  %v1129_v24 = vadd.f32 %v2421_v38, %v1128_v20  ;;  %v1002_v25 = vpop.f32.mrb[7].mxu0  ;;  %v1130_v26 = vpop.f32.mrb[7].mxu1 }
 0x10e   : > { %v1807_v27 = vpack.c.bf16 %v1246_v21, %v1246_v21  ;;  %v1839_v28 = vpack.c.bf16 %v1278_v22, %v1278_v22  ;;  %v1247_v29 = vmax.f32 %v1001_v23, 0.0  ;;  %v1279_v30 = vmax.f32 %v1129_v24, 0.0 }
 0x110   : > { %1567 = vst.msk [vmem:[%s2431_s26 + $0x8] sm:$0xf] %vm1564_vm3, %v1807_v27  ;;  %1599 = vst.msk [vmem:[%s2431_s26 + $0x88] sm:$0xf] %vm1564_vm3, %v1839_v28  ;;  %v1808_v1 = vpack.c.bf16 %v1247_v29, %v1247_v29  ;;  %v1840_v31 = vpack.c.bf16 %v1279_v30, %v1279_v30 }
 0x111   : > { %v1005_v32 = vpop.f32.mrb[8].mxu0  ;;  %v1133_v33 = vpop.f32.mrb[8].mxu1 }
 0x112   : > { %1568 = vst.msk [vmem:[%s2431_s26 + $0xc] sm:$0xf] %vm1564_vm3, %v1808_v1  ;;  %1600 = vst.msk [vmem:[%s2431_s26 + $0x8c] sm:$0xf] %vm1564_vm3, %v1840_v31  ;;  %v1006_v34 = vadd.f32 %v2421_v38, %v1005_v32  ;;  %v1134_v35 = vadd.f32 %v2421_v38, %v1133_v33  ;;  %v1007_v36 = vpop.f32.mrb[9].mxu0  ;;  %v1135_v37 = vpop.f32.mrb[9].mxu1 }
 0x113   : > { %v1008_v10 = vpop.f32.mrb[10].mxu0  ;;  %v1136_v39 = vpop.f32.mrb[10].mxu1 }
 0x114   : > { %v1248_v40 = vmax.f32 %v1006_v34, 0.0  ;;  %v1280_v41 = vmax.f32 %v1134_v35, 0.0  ;;  %v1009_v42 = vadd.f32 %v2421_v38, %v1008_v10  ;;  %v1137_v43 = vadd.f32 %v2421_v38, %v1136_v39  ;;  %v1010_v44 = vpop.f32.mrb[11].mxu0  ;;  %v1138_v45 = vpop.f32.mrb[11].mxu1 }
 0x116   : > { %v1809_v46 = vpack.c.bf16 %v1248_v40, %v1248_v40  ;;  %v1841_v47 = vpack.c.bf16 %v1280_v41, %v1280_v41  ;;  %v1249_v48 = vmax.f32 %v1009_v42, 0.0  ;;  %v1281_v49 = vmax.f32 %v1137_v43, 0.0 }
 0x118   : > { %1569 = vst.msk [vmem:[%s2431_s26 + $0x10] sm:$0xf] %vm1564_vm3, %v1809_v46  ;;  %1601 = vst.msk [vmem:[%s2431_s26 + $0x90] sm:$0xf] %vm1564_vm3, %v1841_v47  ;;  %v1810_v50 = vpack.c.bf16 %v1249_v48, %v1249_v48  ;;  %v1842_v17 = vpack.c.bf16 %v1281_v49, %v1281_v49 }
 0x119   : > { %v1013_v51 = vpop.f32.mrb[12].mxu0  ;;  %v1141_v53 = vpop.f32.mrb[12].mxu1 }
 0x11a   : > { %1570 = vst.msk [vmem:[%s2431_s26 + $0x14] sm:$0xf] %vm1564_vm3, %v1810_v50  ;;  %1602 = vst.msk [vmem:[%s2431_s26 + $0x94] sm:$0xf] %vm1564_vm3, %v1842_v17  ;;  %v1014_v54 = vadd.f32 %v2421_v38, %v1013_v51  ;;  %v1142_v55 = vadd.f32 %v2421_v38, %v1141_v53  ;;  %v1015_v56 = vpop.f32.mrb[13].mxu0  ;;  %v1143_v57 = vpop.f32.mrb[13].mxu1 }
 0x11b   : > { %v1016_v52 = vpop.f32.mrb[14].mxu0  ;;  %v1144_v58 = vpop.f32.mrb[14].mxu1 }
 0x11c   : > { %v1250_v59 = vmax.f32 %v1014_v54, 0.0  ;;  %v1282_v60 = vmax.f32 %v1142_v55, 0.0  ;;  %v1017_v61 = vadd.f32 %v2421_v38, %v1016_v52  ;;  %v1145_v62 = vadd.f32 %v2421_v38, %v1144_v58  ;;  %v1018_v63 = vpop.f32.mrb[15].mxu0  ;;  %v1146_v0 = vpop.f32.mrb[15].mxu1 }
 0x11e   : > { %v1811_v2 = vpack.c.bf16 %v1250_v59, %v1250_v59  ;;  %v1843_v3 = vpack.c.bf16 %v1282_v60, %v1282_v60  ;;  %v1251_v4 = vmax.f32 %v1017_v61, 0.0  ;;  %v1283_v5 = vmax.f32 %v1145_v62, 0.0 }
 0x120   : > { %1571 = vst.msk [vmem:[%s2431_s26 + $0x18] sm:$0xf] %vm1564_vm3, %v1811_v2  ;;  %1603 = vst.msk [vmem:[%s2431_s26 + $0x98] sm:$0xf] %vm1564_vm3, %v1843_v3  ;;  %v1812_v6 = vpack.c.bf16 %v1251_v4, %v1251_v4  ;;  %v1844_v7 = vpack.c.bf16 %v1283_v5, %v1283_v5 }
 0x121   : > { %v1021_v8 = vpop.f32.mrb[16].mxu0  ;;  %v1149_v9 = vpop.f32.mrb[16].mxu1 }
 0x122   : > { %1572 = vst.msk [vmem:[%s2431_s26 + $0x1c] sm:$0xf] %vm1564_vm3, %v1812_v6  ;;  %1604 = vst.msk [vmem:[%s2431_s26 + $0x9c] sm:$0xf] %vm1564_vm3, %v1844_v7  ;;  %v1022_v11 = vadd.f32 %v2421_v38, %v1021_v8  ;;  %v1150_v12 = vadd.f32 %v2421_v38, %v1149_v9  ;;  %v1023_v13 = vpop.f32.mrb[17].mxu0  ;;  %v1151_v14 = vpop.f32.mrb[17].mxu1 }
 0x123   : > { %v1024_v15 = vpop.f32.mrb[18].mxu0  ;;  %v1152_v16 = vpop.f32.mrb[18].mxu1 }
 0x124   : > { %v1252_v18 = vmax.f32 %v1022_v11, 0.0  ;;  %v1284_v19 = vmax.f32 %v1150_v12, 0.0  ;;  %v1025_v20 = vadd.f32 %v2421_v38, %v1024_v15  ;;  %v1153_v21 = vadd.f32 %v2421_v38, %v1152_v16  ;;  %v1026_v22 = vpop.f32.mrb[19].mxu0  ;;  %v1154_v23 = vpop.f32.mrb[19].mxu1 }
 0x126   : > { %v1813_v24 = vpack.c.bf16 %v1252_v18, %v1252_v18  ;;  %v1845_v25 = vpack.c.bf16 %v1284_v19, %v1284_v19  ;;  %v1253_v26 = vmax.f32 %v1025_v20, 0.0  ;;  %v1285_v27 = vmax.f32 %v1153_v21, 0.0 }
 0x128   : > { %1573 = vst.msk [vmem:[%s2431_s26 + $0x20] sm:$0xf] %vm1564_vm3, %v1813_v24  ;;  %1605 = vst.msk [vmem:[%s2431_s26 + $0xa0] sm:$0xf] %vm1564_vm3, %v1845_v25  ;;  %v1814_v28 = vpack.c.bf16 %v1253_v26, %v1253_v26  ;;  %v1846_v29 = vpack.c.bf16 %v1285_v27, %v1285_v27 }
 0x129   : > { %v1029_v30 = vpop.f32.mrb[20].mxu0  ;;  %v1157_v1 = vpop.f32.mrb[20].mxu1 }
 0x12a   : > { %1574 = vst.msk [vmem:[%s2431_s26 + $0x24] sm:$0xf] %vm1564_vm3, %v1814_v28  ;;  %1606 = vst.msk [vmem:[%s2431_s26 + $0xa4] sm:$0xf] %vm1564_vm3, %v1846_v29  ;;  %v1030_v31 = vadd.f32 %v2421_v38, %v1029_v30  ;;  %v1158_v32 = vadd.f32 %v2421_v38, %v1157_v1  ;;  %v1031_v33 = vpop.f32.mrb[21].mxu0  ;;  %v1159_v34 = vpop.f32.mrb[21].mxu1 }
 0x12b   : > { %v1032_v35 = vpop.f32.mrb[22].mxu0  ;;  %v1160_v36 = vpop.f32.mrb[22].mxu1 }
 0x12c   : > { %v1254_v37 = vmax.f32 %v1030_v31, 0.0  ;;  %v1286_v10 = vmax.f32 %v1158_v32, 0.0  ;;  %v1033_v39 = vadd.f32 %v2421_v38, %v1032_v35  ;;  %v1161_v40 = vadd.f32 %v2421_v38, %v1160_v36  ;;  %v1034_v41 = vpop.f32.mrb[23].mxu0  ;;  %v1162_v42 = vpop.f32.mrb[23].mxu1 }
 0x12e   : > { %v1815_v43 = vpack.c.bf16 %v1254_v37, %v1254_v37  ;;  %v1847_v44 = vpack.c.bf16 %v1286_v10, %v1286_v10  ;;  %v1255_v45 = vmax.f32 %v1033_v39, 0.0  ;;  %v1287_v46 = vmax.f32 %v1161_v40, 0.0 }
 0x130   : > { %1575 = vst.msk [vmem:[%s2431_s26 + $0x28] sm:$0xf] %vm1564_vm3, %v1815_v43  ;;  %1607 = vst.msk [vmem:[%s2431_s26 + $0xa8] sm:$0xf] %vm1564_vm3, %v1847_v44  ;;  %v1816_v47 = vpack.c.bf16 %v1255_v45, %v1255_v45  ;;  %v1848_v48 = vpack.c.bf16 %v1287_v46, %v1287_v46 }
 0x131   : > { %v1037_v49 = vpop.f32.mrb[24].mxu0  ;;  %v1165_v50 = vpop.f32.mrb[24].mxu1 }
 0x132   : > { %1576 = vst.msk [vmem:[%s2431_s26 + $0x2c] sm:$0xf] %vm1564_vm3, %v1816_v47  ;;  %1608 = vst.msk [vmem:[%s2431_s26 + $0xac] sm:$0xf] %vm1564_vm3, %v1848_v48  ;;  %v1038_v17 = vadd.f32 %v2421_v38, %v1037_v49  ;;  %v1166_v51 = vadd.f32 %v2421_v38, %v1165_v50  ;;  %v1039_v53 = vpop.f32.mrb[25].mxu0  ;;  %v1167_v54 = vpop.f32.mrb[25].mxu1 }
 0x133   : > { %v1040_v55 = vpop.f32.mrb[26].mxu0  ;;  %v1168_v56 = vpop.f32.mrb[26].mxu1 }
 0x134   : > { %v1256_v57 = vmax.f32 %v1038_v17, 0.0  ;;  %v1288_v52 = vmax.f32 %v1166_v51, 0.0  ;;  %v1041_v58 = vadd.f32 %v2421_v38, %v1040_v55  ;;  %v1169_v59 = vadd.f32 %v2421_v38, %v1168_v56  ;;  %v1042_v60 = vpop.f32.mrb[27].mxu0  ;;  %v1170_v61 = vpop.f32.mrb[27].mxu1 }
 0x136   : > { %v1817_v62 = vpack.c.bf16 %v1256_v57, %v1256_v57  ;;  %v1849_v63 = vpack.c.bf16 %v1288_v52, %v1288_v52  ;;  %v1257_v0 = vmax.f32 %v1041_v58, 0.0  ;;  %v1289_v2 = vmax.f32 %v1169_v59, 0.0 }
 0x138   : > { %1577 = vst.msk [vmem:[%s2431_s26 + $0x30] sm:$0xf] %vm1564_vm3, %v1817_v62  ;;  %1609 = vst.msk [vmem:[%s2431_s26 + $0xb0] sm:$0xf] %vm1564_vm3, %v1849_v63  ;;  %v1818_v3 = vpack.c.bf16 %v1257_v0, %v1257_v0  ;;  %v1850_v4 = vpack.c.bf16 %v1289_v2, %v1289_v2 }
 0x139   : > { %v1045_v5 = vpop.f32.mrb[28].mxu0  ;;  %v1173_v6 = vpop.f32.mrb[28].mxu1 }
 0x13a   : > { %1578 = vst.msk [vmem:[%s2431_s26 + $0x34] sm:$0xf] %vm1564_vm3, %v1818_v3  ;;  %1610 = vst.msk [vmem:[%s2431_s26 + $0xb4] sm:$0xf] %vm1564_vm3, %v1850_v4  ;;  %v1046_v7 = vadd.f32 %v2421_v38, %v1045_v5  ;;  %v1174_v8 = vadd.f32 %v2421_v38, %v1173_v6  ;;  %v1047_v9 = vpop.f32.mrb[29].mxu0  ;;  %v1175_v11 = vpop.f32.mrb[29].mxu1 }
 0x13b   : > { %v1048_v12 = vpop.f32.mrb[30].mxu0  ;;  %v1176_v13 = vpop.f32.mrb[30].mxu1 }
 0x13c   : > { %v1258_v14 = vmax.f32 %v1046_v7, 0.0  ;;  %v1290_v15 = vmax.f32 %v1174_v8, 0.0  ;;  %v1049_v16 = vadd.f32 %v2421_v38, %v1048_v12  ;;  %v1177_v18 = vadd.f32 %v2421_v38, %v1176_v13  ;;  %v1050_v19 = vpop.f32.mrb[31].mxu0  ;;  %v1178_v20 = vpop.f32.mrb[31].mxu1 }
 0x13e   : > { %v1819_v21 = vpack.c.bf16 %v1258_v14, %v1258_v14  ;;  %v1851_v22 = vpack.c.bf16 %v1290_v15, %v1290_v15  ;;  %v1259_v23 = vmax.f32 %v1049_v16, 0.0  ;;  %v1291_v24 = vmax.f32 %v1177_v18, 0.0 }
 0x140   : > { %1579 = vst.msk [vmem:[%s2431_s26 + $0x38] sm:$0xf] %vm1564_vm3, %v1819_v21  ;;  %1611 = vst.msk [vmem:[%s2431_s26 + $0xb8] sm:$0xf] %vm1564_vm3, %v1851_v22  ;;  %v1820_v25 = vpack.c.bf16 %v1259_v23, %v1259_v23  ;;  %v1852_v26 = vpack.c.bf16 %v1291_v24, %v1291_v24 }
 0x141   : > { %v1053_v27 = vpop.f32.mrb[32].mxu0  ;;  %v1181_v28 = vpop.f32.mrb[32].mxu1 }
 0x142   : > { %1580 = vst.msk [vmem:[%s2431_s26 + $0x3c] sm:$0xf] %vm1564_vm3, %v1820_v25  ;;  %1612 = vst.msk [vmem:[%s2431_s26 + $0xbc] sm:$0xf] %vm1564_vm3, %v1852_v26  ;;  %v1054_v29 = vadd.f32 %v2421_v38, %v1053_v27  ;;  %v1182_v30 = vadd.f32 %v2421_v38, %v1181_v28  ;;  %v1055_v1 = vpop.f32.mrb[33].mxu0  ;;  %v1183_v31 = vpop.f32.mrb[33].mxu1 }
 0x143   : > { %v1056_v32 = vpop.f32.mrb[34].mxu0  ;;  %v1184_v33 = vpop.f32.mrb[34].mxu1 }
 0x144   : > { %v1260_v34 = vmax.f32 %v1054_v29, 0.0  ;;  %v1292_v35 = vmax.f32 %v1182_v30, 0.0  ;;  %v1057_v36 = vadd.f32 %v2421_v38, %v1056_v32  ;;  %v1185_v37 = vadd.f32 %v2421_v38, %v1184_v33  ;;  %v1058_v10 = vpop.f32.mrb[35].mxu0  ;;  %v1186_v39 = vpop.f32.mrb[35].mxu1 }
 0x146   : > { %v1821_v40 = vpack.c.bf16 %v1260_v34, %v1260_v34  ;;  %v1853_v41 = vpack.c.bf16 %v1292_v35, %v1292_v35  ;;  %v1261_v42 = vmax.f32 %v1057_v36, 0.0  ;;  %v1293_v43 = vmax.f32 %v1185_v37, 0.0 }
 0x148   : > { %1581 = vst.msk [vmem:[%s2431_s26 + $0x40] sm:$0xf] %vm1564_vm3, %v1821_v40  ;;  %1613 = vst.msk [vmem:[%s2431_s26 + $0xc0] sm:$0xf] %vm1564_vm3, %v1853_v41  ;;  %v1822_v44 = vpack.c.bf16 %v1261_v42, %v1261_v42  ;;  %v1854_v45 = vpack.c.bf16 %v1293_v43, %v1293_v43 }
 0x149   : > { %v1061_v46 = vpop.f32.mrb[36].mxu0  ;;  %v1189_v47 = vpop.f32.mrb[36].mxu1 }
 0x14a   : > { %1582 = vst.msk [vmem:[%s2431_s26 + $0x44] sm:$0xf] %vm1564_vm3, %v1822_v44  ;;  %1614 = vst.msk [vmem:[%s2431_s26 + $0xc4] sm:$0xf] %vm1564_vm3, %v1854_v45  ;;  %v1062_v48 = vadd.f32 %v2421_v38, %v1061_v46  ;;  %v1190_v49 = vadd.f32 %v2421_v38, %v1189_v47  ;;  %v1063_v50 = vpop.f32.mrb[37].mxu0  ;;  %v1191_v17 = vpop.f32.mrb[37].mxu1 }
 0x14b   : > { %v1064_v51 = vpop.f32.mrb[38].mxu0  ;;  %v1192_v53 = vpop.f32.mrb[38].mxu1 }
 0x14c   : > { %v1262_v54 = vmax.f32 %v1062_v48, 0.0  ;;  %v1294_v55 = vmax.f32 %v1190_v49, 0.0  ;;  %v1065_v56 = vadd.f32 %v2421_v38, %v1064_v51  ;;  %v1193_v57 = vadd.f32 %v2421_v38, %v1192_v53  ;;  %v1066_v52 = vpop.f32.mrb[39].mxu0  ;;  %v1194_v58 = vpop.f32.mrb[39].mxu1 }
 0x14e   : > { %v1823_v59 = vpack.c.bf16 %v1262_v54, %v1262_v54  ;;  %v1855_v60 = vpack.c.bf16 %v1294_v55, %v1294_v55  ;;  %v1263_v61 = vmax.f32 %v1065_v56, 0.0  ;;  %v1295_v62 = vmax.f32 %v1193_v57, 0.0 }
 0x150   : > { %1583 = vst.msk [vmem:[%s2431_s26 + $0x48] sm:$0xf] %vm1564_vm3, %v1823_v59  ;;  %1615 = vst.msk [vmem:[%s2431_s26 + $0xc8] sm:$0xf] %vm1564_vm3, %v1855_v60  ;;  %v1824_v63 = vpack.c.bf16 %v1263_v61, %v1263_v61  ;;  %v1856_v0 = vpack.c.bf16 %v1295_v62, %v1295_v62 }
 0x151   : > { %v1069_v2 = vpop.f32.mrb[40].mxu0  ;;  %v1197_v3 = vpop.f32.mrb[40].mxu1 }
 0x152   : > { %1584 = vst.msk [vmem:[%s2431_s26 + $0x4c] sm:$0xf] %vm1564_vm3, %v1824_v63  ;;  %1616 = vst.msk [vmem:[%s2431_s26 + $0xcc] sm:$0xf] %vm1564_vm3, %v1856_v0  ;;  %v1070_v4 = vadd.f32 %v2421_v38, %v1069_v2  ;;  %v1198_v5 = vadd.f32 %v2421_v38, %v1197_v3  ;;  %v1071_v6 = vpop.f32.mrb[41].mxu0  ;;  %v1199_v7 = vpop.f32.mrb[41].mxu1 }
 0x153   : > { %v1072_v8 = vpop.f32.mrb[42].mxu0  ;;  %v1200_v9 = vpop.f32.mrb[42].mxu1 }
 0x154   : > { %v1264_v11 = vmax.f32 %v1070_v4, 0.0  ;;  %v1296_v12 = vmax.f32 %v1198_v5, 0.0  ;;  %v1073_v13 = vadd.f32 %v2421_v38, %v1072_v8  ;;  %v1201_v14 = vadd.f32 %v2421_v38, %v1200_v9  ;;  %v1074_v15 = vpop.f32.mrb[43].mxu0  ;;  %v1202_v16 = vpop.f32.mrb[43].mxu1 }
 0x156   : > { %v1825_v18 = vpack.c.bf16 %v1264_v11, %v1264_v11  ;;  %v1857_v19 = vpack.c.bf16 %v1296_v12, %v1296_v12  ;;  %v1265_v20 = vmax.f32 %v1073_v13, 0.0  ;;  %v1297_v21 = vmax.f32 %v1201_v14, 0.0 }
 0x158   : > { %1585 = vst.msk [vmem:[%s2431_s26 + $0x50] sm:$0xf] %vm1564_vm3, %v1825_v18  ;;  %1617 = vst.msk [vmem:[%s2431_s26 + $0xd0] sm:$0xf] %vm1564_vm3, %v1857_v19  ;;  %v1826_v22 = vpack.c.bf16 %v1265_v20, %v1265_v20  ;;  %v1858_v23 = vpack.c.bf16 %v1297_v21, %v1297_v21 }
 0x159   : > { %v1077_v24 = vpop.f32.mrb[44].mxu0  ;;  %v1205_v25 = vpop.f32.mrb[44].mxu1 }
 0x15a   : > { %1586 = vst.msk [vmem:[%s2431_s26 + $0x54] sm:$0xf] %vm1564_vm3, %v1826_v22  ;;  %1618 = vst.msk [vmem:[%s2431_s26 + $0xd4] sm:$0xf] %vm1564_vm3, %v1858_v23  ;;  %v1078_v26 = vadd.f32 %v2421_v38, %v1077_v24  ;;  %v1206_v27 = vadd.f32 %v2421_v38, %v1205_v25  ;;  %v1079_v28 = vpop.f32.mrb[45].mxu0  ;;  %v1207_v29 = vpop.f32.mrb[45].mxu1 }
 0x15b   : > { %v1080_v30 = vpop.f32.mrb[46].mxu0  ;;  %v1208_v1 = vpop.f32.mrb[46].mxu1 }
 0x15c   : > { %v1266_v31 = vmax.f32 %v1078_v26, 0.0  ;;  %v1298_v32 = vmax.f32 %v1206_v27, 0.0  ;;  %v1081_v33 = vadd.f32 %v2421_v38, %v1080_v30  ;;  %v1209_v34 = vadd.f32 %v2421_v38, %v1208_v1  ;;  %v1082_v35 = vpop.f32.mrb[47].mxu0  ;;  %v1210_v36 = vpop.f32.mrb[47].mxu1 }
 0x15e   : > { %v1827_v37 = vpack.c.bf16 %v1266_v31, %v1266_v31  ;;  %v1859_v10 = vpack.c.bf16 %v1298_v32, %v1298_v32  ;;  %v1267_v39 = vmax.f32 %v1081_v33, 0.0  ;;  %v1299_v40 = vmax.f32 %v1209_v34, 0.0 }
 0x160   : > { %1587 = vst.msk [vmem:[%s2431_s26 + $0x58] sm:$0xf] %vm1564_vm3, %v1827_v37  ;;  %1619 = vst.msk [vmem:[%s2431_s26 + $0xd8] sm:$0xf] %vm1564_vm3, %v1859_v10  ;;  %v1828_v41 = vpack.c.bf16 %v1267_v39, %v1267_v39  ;;  %v1860_v42 = vpack.c.bf16 %v1299_v40, %v1299_v40 }
 0x161   : > { %v1085_v43 = vpop.f32.mrb[48].mxu0  ;;  %v1213_v44 = vpop.f32.mrb[48].mxu1 }
 0x162   : > { %1588 = vst.msk [vmem:[%s2431_s26 + $0x5c] sm:$0xf] %vm1564_vm3, %v1828_v41  ;;  %1620 = vst.msk [vmem:[%s2431_s26 + $0xdc] sm:$0xf] %vm1564_vm3, %v1860_v42  ;;  %v1086_v45 = vadd.f32 %v2421_v38, %v1085_v43  ;;  %v1214_v46 = vadd.f32 %v2421_v38, %v1213_v44  ;;  %v1087_v47 = vpop.f32.mrb[49].mxu0  ;;  %v1215_v48 = vpop.f32.mrb[49].mxu1 }
 0x163   : > { %v1088_v49 = vpop.f32.mrb[50].mxu0  ;;  %v1216_v50 = vpop.f32.mrb[50].mxu1 }
 0x164   : > { %v1268_v17 = vmax.f32 %v1086_v45, 0.0  ;;  %v1300_v51 = vmax.f32 %v1214_v46, 0.0  ;;  %v1089_v53 = vadd.f32 %v2421_v38, %v1088_v49  ;;  %v1217_v54 = vadd.f32 %v2421_v38, %v1216_v50  ;;  %v1090_v55 = vpop.f32.mrb[51].mxu0  ;;  %v1218_v56 = vpop.f32.mrb[51].mxu1 }
 0x166   : > { %v1829_v57 = vpack.c.bf16 %v1268_v17, %v1268_v17  ;;  %v1861_v52 = vpack.c.bf16 %v1300_v51, %v1300_v51  ;;  %v1269_v58 = vmax.f32 %v1089_v53, 0.0  ;;  %v1301_v59 = vmax.f32 %v1217_v54, 0.0 }
 0x168   : > { %1589 = vst.msk [vmem:[%s2431_s26 + $0x60] sm:$0xf] %vm1564_vm3, %v1829_v57  ;;  %1621 = vst.msk [vmem:[%s2431_s26 + $0xe0] sm:$0xf] %vm1564_vm3, %v1861_v52  ;;  %v1830_v60 = vpack.c.bf16 %v1269_v58, %v1269_v58  ;;  %v1862_v61 = vpack.c.bf16 %v1301_v59, %v1301_v59 }
 0x169   : > { %v1093_v62 = vpop.f32.mrb[52].mxu0  ;;  %v1221_v63 = vpop.f32.mrb[52].mxu1 }
 0x16a   : > { %1590 = vst.msk [vmem:[%s2431_s26 + $0x64] sm:$0xf] %vm1564_vm3, %v1830_v60  ;;  %1622 = vst.msk [vmem:[%s2431_s26 + $0xe4] sm:$0xf] %vm1564_vm3, %v1862_v61  ;;  %v1094_v0 = vadd.f32 %v2421_v38, %v1093_v62  ;;  %v1222_v2 = vadd.f32 %v2421_v38, %v1221_v63  ;;  %v1095_v3 = vpop.f32.mrb[53].mxu0  ;;  %v1223_v4 = vpop.f32.mrb[53].mxu1 }
 0x16b   : > { %v1096_v5 = vpop.f32.mrb[54].mxu0  ;;  %v1224_v6 = vpop.f32.mrb[54].mxu1 }
 0x16c   : > { %v1270_v7 = vmax.f32 %v1094_v0, 0.0  ;;  %v1302_v8 = vmax.f32 %v1222_v2, 0.0  ;;  %v1097_v9 = vadd.f32 %v2421_v38, %v1096_v5  ;;  %v1225_v11 = vadd.f32 %v2421_v38, %v1224_v6  ;;  %v1098_v12 = vpop.f32.mrb[55].mxu0  ;;  %v1226_v13 = vpop.f32.mrb[55].mxu1 }
 0x16e   : > { %v1831_v14 = vpack.c.bf16 %v1270_v7, %v1270_v7  ;;  %v1863_v15 = vpack.c.bf16 %v1302_v8, %v1302_v8  ;;  %v1271_v16 = vmax.f32 %v1097_v9, 0.0  ;;  %v1303_v18 = vmax.f32 %v1225_v11, 0.0 }
 0x170   : > { %1591 = vst.msk [vmem:[%s2431_s26 + $0x68] sm:$0xf] %vm1564_vm3, %v1831_v14  ;;  %1623 = vst.msk [vmem:[%s2431_s26 + $0xe8] sm:$0xf] %vm1564_vm3, %v1863_v15  ;;  %v1832_v19 = vpack.c.bf16 %v1271_v16, %v1271_v16  ;;  %v1864_v20 = vpack.c.bf16 %v1303_v18, %v1303_v18 }
 0x171   : > { %v1101_v21 = vpop.f32.mrb[56].mxu0  ;;  %v1229_v22 = vpop.f32.mrb[56].mxu1 }
 0x172   : > { %1592 = vst.msk [vmem:[%s2431_s26 + $0x6c] sm:$0xf] %vm1564_vm3, %v1832_v19  ;;  %1624 = vst.msk [vmem:[%s2431_s26 + $0xec] sm:$0xf] %vm1564_vm3, %v1864_v20  ;;  %v1102_v23 = vadd.f32 %v2421_v38, %v1101_v21  ;;  %v1230_v24 = vadd.f32 %v2421_v38, %v1229_v22  ;;  %v1103_v25 = vpop.f32.mrb[57].mxu0  ;;  %v1231_v26 = vpop.f32.mrb[57].mxu1 }
 0x173   : > { %v1104_v27 = vpop.f32.mrb[58].mxu0  ;;  %v1232_v28 = vpop.f32.mrb[58].mxu1 }
 0x174   : > { %v1272_v29 = vmax.f32 %v1102_v23, 0.0  ;;  %v1304_v30 = vmax.f32 %v1230_v24, 0.0  ;;  %v1105_v1 = vadd.f32 %v2421_v38, %v1104_v27  ;;  %v1233_v31 = vadd.f32 %v2421_v38, %v1232_v28  ;;  %v1106_v32 = vpop.f32.mrb[59].mxu0  ;;  %v1234_v33 = vpop.f32.mrb[59].mxu1 }
 0x176   : > { %v1833_v34 = vpack.c.bf16 %v1272_v29, %v1272_v29  ;;  %v1865_v35 = vpack.c.bf16 %v1304_v30, %v1304_v30  ;;  %v1273_v36 = vmax.f32 %v1105_v1, 0.0  ;;  %v1305_v37 = vmax.f32 %v1233_v31, 0.0 }
 0x178   : > { %1593 = vst.msk [vmem:[%s2431_s26 + $0x70] sm:$0xf] %vm1564_vm3, %v1833_v34  ;;  %1625 = vst.msk [vmem:[%s2431_s26 + $0xf0] sm:$0xf] %vm1564_vm3, %v1865_v35  ;;  %v1834_v10 = vpack.c.bf16 %v1273_v36, %v1273_v36  ;;  %v1866_v39 = vpack.c.bf16 %v1305_v37, %v1305_v37 }
 0x179   : > { %v1109_v40 = vpop.f32.mrb[60].mxu0  ;;  %v1237_v41 = vpop.f32.mrb[60].mxu1 }
 0x17a   : > { %1594 = vst.msk [vmem:[%s2431_s26 + $0x74] sm:$0xf] %vm1564_vm3, %v1834_v10  ;;  %1626 = vst.msk [vmem:[%s2431_s26 + $0xf4] sm:$0xf] %vm1564_vm3, %v1866_v39  ;;  %v1110_v42 = vadd.f32 %v2421_v38, %v1109_v40  ;;  %v1238_v43 = vadd.f32 %v2421_v38, %v1237_v41  ;;  %v1111_v44 = vpop.f32.mrb[61].mxu0  ;;  %v1239_v45 = vpop.f32.mrb[61].mxu1 }
 0x17b   : > { %v1112_v46 = vpop.f32.mrb[62].mxu0  ;;  %v1240_v47 = vpop.f32.mrb[62].mxu1 }
 0x17c   : > { %v1274_v48 = vmax.f32 %v1110_v42, 0.0  ;;  %v1306_v49 = vmax.f32 %v1238_v43, 0.0  ;;  %v1113_v50 = vadd.f32 %v2421_v38, %v1112_v46  ;;  %v1241_v17 = vadd.f32 %v2421_v38, %v1240_v47  ;;  %v1114_v51 = vpop.f32.mrb[63].mxu0  ;;  %v1242_v53 = vpop.f32.mrb[63].mxu1 }
 0x17e   : > { %v1835_v54 = vpack.c.bf16 %v1274_v48, %v1274_v48  ;;  %v1867_v55 = vpack.c.bf16 %v1306_v49, %v1306_v49  ;;  %v1275_v56 = vmax.f32 %v1113_v50, 0.0  ;;  %v1307_v57 = vmax.f32 %v1241_v17, 0.0 }
 0x180   : > { %1595 = vst.msk [vmem:[%s2431_s26 + $0x78] sm:$0xf] %vm1564_vm3, %v1835_v54  ;;  %1627 = vst.msk [vmem:[%s2431_s26 + $0xf8] sm:$0xf] %vm1564_vm3, %v1867_v55  ;;  %v1836_v52 = vpack.c.bf16 %v1275_v56, %v1275_v56  ;;  %v1868_v58 = vpack.c.bf16 %v1307_v57, %v1307_v57 }
 0x182   : > { %1596 = vst.msk [vmem:[%s2431_s26 + $0x7c] sm:$0xf] %vm1564_vm3, %v1836_v52  ;;  %1628 = vst.msk [vmem:[%s2431_s26 + $0xfc] sm:$0xf] %vm1564_vm3, %v1868_v58 }
 0x183 PF: > { %s15_s18 = sadd.s32 1, %s1915_s18  }
 0x184   : > { %p12_p4 = scmp.ge.s32.totalorder %s15_s18, 6  }
 0x186   :  { %14 = sbr.rel (!%p12_p4) target bundleno = 1 (0x1), region = 70 }

// kernel: densenet_forward.23
= control target key start
LH: loop header
LB: loop body
LE: loop exit
PB: predicated region body
PF: predicated region fallthrough
CT: control target
= control target key end

     0   :  { %v2319_v0 = vmov 0   ;;  %vm764_vm0 = vcmask 261120   ;;  %vm1695_vm1 = vcmask 60416   ;;  %s3117_s1 = inlined_call_operand.vmem [shape: bf16[288,8], index: 1, kind: input, shape index: {}]   ;;  %s3118_s0 = inlined_call_operand.vmem [shape: bf16[512,288], index: 0, kind: input, shape index: {}]   ;;  %s3119_s2 = inlined_call_operand.vmem [shape: bf16[512,8], index: 2, kind: output, shape index: {}]  }
   0x1   :  { %861 = vmatprep.subr.bf16.mxu0 %v2319_v0  ;;  %2140 = vmatprep.subr.bf16.mxu1 %v2319_v0  ;;  %v2173_v1 = vld [vmem:[%s3117_s1] sm:$0xff]   ;;  %v2174_v2 = vld [vmem:[%s3117_s1 + $0x8] sm:$0xff]   ;;  %v2175_v3 = vld [vmem:[%s3117_s1 + $0x10] sm:$0xff]  }
   0x2   :  { %862 = vmatpush1.bf16.msra.mxu0 %v2173_v1  ;;  %2156 = vmatpush1.bf16.msra.mxu1 %v2173_v1  ;;  %v2176_v4 = vld [vmem:[%s3117_s1 + $0x18] sm:$0xff]   ;;  %v2177_v5 = vld [vmem:[%s3117_s1 + $0x20] sm:$0xff]   ;;  %v2178_v7 = vld [vmem:[%s3117_s1 + $0x28] sm:$0xff]  }
   0x3   :  { %863 = vmatprep.subr.bf16.mxu0 %v2319_v0  ;;  %2141 = vmatprep.subr.bf16.mxu1 %v2319_v0  ;;  %v2191_v6 = vld [vmem:[%s3118_s0 + $0x4] ss:$12 sps:$4 sm:$0xff]   ;;  %v2180_v10 = vld [vmem:[%s3117_s1 + $0x38] sm:$0xff]   ;;  %v2182_v12 = vld [vmem:[%s3117_s1 + $0x48] sm:$0xff]  }
   0x4   :  { %v2194_v8 = vld [vmem:[%s3118_s0 + $0x244] ss:$12 sps:$4 sm:$0xff]   ;;  %893 = vmatprep.mubr.bf16.mxu0 %v2191_v6  ;;  %v2184_v14 = vld [vmem:[%s3117_s1 + $0x58] sm:$0xff]   ;;  %v2186_v16 = vld [vmem:[%s3117_s1 + $0x68] sm:$0xff]  }
   0x5   :  { %1085 = vmatprep.mubr.bf16.mxu1 %v2194_v8  ;;  %v2179_v9 = vld [vmem:[%s3117_s1 + $0x30] sm:$0xff]   ;;  %v2181_v11 = vld [vmem:[%s3117_s1 + $0x40] sm:$0xff]   ;;  %v2188_v18 = vld [vmem:[%s3117_s1 + $0x78] sm:$0xff]  }
   0x6   :  { %864 = vmatpush1.bf16.msra.mxu0 %v2174_v2  ;;  %2157 = vmatpush1.bf16.msra.mxu1 %v2174_v2  ;;  %v2183_v13 = vld [vmem:[%s3117_s1 + $0x50] sm:$0xff]   ;;  %v2185_v15 = vld [vmem:[%s3117_s1 + $0x60] sm:$0xff]   ;;  %v2196_v22 = vld [vmem:[%s3118_s0 + $0x1c] ss:$12 sps:$4 sm:$0xff]  }
   0x7   :  { %865 = vmatprep.subr.bf16.mxu0 %v2319_v0  ;;  %2142 = vmatprep.subr.bf16.mxu1 %v2319_v0  ;;  %v2187_v17 = vld [vmem:[%s3117_s1 + $0x70] sm:$0xff]   ;;  %v2195_v19 = vld [vmem:[%s3117_s1 + $0x80] sm:$0xff]   ;;  %v2198_v23 = vld [vmem:[%s3118_s0 + $0x25c] ss:$12 sps:$4 sm:$0xff]  }
   0x8   :  { %v2189_v20 = vld [vmem:[%s3118_s0] ss:$12 sps:$4 sm:$0xff]   ;;  %v2200_v25 = vld [vmem:[%s3118_s0 + $0x18] ss:$12 sps:$4 sm:$0xff]   ;;  %v2206_v29 = vld [vmem:[%s3118_s0 + $0x30] ss:$12 sps:$4 sm:$0xff]  }
   0x9   :  { %v2192_v21 = vld [vmem:[%s3118_s0 + $0x240] ss:$12 sps:$4 sm:$0xff]   ;;  %v2201_v26 = vld [vmem:[%s3118_s0 + $0x258] ss:$12 sps:$4 sm:$0xff]   ;;  %v2207_v30 = vld [vmem:[%s3118_s0 + $0x270] ss:$12 sps:$4 sm:$0xff]  }
   0xa   :  { %866 = vmatpush1.bf16.msra.mxu0 %v2175_v3  ;;  %2158 = vmatpush1.bf16.msra.mxu1 %v2175_v3  ;;  %v2220_v24 = vld [vmem:[%s3117_s1 + $0x88] sm:$0xff]   ;;  %v2202_v27 = vld [vmem:[%s3118_s0 + $0x34] ss:$12 sps:$4 sm:$0xff]   ;;  %v2214_v35 = vld [vmem:[%s3118_s0 + $0x64] ss:$12 sps:$4 sm:$0xff]  }
   0xb   :  { %867 = vmatprep.subr.bf16.mxu0 %v2319_v0  ;;  %2143 = vmatprep.subr.bf16.mxu1 %v2319_v0  ;;  %v2204_v28 = vld [vmem:[%s3118_s0 + $0x274] ss:$12 sps:$4 sm:$0xff]   ;;  %v2208_v31 = vld [vmem:[%s3118_s0 + $0x4c] ss:$12 sps:$4 sm:$0xff]   ;;  %v2216_v36 = vld [vmem:[%s3118_s0 + $0x2a4] ss:$12 sps:$4 sm:$0xff]  }
   0xc   :  { %v2210_v32 = vld [vmem:[%s3118_s0 + $0x28c] ss:$12 sps:$4 sm:$0xff]   ;;  %v2212_v33 = vld [vmem:[%s3118_s0 + $0x48] ss:$12 sps:$4 sm:$0xff]   ;;  %v2231_v45 = vld [vmem:[%s3118_s0 + $0x90] ss:$12 sps:$4 sm:$0xff]  }
   0xd   :  { %v2213_v34 = vld [vmem:[%s3118_s0 + $0x288] ss:$12 sps:$4 sm:$0xff]   ;;  %v2218_v37 = vld [vmem:[%s3118_s0 + $0x60] ss:$12 sps:$4 sm:$0xff]   ;;  %v2225_v41 = vld [vmem:[%s3118_s0 + $0x78] ss:$12 sps:$4 sm:$0xff]  }
   0xe   :  { %868 = vmatpush1.bf16.msra.mxu0 %v2176_v4  ;;  %2159 = vmatpush1.bf16.msra.mxu1 %v2176_v4  ;;  %v2219_v38 = vld [vmem:[%s3118_s0 + $0x2a0] ss:$12 sps:$4 sm:$0xff]   ;;  %v2221_v39 = vld [vmem:[%s3118_s0 + $0x7c] ss:$12 sps:$4 sm:$0xff]   ;;  %v2226_v42 = vld [vmem:[%s3118_s0 + $0x2b8] ss:$12 sps:$4 sm:$0xff]  }
   0xf   :  { %869 = vmatprep.subr.bf16.mxu0 %v2319_v0  ;;  %2144 = vmatprep.subr.bf16.mxu1 %v2319_v0  ;;  %v2223_v40 = vld [vmem:[%s3118_s0 + $0x2bc] ss:$12 sps:$4 sm:$0xff]   ;;  %v2227_v43 = vld [vmem:[%s3118_s0 + $0x94] ss:$12 sps:$4 sm:$0xff]   ;;  %v2233_v47 = vld [vmem:[%s3118_s0 + $0xac] ss:$12 sps:$4 sm:$0xff]  }
  0x10   :  { %v2229_v44 = vld [vmem:[%s3118_s0 + $0x2d4] ss:$12 sps:$4 sm:$0xff]   ;;  %v2232_v46 = vld [vmem:[%s3118_s0 + $0x2d0] ss:$12 sps:$4 sm:$0xff]   ;;  %v2235_v48 = vld [vmem:[%s3118_s0 + $0x2ec] ss:$12 sps:$4 sm:$0xff]  }
  0x11   :  { %v2237_v49 = vld [vmem:[%s3118_s0 + $0xa8] ss:$12 sps:$4 sm:$0xff]   ;;  %v2239_v51 = vld [vmem:[%s3118_s0 + $0xc4] ss:$12 sps:$4 sm:$0xff]   ;;  %v2242_v53 = vld [vmem:[%s3118_s0 + $0xc0] ss:$12 sps:$4 sm:$0xff]  }
  0x12   :  { %870 = vmatpush1.bf16.msra.mxu0 %v2177_v5  ;;  %2160 = vmatpush1.bf16.msra.mxu1 %v2177_v5  ;;  %v2238_v50 = vld [vmem:[%s3118_s0 + $0x2e8] ss:$12 sps:$4 sm:$0xff]   ;;  %v2243_v54 = vld [vmem:[%s3118_s0 + $0x20] ss:$12 sps:$4 sm:$0xff]   ;;  %v2246_v56 = vld [vmem:[%s3118_s0 + $0x38] ss:$12 sps:$4 sm:$0xff]  }
  0x13   :  { %871 = vmatprep.subr.bf16.mxu0 %v2319_v0  ;;  %2145 = vmatprep.subr.bf16.mxu1 %v2319_v0  ;;  %v2241_v52 = vld [vmem:[%s3118_s0 + $0x8] ss:$12 sps:$4 sm:$0xff]   ;;  %v2247_v57 = vld [vmem:[%s3118_s0 + $0xd8] ss:$12 sps:$4 sm:$0xff]   ;;  %v2248_v58 = vld [vmem:[%s3118_s0 + $0x50] ss:$12 sps:$4 sm:$0xff]  }
  0x14   :  { %v2244_v55 = vld [vmem:[%s3118_s0 + $0xdc] ss:$12 sps:$4 sm:$0xff]   ;;  %v2249_v59 = vld [vmem:[%s3118_s0 + $0xf4] ss:$12 sps:$4 sm:$0xff]   ;;  %v2254_v63 = vld [vmem:[%s3118_s0 + $0x10c] ss:$12 sps:$4 sm:$0xff]  }
  0x15   :  { %v2251_v60 = vld [vmem:[%s3118_s0 + $0x68] ss:$12 sps:$4 sm:$0xff]   ;;  %v2252_v61 = vld [vmem:[%s3118_s0 + $0xf0] ss:$12 sps:$4 sm:$0xff]   ;;  %v2253_v62 = vld [vmem:[%s3118_s0 + $0x80] ss:$12 sps:$4 sm:$0xff]  }
  0x16   :  { %872 = vmatpush1.bf16.msra.mxu0 %v2178_v7  ;;  %2161 = vmatpush1.bf16.msra.mxu1 %v2178_v7  ;;  %v2257_v1 = vld [vmem:[%s3118_s0 + $0x108] ss:$12 sps:$4 sm:$0xff]   ;;  %v2258_v2 = vld [vmem:[%s3118_s0 + $0xb0] ss:$12 sps:$4 sm:$0xff]   ;;  %v2262_v5 = vld [vmem:[%s3118_s0 + $0x120] ss:$12 sps:$4 sm:$0xff]  }
  0x17   :  { %873 = vmatprep.subr.bf16.mxu0 %v2319_v0  ;;  %2146 = vmatprep.subr.bf16.mxu1 %v2319_v0  ;;  %v2259_v3 = vld [vmem:[%s3118_s0 + $0x124] ss:$12 sps:$4 sm:$0xff]   ;;  %v2261_v4 = vld [vmem:[%s3118_s0 + $0xc8] ss:$12 sps:$4 sm:$0xff]   ;;  %v2263_v6 = vld [vmem:[%s3118_s0 + $0xe0] ss:$12 sps:$4 sm:$0xff]  }
  0x18   :  { %v2264_v7 = vld [vmem:[%s3118_s0 + $0x13c] ss:$12 sps:$4 sm:$0xff]   ;;  %v2266_v8 = vld [vmem:[%s3118_s0 + $0xf8] ss:$12 sps:$4 sm:$0xff]  }
  0x1a   :  { %874 = vmatpush1.bf16.msra.mxu0 %v2179_v9  ;;  %2162 = vmatpush1.bf16.msra.mxu1 %v2179_v9  ;;  %v2267_v9 = vld [vmem:[%s3118_s0 + $0x138] ss:$12 sps:$4 sm:$0xff]  }
  0x1b   :  { %875 = vmatprep.subr.bf16.mxu0 %v2319_v0  ;;  %2147 = vmatprep.subr.bf16.mxu1 %v2319_v0 }
  0x1e   :  { %876 = vmatpush1.bf16.msra.mxu0 %v2180_v10  ;;  %2163 = vmatpush1.bf16.msra.mxu1 %v2180_v10  ;;  %v2268_v10 = vld [vmem:[%s3118_s0 + $0x110] ss:$12 sps:$4 sm:$0xff]  }
  0x1f   :  { %877 = vmatprep.subr.bf16.mxu0 %v2319_v0  ;;  %2148 = vmatprep.subr.bf16.mxu1 %v2319_v0 }
  0x22   :  { %878 = vmatpush1.bf16.msra.mxu0 %v2181_v11  ;;  %2164 = vmatpush1.bf16.msra.mxu1 %v2181_v11  ;;  %v2269_v11 = vld [vmem:[%s3118_s0 + $0x154] ss:$12 sps:$4 sm:$0xff]  }
  0x23   :  { %879 = vmatprep.subr.bf16.mxu0 %v2319_v0  ;;  %2149 = vmatprep.subr.bf16.mxu1 %v2319_v0 }
  0x26   :  { %880 = vmatpush1.bf16.msra.mxu0 %v2182_v12  ;;  %2165 = vmatpush1.bf16.msra.mxu1 %v2182_v12  ;;  %v2271_v12 = vld [vmem:[%s3118_s0 + $0x128] ss:$12 sps:$4 sm:$0xff]  }
  0x27   :  { %881 = vmatprep.subr.bf16.mxu0 %v2319_v0  ;;  %2150 = vmatprep.subr.bf16.mxu1 %v2319_v0 }
  0x2a   :  { %882 = vmatpush1.bf16.msra.mxu0 %v2183_v13  ;;  %2166 = vmatpush1.bf16.msra.mxu1 %v2183_v13  ;;  %v2272_v13 = vld [vmem:[%s3118_s0 + $0x150] ss:$12 sps:$4 sm:$0xff]  }
  0x2b   :  { %883 = vmatprep.subr.bf16.mxu0 %v2319_v0  ;;  %2151 = vmatprep.subr.bf16.mxu1 %v2319_v0 }
  0x2e   :  { %884 = vmatpush1.bf16.msra.mxu0 %v2184_v14  ;;  %2167 = vmatpush1.bf16.msra.mxu1 %v2184_v14  ;;  %v2273_v14 = vld [vmem:[%s3118_s0 + $0x140] ss:$12 sps:$4 sm:$0xff]  }
  0x2f   :  { %885 = vmatprep.subr.bf16.mxu0 %v2319_v0  ;;  %2152 = vmatprep.subr.bf16.mxu1 %v2319_v0 }
  0x32   :  { %886 = vmatpush1.bf16.msra.mxu0 %v2185_v15  ;;  %2168 = vmatpush1.bf16.msra.mxu1 %v2185_v15  ;;  %v2274_v15 = vld [vmem:[%s3118_s0 + $0x16c] ss:$12 sps:$4 sm:$0xff]  }
  0x33   :  { %887 = vmatprep.subr.bf16.mxu0 %v2319_v0  ;;  %2153 = vmatprep.subr.bf16.mxu1 %v2319_v0 }
  0x36   :  { %888 = vmatpush1.bf16.msra.mxu0 %v2186_v16  ;;  %2169 = vmatpush1.bf16.msra.mxu1 %v2186_v16  ;;  %v2276_v16 = vld [vmem:[%s3118_s0 + $0x158] ss:$12 sps:$4 sm:$0xff]  }
  0x37   :  { %889 = vmatprep.subr.bf16.mxu0 %v2319_v0  ;;  %2154 = vmatprep.subr.bf16.mxu1 %v2319_v0 }
  0x3a   :  { %890 = vmatpush1.bf16.msra.mxu0 %v2187_v17  ;;  %2170 = vmatpush1.bf16.msra.mxu1 %v2187_v17  ;;  %v2277_v17 = vld [vmem:[%s3118_s0 + $0x168] ss:$12 sps:$4 sm:$0xff]  }
  0x3b   :  { %891 = vmatprep.subr.bf16.mxu0 %v2319_v0  ;;  %2155 = vmatprep.subr.bf16.mxu1 %v2319_v0  ;;  %v2256_v0 = vld [vmem:[%s3118_s0 + $0x98] ss:$12 sps:$4 sm:$0xff]  }
  0x3e   :  { %892 = vmatpush1.bf16.msra.mxu0 %v2188_v18  ;;  %2171 = vmatpush1.bf16.msra.mxu1 %v2188_v18  ;;  %v2278_v18 = vld [vmem:[%s3118_s0 + $0x170] ss:$12 sps:$4 sm:$0xff]  }
  0x3f   :  { %2072 = vmatprep.subr.bf16.mxu1 %v2195_v19 }
  0x41   :  { %894 = vmatmul.mubr.bf16.vlgmr.msra.gmra.mrb[0].mxu0 %v2189_v20  ;;  %1086 = vmatmul.mubr.bf16.vlgmr.msra.gmra.mrb[0].mxu1 %v2192_v21  ;;  %v2281_v20 = vld [vmem:[%s3118_s0 + $0x188] ss:$12 sps:$4 sm:$0xff]   ;;  %v2282_v21 = vld [vmem:[%s3118_s0 + $0x180] ss:$12 sps:$4 sm:$0xff]  }
  0x42   :  { %2073 = vmatpush3.bf16.msra.mxu1 %v2195_v19  ;;  %901 = vmatprep.mubr.bf16.mxu0 %v2196_v22  ;;  %v2279_v19 = vld [vmem:[%s3118_s0 + $0x184] ss:$12 sps:$4 sm:$0xff]   ;;  %v2283_v22 = vld [vmem:[%s3118_s0 + $0x1a0] ss:$12 sps:$4 sm:$0xff]  }
  0x43   :  { %1093 = vmatprep.mubr.bf16.mxu1 %v2198_v23  ;;  %2074 = vmatprep.subr.bf16.mxu1 %v2220_v24  ;;  %v2284_v23 = vld [vmem:[%s3118_s0 + $0x19c] ss:$12 sps:$4 sm:$0xff]  }
  0x46   :  { %2075 = vmatpush3.bf16.msra.mxu1 %v2220_v24  ;;  %v2286_v24 = vld [vmem:[%s3118_s0 + $0x1b8] ss:$12 sps:$4 sm:$0xff]  }
  0x49   :  { %902 = vmatmul.mubr.bf16.gmra.mrb[4].mxu0 %v2200_v25  ;;  %1094 = vmatmul.mubr.bf16.gmra.mrb[4].mxu1 %v2201_v26  ;;  %v2287_v25 = vld [vmem:[%s3118_s0 + $0x198] ss:$12 sps:$4 sm:$0xff]   ;;  %v2288_v26 = vld [vmem:[%s3118_s0 + $0x1d0] ss:$12 sps:$4 sm:$0xff]  }
  0x4a   :  { %909 = vmatprep.mubr.bf16.mxu0 %v2202_v27  ;;  %1101 = vmatprep.mubr.bf16.mxu1 %v2204_v28  ;;  %v2289_v27 = vld [vmem:[%s3118_s0 + $0x1b4] ss:$12 sps:$4 sm:$0xff]  }
  0x4b   :  { %v2291_v28 = vld [vmem:[%s3118_s0 + $0x1e8] ss:$12 sps:$4 sm:$0xff]  }
  0x51   :  { %910 = vmatmul.mubr.bf16.gmra.mrb[8].mxu0 %v2206_v29  ;;  %1102 = vmatmul.mubr.bf16.gmra.mrb[8].mxu1 %v2207_v30  ;;  %v2292_v29 = vld [vmem:[%s3118_s0 + $0x1b0] ss:$12 sps:$4 sm:$0xff]   ;;  %v2293_v30 = vld [vmem:[%s3118_s0 + $0x200] ss:$12 sps:$4 sm:$0xff]  }
  0x52   :  { %917 = vmatprep.mubr.bf16.mxu0 %v2208_v31  ;;  %1109 = vmatprep.mubr.bf16.mxu1 %v2210_v32  ;;  %v2294_v31 = vld [vmem:[%s3118_s0 + $0x1cc] ss:$12 sps:$4 sm:$0xff]  }
  0x53   :  { %v2296_v32 = vld [vmem:[%s3118_s0 + $0x218] ss:$12 sps:$4 sm:$0xff]  }
  0x59   :  { %918 = vmatmul.mubr.bf16.gmra.mrb[12].mxu0 %v2212_v33  ;;  %1110 = vmatmul.mubr.bf16.gmra.mrb[12].mxu1 %v2213_v34  ;;  %v2297_v33 = vld [vmem:[%s3118_s0 + $0x1c8] ss:$12 sps:$4 sm:$0xff]   ;;  %v2298_v34 = vld [vmem:[%s3118_s0 + $0x230] ss:$12 sps:$4 sm:$0xff]  }
  0x5a   :  { %925 = vmatprep.mubr.bf16.mxu0 %v2214_v35  ;;  %1117 = vmatprep.mubr.bf16.mxu1 %v2216_v36  ;;  %v2299_v35 = vld [vmem:[%s3118_s0 + $0x1e4] ss:$12 sps:$4 sm:$0xff]   ;;  %v2301_v36 = vld [vmem:[%s3118_s0 + $0x248] ss:$12 sps:$4 sm:$0xff]  }
  0x61   :  { %926 = vmatmul.mubr.bf16.gmra.mrb[16].mxu0 %v2218_v37  ;;  %1118 = vmatmul.mubr.bf16.gmra.mrb[16].mxu1 %v2219_v38  ;;  %v2302_v37 = vld [vmem:[%s3118_s0 + $0x1e0] ss:$12 sps:$4 sm:$0xff]  }
  0x62   :  { %933 = vmatprep.mubr.bf16.mxu0 %v2221_v39  ;;  %1125 = vmatprep.mubr.bf16.mxu1 %v2223_v40  ;;  %v2303_v38 = vld [vmem:[%s3118_s0 + $0x260] ss:$12 sps:$4 sm:$0xff]   ;;  %v2304_v39 = vld [vmem:[%s3118_s0 + $0x1fc] ss:$12 sps:$4 sm:$0xff]   ;;  %v2306_v40 = vld [vmem:[%s3118_s0 + $0x278] ss:$12 sps:$4 sm:$0xff]  }
  0x69   :  { %934 = vmatmul.mubr.bf16.gmra.mrb[20].mxu0 %v2225_v41  ;;  %1126 = vmatmul.mubr.bf16.gmra.mrb[20].mxu1 %v2226_v42  ;;  %v2307_v41 = vld [vmem:[%s3118_s0 + $0x1f8] ss:$12 sps:$4 sm:$0xff]   ;;  %v2308_v42 = vld [vmem:[%s3118_s0 + $0x290] ss:$12 sps:$4 sm:$0xff]  }
  0x6a   :  { %941 = vmatprep.mubr.bf16.mxu0 %v2227_v43  ;;  %1133 = vmatprep.mubr.bf16.mxu1 %v2229_v44  ;;  %v2309_v43 = vld [vmem:[%s3118_s0 + $0x214] ss:$12 sps:$4 sm:$0xff]  }
  0x6b   :  { %v2311_v44 = vld [vmem:[%s3118_s0 + $0x2a8] ss:$12 sps:$4 sm:$0xff]  }
  0x71   :  { %942 = vmatmul.mubr.bf16.gmra.mrb[24].mxu0 %v2231_v45  ;;  %1134 = vmatmul.mubr.bf16.gmra.mrb[24].mxu1 %v2232_v46  ;;  %v2312_v45 = vld [vmem:[%s3118_s0 + $0x210] ss:$12 sps:$4 sm:$0xff]   ;;  %v2313_v46 = vld [vmem:[%s3118_s0 + $0x2c0] ss:$12 sps:$4 sm:$0xff]  }
  0x72   :  { %949 = vmatprep.mubr.bf16.mxu0 %v2233_v47  ;;  %1141 = vmatprep.mubr.bf16.mxu1 %v2235_v48  ;;  %v2314_v47 = vld [vmem:[%s3118_s0 + $0x22c] ss:$12 sps:$4 sm:$0xff]  }
  0x73   :  { %v2316_v48 = vld [vmem:[%s3118_s0 + $0x2d8] ss:$12 sps:$4 sm:$0xff]  }
  0x79   :  { %950 = vmatmul.mubr.bf16.gmra.mrb[28].mxu0 %v2237_v49  ;;  %1142 = vmatmul.mubr.bf16.gmra.mrb[28].mxu1 %v2238_v50  ;;  %v2317_v49 = vld [vmem:[%s3118_s0 + $0x228] ss:$12 sps:$4 sm:$0xff]   ;;  %v2318_v50 = vld [vmem:[%s3118_s0 + $0x2f0] ss:$12 sps:$4 sm:$0xff]  }
  0x7a   :  { %957 = vmatprep.mubr.bf16.mxu0 %v2239_v51  ;;  %2076 = vmatprep.mubr.msk.bf16.mxu1 %vm764_vm0, %v2241_v52 }
  0x81   :  { %958 = vmatmul.mubr.bf16.gmra.mrb[32].mxu0 %v2242_v53  ;;  %2077 = vmatmul.mubr.msk.bf16.vlgmr.msra.gmra.mrb[32].mxu1 %vm764_vm0, %v2243_v54 }
  0x82   :  { %965 = vmatprep.mubr.bf16.mxu0 %v2244_v55  ;;  %2080 = vmatprep.mubr.msk.bf16.mxu1 %vm764_vm0, %v2246_v56 }
  0x89   :  { %966 = vmatmul.mubr.bf16.gmra.mrb[36].mxu0 %v2247_v57  ;;  %2081 = vmatmul.mubr.msk.bf16.gmra.mrb[36].mxu1 %vm764_vm0, %v2248_v58 }
  0x8a   :  { %973 = vmatprep.mubr.bf16.mxu0 %v2249_v59  ;;  %2084 = vmatprep.mubr.msk.bf16.mxu1 %vm764_vm0, %v2251_v60 }
  0x91   :  { %974 = vmatmul.mubr.bf16.gmra.mrb[40].mxu0 %v2252_v61  ;;  %2085 = vmatmul.mubr.msk.bf16.gmra.mrb[40].mxu1 %vm764_vm0, %v2253_v62 }
  0x92   :  { %981 = vmatprep.mubr.bf16.mxu0 %v2254_v63  ;;  %2088 = vmatprep.mubr.msk.bf16.mxu1 %vm764_vm0, %v2256_v0 }
  0x99   :  { %982 = vmatmul.mubr.bf16.gmra.mrb[44].mxu0 %v2257_v1  ;;  %2089 = vmatmul.mubr.msk.bf16.gmra.mrb[44].mxu1 %vm764_vm0, %v2258_v2 }
  0x9a   :  { %989 = vmatprep.mubr.bf16.mxu0 %v2259_v3  ;;  %2092 = vmatprep.mubr.msk.bf16.mxu1 %vm764_vm0, %v2261_v4 }
  0xa1   :  { %990 = vmatmul.mubr.bf16.gmra.mrb[48].mxu0 %v2262_v5  ;;  %2093 = vmatmul.mubr.msk.bf16.gmra.mrb[48].mxu1 %vm764_vm0, %v2263_v6 }
  0xa2   :  { %997 = vmatprep.mubr.bf16.mxu0 %v2264_v7  ;;  %2096 = vmatprep.mubr.msk.bf16.mxu1 %vm764_vm0, %v2266_v8 }
  0xa9   :  { %998 = vmatmul.mubr.bf16.gmra.mrb[52].mxu0 %v2267_v9  ;;  %2097 = vmatmul.mubr.msk.bf16.gmra.mrb[52].mxu1 %vm764_vm0, %v2268_v10 }
  0xaa   :  { %1005 = vmatprep.mubr.bf16.mxu0 %v2269_v11  ;;  %2100 = vmatprep.mubr.msk.bf16.mxu1 %vm764_vm0, %v2271_v12 }
  0xb1   :  { %1006 = vmatmul.mubr.bf16.gmra.mrb[56].mxu0 %v2272_v13  ;;  %2101 = vmatmul.mubr.msk.bf16.gmra.mrb[56].mxu1 %vm764_vm0, %v2273_v14 }
  0xb2   :  { %1013 = vmatprep.mubr.bf16.mxu0 %v2274_v15  ;;  %2104 = vmatprep.mubr.msk.bf16.mxu1 %vm764_vm0, %v2276_v16 }
  0xb9   :  { %1014 = vmatmul.mubr.bf16.gmra.mrb[60].mxu0 %v2277_v17  ;;  %2105 = vmatmul.mubr.msk.bf16.gmra.mrb[60].mxu1 %vm764_vm0, %v2278_v18 }
  0xba   :  { %1021 = vmatprep.mubr.bf16.mxu0 %v2279_v19  ;;  %2108 = vmatprep.mubr.msk.bf16.mxu1 %vm764_vm0, %v2281_v20 }
  0xc1   :  { %1022 = vmatmul.mubr.bf16.gmra.mrb[64].mxu0 %v2282_v21  ;;  %2109 = vmatmul.mubr.msk.bf16.gmra.mrb[64].mxu1 %vm764_vm0, %v2283_v22 }
  0xc2   :  { %1029 = vmatprep.mubr.bf16.mxu0 %v2284_v23  ;;  %2112 = vmatprep.mubr.msk.bf16.mxu1 %vm764_vm0, %v2286_v24 }
  0xc9   :  { %1030 = vmatmul.mubr.bf16.gmra.mrb[68].mxu0 %v2287_v25  ;;  %2113 = vmatmul.mubr.msk.bf16.gmra.mrb[68].mxu1 %vm764_vm0, %v2288_v26 }
  0xca   :  { %1037 = vmatprep.mubr.bf16.mxu0 %v2289_v27  ;;  %2116 = vmatprep.mubr.msk.bf16.mxu1 %vm764_vm0, %v2291_v28 }
  0xd1   :  { %1038 = vmatmul.mubr.bf16.gmra.mrb[72].mxu0 %v2292_v29  ;;  %2117 = vmatmul.mubr.msk.bf16.gmra.mrb[72].mxu1 %vm764_vm0, %v2293_v30 }
  0xd2   :  { %1045 = vmatprep.mubr.bf16.mxu0 %v2294_v31  ;;  %2120 = vmatprep.mubr.msk.bf16.mxu1 %vm764_vm0, %v2296_v32 }
  0xd9   :  { %1046 = vmatmul.mubr.bf16.gmra.mrb[76].mxu0 %v2297_v33  ;;  %2121 = vmatmul.mubr.msk.bf16.gmra.mrb[76].mxu1 %vm764_vm0, %v2298_v34 }
  0xda   :  { %1053 = vmatprep.mubr.bf16.mxu0 %v2299_v35  ;;  %2124 = vmatprep.mubr.msk.bf16.mxu1 %vm764_vm0, %v2301_v36 }
  0xe1   :  { %1054 = vmatmul.mubr.bf16.gmra.mrb[80].mxu0 %v2302_v37  ;;  %2125 = vmatmul.mubr.msk.bf16.gmra.mrb[80].mxu1 %vm764_vm0, %v2303_v38 }
  0xe2   :  { %1061 = vmatprep.mubr.bf16.mxu0 %v2304_v39  ;;  %2128 = vmatprep.mubr.msk.bf16.mxu1 %vm764_vm0, %v2306_v40 }
  0xe9   :  { %1062 = vmatmul.mubr.bf16.gmra.mrb[84].mxu0 %v2307_v41  ;;  %2129 = vmatmul.mubr.msk.bf16.gmra.mrb[84].mxu1 %vm764_vm0, %v2308_v42 }
  0xea   :  { %1069 = vmatprep.mubr.bf16.mxu0 %v2309_v43  ;;  %2132 = vmatprep.mubr.msk.bf16.mxu1 %vm764_vm0, %v2311_v44 }
  0xf1   :  { %1070 = vmatmul.mubr.bf16.gmra.mrb[88].mxu0 %v2312_v45  ;;  %2133 = vmatmul.mubr.msk.bf16.gmra.mrb[88].mxu1 %vm764_vm0, %v2313_v46 }
  0xf2   :  { %1077 = vmatprep.mubr.bf16.mxu0 %v2314_v47  ;;  %2136 = vmatprep.mubr.msk.bf16.mxu1 %vm764_vm0, %v2316_v48 }
  0xf9   :  { %1078 = vmatmul.mubr.bf16.gmra.mrb[92].mxu0 %v2317_v49  ;;  %2137 = vmatmul.mubr.msk.bf16.gmra.mrb[92].mxu1 %vm764_vm0, %v2318_v50 }
 0x114   :  { %v2741_v51 = vpop.f32.mrb[0].mxu0  ;;  %v2743_v52 = vpop.f32.mrb[0].mxu1 }
 0x115   :  { %v897_v53 = vpop.f32.mrb[1].mxu0  ;;  %v1089_v54 = vpop.f32.mrb[1].mxu1 }
 0x116   :  { %v2745_v55 = vpop.f32.mrb[2].mxu0  ;;  %v2747_v56 = vpop.f32.mrb[2].mxu1 }
 0x117   :  { %v900_v57 = vpop.f32.mrb[3].mxu0  ;;  %v1092_v58 = vpop.f32.mrb[3].mxu1 }
 0x11c   :  { %v903_v59 = vpop.f32.mrb[4].mxu0  ;;  %v2749_v60 = vpop.f32.mrb[4].mxu1 }
 0x11d   :  { %v905_v61 = vpop.f32.mrb[5].mxu0  ;;  %v1097_v62 = vpop.f32.mrb[5].mxu1 }
 0x11e   :  { %v2751_v63 = vpop.f32.mrb[6].mxu0  ;;  %v2753_v0 = vpop.f32.mrb[6].mxu1 }
 0x11f   :  { %v908_v1 = vpop.f32.mrb[7].mxu0  ;;  %v1100_v2 = vpop.f32.mrb[7].mxu1 }
 0x124   :  { %v2755_v3 = vpop.f32.mrb[8].mxu0  ;;  %v2757_v4 = vpop.f32.mrb[8].mxu1 }
 0x125   :  { %v913_v5 = vpop.f32.mrb[9].mxu0  ;;  %v1105_v6 = vpop.f32.mrb[9].mxu1 }
 0x126   :  { %v2759_v7 = vpop.f32.mrb[10].mxu0  ;;  %v2761_v8 = vpop.f32.mrb[10].mxu1 }
 0x127   :  { %v916_v9 = vpop.f32.mrb[11].mxu0  ;;  %v1108_v10 = vpop.f32.mrb[11].mxu1 }
 0x12c   :  { %v2763_v11 = vpop.f32.mrb[12].mxu0  ;;  %v2765_v12 = vpop.f32.mrb[12].mxu1 }
 0x12d   :  { %v921_v13 = vpop.f32.mrb[13].mxu0  ;;  %v1113_v14 = vpop.f32.mrb[13].mxu1 }
 0x12e   :  { %v2767_v15 = vpop.f32.mrb[14].mxu0  ;;  %v2769_v16 = vpop.f32.mrb[14].mxu1 }
 0x12f   :  { %v924_v17 = vpop.f32.mrb[15].mxu0  ;;  %v1116_v18 = vpop.f32.mrb[15].mxu1 }
 0x134   :  { %v2771_v19 = vpop.f32.mrb[16].mxu0  ;;  %v2773_v20 = vpop.f32.mrb[16].mxu1 }
 0x135   :  { %v929_v21 = vpop.f32.mrb[17].mxu0  ;;  %v1121_v22 = vpop.f32.mrb[17].mxu1 }
 0x136   :  { %v2775_v23 = vpop.f32.mrb[18].mxu0  ;;  %v2777_v24 = vpop.f32.mrb[18].mxu1 }
 0x137   :  { %v932_v25 = vpop.f32.mrb[19].mxu0  ;;  %v1124_v26 = vpop.f32.mrb[19].mxu1 }
 0x13c   :  { %v2779_v27 = vpop.f32.mrb[20].mxu0  ;;  %v2781_v28 = vpop.f32.mrb[20].mxu1 }
 0x13d   :  { %v937_v29 = vpop.f32.mrb[21].mxu0  ;;  %v1129_v30 = vpop.f32.mrb[21].mxu1 }
 0x13e   :  { %v2783_v31 = vpop.f32.mrb[22].mxu0  ;;  %v2785_v32 = vpop.f32.mrb[22].mxu1 }
 0x13f   :  { %v940_v33 = vpop.f32.mrb[23].mxu0  ;;  %v1132_v34 = vpop.f32.mrb[23].mxu1 }
 0x144   :  { %v2787_v35 = vpop.f32.mrb[24].mxu0  ;;  %v2789_v36 = vpop.f32.mrb[24].mxu1 }
 0x145   :  { %v945_v37 = vpop.f32.mrb[25].mxu0  ;;  %v1137_v38 = vpop.f32.mrb[25].mxu1 }
 0x146   :  { %v2791_v39 = vpop.f32.mrb[26].mxu0  ;;  %v2793_v40 = vpop.f32.mrb[26].mxu1 }
 0x147   :  { %v948_v41 = vpop.f32.mrb[27].mxu0  ;;  %v1140_v42 = vpop.f32.mrb[27].mxu1 }
 0x14c   :  { %v2795_v43 = vpop.f32.mrb[28].mxu0  ;;  %v2797_v44 = vpop.f32.mrb[28].mxu1 }
 0x14d   :  { %v953_v45 = vpop.f32.mrb[29].mxu0  ;;  %v1145_v46 = vpop.f32.mrb[29].mxu1 }
 0x14e   :  { %v2799_v47 = vpop.f32.mrb[30].mxu0  ;;  %v2801_v48 = vpop.f32.mrb[30].mxu1 }
 0x14f   :  { %v956_v49 = vpop.f32.mrb[31].mxu0  ;;  %v1148_v50 = vpop.f32.mrb[31].mxu1 }
 0x154   :  { %v2803_v53 = vpop.f32.mrb[32].mxu0  ;;  %v2078_v54 = vpop.f32.mrb[32].mxu1 }
 0x155   :  { %v1193_v57 = vadd.f32 %v2078_v54, %v903_v59  ;;  %v961_v58 = vpop.f32.mrb[33].mxu0  ;;  %v1184_v61 = vpop.f32.mrb[33].mxu1 }
 0x156   :  { %v1185_v62 = vadd.f32 %v1184_v61, %v2741_v51  ;;  %v2806_v1 = vpop.f32.mrb[34].mxu0  ;;  %v2079_v2 = vpop.f32.mrb[34].mxu1 }
 0x157   :  { %v1976_v5 = vpack.c.bf16 %v1193_v57, %v1193_v57  ;;  %v1196_v6 = vadd.f32 %v2079_v2, %v2751_v63  ;;  %v964_v9 = vpop.f32.mrb[35].mxu0  ;;  %v1187_v10 = vpop.f32.mrb[35].mxu1 }
 0x158   :  { %v1974_v13 = vpack.c.bf16 %v1185_v62, %v1185_v62  ;;  %v1188_v14 = vadd.f32 %v1187_v10, %v2745_v55 }
 0x159   :  { %1698 = vst.msk [vmem:[%s3119_s2 + $0x8] sm:$0xf] %vm1695_vm1, %v1976_v5  ;;  %v1977_v59 = vpack.c.bf16 %v1196_v6, %v1196_v6 }
 0x15a   :  { %1696 = vst.msk [vmem:[%s3119_s2] sm:$0xf] %vm1695_vm1, %v1974_v13  ;;  %v1975_v51 = vpack.c.bf16 %v1188_v14, %v1188_v14 }
 0x15b   :  { %1699 = vst.msk [vmem:[%s3119_s2 + $0xc] sm:$0xf] %vm1695_vm1, %v1977_v59 }
 0x15c   :  { %1697 = vst.msk [vmem:[%s3119_s2 + $0x4] sm:$0xf] %vm1695_vm1, %v1975_v51  ;;  %v967_v55 = vpop.f32.mrb[36].mxu0  ;;  %v2082_v63 = vpop.f32.mrb[36].mxu1 }
 0x15d   :  { %v1209_v17 = vadd.f32 %v2082_v63, %v2763_v11  ;;  %v969_v18 = vpop.f32.mrb[37].mxu0  ;;  %v1200_v21 = vpop.f32.mrb[37].mxu1 }
 0x15e   :  { %v1201_v22 = vadd.f32 %v1200_v21, %v2755_v3  ;;  %v2828_v25 = vpop.f32.mrb[38].mxu0  ;;  %v2083_v26 = vpop.f32.mrb[38].mxu1 }
 0x15f   :  { %v1980_v29 = vpack.c.bf16 %v1209_v17, %v1209_v17  ;;  %v1212_v30 = vadd.f32 %v2083_v26, %v2767_v15  ;;  %v972_v33 = vpop.f32.mrb[39].mxu0  ;;  %v1203_v34 = vpop.f32.mrb[39].mxu1 }
 0x160   :  { %v1978_v37 = vpack.c.bf16 %v1201_v22, %v1201_v22  ;;  %v1204_v38 = vadd.f32 %v1203_v34, %v2759_v7 }
 0x161   :  { %1702 = vst.msk [vmem:[%s3119_s2 + $0x18] sm:$0xf] %vm1695_vm1, %v1980_v29  ;;  %v1981_v11 = vpack.c.bf16 %v1212_v30, %v1212_v30 }
 0x162   :  { %1700 = vst.msk [vmem:[%s3119_s2 + $0x10] sm:$0xf] %vm1695_vm1, %v1978_v37  ;;  %v1979_v3 = vpack.c.bf16 %v1204_v38, %v1204_v38 }
 0x163   :  { %1703 = vst.msk [vmem:[%s3119_s2 + $0x1c] sm:$0xf] %vm1695_vm1, %v1981_v11 }
 0x164   :  { %1701 = vst.msk [vmem:[%s3119_s2 + $0x14] sm:$0xf] %vm1695_vm1, %v1979_v3  ;;  %v2848_v7 = vpop.f32.mrb[40].mxu0  ;;  %v2086_v15 = vpop.f32.mrb[40].mxu1 }
 0x165   :  { %v1225_v41 = vadd.f32 %v2086_v15, %v2779_v27  ;;  %v977_v42 = vpop.f32.mrb[41].mxu0  ;;  %v1216_v45 = vpop.f32.mrb[41].mxu1 }
 0x166   :  { %v1217_v46 = vadd.f32 %v1216_v45, %v2771_v19  ;;  %v2852_v49 = vpop.f32.mrb[42].mxu0  ;;  %v2087_v50 = vpop.f32.mrb[42].mxu1 }
 0x167   :  { %v1984_v54 = vpack.c.bf16 %v1225_v41, %v1225_v41  ;;  %v1228_v57 = vadd.f32 %v2087_v50, %v2783_v31  ;;  %v980_v58 = vpop.f32.mrb[43].mxu0  ;;  %v1219_v61 = vpop.f32.mrb[43].mxu1 }
 0x168   :  { %v1982_v62 = vpack.c.bf16 %v1217_v46, %v1217_v46  ;;  %v1220_v2 = vadd.f32 %v1219_v61, %v2775_v23 }
 0x169   :  { %1706 = vst.msk [vmem:[%s3119_s2 + $0x28] sm:$0xf] %vm1695_vm1, %v1984_v54  ;;  %v1985_v27 = vpack.c.bf16 %v1228_v57, %v1228_v57 }
 0x16a   :  { %1704 = vst.msk [vmem:[%s3119_s2 + $0x20] sm:$0xf] %vm1695_vm1, %v1982_v62  ;;  %v1983_v19 = vpack.c.bf16 %v1220_v2, %v1220_v2 }
 0x16b   :  { %1707 = vst.msk [vmem:[%s3119_s2 + $0x2c] sm:$0xf] %vm1695_vm1, %v1985_v27 }
 0x16c   :  { %1705 = vst.msk [vmem:[%s3119_s2 + $0x24] sm:$0xf] %vm1695_vm1, %v1983_v19  ;;  %v983_v23 = vpop.f32.mrb[44].mxu0  ;;  %v2090_v31 = vpop.f32.mrb[44].mxu1 }
 0x16d   :  { %v1241_v5 = vadd.f32 %v2090_v31, %v2795_v43  ;;  %v985_v6 = vpop.f32.mrb[45].mxu0  ;;  %v1232_v9 = vpop.f32.mrb[45].mxu1 }
 0x16e   :  { %v1233_v10 = vadd.f32 %v1232_v9, %v2787_v35  ;;  %v986_v13 = vpop.f32.mrb[46].mxu0  ;;  %v2091_v14 = vpop.f32.mrb[46].mxu1 }
 0x16f   :  { %v1988_v59 = vpack.c.bf16 %v1241_v5, %v1241_v5  ;;  %v1244_v51 = vadd.f32 %v2091_v14, %v2799_v47  ;;  %v988_v63 = vpop.f32.mrb[47].mxu0  ;;  %v1235_v17 = vpop.f32.mrb[47].mxu1 }
 0x170   :  { %v1986_v18 = vpack.c.bf16 %v1233_v10, %v1233_v10  ;;  %v1236_v21 = vadd.f32 %v1235_v17, %v2791_v39 }
 0x171   :  { %1710 = vst.msk [vmem:[%s3119_s2 + $0x38] sm:$0xf] %vm1695_vm1, %v1988_v59  ;;  %v1989_v43 = vpack.c.bf16 %v1244_v51, %v1244_v51 }
 0x172   :  { %1708 = vst.msk [vmem:[%s3119_s2 + $0x30] sm:$0xf] %vm1695_vm1, %v1986_v18  ;;  %v1987_v35 = vpack.c.bf16 %v1236_v21, %v1236_v21 }
 0x173   :  { %1711 = vst.msk [vmem:[%s3119_s2 + $0x3c] sm:$0xf] %vm1695_vm1, %v1989_v43 }
 0x174   :  { %1709 = vst.msk [vmem:[%s3119_s2 + $0x34] sm:$0xf] %vm1695_vm1, %v1987_v35  ;;  %v991_v39 = vpop.f32.mrb[48].mxu0  ;;  %v2094_v47 = vpop.f32.mrb[48].mxu1 }
 0x175   :  { %v1257_v22 = vadd.f32 %v2094_v47, %v967_v55  ;;  %v993_v26 = vpop.f32.mrb[49].mxu0  ;;  %v1248_v29 = vpop.f32.mrb[49].mxu1 }
 0x176   :  { %v1249_v30 = vadd.f32 %v1248_v29, %v2803_v53  ;;  %v994_v33 = vpop.f32.mrb[50].mxu0  ;;  %v2095_v34 = vpop.f32.mrb[50].mxu1 }
 0x177   :  { %v1992_v37 = vpack.c.bf16 %v1257_v22, %v1257_v22  ;;  %v1260_v38 = vadd.f32 %v2095_v34, %v2828_v25  ;;  %v996_v11 = vpop.f32.mrb[51].mxu0  ;;  %v1251_v3 = vpop.f32.mrb[51].mxu1 }
 0x178   :  { %v1990_v15 = vpack.c.bf16 %v1249_v30, %v1249_v30  ;;  %v1252_v41 = vadd.f32 %v1251_v3, %v2806_v1 }
 0x179   :  { %1714 = vst.msk [vmem:[%s3119_s2 + $0x48] sm:$0xf] %vm1695_vm1, %v1992_v37  ;;  %v1993_v55 = vpack.c.bf16 %v1260_v38, %v1260_v38 }
 0x17a   :  { %1712 = vst.msk [vmem:[%s3119_s2 + $0x40] sm:$0xf] %vm1695_vm1, %v1990_v15  ;;  %v1991_v53 = vpack.c.bf16 %v1252_v41, %v1252_v41 }
 0x17b   :  { %1715 = vst.msk [vmem:[%s3119_s2 + $0x4c] sm:$0xf] %vm1695_vm1, %v1993_v55 }
 0x17c   :  { %1713 = vst.msk [vmem:[%s3119_s2 + $0x44] sm:$0xf] %vm1695_vm1, %v1991_v53  ;;  %v999_v1 = vpop.f32.mrb[52].mxu0  ;;  %v2098_v25 = vpop.f32.mrb[52].mxu1 }
 0x17d   :  { %v1273_v42 = vadd.f32 %v2098_v25, %v983_v23  ;;  %v1001_v45 = vpop.f32.mrb[53].mxu0  ;;  %v1264_v46 = vpop.f32.mrb[53].mxu1 }
 0x17e   :  { %v1265_v50 = vadd.f32 %v1264_v46, %v2848_v7  ;;  %v1002_v54 = vpop.f32.mrb[54].mxu0  ;;  %v2099_v57 = vpop.f32.mrb[54].mxu1 }
 0x17f   :  { %v1996_v58 = vpack.c.bf16 %v1273_v42, %v1273_v42  ;;  %v1276_v61 = vadd.f32 %v2099_v57, %v986_v13  ;;  %v1004_v62 = vpop.f32.mrb[55].mxu0  ;;  %v1267_v2 = vpop.f32.mrb[55].mxu1 }
 0x180   :  { %v1994_v27 = vpack.c.bf16 %v1265_v50, %v1265_v50  ;;  %v1268_v19 = vadd.f32 %v1267_v2, %v2852_v49 }
 0x181   :  { %1718 = vst.msk [vmem:[%s3119_s2 + $0x58] sm:$0xf] %vm1695_vm1, %v1996_v58  ;;  %v1997_v31 = vpack.c.bf16 %v1276_v61, %v1276_v61 }
 0x182   :  { %1716 = vst.msk [vmem:[%s3119_s2 + $0x50] sm:$0xf] %vm1695_vm1, %v1994_v27  ;;  %v1995_v7 = vpack.c.bf16 %v1268_v19, %v1268_v19 }
 0x183   :  { %1719 = vst.msk [vmem:[%s3119_s2 + $0x5c] sm:$0xf] %vm1695_vm1, %v1997_v31 }
 0x184   :  { %1717 = vst.msk [vmem:[%s3119_s2 + $0x54] sm:$0xf] %vm1695_vm1, %v1995_v7  ;;  %v1007_v49 = vpop.f32.mrb[56].mxu0  ;;  %v2102_v23 = vpop.f32.mrb[56].mxu1 }
 0x185   :  { %v1289_v5 = vadd.f32 %v2102_v23, %v999_v1  ;;  %v1009_v6 = vpop.f32.mrb[57].mxu0  ;;  %v1280_v9 = vpop.f32.mrb[57].mxu1 }
 0x186   :  { %v1281_v10 = vadd.f32 %v1280_v9, %v991_v39  ;;  %v1010_v13 = vpop.f32.mrb[58].mxu0  ;;  %v2103_v14 = vpop.f32.mrb[58].mxu1 }
 0x187   :  { %v2000_v59 = vpack.c.bf16 %v1289_v5, %v1289_v5  ;;  %v1292_v51 = vadd.f32 %v2103_v14, %v1002_v54  ;;  %v1012_v63 = vpop.f32.mrb[59].mxu0  ;;  %v1283_v17 = vpop.f32.mrb[59].mxu1 }
 0x188   :  { %v1998_v18 = vpack.c.bf16 %v1281_v10, %v1281_v10  ;;  %v1284_v21 = vadd.f32 %v1283_v17, %v994_v33 }
 0x189   :  { %1722 = vst.msk [vmem:[%s3119_s2 + $0x68] sm:$0xf] %vm1695_vm1, %v2000_v59  ;;  %v2001_v43 = vpack.c.bf16 %v1292_v51, %v1292_v51 }
 0x18a   :  { %1720 = vst.msk [vmem:[%s3119_s2 + $0x60] sm:$0xf] %vm1695_vm1, %v1998_v18  ;;  %v1999_v35 = vpack.c.bf16 %v1284_v21, %v1284_v21 }
 0x18b   :  { %1723 = vst.msk [vmem:[%s3119_s2 + $0x6c] sm:$0xf] %vm1695_vm1, %v2001_v43 }
 0x18c   :  { %1721 = vst.msk [vmem:[%s3119_s2 + $0x64] sm:$0xf] %vm1695_vm1, %v1999_v35  ;;  %v1015_v39 = vpop.f32.mrb[60].mxu0  ;;  %v2106_v47 = vpop.f32.mrb[60].mxu1 }
 0x18d   :  { %v1305_v22 = vadd.f32 %v2106_v47, %v1015_v39  ;;  %v1017_v26 = vpop.f32.mrb[61].mxu0  ;;  %v1296_v29 = vpop.f32.mrb[61].mxu1 }
 0x18e   :  { %v1297_v30 = vadd.f32 %v1296_v29, %v1007_v49  ;;  %v1018_v33 = vpop.f32.mrb[62].mxu0  ;;  %v2107_v34 = vpop.f32.mrb[62].mxu1 }
 0x18f   :  { %v2004_v37 = vpack.c.bf16 %v1305_v22, %v1305_v22  ;;  %v1308_v38 = vadd.f32 %v2107_v34, %v1018_v33  ;;  %v1020_v11 = vpop.f32.mrb[63].mxu0  ;;  %v1299_v3 = vpop.f32.mrb[63].mxu1 }
 0x190   :  { %v2002_v15 = vpack.c.bf16 %v1297_v30, %v1297_v30  ;;  %v1300_v41 = vadd.f32 %v1299_v3, %v1010_v13 }
 0x191   :  { %1726 = vst.msk [vmem:[%s3119_s2 + $0x78] sm:$0xf] %vm1695_vm1, %v2004_v37  ;;  %v2005_v55 = vpack.c.bf16 %v1308_v38, %v1308_v38 }
 0x192   :  { %1724 = vst.msk [vmem:[%s3119_s2 + $0x70] sm:$0xf] %vm1695_vm1, %v2002_v15  ;;  %v2003_v53 = vpack.c.bf16 %v1300_v41, %v1300_v41 }
 0x193   :  { %1727 = vst.msk [vmem:[%s3119_s2 + $0x7c] sm:$0xf] %vm1695_vm1, %v2005_v55 }
 0x194   :  { %1725 = vst.msk [vmem:[%s3119_s2 + $0x74] sm:$0xf] %vm1695_vm1, %v2003_v53  ;;  %v1023_v1 = vpop.f32.mrb[64].mxu0  ;;  %v2110_v25 = vpop.f32.mrb[64].mxu1 }
 0x195   :  { %v1025_v42 = vpop.f32.mrb[65].mxu0  ;;  %v1312_v45 = vpop.f32.mrb[65].mxu1 }
 0x196   :  { %v1313_v46 = vadd.f32 %v1312_v45, %v1023_v1  ;;  %v1026_v50 = vpop.f32.mrb[66].mxu0  ;;  %v2111_v54 = vpop.f32.mrb[66].mxu1 }
 0x197   :  { %v1028_v57 = vpop.f32.mrb[67].mxu0  ;;  %v1315_v58 = vpop.f32.mrb[67].mxu1 }
 0x198   :  { %v2006_v61 = vpack.c.bf16 %v1313_v46, %v1313_v46  ;;  %v1316_v62 = vadd.f32 %v1315_v58, %v1026_v50 }
 0x19a   :  { %1728 = vst.msk [vmem:[%s3119_s2 + $0x80] sm:$0xf] %vm1695_vm1, %v2006_v61  ;;  %v2007_v2 = vpack.c.bf16 %v1316_v62, %v1316_v62 }
 0x19c   :  { %1729 = vst.msk [vmem:[%s3119_s2 + $0x84] sm:$0xf] %vm1695_vm1, %v2007_v2  ;;  %v1031_v27 = vpop.f32.mrb[68].mxu0  ;;  %v2114_v19 = vpop.f32.mrb[68].mxu1 }
 0x19d   :  { %v1321_v31 = vadd.f32 %v2110_v25, %v1031_v27  ;;  %v1033_v7 = vpop.f32.mrb[69].mxu0  ;;  %v1328_v49 = vpop.f32.mrb[69].mxu1 }
 0x19e   :  { %v1034_v23 = vpop.f32.mrb[70].mxu0  ;;  %v2115_v5 = vpop.f32.mrb[70].mxu1 }
 0x19f   :  { %v2008_v6 = vpack.c.bf16 %v1321_v31, %v1321_v31  ;;  %v1324_v9 = vadd.f32 %v2111_v54, %v1034_v23  ;;  %v1036_v10 = vpop.f32.mrb[71].mxu0  ;;  %v1331_v13 = vpop.f32.mrb[71].mxu1 }
 0x1a1   :  { %1730 = vst.msk [vmem:[%s3119_s2 + $0x88] sm:$0xf] %vm1695_vm1, %v2008_v6  ;;  %v2009_v14 = vpack.c.bf16 %v1324_v9, %v1324_v9 }
 0x1a3   :  { %1731 = vst.msk [vmem:[%s3119_s2 + $0x8c] sm:$0xf] %vm1695_vm1, %v2009_v14 }
 0x1a4   :  { %v1039_v59 = vpop.f32.mrb[72].mxu0  ;;  %v2118_v51 = vpop.f32.mrb[72].mxu1 }
 0x1a5   :  { %v1329_v63 = vadd.f32 %v1328_v49, %v1039_v59  ;;  %v1041_v17 = vpop.f32.mrb[73].mxu0  ;;  %v1344_v18 = vpop.f32.mrb[73].mxu1 }
 0x1a6   :  { %v1042_v21 = vpop.f32.mrb[74].mxu0  ;;  %v2119_v43 = vpop.f32.mrb[74].mxu1 }
 0x1a7   :  { %v2010_v35 = vpack.c.bf16 %v1329_v63, %v1329_v63  ;;  %v1332_v39 = vadd.f32 %v1331_v13, %v1042_v21  ;;  %v1044_v47 = vpop.f32.mrb[75].mxu0  ;;  %v1347_v22 = vpop.f32.mrb[75].mxu1 }
 0x1a9   :  { %1732 = vst.msk [vmem:[%s3119_s2 + $0x90] sm:$0xf] %vm1695_vm1, %v2010_v35  ;;  %v2011_v26 = vpack.c.bf16 %v1332_v39, %v1332_v39 }
 0x1ab   :  { %1733 = vst.msk [vmem:[%s3119_s2 + $0x94] sm:$0xf] %vm1695_vm1, %v2011_v26 }
 0x1ac   :  { %v1047_v29 = vpop.f32.mrb[76].mxu0  ;;  %v2985_v30 = vpop.f32.mrb[76].mxu1 }
 0x1ad   :  { %v1337_v33 = vadd.f32 %v2114_v19, %v1047_v29  ;;  %v1049_v34 = vpop.f32.mrb[77].mxu0  ;;  %v2987_v37 = vpop.f32.mrb[77].mxu1 }
 0x1ae   :  { %v1050_v38 = vpop.f32.mrb[78].mxu0  ;;  %v2989_v11 = vpop.f32.mrb[78].mxu1 }
 0x1af   :  { %v2012_v3 = vpack.c.bf16 %v1337_v33, %v1337_v33  ;;  %v1340_v15 = vadd.f32 %v2115_v5, %v1050_v38  ;;  %v1052_v41 = vpop.f32.mrb[79].mxu0  ;;  %v2991_v55 = vpop.f32.mrb[79].mxu1 }
 0x1b1   :  { %1734 = vst.msk [vmem:[%s3119_s2 + $0x98] sm:$0xf] %vm1695_vm1, %v2012_v3  ;;  %v2013_v53 = vpack.c.bf16 %v1340_v15, %v1340_v15 }
 0x1b3   :  { %1735 = vst.msk [vmem:[%s3119_s2 + $0x9c] sm:$0xf] %vm1695_vm1, %v2013_v53 }
 0x1b4   :  { %v1055_v1 = vpop.f32.mrb[80].mxu0  ;;  %v2126_v25 = vpop.f32.mrb[80].mxu1 }
 0x1b5   :  { %v1345_v42 = vadd.f32 %v1344_v18, %v1055_v1  ;;  %v1385_v45 = vadd.f32 %v2126_v25, %v2749_v60  ;;  %v1057_v46 = vpop.f32.mrb[81].mxu0  ;;  %v1376_v50 = vpop.f32.mrb[81].mxu1 }
 0x1b6   :  { %v1377_v54 = vadd.f32 %v1376_v50, %v2743_v52  ;;  %v1058_v57 = vpop.f32.mrb[82].mxu0  ;;  %v2127_v58 = vpop.f32.mrb[82].mxu1 }
 0x1b7   :  { %v2014_v61 = vpack.c.bf16 %v1345_v42, %v1345_v42  ;;  %v2024_v62 = vpack.c.bf16 %v1385_v45, %v1385_v45  ;;  %v1348_v2 = vadd.f32 %v1347_v22, %v1058_v57  ;;  %v1388_v27 = vadd.f32 %v2127_v58, %v2753_v0  ;;  %v1060_v19 = vpop.f32.mrb[83].mxu0  ;;  %v1379_v31 = vpop.f32.mrb[83].mxu1 }
 0x1b8   :  { %v2022_v7 = vpack.c.bf16 %v1377_v54, %v1377_v54  ;;  %v1380_v49 = vadd.f32 %v1379_v31, %v2747_v56 }
 0x1b9   :  { %1736 = vst.msk [vmem:[%s3119_s2 + $0xa0] sm:$0xf] %vm1695_vm1, %v2014_v61  ;;  %1746 = vst.msk [vmem:[%s3119_s2 + $0xc8] sm:$0xf] %vm1695_vm1, %v2024_v62  ;;  %v2015_v52 = vpack.c.bf16 %v1348_v2, %v1348_v2  ;;  %v2025_v60 = vpack.c.bf16 %v1388_v27, %v1388_v27 }
 0x1ba   :  { %1744 = vst.msk [vmem:[%s3119_s2 + $0xc0] sm:$0xf] %vm1695_vm1, %v2022_v7  ;;  %v2023_v0 = vpack.c.bf16 %v1380_v49, %v1380_v49 }
 0x1bb   :  { %1737 = vst.msk [vmem:[%s3119_s2 + $0xa4] sm:$0xf] %vm1695_vm1, %v2015_v52  ;;  %1747 = vst.msk [vmem:[%s3119_s2 + $0xcc] sm:$0xf] %vm1695_vm1, %v2025_v60 }
 0x1bc   :  { %1745 = vst.msk [vmem:[%s3119_s2 + $0xc4] sm:$0xf] %vm1695_vm1, %v2023_v0  ;;  %v1063_v56 = vpop.f32.mrb[84].mxu0  ;;  %v2130_v23 = vpop.f32.mrb[84].mxu1 }
 0x1bd   :  { %v1353_v5 = vadd.f32 %v2118_v51, %v1063_v56  ;;  %v1401_v6 = vadd.f32 %v2130_v23, %v2765_v12  ;;  %v1065_v9 = vpop.f32.mrb[85].mxu0  ;;  %v1392_v10 = vpop.f32.mrb[85].mxu1 }
 0x1be   :  { %v1393_v13 = vadd.f32 %v1392_v10, %v2757_v4  ;;  %v1066_v14 = vpop.f32.mrb[86].mxu0  ;;  %v2131_v59 = vpop.f32.mrb[86].mxu1 }
 0x1bf   :  { %v2016_v63 = vpack.c.bf16 %v1353_v5, %v1353_v5  ;;  %v2028_v17 = vpack.c.bf16 %v1401_v6, %v1401_v6  ;;  %v1356_v18 = vadd.f32 %v2119_v43, %v1066_v14  ;;  %v1404_v21 = vadd.f32 %v2131_v59, %v2769_v16  ;;  %v1068_v35 = vpop.f32.mrb[87].mxu0  ;;  %v1395_v39 = vpop.f32.mrb[87].mxu1 }
 0x1c0   :  { %v2026_v47 = vpack.c.bf16 %v1393_v13, %v1393_v13  ;;  %v1396_v22 = vadd.f32 %v1395_v39, %v2761_v8 }
 0x1c1   :  { %1738 = vst.msk [vmem:[%s3119_s2 + $0xa8] sm:$0xf] %vm1695_vm1, %v2016_v63  ;;  %1750 = vst.msk [vmem:[%s3119_s2 + $0xd8] sm:$0xf] %vm1695_vm1, %v2028_v17  ;;  %v2017_v4 = vpack.c.bf16 %v1356_v18, %v1356_v18  ;;  %v2029_v12 = vpack.c.bf16 %v1404_v21, %v1404_v21 }
 0x1c2   :  { %1748 = vst.msk [vmem:[%s3119_s2 + $0xd0] sm:$0xf] %vm1695_vm1, %v2026_v47  ;;  %v2027_v16 = vpack.c.bf16 %v1396_v22, %v1396_v22 }
 0x1c3   :  { %1739 = vst.msk [vmem:[%s3119_s2 + $0xac] sm:$0xf] %vm1695_vm1, %v2017_v4  ;;  %1751 = vst.msk [vmem:[%s3119_s2 + $0xdc] sm:$0xf] %vm1695_vm1, %v2029_v12 }
 0x1c4   :  { %1749 = vst.msk [vmem:[%s3119_s2 + $0xd4] sm:$0xf] %vm1695_vm1, %v2027_v16  ;;  %v1071_v8 = vpop.f32.mrb[88].mxu0  ;;  %v2134_v51 = vpop.f32.mrb[88].mxu1 }
 0x1c5   :  { %v1361_v43 = vadd.f32 %v2987_v37, %v1071_v8  ;;  %v1417_v26 = vadd.f32 %v2134_v51, %v2781_v28  ;;  %v1073_v29 = vpop.f32.mrb[89].mxu0  ;;  %v1408_v33 = vpop.f32.mrb[89].mxu1 }
 0x1c6   :  { %v1409_v34 = vadd.f32 %v1408_v33, %v2773_v20  ;;  %v1074_v38 = vpop.f32.mrb[90].mxu0  ;;  %v2135_v3 = vpop.f32.mrb[90].mxu1 }
 0x1c7   :  { %v2018_v15 = vpack.c.bf16 %v1361_v43, %v1361_v43  ;;  %v2032_v41 = vpack.c.bf16 %v1417_v26, %v1417_v26  ;;  %v1364_v53 = vadd.f32 %v2991_v55, %v1074_v38  ;;  %v1420_v1 = vadd.f32 %v2135_v3, %v2785_v32  ;;  %v1076_v25 = vpop.f32.mrb[91].mxu0  ;;  %v1411_v42 = vpop.f32.mrb[91].mxu1 }
 0x1c8   :  { %v2030_v45 = vpack.c.bf16 %v1409_v34, %v1409_v34  ;;  %v1412_v46 = vadd.f32 %v1411_v42, %v2777_v24 }
 0x1c9   :  { %1740 = vst.msk [vmem:[%s3119_s2 + $0xb0] sm:$0xf] %vm1695_vm1, %v2018_v15  ;;  %1754 = vst.msk [vmem:[%s3119_s2 + $0xe8] sm:$0xf] %vm1695_vm1, %v2032_v41  ;;  %v2019_v20 = vpack.c.bf16 %v1364_v53, %v1364_v53  ;;  %v2033_v28 = vpack.c.bf16 %v1420_v1, %v1420_v1 }
 0x1ca   :  { %1752 = vst.msk [vmem:[%s3119_s2 + $0xe0] sm:$0xf] %vm1695_vm1, %v2030_v45  ;;  %v2031_v32 = vpack.c.bf16 %v1412_v46, %v1412_v46 }
 0x1cb   :  { %1741 = vst.msk [vmem:[%s3119_s2 + $0xb4] sm:$0xf] %vm1695_vm1, %v2019_v20  ;;  %1755 = vst.msk [vmem:[%s3119_s2 + $0xec] sm:$0xf] %vm1695_vm1, %v2033_v28 }
 0x1cc   :  { %1753 = vst.msk [vmem:[%s3119_s2 + $0xe4] sm:$0xf] %vm1695_vm1, %v2031_v32  ;;  %v1079_v24 = vpop.f32.mrb[92].mxu0  ;;  %v2138_v37 = vpop.f32.mrb[92].mxu1 }
 0x1cd   :  { %v1369_v55 = vadd.f32 %v2985_v30, %v1079_v24  ;;  %v1433_v50 = vadd.f32 %v2138_v37, %v2797_v44  ;;  %v1081_v54 = vpop.f32.mrb[93].mxu0  ;;  %v1424_v57 = vpop.f32.mrb[93].mxu1 }
 0x1ce   :  { %v1425_v58 = vadd.f32 %v1424_v57, %v2789_v36  ;;  %v1082_v61 = vpop.f32.mrb[94].mxu0  ;;  %v2139_v62 = vpop.f32.mrb[94].mxu1 }
 0x1cf   :  { %v2020_v2 = vpack.c.bf16 %v1369_v55, %v1369_v55  ;;  %v2036_v27 = vpack.c.bf16 %v1433_v50, %v1433_v50  ;;  %v1372_v19 = vadd.f32 %v2989_v11, %v1082_v61  ;;  %v1436_v31 = vadd.f32 %v2139_v62, %v2801_v48  ;;  %v1084_v7 = vpop.f32.mrb[95].mxu0  ;;  %v1427_v49 = vpop.f32.mrb[95].mxu1 }
 0x1d0   :  { %v2034_v52 = vpack.c.bf16 %v1425_v58, %v1425_v58  ;;  %v1428_v60 = vadd.f32 %v1427_v49, %v2793_v40 }
 0x1d1   :  { %1742 = vst.msk [vmem:[%s3119_s2 + $0xb8] sm:$0xf] %vm1695_vm1, %v2020_v2  ;;  %1758 = vst.msk [vmem:[%s3119_s2 + $0xf8] sm:$0xf] %vm1695_vm1, %v2036_v27  ;;  %v2021_v36 = vpack.c.bf16 %v1372_v19, %v1372_v19  ;;  %v2037_v44 = vpack.c.bf16 %v1436_v31, %v1436_v31 }
 0x1d2   :  { %1756 = vst.msk [vmem:[%s3119_s2 + $0xf0] sm:$0xf] %vm1695_vm1, %v2034_v52  ;;  %v2035_v48 = vpack.c.bf16 %v1428_v60, %v1428_v60 }
 0x1d3   :  { %1743 = vst.msk [vmem:[%s3119_s2 + $0xbc] sm:$0xf] %vm1695_vm1, %v2021_v36  ;;  %1759 = vst.msk [vmem:[%s3119_s2 + $0xfc] sm:$0xf] %vm1695_vm1, %v2037_v44 }
 0x1d4   :  { %1757 = vst.msk [vmem:[%s3119_s2 + $0xf4] sm:$0xf] %vm1695_vm1, %v2035_v48 }

// kernel: densenet_forward.24
= control target key start
LH: loop header
LB: loop body
LE: loop exit
PB: predicated region body
PF: predicated region fallthrough
CT: control target
= control target key end

     0   :  { %vm503_vm0 = vcmask 1043456   ;;  %vm406_vm1 = vcmask 195584   ;;  %vm1116_vm2 = vcmask 257024   ;;  %s2249_s1 = inlined_call_operand.vmem [shape: bf16[24,32], index: 1, kind: input, shape index: {}]   ;;  %s2250_s0 = inlined_call_operand.vmem [shape: bf16[512,24], index: 0, kind: input, shape index: {}]   ;;  %s2251_s2 = inlined_call_operand.vmem [shape: f32[1,24], index: 2, kind: input, shape index: {}]   ;;  %s2252_s3 = inlined_call_operand.vmem [shape: f32[1,24], index: 3, kind: input, shape index: {}]   ;;  %s2253_s4 = inlined_call_operand.vmem [shape: f32[1,32], index: 4, kind: input, shape index: {}]   ;;  %s2254_s5 = inlined_call_operand.vmem [shape: bf16[512,32], index: 5, kind: output, shape index: {}]  }
   0x1   :  { %v1617_v0 = vld [vmem:[%s2249_s1] sm:$0xff]   ;;  %v1618_v1 = vld [vmem:[%s2249_s1 + $0x8] ss:$0 sps:$4 sm:$0xff]   ;;  %v1479_v17 = vld [vmem:[%s2250_s0 + $0x10] sm:$0xff]  }
   0x2   :  { %v1351_v2 = vld [vmem:[%s2250_s0] sm:$0xff]   ;;  %1543 = vmatprep.subr.bf16.mxu0 %v1617_v0  ;;  %1611 = vmatprep.subr.bf16.mxu1 %v1617_v0  ;;  %v505_v7 = vsel %vm503_vm0, %v1618_v1, 0  ;;  %v1478_v11 = vld [vmem:[%s2250_s0 + $0x8] sm:$0xff]   ;;  %v1360_v29 = vunpack.c.l.bf16 %v1479_v17  ;;  %v1495_v38 = vld [vmem:[%s2250_s0 + $0x90] sm:$0xff]   ;;  %v1361_v42 = vunpack.c.h.bf16 %v1479_v17 }
   0x3   :  { %v1352_v3 = vunpack.c.l.bf16 %v1351_v2  ;;  %v1353_v4 = vunpack.c.h.bf16 %v1351_v2  ;;  %v1661_v5 = vld [vmem:[%s2251_s2] ss:$0 sm:$0xff]  ;;  %1544 = vmatpush3.bf16.msra.mxu0 %v1617_v0  ;;  %1613 = vmatpush3.bf16.msra.mxu1 %v1617_v0  ;;  %v1494_v12 = vld [vmem:[%s2250_s0 + $0x88] sm:$0xff]   ;;  %v1356_v15 = vunpack.c.l.bf16 %v1478_v11  ;;  %v1357_v16 = vunpack.c.h.bf16 %v1478_v11  ;;  %v1480_v43 = vld [vmem:[%s2250_s0 + $0x18] sm:$0xff]  }
   0x4   :  { %v1493_v6 = vld [vmem:[%s2250_s0 + $0x80] sm:$0xff]   ;;  %1615 = vmatprep.subr.msk.bf16.mxu0 %vm503_vm0, %v1618_v1  ;;  %1616 = vmatprep.subr.msk.bf16.mxu1 %vm503_vm0, %v1618_v1  ;;  %v1420_v20 = vunpack.c.l.bf16 %v1494_v12  ;;  %v1421_v21 = vunpack.c.h.bf16 %v1494_v12  ;;  %v160_v47 = vmul.f32 %v1360_v29, %v1661_v5  ;;  %v1496_v48 = vld [vmem:[%s2250_s0 + $0x98] sm:$0xff]   ;;  %v161_v50 = vmul.f32 %v1361_v42, %v1661_v5 }
   0x5   :  { %v1670_v8 = vld [vmem:[%s2252_s3] ss:$0 sm:$0xff]  ;;  %v1416_v9 = vunpack.c.l.bf16 %v1493_v6  ;;  %v1417_v10 = vunpack.c.h.bf16 %v1493_v6  ;;  %v156_v13 = vmul.f32 %v1352_v3, %v1661_v5  ;;  %v157_v14 = vmul.f32 %v1353_v4, %v1661_v5 }
   0x6   :  { %v158_v24 = vmul.f32 %v1356_v15, %v1661_v5  ;;  %v159_v25 = vmul.f32 %v1357_v16, %v1661_v5  ;;  %v190_v28 = vmul.f32 %v1420_v20, %v1661_v5  ;;  %v191_v36 = vmul.f32 %v1421_v21, %v1661_v5  ;;  %v1481_v61 = vld [vmem:[%s2250_s0 + $0x20] sm:$0xff]   ;;  %v1482_v21 = vld [vmem:[%s2250_s0 + $0x28] sm:$0xff]  }
   0x7   :  { %v188_v18 = vmul.f32 %v1416_v9, %v1661_v5  ;;  %v189_v19 = vmul.f32 %v1417_v10, %v1661_v5  ;;  %v227_v22 = vadd.f32 %v1670_v8, %v156_v13  ;;  %v228_v23 = vadd.f32 %v1670_v8, %v157_v14  ;;  %1546 = vmatpush3.bf16.msra.mxu0 %v505_v7  ;;  %v1497_v12 = vld [vmem:[%s2250_s0 + $0xa0] sm:$0xff]  }
   0x8   :  { %1614 = vmatpush3.bf16.msra.mxu1 %v505_v7  ;;  %v229_v32 = vadd.f32 %v1670_v8, %v158_v24  ;;  %v230_v33 = vadd.f32 %v1670_v8, %v159_v25  ;;  %v261_v37 = vadd.f32 %v1670_v8, %v190_v28  ;;  %v262_v45 = vadd.f32 %v1670_v8, %v191_v36 }
   0x9   :  { %v259_v26 = vadd.f32 %v1670_v8, %v188_v18  ;;  %v260_v27 = vadd.f32 %v1670_v8, %v189_v19  ;;  %v291_v30 = vmax.f32 %v227_v22, 0.0  ;;  %v292_v31 = vmax.f32 %v228_v23, 0.0 }
   0xa   :  { %v293_v40 = vmax.f32 %v229_v32, 0.0  ;;  %v294_v41 = vmax.f32 %v230_v33, 0.0  ;;  %v325_v46 = vmax.f32 %v261_v37, 0.0  ;;  %v1424_v51 = vunpack.c.l.bf16 %v1495_v38 }
   0xb   :  { %v323_v34 = vmax.f32 %v259_v26, 0.0  ;;  %v324_v35 = vmax.f32 %v260_v27, 0.0  ;;  %v355_v39 = vpack.c.bf16 %v292_v31, %v291_v30  ;;  %v1425_v52 = vunpack.c.h.bf16 %v1495_v38  ;;  %v1498_v26 = vld [vmem:[%s2250_s0 + $0xa8] sm:$0xff]  }
   0xc   :  { %v356_v49 = vpack.c.bf16 %v294_v41, %v293_v40  ;;  %v326_v53 = vmax.f32 %v262_v45, 0.0  ;;  %v231_v54 = vadd.f32 %v1670_v8, %v160_v47  ;;  %v1364_v55 = vunpack.c.l.bf16 %v1480_v43 }
   0xd   :  { %v371_v44 = vpack.c.bf16 %v324_v35, %v323_v34  ;;  %1547 = vmatprep.mubr.msk.bf16.mxu0 %vm406_vm1, %v355_v39  ;;  %v1365_v56 = vunpack.c.h.bf16 %v1480_v43  ;;  %v232_v57 = vadd.f32 %v1670_v8, %v161_v50  ;;  %v192_v58 = vmul.f32 %v1424_v51, %v1661_v5  ;;  %v1483_v39 = vld [vmem:[%s2250_s0 + $0x30] sm:$0xff]  }
   0xe   :  { %1548 = vmatmul.mubr.msk.bf16.vlgmr.msra.gmra.mrb[0].mxu0 %vm406_vm1, %v356_v49  ;;  %v193_v59 = vmul.f32 %v1425_v52, %v1661_v5  ;;  %v1428_v60 = vunpack.c.l.bf16 %v1496_v48  ;;  %v372_v62 = vpack.c.bf16 %v326_v53, %v325_v46  ;;  %v295_v63 = vmax.f32 %v231_v54, 0.0  ;;  %v1499_v52 = vld [vmem:[%s2250_s0 + $0xb0] sm:$0xff]  }
   0xf   :  { %1579 = vmatprep.mubr.msk.bf16.mxu1 %vm406_vm1, %v371_v44  ;;  %v162_v0 = vmul.f32 %v1364_v55, %v1661_v5  ;;  %v163_v1 = vmul.f32 %v1365_v56, %v1661_v5  ;;  %v296_v2 = vmax.f32 %v232_v57, 0.0  ;;  %v263_v3 = vadd.f32 %v1670_v8, %v192_v58 }
  0x10   :  { %v264_v4 = vadd.f32 %v1670_v8, %v193_v59  ;;  %v1429_v6 = vunpack.c.h.bf16 %v1496_v48  ;;  %1580 = vmatmul.mubr.msk.bf16.vlgmr.msra.gmra.mrb[0].mxu1 %vm406_vm1, %v372_v62  ;;  %v194_v10 = vmul.f32 %v1428_v60, %v1661_v5  ;;  %v1368_v11 = vunpack.c.l.bf16 %v1481_v61 }
  0x11   :  { %v233_v7 = vadd.f32 %v1670_v8, %v162_v0  ;;  %v234_v9 = vadd.f32 %v1670_v8, %v163_v1  ;;  %v357_v13 = vpack.c.bf16 %v296_v2, %v295_v63  ;;  %v327_v14 = vmax.f32 %v263_v3, 0.0 }
  0x12   :  { %v328_v15 = vmax.f32 %v264_v4, 0.0  ;;  %v195_v16 = vmul.f32 %v1429_v6, %v1661_v5  ;;  %v265_v19 = vadd.f32 %v1670_v8, %v194_v10  ;;  %v1369_v20 = vunpack.c.h.bf16 %v1481_v61  ;;  %v1484_v61 = vld [vmem:[%s2250_s0 + $0x38] sm:$0xff]  }
  0x13   :  { %v297_v17 = vmax.f32 %v233_v7, 0.0  ;;  %v298_v18 = vmax.f32 %v234_v9, 0.0  ;;  %1551 = vmatprep.mubr.msk.bf16.mxu0 %vm406_vm1, %v357_v13  ;;  %v164_v24 = vmul.f32 %v1368_v11, %v1661_v5  ;;  %v1432_v25 = vunpack.c.l.bf16 %v1497_v12  ;;  %v1500_v7 = vld [vmem:[%s2250_s0 + $0xb8] sm:$0xff]  }
  0x14   :  { %v373_v22 = vpack.c.bf16 %v328_v15, %v327_v14  ;;  %v266_v23 = vadd.f32 %v1670_v8, %v195_v16  ;;  %v329_v28 = vmax.f32 %v265_v19, 0.0  ;;  %v165_v29 = vmul.f32 %v1369_v20, %v1661_v5 }
  0x15   :  { %v358_v27 = vpack.c.bf16 %v298_v18, %v297_v17  ;;  %v1433_v30 = vunpack.c.h.bf16 %v1497_v12  ;;  %v235_v32 = vadd.f32 %v1670_v8, %v164_v24  ;;  %v196_v33 = vmul.f32 %v1432_v25, %v1661_v5  ;;  %v1485_v17 = vld [vmem:[%s2250_s0 + $0x40] sm:$0xff]  }
  0x16   :  { %1583 = vmatprep.mubr.msk.bf16.mxu1 %vm406_vm1, %v373_v22  ;;  %v330_v31 = vmax.f32 %v266_v23, 0.0  ;;  %v1372_v34 = vunpack.c.l.bf16 %v1482_v21  ;;  %v236_v35 = vadd.f32 %v1670_v8, %v165_v29  ;;  %v1373_v37 = vunpack.c.h.bf16 %v1482_v21 }
  0x17   :  { %1552 = vmatmul.mubr.msk.bf16.gmra.mrb[4].mxu0 %vm406_vm1, %v358_v27  ;;  %v197_v36 = vmul.f32 %v1433_v30, %v1661_v5  ;;  %v1436_v38 = vunpack.c.l.bf16 %v1498_v26  ;;  %v299_v41 = vmax.f32 %v235_v32, 0.0  ;;  %v267_v42 = vadd.f32 %v1670_v8, %v196_v33  ;;  %v1501_v30 = vld [vmem:[%s2250_s0 + $0xc0] sm:$0xff]  }
  0x18   :  { %v374_v40 = vpack.c.bf16 %v330_v31, %v329_v28  ;;  %v166_v43 = vmul.f32 %v1372_v34, %v1661_v5  ;;  %v300_v44 = vmax.f32 %v236_v35, 0.0  ;;  %v167_v46 = vmul.f32 %v1373_v37, %v1661_v5 }
  0x19   :  { %v268_v45 = vadd.f32 %v1670_v8, %v197_v36  ;;  %v1437_v47 = vunpack.c.h.bf16 %v1498_v26  ;;  %v331_v48 = vmax.f32 %v267_v42, 0.0  ;;  %v198_v50 = vmul.f32 %v1436_v38, %v1661_v5 }
  0x1a   :  { %1584 = vmatmul.mubr.msk.bf16.gmra.mrb[4].mxu1 %vm406_vm1, %v374_v40  ;;  %v237_v49 = vadd.f32 %v1670_v8, %v166_v43  ;;  %v1376_v51 = vunpack.c.l.bf16 %v1483_v39  ;;  %v359_v53 = vpack.c.bf16 %v300_v44, %v299_v41  ;;  %v238_v55 = vadd.f32 %v1670_v8, %v167_v46 }
  0x1b   :  { %v332_v54 = vmax.f32 %v268_v45, 0.0  ;;  %v199_v56 = vmul.f32 %v1437_v47, %v1661_v5  ;;  %v269_v58 = vadd.f32 %v1670_v8, %v198_v50  ;;  %v1377_v59 = vunpack.c.h.bf16 %v1483_v39  ;;  %v1486_v39 = vld [vmem:[%s2250_s0 + $0x48] sm:$0xff]  }
  0x1c   :  { %v301_v57 = vmax.f32 %v237_v49, 0.0  ;;  %v168_v60 = vmul.f32 %v1376_v51, %v1661_v5  ;;  %1555 = vmatprep.mubr.msk.bf16.mxu0 %vm406_vm1, %v359_v53  ;;  %v302_v63 = vmax.f32 %v238_v55, 0.0  ;;  %v1440_v1 = vunpack.c.l.bf16 %v1499_v52 }
  0x1d   :  { %v375_v62 = vpack.c.bf16 %v332_v54, %v331_v48  ;;  %v270_v0 = vadd.f32 %v1670_v8, %v199_v56  ;;  %v333_v2 = vmax.f32 %v269_v58, 0.0  ;;  %v169_v3 = vmul.f32 %v1377_v59, %v1661_v5  ;;  %v1502_v48 = vld [vmem:[%s2250_s0 + $0xc8] sm:$0xff]  }
  0x1e   :  { %v239_v4 = vadd.f32 %v1670_v8, %v168_v60  ;;  %v1441_v6 = vunpack.c.h.bf16 %v1499_v52  ;;  %v360_v9 = vpack.c.bf16 %v302_v63, %v301_v57  ;;  %v200_v11 = vmul.f32 %v1440_v1, %v1661_v5  ;;  %v1487_v57 = vld [vmem:[%s2250_s0 + $0x50] sm:$0xff]  }
  0x1f   :  { %1587 = vmatprep.mubr.msk.bf16.mxu1 %vm406_vm1, %v375_v62  ;;  %v334_v10 = vmax.f32 %v270_v0, 0.0  ;;  %v1380_v12 = vunpack.c.l.bf16 %v1484_v61  ;;  %v240_v13 = vadd.f32 %v1670_v8, %v169_v3  ;;  %v1381_v16 = vunpack.c.h.bf16 %v1484_v61 }
  0x20   :  { %v303_v14 = vmax.f32 %v239_v4, 0.0  ;;  %v201_v15 = vmul.f32 %v1441_v6, %v1661_v5  ;;  %1556 = vmatmul.mubr.msk.bf16.gmra.mrb[8].mxu0 %vm406_vm1, %v360_v9  ;;  %v271_v19 = vadd.f32 %v1670_v8, %v200_v11  ;;  %v1444_v21 = vunpack.c.l.bf16 %v1500_v7 }
  0x21   :  { %v376_v18 = vpack.c.bf16 %v334_v10, %v333_v2  ;;  %v170_v20 = vmul.f32 %v1380_v12, %v1661_v5  ;;  %v304_v22 = vmax.f32 %v240_v13, 0.0  ;;  %v171_v24 = vmul.f32 %v1381_v16, %v1661_v5 }
  0x22   :  { %v272_v23 = vadd.f32 %v1670_v8, %v201_v15  ;;  %v1445_v25 = vunpack.c.h.bf16 %v1500_v7  ;;  %v335_v26 = vmax.f32 %v271_v19, 0.0  ;;  %v202_v28 = vmul.f32 %v1444_v21, %v1661_v5  ;;  %v1503_v7 = vld [vmem:[%s2250_s0 + $0xd0] sm:$0xff]  }
  0x23   :  { %1588 = vmatmul.mubr.msk.bf16.gmra.mrb[8].mxu1 %vm406_vm1, %v376_v18  ;;  %v241_v27 = vadd.f32 %v1670_v8, %v170_v20  ;;  %v1384_v29 = vunpack.c.l.bf16 %v1485_v17  ;;  %v361_v31 = vpack.c.bf16 %v304_v22, %v303_v14  ;;  %v242_v33 = vadd.f32 %v1670_v8, %v171_v24 }
  0x24   :  { %v336_v32 = vmax.f32 %v272_v23, 0.0  ;;  %v203_v34 = vmul.f32 %v1445_v25, %v1661_v5  ;;  %v273_v36 = vadd.f32 %v1670_v8, %v202_v28  ;;  %v1385_v37 = vunpack.c.h.bf16 %v1485_v17  ;;  %v1488_v17 = vld [vmem:[%s2250_s0 + $0x58] sm:$0xff]  }
  0x25   :  { %v305_v35 = vmax.f32 %v241_v27, 0.0  ;;  %v172_v38 = vmul.f32 %v1384_v29, %v1661_v5  ;;  %1559 = vmatprep.mubr.msk.bf16.mxu0 %vm406_vm1, %v361_v31  ;;  %v306_v41 = vmax.f32 %v242_v33, 0.0  ;;  %v1448_v43 = vunpack.c.l.bf16 %v1501_v30 }
  0x26   :  { %v377_v40 = vpack.c.bf16 %v336_v32, %v335_v26  ;;  %v274_v42 = vadd.f32 %v1670_v8, %v203_v34  ;;  %v337_v44 = vmax.f32 %v273_v36, 0.0  ;;  %v173_v45 = vmul.f32 %v1385_v37, %v1661_v5  ;;  %v1504_v26 = vld [vmem:[%s2250_s0 + $0xd8] sm:$0xff]  }
  0x27   :  { %v243_v46 = vadd.f32 %v1670_v8, %v172_v38  ;;  %v1449_v47 = vunpack.c.h.bf16 %v1501_v30  ;;  %v362_v49 = vpack.c.bf16 %v306_v41, %v305_v35  ;;  %v204_v51 = vmul.f32 %v1448_v43, %v1661_v5  ;;  %v1489_v35 = vld [vmem:[%s2250_s0 + $0x60] sm:$0xff]  }
  0x28   :  { %1591 = vmatprep.mubr.msk.bf16.mxu1 %vm406_vm1, %v377_v40  ;;  %v338_v50 = vmax.f32 %v274_v42, 0.0  ;;  %v1388_v52 = vunpack.c.l.bf16 %v1486_v39  ;;  %v244_v53 = vadd.f32 %v1670_v8, %v173_v45  ;;  %v1389_v56 = vunpack.c.h.bf16 %v1486_v39 }
  0x29   :  { %v307_v54 = vmax.f32 %v243_v46, 0.0  ;;  %v205_v55 = vmul.f32 %v1449_v47, %v1661_v5  ;;  %1560 = vmatmul.mubr.msk.bf16.gmra.mrb[12].mxu0 %vm406_vm1, %v362_v49  ;;  %v275_v59 = vadd.f32 %v1670_v8, %v204_v51  ;;  %v1452_v61 = vunpack.c.l.bf16 %v1502_v48 }
  0x2a   :  { %v378_v58 = vpack.c.bf16 %v338_v50, %v337_v44  ;;  %v174_v60 = vmul.f32 %v1388_v52, %v1661_v5  ;;  %v308_v62 = vmax.f32 %v244_v53, 0.0  ;;  %v175_v0 = vmul.f32 %v1389_v56, %v1661_v5 }
  0x2b   :  { %v276_v63 = vadd.f32 %v1670_v8, %v205_v55  ;;  %v1453_v1 = vunpack.c.h.bf16 %v1502_v48  ;;  %v339_v2 = vmax.f32 %v275_v59, 0.0  ;;  %v206_v4 = vmul.f32 %v1452_v61, %v1661_v5  ;;  %v1505_v48 = vld [vmem:[%s2250_s0 + $0xe0] sm:$0xff]  }
  0x2c   :  { %1592 = vmatmul.mubr.msk.bf16.gmra.mrb[12].mxu1 %vm406_vm1, %v378_v58  ;;  %v245_v3 = vadd.f32 %v1670_v8, %v174_v60  ;;  %v1392_v6 = vunpack.c.l.bf16 %v1487_v57  ;;  %v363_v9 = vpack.c.bf16 %v308_v62, %v307_v54  ;;  %v246_v11 = vadd.f32 %v1670_v8, %v175_v0 }
  0x2d   :  { %v340_v10 = vmax.f32 %v276_v63, 0.0  ;;  %v207_v12 = vmul.f32 %v1453_v1, %v1661_v5  ;;  %v277_v14 = vadd.f32 %v1670_v8, %v206_v4  ;;  %v1393_v15 = vunpack.c.h.bf16 %v1487_v57  ;;  %v1490_v57 = vld [vmem:[%s2250_s0 + $0x68] sm:$0xff]  }
  0x2e   :  { %v309_v13 = vmax.f32 %v245_v3, 0.0  ;;  %v176_v16 = vmul.f32 %v1392_v6, %v1661_v5  ;;  %1563 = vmatprep.mubr.msk.bf16.mxu0 %vm406_vm1, %v363_v9  ;;  %v310_v19 = vmax.f32 %v246_v11, 0.0  ;;  %v1456_v21 = vunpack.c.l.bf16 %v1503_v7 }
  0x2f   :  { %v379_v18 = vpack.c.bf16 %v340_v10, %v339_v2  ;;  %v278_v20 = vadd.f32 %v1670_v8, %v207_v12  ;;  %v341_v22 = vmax.f32 %v277_v14, 0.0  ;;  %v177_v23 = vmul.f32 %v1393_v15, %v1661_v5  ;;  %v1506_v2 = vld [vmem:[%s2250_s0 + $0xe8] sm:$0xff]  }
  0x30   :  { %v247_v24 = vadd.f32 %v1670_v8, %v176_v16  ;;  %v1457_v25 = vunpack.c.h.bf16 %v1503_v7  ;;  %v364_v27 = vpack.c.bf16 %v310_v19, %v309_v13  ;;  %v208_v29 = vmul.f32 %v1456_v21, %v1661_v5  ;;  %v1491_v13 = vld [vmem:[%s2250_s0 + $0x70] sm:$0xff]  }
  0x31   :  { %1595 = vmatprep.mubr.msk.bf16.mxu1 %vm406_vm1, %v379_v18  ;;  %v342_v28 = vmax.f32 %v278_v20, 0.0  ;;  %v1396_v30 = vunpack.c.l.bf16 %v1488_v17  ;;  %v248_v31 = vadd.f32 %v1670_v8, %v177_v23  ;;  %v1397_v34 = vunpack.c.h.bf16 %v1488_v17 }
  0x32   :  { %v311_v32 = vmax.f32 %v247_v24, 0.0  ;;  %v209_v33 = vmul.f32 %v1457_v25, %v1661_v5  ;;  %1564 = vmatmul.mubr.msk.bf16.gmra.mrb[16].mxu0 %vm406_vm1, %v364_v27  ;;  %v279_v37 = vadd.f32 %v1670_v8, %v208_v29  ;;  %v1460_v39 = vunpack.c.l.bf16 %v1504_v26 }
  0x33   :  { %v380_v36 = vpack.c.bf16 %v342_v28, %v341_v22  ;;  %v178_v38 = vmul.f32 %v1396_v30, %v1661_v5  ;;  %v312_v40 = vmax.f32 %v248_v31, 0.0  ;;  %v179_v42 = vmul.f32 %v1397_v34, %v1661_v5 }
  0x34   :  { %v280_v41 = vadd.f32 %v1670_v8, %v209_v33  ;;  %v1461_v43 = vunpack.c.h.bf16 %v1504_v26  ;;  %v343_v44 = vmax.f32 %v279_v37, 0.0  ;;  %v210_v46 = vmul.f32 %v1460_v39, %v1661_v5  ;;  %v1507_v26 = vld [vmem:[%s2250_s0 + $0xf0] sm:$0xff]  }
  0x35   :  { %1596 = vmatmul.mubr.msk.bf16.gmra.mrb[16].mxu1 %vm406_vm1, %v380_v36  ;;  %v249_v45 = vadd.f32 %v1670_v8, %v178_v38  ;;  %v1400_v47 = vunpack.c.l.bf16 %v1489_v35  ;;  %v365_v49 = vpack.c.bf16 %v312_v40, %v311_v32  ;;  %v250_v51 = vadd.f32 %v1670_v8, %v179_v42 }
  0x36   :  { %v344_v50 = vmax.f32 %v280_v41, 0.0  ;;  %v211_v52 = vmul.f32 %v1461_v43, %v1661_v5  ;;  %v281_v54 = vadd.f32 %v1670_v8, %v210_v46  ;;  %v1401_v55 = vunpack.c.h.bf16 %v1489_v35  ;;  %v1492_v35 = vld [vmem:[%s2250_s0 + $0x78] sm:$0xff]  }
  0x37   :  { %v313_v53 = vmax.f32 %v249_v45, 0.0  ;;  %v180_v56 = vmul.f32 %v1400_v47, %v1661_v5  ;;  %1567 = vmatprep.mubr.msk.bf16.mxu0 %vm406_vm1, %v365_v49  ;;  %v314_v59 = vmax.f32 %v250_v51, 0.0  ;;  %v1464_v61 = vunpack.c.l.bf16 %v1505_v48 }
  0x38   :  { %v381_v58 = vpack.c.bf16 %v344_v50, %v343_v44  ;;  %v282_v60 = vadd.f32 %v1670_v8, %v211_v52  ;;  %v345_v62 = vmax.f32 %v281_v54, 0.0  ;;  %v181_v63 = vmul.f32 %v1401_v55, %v1661_v5  ;;  %v1508_v44 = vld [vmem:[%s2250_s0 + $0xf8] sm:$0xff]  }
  0x39   :  { %v251_v0 = vadd.f32 %v1670_v8, %v180_v56  ;;  %v1465_v1 = vunpack.c.h.bf16 %v1505_v48  ;;  %v366_v3 = vpack.c.bf16 %v314_v59, %v313_v53  ;;  %v212_v6 = vmul.f32 %v1464_v61, %v1661_v5 }
  0x3a   :  { %1599 = vmatprep.mubr.msk.bf16.mxu1 %vm406_vm1, %v381_v58  ;;  %v346_v4 = vmax.f32 %v282_v60, 0.0  ;;  %v1404_v7 = vunpack.c.l.bf16 %v1490_v57  ;;  %v252_v9 = vadd.f32 %v1670_v8, %v181_v63  ;;  %v1405_v12 = vunpack.c.h.bf16 %v1490_v57 }
  0x3b   :  { %v315_v10 = vmax.f32 %v251_v0, 0.0  ;;  %v213_v11 = vmul.f32 %v1465_v1, %v1661_v5  ;;  %1568 = vmatmul.mubr.msk.bf16.gmra.mrb[20].mxu0 %vm406_vm1, %v366_v3  ;;  %v283_v15 = vadd.f32 %v1670_v8, %v212_v6  ;;  %v1468_v17 = vunpack.c.l.bf16 %v1506_v2 }
  0x3c   :  { %v382_v14 = vpack.c.bf16 %v346_v4, %v345_v62  ;;  %v182_v16 = vmul.f32 %v1404_v7, %v1661_v5  ;;  %v316_v18 = vmax.f32 %v252_v9, 0.0  ;;  %v183_v20 = vmul.f32 %v1405_v12, %v1661_v5 }
  0x3d   :  { %v284_v19 = vadd.f32 %v1670_v8, %v213_v11  ;;  %v1469_v21 = vunpack.c.h.bf16 %v1506_v2  ;;  %v347_v22 = vmax.f32 %v283_v15, 0.0  ;;  %v214_v24 = vmul.f32 %v1468_v17, %v1661_v5 }
  0x3e   :  { %1600 = vmatmul.mubr.msk.bf16.gmra.mrb[20].mxu1 %vm406_vm1, %v382_v14  ;;  %v253_v23 = vadd.f32 %v1670_v8, %v182_v16  ;;  %v1408_v25 = vunpack.c.l.bf16 %v1491_v13  ;;  %v367_v27 = vpack.c.bf16 %v316_v18, %v315_v10  ;;  %v254_v29 = vadd.f32 %v1670_v8, %v183_v20 }
  0x3f   :  { %v348_v28 = vmax.f32 %v284_v19, 0.0  ;;  %v215_v30 = vmul.f32 %v1469_v21, %v1661_v5  ;;  %v285_v32 = vadd.f32 %v1670_v8, %v214_v24  ;;  %v1409_v33 = vunpack.c.h.bf16 %v1491_v13 }
  0x40   :  { %v317_v31 = vmax.f32 %v253_v23, 0.0  ;;  %v184_v34 = vmul.f32 %v1408_v25, %v1661_v5  ;;  %1571 = vmatprep.mubr.msk.bf16.mxu0 %vm406_vm1, %v367_v27  ;;  %v318_v37 = vmax.f32 %v254_v29, 0.0  ;;  %v1472_v39 = vunpack.c.l.bf16 %v1507_v26 }
  0x41   :  { %v383_v36 = vpack.c.bf16 %v348_v28, %v347_v22  ;;  %v286_v38 = vadd.f32 %v1670_v8, %v215_v30  ;;  %v349_v40 = vmax.f32 %v285_v32, 0.0  ;;  %v185_v41 = vmul.f32 %v1409_v33, %v1661_v5 }
  0x42   :  { %v255_v42 = vadd.f32 %v1670_v8, %v184_v34  ;;  %v1473_v43 = vunpack.c.h.bf16 %v1507_v26  ;;  %v368_v45 = vpack.c.bf16 %v318_v37, %v317_v31  ;;  %v216_v47 = vmul.f32 %v1472_v39, %v1661_v5 }
  0x43   :  { %1603 = vmatprep.mubr.msk.bf16.mxu1 %vm406_vm1, %v383_v36  ;;  %v350_v46 = vmax.f32 %v286_v38, 0.0  ;;  %v1412_v48 = vunpack.c.l.bf16 %v1492_v35  ;;  %v256_v49 = vadd.f32 %v1670_v8, %v185_v41  ;;  %v1413_v52 = vunpack.c.h.bf16 %v1492_v35 }
  0x44   :  { %v319_v50 = vmax.f32 %v255_v42, 0.0  ;;  %v217_v51 = vmul.f32 %v1473_v43, %v1661_v5  ;;  %1572 = vmatmul.mubr.msk.bf16.gmra.mrb[24].mxu0 %vm406_vm1, %v368_v45  ;;  %v287_v54 = vadd.f32 %v1670_v8, %v216_v47  ;;  %v1476_v56 = vunpack.c.l.bf16 %v1508_v44 }
  0x45   :  { %v384_v53 = vpack.c.bf16 %v350_v46, %v349_v40  ;;  %v186_v55 = vmul.f32 %v1412_v48, %v1661_v5  ;;  %v320_v57 = vmax.f32 %v256_v49, 0.0  ;;  %v187_v59 = vmul.f32 %v1413_v52, %v1661_v5 }
  0x46   :  { %v288_v58 = vadd.f32 %v1670_v8, %v217_v51  ;;  %v1477_v60 = vunpack.c.h.bf16 %v1508_v44  ;;  %v351_v61 = vmax.f32 %v287_v54, 0.0  ;;  %v218_v63 = vmul.f32 %v1476_v56, %v1661_v5 }
  0x47   :  { %1604 = vmatmul.mubr.msk.bf16.gmra.mrb[24].mxu1 %vm406_vm1, %v384_v53  ;;  %v257_v62 = vadd.f32 %v1670_v8, %v186_v55  ;;  %v369_v0 = vpack.c.bf16 %v320_v57, %v319_v50  ;;  %v258_v2 = vadd.f32 %v1670_v8, %v187_v59 }
  0x48   :  { %v352_v1 = vmax.f32 %v288_v58, 0.0  ;;  %v219_v3 = vmul.f32 %v1477_v60, %v1661_v5  ;;  %v289_v6 = vadd.f32 %v1670_v8, %v218_v63  ;;  %v1927_v5 = vld [vmem:[%s2253_s4] ss:$0 sm:$0xff] }
  0x49   :  { %v321_v4 = vmax.f32 %v257_v62, 0.0  ;;  %1575 = vmatprep.mubr.msk.bf16.mxu0 %vm406_vm1, %v369_v0  ;;  %v322_v9 = vmax.f32 %v258_v2, 0.0 }
  0x4a   :  { %v385_v7 = vpack.c.bf16 %v352_v1, %v351_v61  ;;  %v290_v10 = vadd.f32 %v1670_v8, %v219_v3  ;;  %v353_v11 = vmax.f32 %v289_v6, 0.0 }
  0x4b   :  { %v370_v12 = vpack.c.bf16 %v322_v9, %v321_v4 }
  0x4c   :  { %1607 = vmatprep.mubr.msk.bf16.mxu1 %vm406_vm1, %v385_v7  ;;  %v354_v13 = vmax.f32 %v290_v10, 0.0 }
  0x4d   :  { %1576 = vmatmul.mubr.msk.bf16.gmra.mrb[28].mxu0 %vm406_vm1, %v370_v12 }
  0x4e   :  { %v386_v14 = vpack.c.bf16 %v354_v13, %v353_v11 }
  0x50   :  { %1608 = vmatmul.mubr.msk.bf16.gmra.mrb[28].mxu1 %vm406_vm1, %v386_v14 }
  0xe1   :  { %v1549_v15 = vpop.f32.mrb[0].mxu0 }
  0xe2   :  { %v550_v16 = vadd.f32 %v1549_v15, %v1927_v5  ;;  %v541_v17 = vpop.f32.mrb[1].mxu0 }
  0xe3   :  { %v542_v8 = vadd.f32 %v1927_v5, %v541_v17  ;;  %v1550_v18 = vpop.f32.mrb[2].mxu0  ;;  %v1581_v20 = vpop.f32.mrb[0].mxu1 }
  0xe4   :  { %v798_v19 = vmax.f32 %v550_v16, 0.0  ;;  %v553_v21 = vadd.f32 %v1550_v18, %v1927_v5  ;;  %v544_v22 = vpop.f32.mrb[3].mxu0  ;;  %v678_v23 = vadd.f32 %v1581_v20, %v1927_v5  ;;  %v669_v25 = vpop.f32.mrb[1].mxu1 }
  0xe5   :  { %v796_v24 = vmax.f32 %v542_v8, 0.0  ;;  %v545_v26 = vadd.f32 %v1927_v5, %v544_v22  ;;  %v670_v28 = vadd.f32 %v1927_v5, %v669_v25  ;;  %v1582_v30 = vpop.f32.mrb[2].mxu1 }
  0xe6   :  { %v1288_v27 = vpack.c.bf16 %v798_v19, %v798_v19  ;;  %v799_v29 = vmax.f32 %v553_v21, 0.0  ;;  %v830_v31 = vmax.f32 %v678_v23, 0.0  ;;  %v681_v33 = vadd.f32 %v1582_v30, %v1927_v5  ;;  %v672_v35 = vpop.f32.mrb[3].mxu1 }
  0xe7   :  { %v1286_v32 = vpack.c.bf16 %v796_v24, %v796_v24  ;;  %v797_v34 = vmax.f32 %v545_v26, 0.0  ;;  %v828_v36 = vmax.f32 %v670_v28, 0.0  ;;  %v673_v38 = vadd.f32 %v1927_v5, %v672_v35 }
  0xe8   :  { %1119 = vst.msk [vmem:[%s2254_s5 + $0x8] sm:$0xf] %vm1116_vm2, %v1288_v27  ;;  %v1289_v37 = vpack.c.bf16 %v799_v29, %v799_v29  ;;  %v1320_v39 = vpack.c.bf16 %v830_v31, %v830_v31  ;;  %v831_v40 = vmax.f32 %v681_v33, 0.0 }
  0xe9   :  { %1117 = vst.msk [vmem:[%s2254_s5] sm:$0xf] %vm1116_vm2, %v1286_v32  ;;  %v1287_v41 = vpack.c.bf16 %v797_v34, %v797_v34  ;;  %v1318_v42 = vpack.c.bf16 %v828_v36, %v828_v36  ;;  %v829_v43 = vmax.f32 %v673_v38, 0.0 }
  0xea   :  { %1120 = vst.msk [vmem:[%s2254_s5 + $0xc] sm:$0xf] %vm1116_vm2, %v1289_v37  ;;  %v1553_v44 = vpop.f32.mrb[4].mxu0  ;;  %1151 = vst.msk [vmem:[%s2254_s5 + $0x88] sm:$0xf] %vm1116_vm2, %v1320_v39  ;;  %v1321_v45 = vpack.c.bf16 %v831_v40, %v831_v40 }
  0xeb   :  { %1118 = vst.msk [vmem:[%s2254_s5 + $0x4] sm:$0xf] %vm1116_vm2, %v1287_v41  ;;  %v566_v46 = vadd.f32 %v1553_v44, %v1927_v5  ;;  %v557_v47 = vpop.f32.mrb[5].mxu0  ;;  %1149 = vst.msk [vmem:[%s2254_s5 + $0x80] sm:$0xf] %vm1116_vm2, %v1318_v42  ;;  %v1319_v48 = vpack.c.bf16 %v829_v43, %v829_v43 }
  0xec   :  { %v558_v49 = vadd.f32 %v1927_v5, %v557_v47  ;;  %v1554_v50 = vpop.f32.mrb[6].mxu0  ;;  %1152 = vst.msk [vmem:[%s2254_s5 + $0x8c] sm:$0xf] %vm1116_vm2, %v1321_v45 }
  0xed   :  { %v802_v51 = vmax.f32 %v566_v46, 0.0  ;;  %v1585_v52 = vpop.f32.mrb[4].mxu1  ;;  %v569_v53 = vadd.f32 %v1554_v50, %v1927_v5  ;;  %v560_v54 = vpop.f32.mrb[7].mxu0  ;;  %1150 = vst.msk [vmem:[%s2254_s5 + $0x84] sm:$0xf] %vm1116_vm2, %v1319_v48 }
  0xee   :  { %v694_v55 = vadd.f32 %v1585_v52, %v1927_v5  ;;  %v800_v56 = vmax.f32 %v558_v49, 0.0  ;;  %v685_v57 = vpop.f32.mrb[5].mxu1  ;;  %v561_v58 = vadd.f32 %v1927_v5, %v560_v54 }
  0xef   :  { %v1292_v59 = vpack.c.bf16 %v802_v51, %v802_v51  ;;  %v686_v60 = vadd.f32 %v1927_v5, %v685_v57  ;;  %v803_v61 = vmax.f32 %v569_v53, 0.0  ;;  %v1586_v62 = vpop.f32.mrb[6].mxu1 }
  0xf0   :  { %v834_v63 = vmax.f32 %v694_v55, 0.0  ;;  %v1290_v0 = vpack.c.bf16 %v800_v56, %v800_v56  ;;  %v697_v1 = vadd.f32 %v1586_v62, %v1927_v5  ;;  %v801_v2 = vmax.f32 %v561_v58, 0.0  ;;  %v688_v3 = vpop.f32.mrb[7].mxu1 }
  0xf1   :  { %1123 = vst.msk [vmem:[%s2254_s5 + $0x18] sm:$0xf] %vm1116_vm2, %v1292_v59  ;;  %v832_v4 = vmax.f32 %v686_v60, 0.0  ;;  %v1293_v6 = vpack.c.bf16 %v803_v61, %v803_v61  ;;  %v689_v7 = vadd.f32 %v1927_v5, %v688_v3 }
  0xf2   :  { %v1324_v9 = vpack.c.bf16 %v834_v63, %v834_v63  ;;  %1121 = vst.msk [vmem:[%s2254_s5 + $0x10] sm:$0xf] %vm1116_vm2, %v1290_v0  ;;  %v835_v10 = vmax.f32 %v697_v1, 0.0  ;;  %v1291_v11 = vpack.c.bf16 %v801_v2, %v801_v2 }
  0xf3   :  { %v1322_v12 = vpack.c.bf16 %v832_v4, %v832_v4  ;;  %1124 = vst.msk [vmem:[%s2254_s5 + $0x1c] sm:$0xf] %vm1116_vm2, %v1293_v6  ;;  %v833_v13 = vmax.f32 %v689_v7, 0.0  ;;  %v1557_v15 = vpop.f32.mrb[8].mxu0 }
  0xf4   :  { %1155 = vst.msk [vmem:[%s2254_s5 + $0x98] sm:$0xf] %vm1116_vm2, %v1324_v9  ;;  %v1325_v14 = vpack.c.bf16 %v835_v10, %v835_v10  ;;  %1122 = vst.msk [vmem:[%s2254_s5 + $0x14] sm:$0xf] %vm1116_vm2, %v1291_v11  ;;  %v582_v17 = vadd.f32 %v1557_v15, %v1927_v5  ;;  %v573_v8 = vpop.f32.mrb[9].mxu0 }
  0xf5   :  { %1153 = vst.msk [vmem:[%s2254_s5 + $0x90] sm:$0xf] %vm1116_vm2, %v1322_v12  ;;  %v1323_v16 = vpack.c.bf16 %v833_v13, %v833_v13  ;;  %v574_v19 = vadd.f32 %v1927_v5, %v573_v8  ;;  %v1558_v20 = vpop.f32.mrb[10].mxu0 }
  0xf6   :  { %1156 = vst.msk [vmem:[%s2254_s5 + $0x9c] sm:$0xf] %vm1116_vm2, %v1325_v14  ;;  %v1589_v18 = vpop.f32.mrb[8].mxu1  ;;  %v806_v21 = vmax.f32 %v582_v17, 0.0  ;;  %v585_v24 = vadd.f32 %v1558_v20, %v1927_v5  ;;  %v576_v25 = vpop.f32.mrb[11].mxu0 }
  0xf7   :  { %1154 = vst.msk [vmem:[%s2254_s5 + $0x94] sm:$0xf] %vm1116_vm2, %v1323_v16  ;;  %v710_v22 = vadd.f32 %v1589_v18, %v1927_v5  ;;  %v701_v23 = vpop.f32.mrb[9].mxu1  ;;  %v804_v26 = vmax.f32 %v574_v19, 0.0  ;;  %v577_v29 = vadd.f32 %v1927_v5, %v576_v25 }
  0xf8   :  { %v702_v27 = vadd.f32 %v1927_v5, %v701_v23  ;;  %v1590_v28 = vpop.f32.mrb[10].mxu1  ;;  %v1296_v30 = vpack.c.bf16 %v806_v21, %v806_v21  ;;  %v807_v32 = vmax.f32 %v585_v24, 0.0 }
  0xf9   :  { %v838_v31 = vmax.f32 %v710_v22, 0.0  ;;  %v713_v33 = vadd.f32 %v1590_v28, %v1927_v5  ;;  %v704_v34 = vpop.f32.mrb[11].mxu1  ;;  %v1294_v35 = vpack.c.bf16 %v804_v26, %v804_v26  ;;  %v805_v37 = vmax.f32 %v577_v29, 0.0 }
  0xfa   :  { %v836_v36 = vmax.f32 %v702_v27, 0.0  ;;  %v705_v38 = vadd.f32 %v1927_v5, %v704_v34  ;;  %1127 = vst.msk [vmem:[%s2254_s5 + $0x28] sm:$0xf] %vm1116_vm2, %v1296_v30  ;;  %v1297_v40 = vpack.c.bf16 %v807_v32, %v807_v32 }
  0xfb   :  { %v1328_v39 = vpack.c.bf16 %v838_v31, %v838_v31  ;;  %v839_v41 = vmax.f32 %v713_v33, 0.0  ;;  %1125 = vst.msk [vmem:[%s2254_s5 + $0x20] sm:$0xf] %vm1116_vm2, %v1294_v35  ;;  %v1295_v43 = vpack.c.bf16 %v805_v37, %v805_v37 }
  0xfc   :  { %v1326_v42 = vpack.c.bf16 %v836_v36, %v836_v36  ;;  %v837_v44 = vmax.f32 %v705_v38, 0.0  ;;  %1128 = vst.msk [vmem:[%s2254_s5 + $0x2c] sm:$0xf] %vm1116_vm2, %v1297_v40  ;;  %v1561_v46 = vpop.f32.mrb[12].mxu0 }
  0xfd   :  { %1159 = vst.msk [vmem:[%s2254_s5 + $0xa8] sm:$0xf] %vm1116_vm2, %v1328_v39  ;;  %v1329_v45 = vpack.c.bf16 %v839_v41, %v839_v41  ;;  %1126 = vst.msk [vmem:[%s2254_s5 + $0x24] sm:$0xf] %vm1116_vm2, %v1295_v43  ;;  %v598_v48 = vadd.f32 %v1561_v46, %v1927_v5  ;;  %v589_v49 = vpop.f32.mrb[13].mxu0 }
  0xfe   :  { %1157 = vst.msk [vmem:[%s2254_s5 + $0xa0] sm:$0xf] %vm1116_vm2, %v1326_v42  ;;  %v1327_v47 = vpack.c.bf16 %v837_v44, %v837_v44  ;;  %v590_v51 = vadd.f32 %v1927_v5, %v589_v49  ;;  %v1562_v52 = vpop.f32.mrb[14].mxu0 }
  0xff   :  { %1160 = vst.msk [vmem:[%s2254_s5 + $0xac] sm:$0xf] %vm1116_vm2, %v1329_v45  ;;  %v1593_v50 = vpop.f32.mrb[12].mxu1  ;;  %v810_v53 = vmax.f32 %v598_v48, 0.0  ;;  %v601_v56 = vadd.f32 %v1562_v52, %v1927_v5  ;;  %v592_v57 = vpop.f32.mrb[15].mxu0 }
 0x100   :  { %1158 = vst.msk [vmem:[%s2254_s5 + $0xa4] sm:$0xf] %vm1116_vm2, %v1327_v47  ;;  %v726_v54 = vadd.f32 %v1593_v50, %v1927_v5  ;;  %v717_v55 = vpop.f32.mrb[13].mxu1  ;;  %v808_v58 = vmax.f32 %v590_v51, 0.0  ;;  %v593_v61 = vadd.f32 %v1927_v5, %v592_v57 }
 0x101   :  { %v718_v59 = vadd.f32 %v1927_v5, %v717_v55  ;;  %v1594_v60 = vpop.f32.mrb[14].mxu1  ;;  %v1300_v62 = vpack.c.bf16 %v810_v53, %v810_v53  ;;  %v811_v0 = vmax.f32 %v601_v56, 0.0 }
 0x102   :  { %v842_v63 = vmax.f32 %v726_v54, 0.0  ;;  %v729_v1 = vadd.f32 %v1594_v60, %v1927_v5  ;;  %v720_v2 = vpop.f32.mrb[15].mxu1  ;;  %v1298_v3 = vpack.c.bf16 %v808_v58, %v808_v58  ;;  %v809_v6 = vmax.f32 %v593_v61, 0.0 }
 0x103   :  { %v840_v4 = vmax.f32 %v718_v59, 0.0  ;;  %v721_v7 = vadd.f32 %v1927_v5, %v720_v2  ;;  %1131 = vst.msk [vmem:[%s2254_s5 + $0x38] sm:$0xf] %vm1116_vm2, %v1300_v62  ;;  %v1301_v10 = vpack.c.bf16 %v811_v0, %v811_v0 }
 0x104   :  { %v1332_v9 = vpack.c.bf16 %v842_v63, %v842_v63  ;;  %v843_v11 = vmax.f32 %v729_v1, 0.0  ;;  %1129 = vst.msk [vmem:[%s2254_s5 + $0x30] sm:$0xf] %vm1116_vm2, %v1298_v3  ;;  %v1299_v13 = vpack.c.bf16 %v809_v6, %v809_v6 }
 0x105   :  { %v1330_v12 = vpack.c.bf16 %v840_v4, %v840_v4  ;;  %v841_v14 = vmax.f32 %v721_v7, 0.0  ;;  %1132 = vst.msk [vmem:[%s2254_s5 + $0x3c] sm:$0xf] %vm1116_vm2, %v1301_v10  ;;  %v1565_v16 = vpop.f32.mrb[16].mxu0 }
 0x106   :  { %1163 = vst.msk [vmem:[%s2254_s5 + $0xb8] sm:$0xf] %vm1116_vm2, %v1332_v9  ;;  %v1333_v15 = vpack.c.bf16 %v843_v11, %v843_v11  ;;  %1130 = vst.msk [vmem:[%s2254_s5 + $0x34] sm:$0xf] %vm1116_vm2, %v1299_v13  ;;  %v614_v8 = vadd.f32 %v1565_v16, %v1927_v5  ;;  %v605_v18 = vpop.f32.mrb[17].mxu0 }
 0x107   :  { %1161 = vst.msk [vmem:[%s2254_s5 + $0xb0] sm:$0xf] %vm1116_vm2, %v1330_v12  ;;  %v1331_v17 = vpack.c.bf16 %v841_v14, %v841_v14  ;;  %v606_v20 = vadd.f32 %v1927_v5, %v605_v18  ;;  %v1566_v21 = vpop.f32.mrb[18].mxu0 }
 0x108   :  { %1164 = vst.msk [vmem:[%s2254_s5 + $0xbc] sm:$0xf] %vm1116_vm2, %v1333_v15  ;;  %v1597_v19 = vpop.f32.mrb[16].mxu1  ;;  %v814_v22 = vmax.f32 %v614_v8, 0.0  ;;  %v617_v25 = vadd.f32 %v1566_v21, %v1927_v5  ;;  %v608_v26 = vpop.f32.mrb[19].mxu0 }
 0x109   :  { %1162 = vst.msk [vmem:[%s2254_s5 + $0xb4] sm:$0xf] %vm1116_vm2, %v1331_v17  ;;  %v742_v23 = vadd.f32 %v1597_v19, %v1927_v5  ;;  %v733_v24 = vpop.f32.mrb[17].mxu1  ;;  %v812_v27 = vmax.f32 %v606_v20, 0.0  ;;  %v609_v30 = vadd.f32 %v1927_v5, %v608_v26 }
 0x10a   :  { %v734_v28 = vadd.f32 %v1927_v5, %v733_v24  ;;  %v1598_v29 = vpop.f32.mrb[18].mxu1  ;;  %v1304_v31 = vpack.c.bf16 %v814_v22, %v814_v22  ;;  %v815_v33 = vmax.f32 %v617_v25, 0.0 }
 0x10b   :  { %v846_v32 = vmax.f32 %v742_v23, 0.0  ;;  %v745_v34 = vadd.f32 %v1598_v29, %v1927_v5  ;;  %v736_v35 = vpop.f32.mrb[19].mxu1  ;;  %v1302_v36 = vpack.c.bf16 %v812_v27, %v812_v27  ;;  %v813_v38 = vmax.f32 %v609_v30, 0.0 }
 0x10c   :  { %v844_v37 = vmax.f32 %v734_v28, 0.0  ;;  %v737_v39 = vadd.f32 %v1927_v5, %v736_v35  ;;  %1135 = vst.msk [vmem:[%s2254_s5 + $0x48] sm:$0xf] %vm1116_vm2, %v1304_v31  ;;  %v1305_v41 = vpack.c.bf16 %v815_v33, %v815_v33 }
 0x10d   :  { %v1336_v40 = vpack.c.bf16 %v846_v32, %v846_v32  ;;  %v847_v42 = vmax.f32 %v745_v34, 0.0  ;;  %1133 = vst.msk [vmem:[%s2254_s5 + $0x40] sm:$0xf] %vm1116_vm2, %v1302_v36  ;;  %v1303_v44 = vpack.c.bf16 %v813_v38, %v813_v38 }
 0x10e   :  { %v1334_v43 = vpack.c.bf16 %v844_v37, %v844_v37  ;;  %v845_v45 = vmax.f32 %v737_v39, 0.0  ;;  %1136 = vst.msk [vmem:[%s2254_s5 + $0x4c] sm:$0xf] %vm1116_vm2, %v1305_v41  ;;  %v1569_v47 = vpop.f32.mrb[20].mxu0 }
 0x10f   :  { %1167 = vst.msk [vmem:[%s2254_s5 + $0xc8] sm:$0xf] %vm1116_vm2, %v1336_v40  ;;  %v1337_v46 = vpack.c.bf16 %v847_v42, %v847_v42  ;;  %1134 = vst.msk [vmem:[%s2254_s5 + $0x44] sm:$0xf] %vm1116_vm2, %v1303_v44  ;;  %v630_v49 = vadd.f32 %v1569_v47, %v1927_v5  ;;  %v621_v50 = vpop.f32.mrb[21].mxu0 }
 0x110   :  { %1165 = vst.msk [vmem:[%s2254_s5 + $0xc0] sm:$0xf] %vm1116_vm2, %v1334_v43  ;;  %v1335_v48 = vpack.c.bf16 %v845_v45, %v845_v45  ;;  %v622_v52 = vadd.f32 %v1927_v5, %v621_v50  ;;  %v1570_v53 = vpop.f32.mrb[22].mxu0 }
 0x111   :  { %1168 = vst.msk [vmem:[%s2254_s5 + $0xcc] sm:$0xf] %vm1116_vm2, %v1337_v46  ;;  %v1601_v51 = vpop.f32.mrb[20].mxu1  ;;  %v818_v54 = vmax.f32 %v630_v49, 0.0  ;;  %v633_v57 = vadd.f32 %v1570_v53, %v1927_v5  ;;  %v624_v58 = vpop.f32.mrb[23].mxu0 }
 0x112   :  { %1166 = vst.msk [vmem:[%s2254_s5 + $0xc4] sm:$0xf] %vm1116_vm2, %v1335_v48  ;;  %v758_v55 = vadd.f32 %v1601_v51, %v1927_v5  ;;  %v749_v56 = vpop.f32.mrb[21].mxu1  ;;  %v816_v59 = vmax.f32 %v622_v52, 0.0  ;;  %v625_v62 = vadd.f32 %v1927_v5, %v624_v58 }
 0x113   :  { %v750_v60 = vadd.f32 %v1927_v5, %v749_v56  ;;  %v1602_v61 = vpop.f32.mrb[22].mxu1  ;;  %v1308_v63 = vpack.c.bf16 %v818_v54, %v818_v54  ;;  %v819_v1 = vmax.f32 %v633_v57, 0.0 }
 0x114   :  { %v850_v0 = vmax.f32 %v758_v55, 0.0  ;;  %v761_v2 = vadd.f32 %v1602_v61, %v1927_v5  ;;  %v752_v3 = vpop.f32.mrb[23].mxu1  ;;  %v1306_v4 = vpack.c.bf16 %v816_v59, %v816_v59  ;;  %v817_v7 = vmax.f32 %v625_v62, 0.0 }
 0x115   :  { %v848_v6 = vmax.f32 %v750_v60, 0.0  ;;  %v753_v9 = vadd.f32 %v1927_v5, %v752_v3  ;;  %1139 = vst.msk [vmem:[%s2254_s5 + $0x58] sm:$0xf] %vm1116_vm2, %v1308_v63  ;;  %v1309_v11 = vpack.c.bf16 %v819_v1, %v819_v1 }
 0x116   :  { %v1340_v10 = vpack.c.bf16 %v850_v0, %v850_v0  ;;  %v851_v12 = vmax.f32 %v761_v2, 0.0  ;;  %1137 = vst.msk [vmem:[%s2254_s5 + $0x50] sm:$0xf] %vm1116_vm2, %v1306_v4  ;;  %v1307_v14 = vpack.c.bf16 %v817_v7, %v817_v7 }
 0x117   :  { %v1338_v13 = vpack.c.bf16 %v848_v6, %v848_v6  ;;  %v849_v15 = vmax.f32 %v753_v9, 0.0  ;;  %1140 = vst.msk [vmem:[%s2254_s5 + $0x5c] sm:$0xf] %vm1116_vm2, %v1309_v11  ;;  %v1573_v17 = vpop.f32.mrb[24].mxu0 }
 0x118   :  { %1171 = vst.msk [vmem:[%s2254_s5 + $0xd8] sm:$0xf] %vm1116_vm2, %v1340_v10  ;;  %v1341_v16 = vpack.c.bf16 %v851_v12, %v851_v12  ;;  %1138 = vst.msk [vmem:[%s2254_s5 + $0x54] sm:$0xf] %vm1116_vm2, %v1307_v14  ;;  %v646_v18 = vadd.f32 %v1573_v17, %v1927_v5  ;;  %v637_v19 = vpop.f32.mrb[25].mxu0 }
 0x119   :  { %1169 = vst.msk [vmem:[%s2254_s5 + $0xd0] sm:$0xf] %vm1116_vm2, %v1338_v13  ;;  %v1339_v8 = vpack.c.bf16 %v849_v15, %v849_v15  ;;  %v638_v21 = vadd.f32 %v1927_v5, %v637_v19  ;;  %v1574_v22 = vpop.f32.mrb[26].mxu0 }
 0x11a   :  { %1172 = vst.msk [vmem:[%s2254_s5 + $0xdc] sm:$0xf] %vm1116_vm2, %v1341_v16  ;;  %v1605_v20 = vpop.f32.mrb[24].mxu1  ;;  %v822_v23 = vmax.f32 %v646_v18, 0.0  ;;  %v649_v26 = vadd.f32 %v1574_v22, %v1927_v5  ;;  %v640_v27 = vpop.f32.mrb[27].mxu0 }
 0x11b   :  { %1170 = vst.msk [vmem:[%s2254_s5 + $0xd4] sm:$0xf] %vm1116_vm2, %v1339_v8  ;;  %v774_v24 = vadd.f32 %v1605_v20, %v1927_v5  ;;  %v765_v25 = vpop.f32.mrb[25].mxu1  ;;  %v820_v28 = vmax.f32 %v638_v21, 0.0  ;;  %v641_v31 = vadd.f32 %v1927_v5, %v640_v27 }
 0x11c   :  { %v766_v29 = vadd.f32 %v1927_v5, %v765_v25  ;;  %v1606_v30 = vpop.f32.mrb[26].mxu1  ;;  %v1312_v32 = vpack.c.bf16 %v822_v23, %v822_v23  ;;  %v823_v34 = vmax.f32 %v649_v26, 0.0 }
 0x11d   :  { %v854_v33 = vmax.f32 %v774_v24, 0.0  ;;  %v777_v35 = vadd.f32 %v1606_v30, %v1927_v5  ;;  %v768_v36 = vpop.f32.mrb[27].mxu1  ;;  %v1310_v37 = vpack.c.bf16 %v820_v28, %v820_v28  ;;  %v821_v39 = vmax.f32 %v641_v31, 0.0 }
 0x11e   :  { %v852_v38 = vmax.f32 %v766_v29, 0.0  ;;  %v769_v40 = vadd.f32 %v1927_v5, %v768_v36  ;;  %1143 = vst.msk [vmem:[%s2254_s5 + $0x68] sm:$0xf] %vm1116_vm2, %v1312_v32  ;;  %v1313_v42 = vpack.c.bf16 %v823_v34, %v823_v34 }
 0x11f   :  { %v1344_v41 = vpack.c.bf16 %v854_v33, %v854_v33  ;;  %v855_v43 = vmax.f32 %v777_v35, 0.0  ;;  %1141 = vst.msk [vmem:[%s2254_s5 + $0x60] sm:$0xf] %vm1116_vm2, %v1310_v37  ;;  %v1311_v45 = vpack.c.bf16 %v821_v39, %v821_v39 }
 0x120   :  { %v1342_v44 = vpack.c.bf16 %v852_v38, %v852_v38  ;;  %v853_v46 = vmax.f32 %v769_v40, 0.0  ;;  %1144 = vst.msk [vmem:[%s2254_s5 + $0x6c] sm:$0xf] %vm1116_vm2, %v1313_v42  ;;  %v1577_v48 = vpop.f32.mrb[28].mxu0 }
 0x121   :  { %1175 = vst.msk [vmem:[%s2254_s5 + $0xe8] sm:$0xf] %vm1116_vm2, %v1344_v41  ;;  %v1345_v47 = vpack.c.bf16 %v855_v43, %v855_v43  ;;  %1142 = vst.msk [vmem:[%s2254_s5 + $0x64] sm:$0xf] %vm1116_vm2, %v1311_v45  ;;  %v662_v50 = vadd.f32 %v1577_v48, %v1927_v5  ;;  %v653_v51 = vpop.f32.mrb[29].mxu0 }
 0x122   :  { %1173 = vst.msk [vmem:[%s2254_s5 + $0xe0] sm:$0xf] %vm1116_vm2, %v1342_v44  ;;  %v1343_v49 = vpack.c.bf16 %v853_v46, %v853_v46  ;;  %v654_v53 = vadd.f32 %v1927_v5, %v653_v51  ;;  %v1578_v54 = vpop.f32.mrb[30].mxu0 }
 0x123   :  { %1176 = vst.msk [vmem:[%s2254_s5 + $0xec] sm:$0xf] %vm1116_vm2, %v1345_v47  ;;  %v1609_v52 = vpop.f32.mrb[28].mxu1  ;;  %v826_v55 = vmax.f32 %v662_v50, 0.0  ;;  %v665_v58 = vadd.f32 %v1578_v54, %v1927_v5  ;;  %v656_v59 = vpop.f32.mrb[31].mxu0 }
 0x124   :  { %1174 = vst.msk [vmem:[%s2254_s5 + $0xe4] sm:$0xf] %vm1116_vm2, %v1343_v49  ;;  %v790_v56 = vadd.f32 %v1609_v52, %v1927_v5  ;;  %v781_v57 = vpop.f32.mrb[29].mxu1  ;;  %v824_v60 = vmax.f32 %v654_v53, 0.0  ;;  %v657_v63 = vadd.f32 %v1927_v5, %v656_v59 }
 0x125   :  { %v782_v61 = vadd.f32 %v1927_v5, %v781_v57  ;;  %v1610_v62 = vpop.f32.mrb[30].mxu1  ;;  %v1316_v0 = vpack.c.bf16 %v826_v55, %v826_v55  ;;  %v827_v2 = vmax.f32 %v665_v58, 0.0 }
 0x126   :  { %v858_v1 = vmax.f32 %v790_v56, 0.0  ;;  %v793_v3 = vadd.f32 %v1610_v62, %v1927_v5  ;;  %v784_v4 = vpop.f32.mrb[31].mxu1  ;;  %v1314_v6 = vpack.c.bf16 %v824_v60, %v824_v60  ;;  %v825_v9 = vmax.f32 %v657_v63, 0.0 }
 0x127   :  { %v856_v7 = vmax.f32 %v782_v61, 0.0  ;;  %v785_v10 = vadd.f32 %v1927_v5, %v784_v4  ;;  %1147 = vst.msk [vmem:[%s2254_s5 + $0x78] sm:$0xf] %vm1116_vm2, %v1316_v0  ;;  %v1317_v12 = vpack.c.bf16 %v827_v2, %v827_v2 }
 0x128   :  { %v1348_v11 = vpack.c.bf16 %v858_v1, %v858_v1  ;;  %v859_v13 = vmax.f32 %v793_v3, 0.0  ;;  %1145 = vst.msk [vmem:[%s2254_s5 + $0x70] sm:$0xf] %vm1116_vm2, %v1314_v6  ;;  %v1315_v15 = vpack.c.bf16 %v825_v9, %v825_v9 }
 0x129   :  { %v1346_v14 = vpack.c.bf16 %v856_v7, %v856_v7  ;;  %v857_v16 = vmax.f32 %v785_v10, 0.0  ;;  %1148 = vst.msk [vmem:[%s2254_s5 + $0x7c] sm:$0xf] %vm1116_vm2, %v1317_v12 }
 0x12a   :  { %1179 = vst.msk [vmem:[%s2254_s5 + $0xf8] sm:$0xf] %vm1116_vm2, %v1348_v11  ;;  %v1349_v5 = vpack.c.bf16 %v859_v13, %v859_v13  ;;  %1146 = vst.msk [vmem:[%s2254_s5 + $0x74] sm:$0xf] %vm1116_vm2, %v1315_v15 }
 0x12b   :  { %1177 = vst.msk [vmem:[%s2254_s5 + $0xf0] sm:$0xf] %vm1116_vm2, %v1346_v14  ;;  %v1347_v17 = vpack.c.bf16 %v857_v16, %v857_v16 }
 0x12c   :  { %1180 = vst.msk [vmem:[%s2254_s5 + $0xfc] sm:$0xf] %vm1116_vm2, %v1349_v5 }
 0x12d   :  { %1178 = vst.msk [vmem:[%s2254_s5 + $0xf4] sm:$0xf] %vm1116_vm2, %v1347_v17 }

// kernel: densenet_forward.26
= control target key start
LH: loop header
LB: loop body
LE: loop exit
PB: predicated region body
PF: predicated region fallthrough
CT: control target
= control target key end

     0   :  { %vm400_vm0 = vcmask 261120   ;;  %vm1042_vm1 = vcmask 125952   ;;  %s2095_s1 = inlined_call_operand.vmem [shape: bf16[32,16], index: 1, kind: input, shape index: {}]   ;;  %s2096_s0 = inlined_call_operand.vmem [shape: bf16[512,32], index: 0, kind: input, shape index: {}]   ;;  %s2097_s2 = inlined_call_operand.vmem [shape: f32[1,32], index: 2, kind: input, shape index: {}]   ;;  %s2098_s3 = inlined_call_operand.vmem [shape: f32[1,32], index: 3, kind: input, shape index: {}]   ;;  %s2099_s4 = inlined_call_operand.vmem [shape: bf16[512,16], index: 4, kind: output, shape index: {}]  }
   0x1   :  { %v1540_v0 = vld [vmem:[%s2095_s1] sm:$0xff]   ;;  %v1541_v1 = vld [vmem:[%s2095_s1 + $0x8] sm:$0xff]   ;;  %v1404_v14 = vld [vmem:[%s2096_s0 + $0x10] sm:$0xff]  }
   0x2   :  { %1468 = vmatprep.subr.bf16.mxu0 %v1540_v0  ;;  %1536 = vmatprep.subr.bf16.mxu1 %v1540_v0  ;;  %v1276_v2 = vld [vmem:[%s2096_s0] sm:$0xff]   ;;  %v1403_v7 = vld [vmem:[%s2096_s0 + $0x8] sm:$0xff]   ;;  %v1285_v26 = vunpack.c.l.bf16 %v1404_v14  ;;  %v1420_v35 = vld [vmem:[%s2096_s0 + $0x90] sm:$0xff]   ;;  %v1286_v44 = vunpack.c.h.bf16 %v1404_v14 }
   0x3   :  { %v1579_v3 = vld [vmem:[%s2097_s2] ss:$0 sm:$0xff]  ;;  %1469 = vmatpush3.bf16.msra.mxu0 %v1540_v0  ;;  %1538 = vmatpush3.bf16.msra.mxu1 %v1540_v0  ;;  %v1277_v4 = vunpack.c.l.bf16 %v1276_v2  ;;  %v1278_v5 = vunpack.c.h.bf16 %v1276_v2  ;;  %v1419_v8 = vld [vmem:[%s2096_s0 + $0x88] sm:$0xff]   ;;  %v1281_v12 = vunpack.c.l.bf16 %v1403_v7  ;;  %v1282_v13 = vunpack.c.h.bf16 %v1403_v7  ;;  %v1405_v40 = vld [vmem:[%s2096_s0 + $0x18] sm:$0xff]  }
   0x4   :  { %v1418_v6 = vld [vmem:[%s2096_s0 + $0x80] sm:$0xff]   ;;  %1470 = vmatprep.subr.bf16.mxu0 %v1541_v1  ;;  %1537 = vmatprep.subr.bf16.mxu1 %v1541_v1  ;;  %v1345_v17 = vunpack.c.l.bf16 %v1419_v8  ;;  %v1346_v18 = vunpack.c.h.bf16 %v1419_v8  ;;  %v1421_v45 = vld [vmem:[%s2096_s0 + $0x98] sm:$0xff]   ;;  %v157_v48 = vmul.f32 %v1285_v26, %v1579_v3  ;;  %v1349_v49 = vunpack.c.l.bf16 %v1420_v35 }
   0x5   :  { %v1593_v9 = vld [vmem:[%s2098_s3] ss:$0 sm:$0xff]  ;;  %v1341_v10 = vunpack.c.l.bf16 %v1418_v6  ;;  %v1342_v11 = vunpack.c.h.bf16 %v1418_v6  ;;  %v153_v15 = vmul.f32 %v1277_v4, %v1579_v3  ;;  %v154_v16 = vmul.f32 %v1278_v5, %v1579_v3 }
   0x6   :  { %v155_v21 = vmul.f32 %v1281_v12, %v1579_v3  ;;  %v156_v22 = vmul.f32 %v1282_v13, %v1579_v3  ;;  %v187_v25 = vmul.f32 %v1345_v17, %v1579_v3  ;;  %v188_v33 = vmul.f32 %v1346_v18, %v1579_v3  ;;  %v1406_v62 = vld [vmem:[%s2096_s0 + $0x20] sm:$0xff]  }
   0x7   :  { %v185_v19 = vmul.f32 %v1341_v10, %v1579_v3  ;;  %v186_v20 = vmul.f32 %v1342_v11, %v1579_v3  ;;  %1471 = vmatpush3.bf16.msra.mxu0 %v1541_v1  ;;  %1539 = vmatpush3.bf16.msra.mxu1 %v1541_v1  ;;  %v224_v23 = vadd.f32 %v1593_v9, %v153_v15  ;;  %v1350_v52 = vunpack.c.h.bf16 %v1420_v35  ;;  %v1422_v13 = vld [vmem:[%s2096_s0 + $0xa0] sm:$0xff]  }
   0x8   :  { %v225_v24 = vadd.f32 %v1593_v9, %v154_v16  ;;  %v226_v29 = vadd.f32 %v1593_v9, %v155_v21  ;;  %v227_v30 = vadd.f32 %v1593_v9, %v156_v22  ;;  %v258_v34 = vadd.f32 %v1593_v9, %v187_v25  ;;  %v1407_v22 = vld [vmem:[%s2096_s0 + $0x28] sm:$0xff]  }
   0x9   :  { %v256_v27 = vadd.f32 %v1593_v9, %v185_v19  ;;  %v257_v28 = vadd.f32 %v1593_v9, %v186_v20  ;;  %v288_v31 = vmax.f32 %v224_v23, 0.0  ;;  %v259_v42 = vadd.f32 %v1593_v9, %v188_v33 }
   0xa   :  { %v289_v32 = vmax.f32 %v225_v24, 0.0  ;;  %v290_v38 = vmax.f32 %v226_v29, 0.0  ;;  %v291_v39 = vmax.f32 %v227_v30, 0.0  ;;  %v322_v43 = vmax.f32 %v258_v34, 0.0 }
   0xb   :  { %v320_v36 = vmax.f32 %v256_v27, 0.0  ;;  %v321_v37 = vmax.f32 %v257_v28, 0.0  ;;  %v323_v50 = vmax.f32 %v259_v42, 0.0  ;;  %v158_v51 = vmul.f32 %v1286_v44, %v1579_v3  ;;  %v1423_v27 = vld [vmem:[%s2096_s0 + $0xa8] sm:$0xff]  }
   0xc   :  { %v352_v41 = vpack.c.bf16 %v289_v32, %v288_v31  ;;  %v353_v47 = vpack.c.bf16 %v291_v39, %v290_v38  ;;  %v1289_v53 = vunpack.c.l.bf16 %v1405_v40  ;;  %v228_v54 = vadd.f32 %v1593_v9, %v157_v48 }
   0xd   :  { %v368_v46 = vpack.c.bf16 %v321_v37, %v320_v36  ;;  %v189_v55 = vmul.f32 %v1349_v49, %v1579_v3  ;;  %v1290_v56 = vunpack.c.h.bf16 %v1405_v40  ;;  %v1353_v57 = vunpack.c.l.bf16 %v1421_v45  ;;  %v1408_v36 = vld [vmem:[%s2096_s0 + $0x30] sm:$0xff]  }
   0xe   :  { %1472 = vmatprep.mubr.msk.bf16.mxu0 %vm400_vm0, %v352_v41  ;;  %v369_v58 = vpack.c.bf16 %v323_v50, %v322_v43  ;;  %v229_v59 = vadd.f32 %v1593_v9, %v158_v51  ;;  %v190_v60 = vmul.f32 %v1350_v52, %v1579_v3  ;;  %v159_v61 = vmul.f32 %v1289_v53, %v1579_v3  ;;  %v1424_v53 = vld [vmem:[%s2096_s0 + $0xb0] sm:$0xff]  }
   0xf   :  { %1504 = vmatprep.mubr.msk.bf16.mxu1 %vm400_vm0, %v368_v46  ;;  %1473 = vmatmul.mubr.msk.bf16.vlgmr.msra.gmra.mrb[0].mxu0 %vm400_vm0, %v353_v47  ;;  %v292_v63 = vmax.f32 %v228_v54, 0.0  ;;  %v260_v0 = vadd.f32 %v1593_v9, %v189_v55  ;;  %v160_v1 = vmul.f32 %v1290_v56, %v1579_v3  ;;  %v1354_v2 = vunpack.c.h.bf16 %v1421_v45 }
  0x10   :  { %1505 = vmatmul.mubr.msk.bf16.vlgmr.msra.gmra.mrb[0].mxu1 %vm400_vm0, %v369_v58  ;;  %v293_v4 = vmax.f32 %v229_v59, 0.0  ;;  %v261_v5 = vadd.f32 %v1593_v9, %v190_v60  ;;  %v230_v6 = vadd.f32 %v1593_v9, %v159_v61  ;;  %v191_v7 = vmul.f32 %v1353_v57, %v1579_v3  ;;  %v1409_v58 = vld [vmem:[%s2096_s0 + $0x38] sm:$0xff]  }
  0x11   :  { %v324_v8 = vmax.f32 %v260_v0, 0.0  ;;  %v231_v10 = vadd.f32 %v1593_v9, %v160_v1  ;;  %v192_v11 = vmul.f32 %v1354_v2, %v1579_v3  ;;  %v1293_v12 = vunpack.c.l.bf16 %v1406_v62 }
  0x12   :  { %v354_v14 = vpack.c.bf16 %v293_v4, %v292_v63  ;;  %v325_v15 = vmax.f32 %v261_v5, 0.0  ;;  %v294_v16 = vmax.f32 %v230_v6, 0.0  ;;  %v262_v17 = vadd.f32 %v1593_v9, %v191_v7  ;;  %v1425_v4 = vld [vmem:[%s2096_s0 + $0xb8] sm:$0xff]  }
  0x13   :  { %v295_v18 = vmax.f32 %v231_v10, 0.0  ;;  %v263_v19 = vadd.f32 %v1593_v9, %v192_v11  ;;  %v1294_v20 = vunpack.c.h.bf16 %v1406_v62  ;;  %v161_v21 = vmul.f32 %v1293_v12, %v1579_v3 }
  0x14   :  { %1476 = vmatprep.mubr.msk.bf16.mxu0 %vm400_vm0, %v354_v14  ;;  %v370_v23 = vpack.c.bf16 %v325_v15, %v324_v8  ;;  %v326_v24 = vmax.f32 %v262_v17, 0.0  ;;  %v1357_v25 = vunpack.c.l.bf16 %v1422_v13  ;;  %v1358_v26 = vunpack.c.h.bf16 %v1422_v13 }
  0x15   :  { %v355_v28 = vpack.c.bf16 %v295_v18, %v294_v16  ;;  %v327_v29 = vmax.f32 %v263_v19, 0.0  ;;  %v162_v30 = vmul.f32 %v1294_v20, %v1579_v3  ;;  %v232_v31 = vadd.f32 %v1593_v9, %v161_v21  ;;  %v1410_v18 = vld [vmem:[%s2096_s0 + $0x40] sm:$0xff]  }
  0x16   :  { %1508 = vmatprep.mubr.msk.bf16.mxu1 %vm400_vm0, %v370_v23  ;;  %v193_v32 = vmul.f32 %v1357_v25, %v1579_v3  ;;  %v194_v33 = vmul.f32 %v1358_v26, %v1579_v3  ;;  %v1297_v34 = vunpack.c.l.bf16 %v1407_v22  ;;  %v1298_v35 = vunpack.c.h.bf16 %v1407_v22 }
  0x17   :  { %1477 = vmatmul.mubr.msk.bf16.gmra.mrb[4].mxu0 %vm400_vm0, %v355_v28  ;;  %v371_v37 = vpack.c.bf16 %v327_v29, %v326_v24  ;;  %v233_v38 = vadd.f32 %v1593_v9, %v162_v30  ;;  %v296_v39 = vmax.f32 %v232_v31, 0.0  ;;  %v1361_v40 = vunpack.c.l.bf16 %v1423_v27 }
  0x18   :  { %v264_v41 = vadd.f32 %v1593_v9, %v193_v32  ;;  %v265_v42 = vadd.f32 %v1593_v9, %v194_v33  ;;  %v163_v43 = vmul.f32 %v1297_v34, %v1579_v3  ;;  %v164_v44 = vmul.f32 %v1298_v35, %v1579_v3 }
  0x19   :  { %1509 = vmatmul.mubr.msk.bf16.gmra.mrb[4].mxu1 %vm400_vm0, %v371_v37  ;;  %v297_v45 = vmax.f32 %v233_v38, 0.0  ;;  %v1362_v46 = vunpack.c.h.bf16 %v1423_v27  ;;  %v195_v47 = vmul.f32 %v1361_v40, %v1579_v3  ;;  %v1301_v48 = vunpack.c.l.bf16 %v1408_v36  ;;  %v1426_v27 = vld [vmem:[%s2096_s0 + $0xc0] sm:$0xff]   ;;  %v1411_v40 = vld [vmem:[%s2096_s0 + $0x48] sm:$0xff]  }
  0x1a   :  { %v328_v49 = vmax.f32 %v264_v41, 0.0  ;;  %v329_v50 = vmax.f32 %v265_v42, 0.0  ;;  %v234_v51 = vadd.f32 %v1593_v9, %v163_v43  ;;  %v235_v52 = vadd.f32 %v1593_v9, %v164_v44 }
  0x1b   :  { %v356_v54 = vpack.c.bf16 %v297_v45, %v296_v39  ;;  %v196_v55 = vmul.f32 %v1362_v46, %v1579_v3  ;;  %v266_v56 = vadd.f32 %v1593_v9, %v195_v47  ;;  %v1302_v57 = vunpack.c.h.bf16 %v1408_v36  ;;  %v1427_v45 = vld [vmem:[%s2096_s0 + $0xc8] sm:$0xff]  }
  0x1c   :  { %v372_v59 = vpack.c.bf16 %v329_v50, %v328_v49  ;;  %v298_v60 = vmax.f32 %v234_v51, 0.0  ;;  %v299_v61 = vmax.f32 %v235_v52, 0.0  ;;  %v165_v62 = vmul.f32 %v1301_v48, %v1579_v3 }
  0x1d   :  { %1480 = vmatprep.mubr.msk.bf16.mxu0 %vm400_vm0, %v356_v54  ;;  %v267_v63 = vadd.f32 %v1593_v9, %v196_v55  ;;  %v330_v0 = vmax.f32 %v266_v56, 0.0  ;;  %v166_v1 = vmul.f32 %v1302_v57, %v1579_v3  ;;  %v1365_v2 = vunpack.c.l.bf16 %v1424_v53 }
  0x1e   :  { %1512 = vmatprep.mubr.msk.bf16.mxu1 %vm400_vm0, %v372_v59  ;;  %v357_v5 = vpack.c.bf16 %v299_v61, %v298_v60  ;;  %v236_v6 = vadd.f32 %v1593_v9, %v165_v62  ;;  %v1366_v7 = vunpack.c.h.bf16 %v1424_v53  ;;  %v1305_v8 = vunpack.c.l.bf16 %v1409_v58 }
  0x1f   :  { %v331_v10 = vmax.f32 %v267_v63, 0.0  ;;  %v237_v11 = vadd.f32 %v1593_v9, %v166_v1  ;;  %v197_v12 = vmul.f32 %v1365_v2, %v1579_v3  ;;  %v1306_v13 = vunpack.c.h.bf16 %v1409_v58  ;;  %v1412_v58 = vld [vmem:[%s2096_s0 + $0x50] sm:$0xff]  }
  0x20   :  { %1481 = vmatmul.mubr.msk.bf16.gmra.mrb[8].mxu0 %vm400_vm0, %v357_v5  ;;  %v300_v14 = vmax.f32 %v236_v6, 0.0  ;;  %v198_v15 = vmul.f32 %v1366_v7, %v1579_v3  ;;  %v167_v16 = vmul.f32 %v1305_v8, %v1579_v3  ;;  %v1369_v17 = vunpack.c.l.bf16 %v1425_v4  ;;  %v1428_v8 = vld [vmem:[%s2096_s0 + $0xd0] sm:$0xff]  }
  0x21   :  { %v373_v19 = vpack.c.bf16 %v331_v10, %v330_v0  ;;  %v301_v20 = vmax.f32 %v237_v11, 0.0  ;;  %v268_v21 = vadd.f32 %v1593_v9, %v197_v12  ;;  %v168_v22 = vmul.f32 %v1306_v13, %v1579_v3 }
  0x22   :  { %v269_v23 = vadd.f32 %v1593_v9, %v198_v15  ;;  %v238_v24 = vadd.f32 %v1593_v9, %v167_v16  ;;  %v1370_v25 = vunpack.c.h.bf16 %v1425_v4  ;;  %v199_v26 = vmul.f32 %v1369_v17, %v1579_v3 }
  0x23   :  { %1513 = vmatmul.mubr.msk.bf16.gmra.mrb[8].mxu1 %vm400_vm0, %v373_v19  ;;  %v358_v28 = vpack.c.bf16 %v301_v20, %v300_v14  ;;  %v332_v29 = vmax.f32 %v268_v21, 0.0  ;;  %v239_v30 = vadd.f32 %v1593_v9, %v168_v22  ;;  %v1309_v31 = vunpack.c.l.bf16 %v1410_v18  ;;  %v1413_v14 = vld [vmem:[%s2096_s0 + $0x58] sm:$0xff]  }
  0x24   :  { %v333_v32 = vmax.f32 %v269_v23, 0.0  ;;  %v302_v33 = vmax.f32 %v238_v24, 0.0  ;;  %v200_v34 = vmul.f32 %v1370_v25, %v1579_v3  ;;  %v270_v35 = vadd.f32 %v1593_v9, %v199_v26  ;;  %v1429_v23 = vld [vmem:[%s2096_s0 + $0xd8] sm:$0xff]  }
  0x25   :  { %1484 = vmatprep.mubr.msk.bf16.mxu0 %vm400_vm0, %v358_v28  ;;  %v303_v36 = vmax.f32 %v239_v30, 0.0  ;;  %v1310_v37 = vunpack.c.h.bf16 %v1410_v18  ;;  %v169_v38 = vmul.f32 %v1309_v31, %v1579_v3  ;;  %v1373_v39 = vunpack.c.l.bf16 %v1426_v27 }
  0x26   :  { %v374_v41 = vpack.c.bf16 %v333_v32, %v332_v29  ;;  %v271_v42 = vadd.f32 %v1593_v9, %v200_v34  ;;  %v334_v43 = vmax.f32 %v270_v35, 0.0  ;;  %v1374_v44 = vunpack.c.h.bf16 %v1426_v27 }
  0x27   :  { %v359_v46 = vpack.c.bf16 %v303_v36, %v302_v33  ;;  %v170_v47 = vmul.f32 %v1310_v37, %v1579_v3  ;;  %v240_v48 = vadd.f32 %v1593_v9, %v169_v38  ;;  %v201_v49 = vmul.f32 %v1373_v39, %v1579_v3  ;;  %v1414_v36 = vld [vmem:[%s2096_s0 + $0x60] sm:$0xff]  }
  0x28   :  { %1516 = vmatprep.mubr.msk.bf16.mxu1 %vm400_vm0, %v374_v41  ;;  %v335_v50 = vmax.f32 %v271_v42, 0.0  ;;  %v202_v51 = vmul.f32 %v1374_v44, %v1579_v3  ;;  %v1313_v52 = vunpack.c.l.bf16 %v1411_v40  ;;  %v1314_v53 = vunpack.c.h.bf16 %v1411_v40 }
  0x29   :  { %1485 = vmatmul.mubr.msk.bf16.gmra.mrb[12].mxu0 %vm400_vm0, %v359_v46  ;;  %v241_v54 = vadd.f32 %v1593_v9, %v170_v47  ;;  %v304_v55 = vmax.f32 %v240_v48, 0.0  ;;  %v272_v56 = vadd.f32 %v1593_v9, %v201_v49  ;;  %v1377_v57 = vunpack.c.l.bf16 %v1427_v45 }
  0x2a   :  { %v375_v59 = vpack.c.bf16 %v335_v50, %v334_v43  ;;  %v273_v60 = vadd.f32 %v1593_v9, %v202_v51  ;;  %v171_v61 = vmul.f32 %v1313_v52, %v1579_v3  ;;  %v172_v62 = vmul.f32 %v1314_v53, %v1579_v3 }
  0x2b   :  { %v305_v63 = vmax.f32 %v241_v54, 0.0  ;;  %v336_v0 = vmax.f32 %v272_v56, 0.0  ;;  %v1378_v1 = vunpack.c.h.bf16 %v1427_v45  ;;  %v203_v2 = vmul.f32 %v1377_v57, %v1579_v3  ;;  %v1430_v45 = vld [vmem:[%s2096_s0 + $0xe0] sm:$0xff]  }
  0x2c   :  { %1517 = vmatmul.mubr.msk.bf16.gmra.mrb[12].mxu1 %vm400_vm0, %v375_v59  ;;  %v337_v4 = vmax.f32 %v273_v60, 0.0  ;;  %v242_v5 = vadd.f32 %v1593_v9, %v171_v61  ;;  %v243_v6 = vadd.f32 %v1593_v9, %v172_v62  ;;  %v1317_v7 = vunpack.c.l.bf16 %v1412_v58 }
  0x2d   :  { %v360_v10 = vpack.c.bf16 %v305_v63, %v304_v55  ;;  %v204_v11 = vmul.f32 %v1378_v1, %v1579_v3  ;;  %v274_v12 = vadd.f32 %v1593_v9, %v203_v2  ;;  %v1318_v13 = vunpack.c.h.bf16 %v1412_v58  ;;  %v1415_v58 = vld [vmem:[%s2096_s0 + $0x68] sm:$0xff]  }
  0x2e   :  { %v376_v15 = vpack.c.bf16 %v337_v4, %v336_v0  ;;  %v306_v16 = vmax.f32 %v242_v5, 0.0  ;;  %v307_v17 = vmax.f32 %v243_v6, 0.0  ;;  %v173_v18 = vmul.f32 %v1317_v7, %v1579_v3  ;;  %v1431_v63 = vld [vmem:[%s2096_s0 + $0xe8] sm:$0xff]  }
  0x2f   :  { %1488 = vmatprep.mubr.msk.bf16.mxu0 %vm400_vm0, %v360_v10  ;;  %v275_v19 = vadd.f32 %v1593_v9, %v204_v11  ;;  %v338_v20 = vmax.f32 %v274_v12, 0.0  ;;  %v174_v21 = vmul.f32 %v1318_v13, %v1579_v3  ;;  %v1381_v22 = vunpack.c.l.bf16 %v1428_v8 }
  0x30   :  { %1520 = vmatprep.mubr.msk.bf16.mxu1 %vm400_vm0, %v376_v15  ;;  %v361_v24 = vpack.c.bf16 %v307_v17, %v306_v16  ;;  %v244_v25 = vadd.f32 %v1593_v9, %v173_v18  ;;  %v1382_v26 = vunpack.c.h.bf16 %v1428_v8  ;;  %v1321_v27 = vunpack.c.l.bf16 %v1413_v14 }
  0x31   :  { %v339_v28 = vmax.f32 %v275_v19, 0.0  ;;  %v245_v29 = vadd.f32 %v1593_v9, %v174_v21  ;;  %v205_v30 = vmul.f32 %v1381_v22, %v1579_v3  ;;  %v1322_v31 = vunpack.c.h.bf16 %v1413_v14  ;;  %v1416_v14 = vld [vmem:[%s2096_s0 + $0x70] sm:$0xff]  }
  0x32   :  { %1489 = vmatmul.mubr.msk.bf16.gmra.mrb[16].mxu0 %vm400_vm0, %v361_v24  ;;  %v308_v32 = vmax.f32 %v244_v25, 0.0  ;;  %v206_v33 = vmul.f32 %v1382_v26, %v1579_v3  ;;  %v175_v34 = vmul.f32 %v1321_v27, %v1579_v3  ;;  %v1385_v35 = vunpack.c.l.bf16 %v1429_v23  ;;  %v1432_v27 = vld [vmem:[%s2096_s0 + $0xf0] sm:$0xff]  }
  0x33   :  { %v377_v37 = vpack.c.bf16 %v339_v28, %v338_v20  ;;  %v309_v38 = vmax.f32 %v245_v29, 0.0  ;;  %v276_v39 = vadd.f32 %v1593_v9, %v205_v30  ;;  %v176_v40 = vmul.f32 %v1322_v31, %v1579_v3 }
  0x34   :  { %v277_v41 = vadd.f32 %v1593_v9, %v206_v33  ;;  %v246_v42 = vadd.f32 %v1593_v9, %v175_v34  ;;  %v1386_v43 = vunpack.c.h.bf16 %v1429_v23  ;;  %v207_v44 = vmul.f32 %v1385_v35, %v1579_v3 }
  0x35   :  { %1521 = vmatmul.mubr.msk.bf16.gmra.mrb[16].mxu1 %vm400_vm0, %v377_v37  ;;  %v362_v46 = vpack.c.bf16 %v309_v38, %v308_v32  ;;  %v340_v47 = vmax.f32 %v276_v39, 0.0  ;;  %v247_v48 = vadd.f32 %v1593_v9, %v176_v40  ;;  %v1325_v49 = vunpack.c.l.bf16 %v1414_v36  ;;  %v1417_v32 = vld [vmem:[%s2096_s0 + $0x78] sm:$0xff]  }
  0x36   :  { %v341_v50 = vmax.f32 %v277_v41, 0.0  ;;  %v310_v51 = vmax.f32 %v246_v42, 0.0  ;;  %v208_v52 = vmul.f32 %v1386_v43, %v1579_v3  ;;  %v278_v53 = vadd.f32 %v1593_v9, %v207_v44  ;;  %v1433_v41 = vld [vmem:[%s2096_s0 + $0xf8] sm:$0xff]  }
  0x37   :  { %1492 = vmatprep.mubr.msk.bf16.mxu0 %vm400_vm0, %v362_v46  ;;  %v311_v54 = vmax.f32 %v247_v48, 0.0  ;;  %v1326_v55 = vunpack.c.h.bf16 %v1414_v36  ;;  %v177_v56 = vmul.f32 %v1325_v49, %v1579_v3  ;;  %v1389_v57 = vunpack.c.l.bf16 %v1430_v45 }
  0x38   :  { %v378_v59 = vpack.c.bf16 %v341_v50, %v340_v47  ;;  %v279_v60 = vadd.f32 %v1593_v9, %v208_v52  ;;  %v342_v61 = vmax.f32 %v278_v53, 0.0  ;;  %v1390_v62 = vunpack.c.h.bf16 %v1430_v45 }
  0x39   :  { %v363_v0 = vpack.c.bf16 %v311_v54, %v310_v51  ;;  %v178_v1 = vmul.f32 %v1326_v55, %v1579_v3  ;;  %v248_v2 = vadd.f32 %v1593_v9, %v177_v56  ;;  %v209_v4 = vmul.f32 %v1389_v57, %v1579_v3 }
  0x3a   :  { %1524 = vmatprep.mubr.msk.bf16.mxu1 %vm400_vm0, %v378_v59  ;;  %v343_v5 = vmax.f32 %v279_v60, 0.0  ;;  %v210_v6 = vmul.f32 %v1390_v62, %v1579_v3  ;;  %v1329_v7 = vunpack.c.l.bf16 %v1415_v58  ;;  %v1330_v8 = vunpack.c.h.bf16 %v1415_v58 }
  0x3b   :  { %1493 = vmatmul.mubr.msk.bf16.gmra.mrb[20].mxu0 %vm400_vm0, %v363_v0  ;;  %v249_v10 = vadd.f32 %v1593_v9, %v178_v1  ;;  %v312_v11 = vmax.f32 %v248_v2, 0.0  ;;  %v280_v12 = vadd.f32 %v1593_v9, %v209_v4  ;;  %v1393_v13 = vunpack.c.l.bf16 %v1431_v63 }
  0x3c   :  { %v379_v15 = vpack.c.bf16 %v343_v5, %v342_v61  ;;  %v281_v16 = vadd.f32 %v1593_v9, %v210_v6  ;;  %v179_v17 = vmul.f32 %v1329_v7, %v1579_v3  ;;  %v180_v18 = vmul.f32 %v1330_v8, %v1579_v3 }
  0x3d   :  { %v313_v19 = vmax.f32 %v249_v10, 0.0  ;;  %v344_v20 = vmax.f32 %v280_v12, 0.0  ;;  %v1394_v21 = vunpack.c.h.bf16 %v1431_v63  ;;  %v211_v22 = vmul.f32 %v1393_v13, %v1579_v3 }
  0x3e   :  { %1525 = vmatmul.mubr.msk.bf16.gmra.mrb[20].mxu1 %vm400_vm0, %v379_v15  ;;  %v345_v23 = vmax.f32 %v281_v16, 0.0  ;;  %v250_v24 = vadd.f32 %v1593_v9, %v179_v17  ;;  %v251_v25 = vadd.f32 %v1593_v9, %v180_v18  ;;  %v1333_v26 = vunpack.c.l.bf16 %v1416_v14 }
  0x3f   :  { %v364_v28 = vpack.c.bf16 %v313_v19, %v312_v11  ;;  %v212_v29 = vmul.f32 %v1394_v21, %v1579_v3  ;;  %v282_v30 = vadd.f32 %v1593_v9, %v211_v22  ;;  %v1334_v31 = vunpack.c.h.bf16 %v1416_v14 }
  0x40   :  { %v380_v33 = vpack.c.bf16 %v345_v23, %v344_v20  ;;  %v314_v34 = vmax.f32 %v250_v24, 0.0  ;;  %v315_v35 = vmax.f32 %v251_v25, 0.0  ;;  %v181_v36 = vmul.f32 %v1333_v26, %v1579_v3 }
  0x41   :  { %1496 = vmatprep.mubr.msk.bf16.mxu0 %vm400_vm0, %v364_v28  ;;  %v283_v37 = vadd.f32 %v1593_v9, %v212_v29  ;;  %v346_v38 = vmax.f32 %v282_v30, 0.0  ;;  %v182_v39 = vmul.f32 %v1334_v31, %v1579_v3  ;;  %v1397_v40 = vunpack.c.l.bf16 %v1432_v27 }
  0x42   :  { %1528 = vmatprep.mubr.msk.bf16.mxu1 %vm400_vm0, %v380_v33  ;;  %v365_v42 = vpack.c.bf16 %v315_v35, %v314_v34  ;;  %v252_v43 = vadd.f32 %v1593_v9, %v181_v36  ;;  %v1398_v44 = vunpack.c.h.bf16 %v1432_v27  ;;  %v1337_v45 = vunpack.c.l.bf16 %v1417_v32 }
  0x43   :  { %v347_v46 = vmax.f32 %v283_v37, 0.0  ;;  %v253_v47 = vadd.f32 %v1593_v9, %v182_v39  ;;  %v213_v48 = vmul.f32 %v1397_v40, %v1579_v3  ;;  %v1338_v49 = vunpack.c.h.bf16 %v1417_v32 }
  0x44   :  { %1497 = vmatmul.mubr.msk.bf16.gmra.mrb[24].mxu0 %vm400_vm0, %v365_v42  ;;  %v316_v50 = vmax.f32 %v252_v43, 0.0  ;;  %v214_v51 = vmul.f32 %v1398_v44, %v1579_v3  ;;  %v183_v52 = vmul.f32 %v1337_v45, %v1579_v3  ;;  %v1401_v53 = vunpack.c.l.bf16 %v1433_v41 }
  0x45   :  { %v381_v54 = vpack.c.bf16 %v347_v46, %v346_v38  ;;  %v317_v55 = vmax.f32 %v253_v47, 0.0  ;;  %v284_v56 = vadd.f32 %v1593_v9, %v213_v48  ;;  %v184_v57 = vmul.f32 %v1338_v49, %v1579_v3 }
  0x46   :  { %v285_v58 = vadd.f32 %v1593_v9, %v214_v51  ;;  %v254_v59 = vadd.f32 %v1593_v9, %v183_v52  ;;  %v1402_v60 = vunpack.c.h.bf16 %v1433_v41  ;;  %v215_v61 = vmul.f32 %v1401_v53, %v1579_v3 }
  0x47   :  { %1529 = vmatmul.mubr.msk.bf16.gmra.mrb[24].mxu1 %vm400_vm0, %v381_v54  ;;  %v366_v62 = vpack.c.bf16 %v317_v55, %v316_v50  ;;  %v348_v63 = vmax.f32 %v284_v56, 0.0  ;;  %v255_v0 = vadd.f32 %v1593_v9, %v184_v57 }
  0x48   :  { %v349_v1 = vmax.f32 %v285_v58, 0.0  ;;  %v318_v2 = vmax.f32 %v254_v59, 0.0  ;;  %v216_v4 = vmul.f32 %v1402_v60, %v1579_v3  ;;  %v286_v5 = vadd.f32 %v1593_v9, %v215_v61 }
  0x49   :  { %1500 = vmatprep.mubr.msk.bf16.mxu0 %vm400_vm0, %v366_v62  ;;  %v319_v6 = vmax.f32 %v255_v0, 0.0 }
  0x4a   :  { %v382_v7 = vpack.c.bf16 %v349_v1, %v348_v63  ;;  %v287_v8 = vadd.f32 %v1593_v9, %v216_v4  ;;  %v350_v10 = vmax.f32 %v286_v5, 0.0 }
  0x4b   :  { %v367_v11 = vpack.c.bf16 %v319_v6, %v318_v2 }
  0x4c   :  { %1532 = vmatprep.mubr.msk.bf16.mxu1 %vm400_vm0, %v382_v7  ;;  %v351_v12 = vmax.f32 %v287_v8, 0.0 }
  0x4d   :  { %1501 = vmatmul.mubr.msk.bf16.gmra.mrb[28].mxu0 %vm400_vm0, %v367_v11 }
  0x4e   :  { %v383_v13 = vpack.c.bf16 %v351_v12, %v350_v10 }
  0x50   :  { %1533 = vmatmul.mubr.msk.bf16.gmra.mrb[28].mxu1 %vm400_vm0, %v383_v13 }
  0xe2   :  { %v1474_v14 = vpop.f32.mrb[0].mxu0 }
  0xe3   :  { %v1213_v3 = vpack.c.bf16 %v1474_v14, %v1474_v14  ;;  %v531_v15 = vpop.f32.mrb[1].mxu0  ;;  %v1506_v9 = vpop.f32.mrb[0].mxu1 }
  0xe4   :  { %v1211_v16 = vpack.c.bf16 %v531_v15, %v531_v15  ;;  %v1475_v17 = vpop.f32.mrb[2].mxu0  ;;  %v1245_v20 = vpack.c.bf16 %v1506_v9, %v1506_v9  ;;  %v659_v21 = vpop.f32.mrb[1].mxu1 }
  0xe5   :  { %1045 = vst.msk [vmem:[%s2099_s4 + $0x8] sm:$0xf] %vm1042_vm1, %v1213_v3  ;;  %v1214_v18 = vpack.c.bf16 %v1475_v17, %v1475_v17  ;;  %v534_v19 = vpop.f32.mrb[3].mxu0  ;;  %v1243_v23 = vpack.c.bf16 %v659_v21, %v659_v21  ;;  %v1507_v24 = vpop.f32.mrb[2].mxu1 }
  0xe6   :  { %1043 = vst.msk [vmem:[%s2099_s4] sm:$0xf] %vm1042_vm1, %v1211_v16  ;;  %v1212_v22 = vpack.c.bf16 %v534_v19, %v534_v19  ;;  %1077 = vst.msk [vmem:[%s2099_s4 + $0x88] sm:$0xf] %vm1042_vm1, %v1245_v20  ;;  %v1246_v25 = vpack.c.bf16 %v1507_v24, %v1507_v24  ;;  %v662_v26 = vpop.f32.mrb[3].mxu1 }
  0xe7   :  { %1046 = vst.msk [vmem:[%s2099_s4 + $0xc] sm:$0xf] %vm1042_vm1, %v1214_v18  ;;  %1075 = vst.msk [vmem:[%s2099_s4 + $0x80] sm:$0xf] %vm1042_vm1, %v1243_v23  ;;  %v1244_v27 = vpack.c.bf16 %v662_v26, %v662_v26 }
  0xe8   :  { %1044 = vst.msk [vmem:[%s2099_s4 + $0x4] sm:$0xf] %vm1042_vm1, %v1212_v22  ;;  %1078 = vst.msk [vmem:[%s2099_s4 + $0x8c] sm:$0xf] %vm1042_vm1, %v1246_v25 }
  0xe9   :  { %1076 = vst.msk [vmem:[%s2099_s4 + $0x84] sm:$0xf] %vm1042_vm1, %v1244_v27 }
  0xea   :  { %v1478_v28 = vpop.f32.mrb[4].mxu0 }
  0xeb   :  { %v1217_v29 = vpack.c.bf16 %v1478_v28, %v1478_v28  ;;  %v547_v30 = vpop.f32.mrb[5].mxu0 }
  0xec   :  { %v1510_v31 = vpop.f32.mrb[4].mxu1  ;;  %v1215_v32 = vpack.c.bf16 %v547_v30, %v547_v30  ;;  %v1479_v33 = vpop.f32.mrb[6].mxu0 }
  0xed   :  { %1049 = vst.msk [vmem:[%s2099_s4 + $0x18] sm:$0xf] %vm1042_vm1, %v1217_v29  ;;  %v1249_v34 = vpack.c.bf16 %v1510_v31, %v1510_v31  ;;  %v675_v35 = vpop.f32.mrb[5].mxu1  ;;  %v1218_v36 = vpack.c.bf16 %v1479_v33, %v1479_v33  ;;  %v550_v37 = vpop.f32.mrb[7].mxu0 }
  0xee   :  { %1047 = vst.msk [vmem:[%s2099_s4 + $0x10] sm:$0xf] %vm1042_vm1, %v1215_v32  ;;  %v1247_v38 = vpack.c.bf16 %v675_v35, %v675_v35  ;;  %v1511_v39 = vpop.f32.mrb[6].mxu1  ;;  %v1216_v40 = vpack.c.bf16 %v550_v37, %v550_v37 }
  0xef   :  { %1081 = vst.msk [vmem:[%s2099_s4 + $0x98] sm:$0xf] %vm1042_vm1, %v1249_v34  ;;  %1050 = vst.msk [vmem:[%s2099_s4 + $0x1c] sm:$0xf] %vm1042_vm1, %v1218_v36  ;;  %v1250_v41 = vpack.c.bf16 %v1511_v39, %v1511_v39  ;;  %v678_v42 = vpop.f32.mrb[7].mxu1 }
  0xf0   :  { %1079 = vst.msk [vmem:[%s2099_s4 + $0x90] sm:$0xf] %vm1042_vm1, %v1247_v38  ;;  %1048 = vst.msk [vmem:[%s2099_s4 + $0x14] sm:$0xf] %vm1042_vm1, %v1216_v40  ;;  %v1248_v43 = vpack.c.bf16 %v678_v42, %v678_v42 }
  0xf1   :  { %1082 = vst.msk [vmem:[%s2099_s4 + $0x9c] sm:$0xf] %vm1042_vm1, %v1250_v41 }
  0xf2   :  { %1080 = vst.msk [vmem:[%s2099_s4 + $0x94] sm:$0xf] %vm1042_vm1, %v1248_v43 }
  0xf3   :  { %v1482_v44 = vpop.f32.mrb[8].mxu0 }
  0xf4   :  { %v1221_v45 = vpack.c.bf16 %v1482_v44, %v1482_v44  ;;  %v563_v46 = vpop.f32.mrb[9].mxu0 }
  0xf5   :  { %v1219_v47 = vpack.c.bf16 %v563_v46, %v563_v46  ;;  %v1483_v48 = vpop.f32.mrb[10].mxu0 }
  0xf6   :  { %1053 = vst.msk [vmem:[%s2099_s4 + $0x28] sm:$0xf] %vm1042_vm1, %v1221_v45  ;;  %v1514_v49 = vpop.f32.mrb[8].mxu1  ;;  %v1222_v50 = vpack.c.bf16 %v1483_v48, %v1483_v48  ;;  %v566_v51 = vpop.f32.mrb[11].mxu0 }
  0xf7   :  { %v1253_v52 = vpack.c.bf16 %v1514_v49, %v1514_v49  ;;  %1051 = vst.msk [vmem:[%s2099_s4 + $0x20] sm:$0xf] %vm1042_vm1, %v1219_v47  ;;  %v691_v53 = vpop.f32.mrb[9].mxu1  ;;  %v1220_v54 = vpack.c.bf16 %v566_v51, %v566_v51 }
  0xf8   :  { %v1251_v55 = vpack.c.bf16 %v691_v53, %v691_v53  ;;  %1054 = vst.msk [vmem:[%s2099_s4 + $0x2c] sm:$0xf] %vm1042_vm1, %v1222_v50  ;;  %v1515_v56 = vpop.f32.mrb[10].mxu1 }
  0xf9   :  { %1085 = vst.msk [vmem:[%s2099_s4 + $0xa8] sm:$0xf] %vm1042_vm1, %v1253_v52  ;;  %v1254_v57 = vpack.c.bf16 %v1515_v56, %v1515_v56  ;;  %1052 = vst.msk [vmem:[%s2099_s4 + $0x24] sm:$0xf] %vm1042_vm1, %v1220_v54  ;;  %v694_v58 = vpop.f32.mrb[11].mxu1 }
  0xfa   :  { %1083 = vst.msk [vmem:[%s2099_s4 + $0xa0] sm:$0xf] %vm1042_vm1, %v1251_v55  ;;  %v1252_v59 = vpack.c.bf16 %v694_v58, %v694_v58 }
  0xfb   :  { %1086 = vst.msk [vmem:[%s2099_s4 + $0xac] sm:$0xf] %vm1042_vm1, %v1254_v57 }
  0xfc   :  { %1084 = vst.msk [vmem:[%s2099_s4 + $0xa4] sm:$0xf] %vm1042_vm1, %v1252_v59  ;;  %v1486_v60 = vpop.f32.mrb[12].mxu0 }
  0xfd   :  { %v1225_v61 = vpack.c.bf16 %v1486_v60, %v1486_v60  ;;  %v579_v62 = vpop.f32.mrb[13].mxu0 }
  0xfe   :  { %v1223_v63 = vpack.c.bf16 %v579_v62, %v579_v62  ;;  %v1487_v0 = vpop.f32.mrb[14].mxu0 }
  0xff   :  { %1057 = vst.msk [vmem:[%s2099_s4 + $0x38] sm:$0xf] %vm1042_vm1, %v1225_v61  ;;  %v1518_v1 = vpop.f32.mrb[12].mxu1  ;;  %v1226_v2 = vpack.c.bf16 %v1487_v0, %v1487_v0  ;;  %v582_v4 = vpop.f32.mrb[15].mxu0 }
 0x100   :  { %v1257_v5 = vpack.c.bf16 %v1518_v1, %v1518_v1  ;;  %1055 = vst.msk [vmem:[%s2099_s4 + $0x30] sm:$0xf] %vm1042_vm1, %v1223_v63  ;;  %v707_v6 = vpop.f32.mrb[13].mxu1  ;;  %v1224_v7 = vpack.c.bf16 %v582_v4, %v582_v4 }
 0x101   :  { %v1255_v8 = vpack.c.bf16 %v707_v6, %v707_v6  ;;  %1058 = vst.msk [vmem:[%s2099_s4 + $0x3c] sm:$0xf] %vm1042_vm1, %v1226_v2  ;;  %v1519_v10 = vpop.f32.mrb[14].mxu1 }
 0x102   :  { %1089 = vst.msk [vmem:[%s2099_s4 + $0xb8] sm:$0xf] %vm1042_vm1, %v1257_v5  ;;  %v1258_v11 = vpack.c.bf16 %v1519_v10, %v1519_v10  ;;  %1056 = vst.msk [vmem:[%s2099_s4 + $0x34] sm:$0xf] %vm1042_vm1, %v1224_v7  ;;  %v710_v12 = vpop.f32.mrb[15].mxu1 }
 0x103   :  { %1087 = vst.msk [vmem:[%s2099_s4 + $0xb0] sm:$0xf] %vm1042_vm1, %v1255_v8  ;;  %v1256_v13 = vpack.c.bf16 %v710_v12, %v710_v12 }
 0x104   :  { %1090 = vst.msk [vmem:[%s2099_s4 + $0xbc] sm:$0xf] %vm1042_vm1, %v1258_v11 }
 0x105   :  { %1088 = vst.msk [vmem:[%s2099_s4 + $0xb4] sm:$0xf] %vm1042_vm1, %v1256_v13  ;;  %v1490_v14 = vpop.f32.mrb[16].mxu0 }
 0x106   :  { %v1229_v3 = vpack.c.bf16 %v1490_v14, %v1490_v14  ;;  %v595_v15 = vpop.f32.mrb[17].mxu0 }
 0x107   :  { %v1227_v16 = vpack.c.bf16 %v595_v15, %v595_v15  ;;  %v1491_v17 = vpop.f32.mrb[18].mxu0 }
 0x108   :  { %1061 = vst.msk [vmem:[%s2099_s4 + $0x48] sm:$0xf] %vm1042_vm1, %v1229_v3  ;;  %v1522_v9 = vpop.f32.mrb[16].mxu1  ;;  %v1230_v18 = vpack.c.bf16 %v1491_v17, %v1491_v17  ;;  %v598_v19 = vpop.f32.mrb[19].mxu0 }
 0x109   :  { %v1261_v20 = vpack.c.bf16 %v1522_v9, %v1522_v9  ;;  %1059 = vst.msk [vmem:[%s2099_s4 + $0x40] sm:$0xf] %vm1042_vm1, %v1227_v16  ;;  %v723_v21 = vpop.f32.mrb[17].mxu1  ;;  %v1228_v22 = vpack.c.bf16 %v598_v19, %v598_v19 }
 0x10a   :  { %v1259_v23 = vpack.c.bf16 %v723_v21, %v723_v21  ;;  %1062 = vst.msk [vmem:[%s2099_s4 + $0x4c] sm:$0xf] %vm1042_vm1, %v1230_v18  ;;  %v1523_v24 = vpop.f32.mrb[18].mxu1 }
 0x10b   :  { %1093 = vst.msk [vmem:[%s2099_s4 + $0xc8] sm:$0xf] %vm1042_vm1, %v1261_v20  ;;  %v1262_v25 = vpack.c.bf16 %v1523_v24, %v1523_v24  ;;  %1060 = vst.msk [vmem:[%s2099_s4 + $0x44] sm:$0xf] %vm1042_vm1, %v1228_v22  ;;  %v726_v26 = vpop.f32.mrb[19].mxu1 }
 0x10c   :  { %1091 = vst.msk [vmem:[%s2099_s4 + $0xc0] sm:$0xf] %vm1042_vm1, %v1259_v23  ;;  %v1260_v27 = vpack.c.bf16 %v726_v26, %v726_v26 }
 0x10d   :  { %1094 = vst.msk [vmem:[%s2099_s4 + $0xcc] sm:$0xf] %vm1042_vm1, %v1262_v25 }
 0x10e   :  { %1092 = vst.msk [vmem:[%s2099_s4 + $0xc4] sm:$0xf] %vm1042_vm1, %v1260_v27  ;;  %v1494_v28 = vpop.f32.mrb[20].mxu0 }
 0x10f   :  { %v1233_v29 = vpack.c.bf16 %v1494_v28, %v1494_v28  ;;  %v611_v30 = vpop.f32.mrb[21].mxu0 }
 0x110   :  { %v1231_v31 = vpack.c.bf16 %v611_v30, %v611_v30  ;;  %v1495_v32 = vpop.f32.mrb[22].mxu0 }
 0x111   :  { %1065 = vst.msk [vmem:[%s2099_s4 + $0x58] sm:$0xf] %vm1042_vm1, %v1233_v29  ;;  %v1526_v33 = vpop.f32.mrb[20].mxu1  ;;  %v1234_v34 = vpack.c.bf16 %v1495_v32, %v1495_v32  ;;  %v614_v35 = vpop.f32.mrb[23].mxu0 }
 0x112   :  { %v1265_v36 = vpack.c.bf16 %v1526_v33, %v1526_v33  ;;  %1063 = vst.msk [vmem:[%s2099_s4 + $0x50] sm:$0xf] %vm1042_vm1, %v1231_v31  ;;  %v739_v37 = vpop.f32.mrb[21].mxu1  ;;  %v1232_v38 = vpack.c.bf16 %v614_v35, %v614_v35 }
 0x113   :  { %v1263_v39 = vpack.c.bf16 %v739_v37, %v739_v37  ;;  %1066 = vst.msk [vmem:[%s2099_s4 + $0x5c] sm:$0xf] %vm1042_vm1, %v1234_v34  ;;  %v1527_v40 = vpop.f32.mrb[22].mxu1 }
 0x114   :  { %1097 = vst.msk [vmem:[%s2099_s4 + $0xd8] sm:$0xf] %vm1042_vm1, %v1265_v36  ;;  %v1266_v41 = vpack.c.bf16 %v1527_v40, %v1527_v40  ;;  %1064 = vst.msk [vmem:[%s2099_s4 + $0x54] sm:$0xf] %vm1042_vm1, %v1232_v38  ;;  %v742_v42 = vpop.f32.mrb[23].mxu1 }
 0x115   :  { %1095 = vst.msk [vmem:[%s2099_s4 + $0xd0] sm:$0xf] %vm1042_vm1, %v1263_v39  ;;  %v1264_v43 = vpack.c.bf16 %v742_v42, %v742_v42 }
 0x116   :  { %1098 = vst.msk [vmem:[%s2099_s4 + $0xdc] sm:$0xf] %vm1042_vm1, %v1266_v41 }
 0x117   :  { %1096 = vst.msk [vmem:[%s2099_s4 + $0xd4] sm:$0xf] %vm1042_vm1, %v1264_v43  ;;  %v1498_v44 = vpop.f32.mrb[24].mxu0 }
 0x118   :  { %v1237_v45 = vpack.c.bf16 %v1498_v44, %v1498_v44  ;;  %v627_v46 = vpop.f32.mrb[25].mxu0 }
 0x119   :  { %v1235_v47 = vpack.c.bf16 %v627_v46, %v627_v46  ;;  %v1499_v48 = vpop.f32.mrb[26].mxu0 }
 0x11a   :  { %1069 = vst.msk [vmem:[%s2099_s4 + $0x68] sm:$0xf] %vm1042_vm1, %v1237_v45  ;;  %v1530_v49 = vpop.f32.mrb[24].mxu1  ;;  %v1238_v50 = vpack.c.bf16 %v1499_v48, %v1499_v48  ;;  %v630_v51 = vpop.f32.mrb[27].mxu0 }
 0x11b   :  { %v1269_v52 = vpack.c.bf16 %v1530_v49, %v1530_v49  ;;  %1067 = vst.msk [vmem:[%s2099_s4 + $0x60] sm:$0xf] %vm1042_vm1, %v1235_v47  ;;  %v755_v53 = vpop.f32.mrb[25].mxu1  ;;  %v1236_v54 = vpack.c.bf16 %v630_v51, %v630_v51 }
 0x11c   :  { %v1267_v55 = vpack.c.bf16 %v755_v53, %v755_v53  ;;  %1070 = vst.msk [vmem:[%s2099_s4 + $0x6c] sm:$0xf] %vm1042_vm1, %v1238_v50  ;;  %v1531_v56 = vpop.f32.mrb[26].mxu1 }
 0x11d   :  { %1101 = vst.msk [vmem:[%s2099_s4 + $0xe8] sm:$0xf] %vm1042_vm1, %v1269_v52  ;;  %v1270_v57 = vpack.c.bf16 %v1531_v56, %v1531_v56  ;;  %1068 = vst.msk [vmem:[%s2099_s4 + $0x64] sm:$0xf] %vm1042_vm1, %v1236_v54  ;;  %v758_v58 = vpop.f32.mrb[27].mxu1 }
 0x11e   :  { %1099 = vst.msk [vmem:[%s2099_s4 + $0xe0] sm:$0xf] %vm1042_vm1, %v1267_v55  ;;  %v1268_v59 = vpack.c.bf16 %v758_v58, %v758_v58 }
 0x11f   :  { %1102 = vst.msk [vmem:[%s2099_s4 + $0xec] sm:$0xf] %vm1042_vm1, %v1270_v57 }
 0x120   :  { %1100 = vst.msk [vmem:[%s2099_s4 + $0xe4] sm:$0xf] %vm1042_vm1, %v1268_v59  ;;  %v1502_v60 = vpop.f32.mrb[28].mxu0 }
 0x121   :  { %v1241_v61 = vpack.c.bf16 %v1502_v60, %v1502_v60  ;;  %v643_v62 = vpop.f32.mrb[29].mxu0 }
 0x122   :  { %v1239_v63 = vpack.c.bf16 %v643_v62, %v643_v62  ;;  %v1503_v0 = vpop.f32.mrb[30].mxu0 }
 0x123   :  { %1073 = vst.msk [vmem:[%s2099_s4 + $0x78] sm:$0xf] %vm1042_vm1, %v1241_v61  ;;  %v1534_v1 = vpop.f32.mrb[28].mxu1  ;;  %v1242_v2 = vpack.c.bf16 %v1503_v0, %v1503_v0  ;;  %v646_v4 = vpop.f32.mrb[31].mxu0 }
 0x124   :  { %v1273_v5 = vpack.c.bf16 %v1534_v1, %v1534_v1  ;;  %1071 = vst.msk [vmem:[%s2099_s4 + $0x70] sm:$0xf] %vm1042_vm1, %v1239_v63  ;;  %v771_v6 = vpop.f32.mrb[29].mxu1  ;;  %v1240_v7 = vpack.c.bf16 %v646_v4, %v646_v4 }
 0x125   :  { %v1271_v8 = vpack.c.bf16 %v771_v6, %v771_v6  ;;  %1074 = vst.msk [vmem:[%s2099_s4 + $0x7c] sm:$0xf] %vm1042_vm1, %v1242_v2  ;;  %v1535_v10 = vpop.f32.mrb[30].mxu1 }
 0x126   :  { %1105 = vst.msk [vmem:[%s2099_s4 + $0xf8] sm:$0xf] %vm1042_vm1, %v1273_v5  ;;  %v1274_v11 = vpack.c.bf16 %v1535_v10, %v1535_v10  ;;  %1072 = vst.msk [vmem:[%s2099_s4 + $0x74] sm:$0xf] %vm1042_vm1, %v1240_v7  ;;  %v774_v12 = vpop.f32.mrb[31].mxu1 }
 0x127   :  { %1103 = vst.msk [vmem:[%s2099_s4 + $0xf0] sm:$0xf] %vm1042_vm1, %v1271_v8  ;;  %v1272_v13 = vpack.c.bf16 %v774_v12, %v774_v12 }
 0x128   :  { %1106 = vst.msk [vmem:[%s2099_s4 + $0xfc] sm:$0xf] %vm1042_vm1, %v1274_v11 }
 0x129   :  { %1104 = vst.msk [vmem:[%s2099_s4 + $0xf4] sm:$0xf] %vm1042_vm1, %v1272_v13 }

// kernel: densenet_forward.27
= control target key start
LH: loop header
LB: loop body
LE: loop exit
PB: predicated region body
PF: predicated region fallthrough
CT: control target
= control target key end

     0   :  { %vm138_vm0 = vcmask 130048   ;;  %vm340_vm1 = vcmask 257024   ;;  %s666_s1 = inlined_call_operand.vmem [shape: bf16[16,32], index: 1, kind: input, shape index: {}]   ;;  %s667_s0 = inlined_call_operand.vmem [shape: bf16[128,16], index: 0, kind: input, shape index: {}]   ;;  %s668_s2 = inlined_call_operand.vmem [shape: f32[1,16], index: 2, kind: input, shape index: {}]   ;;  %s669_s3 = inlined_call_operand.vmem [shape: f32[1,16], index: 3, kind: input, shape index: {}]   ;;  %s670_s4 = inlined_call_operand.vmem [shape: f32[1,32], index: 4, kind: input, shape index: {}]   ;;  %s671_s5 = inlined_call_operand.vmem [shape: bf16[128,32], index: 5, kind: output, shape index: {}]  }
   0x1   :  { %v473_v0 = vld [vmem:[%s666_s1] sm:$0xff]   ;;  %v437_v6 = vld [vmem:[%s667_s0 + $0x8] sm:$0xff]   ;;  %v438_v29 = vld [vmem:[%s667_s0 + $0x10] sm:$0xff]  }
   0x2   :  { %v406_v1 = vld [vmem:[%s667_s0] sm:$0xff]   ;;  %453 = vmatprep.subr.bf16.mxu0 %v473_v0  ;;  %471 = vmatprep.subr.bf16.mxu1 %v473_v0  ;;  %v441_v7 = vld [vmem:[%s667_s0 + $0x28] sm:$0xff]   ;;  %v411_v11 = vunpack.c.l.bf16 %v437_v6  ;;  %v412_v12 = vunpack.c.h.bf16 %v437_v6  ;;  %v442_v34 = vld [vmem:[%s667_s0 + $0x30] sm:$0xff]   ;;  %v415_v43 = vunpack.c.l.bf16 %v438_v29  ;;  %v416_v47 = vunpack.c.h.bf16 %v438_v29 }
   0x3   :  { %v513_v2 = vld [vmem:[%s668_s2] ss:$0 sm:$0xff]  ;;  %v407_v3 = vunpack.c.l.bf16 %v406_v1  ;;  %v408_v4 = vunpack.c.h.bf16 %v406_v1  ;;  %454 = vmatpush3.bf16.msra.mxu0 %v473_v0  ;;  %472 = vmatpush3.bf16.msra.mxu1 %v473_v0  ;;  %v427_v15 = vunpack.c.l.bf16 %v441_v7  ;;  %v428_v16 = vunpack.c.h.bf16 %v441_v7  ;;  %v439_v39 = vld [vmem:[%s667_s0 + $0x18] sm:$0xff]  }
   0x4   :  { %v440_v5 = vld [vmem:[%s667_s0 + $0x20] sm:$0xff]   ;;  %v62_v19 = vmul.f32 %v411_v11, %v513_v2  ;;  %v63_v20 = vmul.f32 %v412_v12, %v513_v2  ;;  %v443_v44 = vld [vmem:[%s667_s0 + $0x38] sm:$0xff]   ;;  %v431_v48 = vunpack.c.l.bf16 %v442_v34  ;;  %v64_v50 = vmul.f32 %v415_v43, %v513_v2 }
   0x5   :  { %v527_v8 = vld [vmem:[%s669_s3] ss:$0 sm:$0xff]  ;;  %v423_v9 = vunpack.c.l.bf16 %v440_v5  ;;  %v424_v10 = vunpack.c.h.bf16 %v440_v5  ;;  %v60_v13 = vmul.f32 %v407_v3, %v513_v2  ;;  %v61_v14 = vmul.f32 %v408_v4, %v513_v2 }
   0x6   :  { %v70_v23 = vmul.f32 %v427_v15, %v513_v2  ;;  %v71_v24 = vmul.f32 %v428_v16, %v513_v2  ;;  %v85_v27 = vadd.f32 %v527_v8, %v62_v19  ;;  %v86_v28 = vadd.f32 %v527_v8, %v63_v20  ;;  %v584_v20 = vld [vmem:[%s670_s4] ss:$0 sm:$0xff] }
   0x7   :  { %v68_v17 = vmul.f32 %v423_v9, %v513_v2  ;;  %v69_v18 = vmul.f32 %v424_v10, %v513_v2  ;;  %v83_v21 = vadd.f32 %v527_v8, %v60_v13  ;;  %v84_v22 = vadd.f32 %v527_v8, %v61_v14 }
   0x8   :  { %v93_v32 = vadd.f32 %v527_v8, %v70_v23  ;;  %v94_v33 = vadd.f32 %v527_v8, %v71_v24  ;;  %v101_v37 = vmax.f32 %v85_v27, 0.0  ;;  %v102_v38 = vmax.f32 %v86_v28, 0.0 }
   0x9   :  { %v91_v25 = vadd.f32 %v527_v8, %v68_v17  ;;  %v92_v26 = vadd.f32 %v527_v8, %v69_v18  ;;  %v99_v30 = vmax.f32 %v83_v21, 0.0  ;;  %v100_v31 = vmax.f32 %v84_v22, 0.0 }
   0xa   :  { %v109_v41 = vmax.f32 %v93_v32, 0.0  ;;  %v110_v42 = vmax.f32 %v94_v33, 0.0  ;;  %v116_v46 = vpack.c.bf16 %v102_v38, %v101_v37  ;;  %v432_v51 = vunpack.c.h.bf16 %v442_v34 }
   0xb   :  { %v107_v35 = vmax.f32 %v91_v25, 0.0  ;;  %v108_v36 = vmax.f32 %v92_v26, 0.0  ;;  %v115_v40 = vpack.c.bf16 %v100_v31, %v99_v30  ;;  %v419_v52 = vunpack.c.l.bf16 %v439_v39 }
   0xc   :  { %v120_v49 = vpack.c.bf16 %v110_v42, %v109_v41  ;;  %v65_v53 = vmul.f32 %v416_v47, %v513_v2  ;;  %v72_v54 = vmul.f32 %v431_v48, %v513_v2  ;;  %v420_v55 = vunpack.c.h.bf16 %v439_v39 }
   0xd   :  { %v119_v45 = vpack.c.bf16 %v108_v36, %v107_v35  ;;  %455 = vmatprep.mubr.msk.bf16.mxu0 %vm138_vm0, %v115_v40  ;;  %v435_v56 = vunpack.c.l.bf16 %v443_v44  ;;  %v87_v57 = vadd.f32 %v527_v8, %v64_v50  ;;  %v73_v58 = vmul.f32 %v432_v51, %v513_v2 }
   0xe   :  { %456 = vmatmul.mubr.msk.bf16.vlgmr.msra.gmra.mrb[0].mxu0 %vm138_vm0, %v116_v46  ;;  %v66_v59 = vmul.f32 %v419_v52, %v513_v2  ;;  %v436_v60 = vunpack.c.h.bf16 %v443_v44  ;;  %v88_v61 = vadd.f32 %v527_v8, %v65_v53  ;;  %v95_v62 = vadd.f32 %v527_v8, %v72_v54 }
   0xf   :  { %463 = vmatprep.mubr.msk.bf16.mxu1 %vm138_vm0, %v119_v45  ;;  %v67_v63 = vmul.f32 %v420_v55, %v513_v2  ;;  %v74_v0 = vmul.f32 %v435_v56, %v513_v2  ;;  %v103_v1 = vmax.f32 %v87_v57, 0.0  ;;  %v96_v3 = vadd.f32 %v527_v8, %v73_v58 }
  0x10   :  { %464 = vmatmul.mubr.msk.bf16.vlgmr.msra.gmra.mrb[0].mxu1 %vm138_vm0, %v120_v49  ;;  %v89_v4 = vadd.f32 %v527_v8, %v66_v59  ;;  %v75_v5 = vmul.f32 %v436_v60, %v513_v2  ;;  %v104_v6 = vmax.f32 %v88_v61, 0.0  ;;  %v111_v7 = vmax.f32 %v95_v62, 0.0 }
  0x11   :  { %v90_v9 = vadd.f32 %v527_v8, %v67_v63  ;;  %v97_v10 = vadd.f32 %v527_v8, %v74_v0  ;;  %v112_v11 = vmax.f32 %v96_v3, 0.0 }
  0x12   :  { %v105_v12 = vmax.f32 %v89_v4, 0.0  ;;  %v98_v13 = vadd.f32 %v527_v8, %v75_v5  ;;  %v117_v14 = vpack.c.bf16 %v104_v6, %v103_v1 }
  0x13   :  { %v106_v15 = vmax.f32 %v90_v9, 0.0  ;;  %v113_v16 = vmax.f32 %v97_v10, 0.0  ;;  %v121_v17 = vpack.c.bf16 %v112_v11, %v111_v7 }
  0x14   :  { %v114_v18 = vmax.f32 %v98_v13, 0.0  ;;  %459 = vmatprep.mubr.msk.bf16.mxu0 %vm138_vm0, %v117_v14 }
  0x15   :  { %v118_v19 = vpack.c.bf16 %v106_v15, %v105_v12  ;;  %467 = vmatprep.mubr.msk.bf16.mxu1 %vm138_vm0, %v121_v17 }
  0x16   :  { %v122_v2 = vpack.c.bf16 %v114_v18, %v113_v16 }
  0x17   :  { %460 = vmatmul.mubr.msk.bf16.gmra.mrb[4].mxu0 %vm138_vm0, %v118_v19 }
  0x18   :  { %468 = vmatmul.mubr.msk.bf16.gmra.mrb[4].mxu1 %vm138_vm0, %v122_v2 }
  0xe1   :  { %v457_v8 = vpop.f32.mrb[0].mxu0 }
  0xe2   :  { %v206_v21 = vadd.f32 %v457_v8, %v584_v20  ;;  %v197_v23 = vpop.f32.mrb[1].mxu0 }
  0xe3   :  { %v465_v22 = vpop.f32.mrb[0].mxu1  ;;  %v198_v25 = vadd.f32 %v584_v20, %v197_v23  ;;  %v458_v27 = vpop.f32.mrb[2].mxu0 }
  0xe4   :  { %v238_v24 = vadd.f32 %v465_v22, %v584_v20  ;;  %v229_v26 = vpop.f32.mrb[1].mxu1  ;;  %v262_v28 = vmax.f32 %v206_v21, 0.0  ;;  %v209_v30 = vadd.f32 %v458_v27, %v584_v20  ;;  %v200_v32 = vpop.f32.mrb[3].mxu0 }
  0xe5   :  { %v230_v29 = vadd.f32 %v584_v20, %v229_v26  ;;  %v466_v31 = vpop.f32.mrb[2].mxu1  ;;  %v260_v34 = vmax.f32 %v198_v25, 0.0  ;;  %v201_v36 = vadd.f32 %v584_v20, %v200_v32 }
  0xe6   :  { %v270_v33 = vmax.f32 %v238_v24, 0.0  ;;  %v241_v35 = vadd.f32 %v466_v31, %v584_v20  ;;  %v232_v37 = vpop.f32.mrb[3].mxu1  ;;  %v391_v38 = vpack.c.bf16 %v262_v28, %v262_v28  ;;  %v263_v40 = vmax.f32 %v209_v30, 0.0 }
  0xe7   :  { %v268_v39 = vmax.f32 %v230_v29, 0.0  ;;  %v233_v41 = vadd.f32 %v584_v20, %v232_v37  ;;  %v389_v43 = vpack.c.bf16 %v260_v34, %v260_v34  ;;  %v261_v45 = vmax.f32 %v201_v36, 0.0 }
  0xe8   :  { %v399_v42 = vpack.c.bf16 %v270_v33, %v270_v33  ;;  %v271_v44 = vmax.f32 %v241_v35, 0.0  ;;  %343 = vst.msk [vmem:[%s671_s5 + $0x8] sm:$0xf] %vm340_vm1, %v391_v38  ;;  %v392_v47 = vpack.c.bf16 %v263_v40, %v263_v40 }
  0xe9   :  { %v397_v46 = vpack.c.bf16 %v268_v39, %v268_v39  ;;  %v269_v48 = vmax.f32 %v233_v41, 0.0  ;;  %341 = vst.msk [vmem:[%s671_s5] sm:$0xf] %vm340_vm1, %v389_v43  ;;  %v390_v50 = vpack.c.bf16 %v261_v45, %v261_v45 }
  0xea   :  { %351 = vst.msk [vmem:[%s671_s5 + $0x28] sm:$0xf] %vm340_vm1, %v399_v42  ;;  %v400_v49 = vpack.c.bf16 %v271_v44, %v271_v44  ;;  %344 = vst.msk [vmem:[%s671_s5 + $0xc] sm:$0xf] %vm340_vm1, %v392_v47  ;;  %v461_v52 = vpop.f32.mrb[4].mxu0 }
  0xeb   :  { %349 = vst.msk [vmem:[%s671_s5 + $0x20] sm:$0xf] %vm340_vm1, %v397_v46  ;;  %v398_v51 = vpack.c.bf16 %v269_v48, %v269_v48  ;;  %342 = vst.msk [vmem:[%s671_s5 + $0x4] sm:$0xf] %vm340_vm1, %v390_v50  ;;  %v222_v53 = vadd.f32 %v461_v52, %v584_v20  ;;  %v469_v54 = vpop.f32.mrb[4].mxu1  ;;  %v213_v55 = vpop.f32.mrb[5].mxu0 }
  0xec   :  { %352 = vst.msk [vmem:[%s671_s5 + $0x2c] sm:$0xf] %vm340_vm1, %v400_v49  ;;  %v254_v56 = vadd.f32 %v469_v54, %v584_v20  ;;  %v214_v57 = vadd.f32 %v584_v20, %v213_v55  ;;  %v245_v58 = vpop.f32.mrb[5].mxu1  ;;  %v462_v59 = vpop.f32.mrb[6].mxu0 }
  0xed   :  { %350 = vst.msk [vmem:[%s671_s5 + $0x24] sm:$0xf] %vm340_vm1, %v398_v51  ;;  %v266_v60 = vmax.f32 %v222_v53, 0.0  ;;  %v246_v61 = vadd.f32 %v584_v20, %v245_v58  ;;  %v225_v62 = vadd.f32 %v462_v59, %v584_v20  ;;  %v470_v63 = vpop.f32.mrb[6].mxu1  ;;  %v216_v0 = vpop.f32.mrb[7].mxu0 }
  0xee   :  { %v274_v1 = vmax.f32 %v254_v56, 0.0  ;;  %v264_v3 = vmax.f32 %v214_v57, 0.0  ;;  %v257_v4 = vadd.f32 %v470_v63, %v584_v20  ;;  %v217_v5 = vadd.f32 %v584_v20, %v216_v0  ;;  %v248_v6 = vpop.f32.mrb[7].mxu1 }
  0xef   :  { %v395_v7 = vpack.c.bf16 %v266_v60, %v266_v60  ;;  %v272_v9 = vmax.f32 %v246_v61, 0.0  ;;  %v267_v10 = vmax.f32 %v225_v62, 0.0  ;;  %v249_v11 = vadd.f32 %v584_v20, %v248_v6 }
  0xf0   :  { %v403_v12 = vpack.c.bf16 %v274_v1, %v274_v1  ;;  %v393_v13 = vpack.c.bf16 %v264_v3, %v264_v3  ;;  %v275_v14 = vmax.f32 %v257_v4, 0.0  ;;  %v265_v15 = vmax.f32 %v217_v5, 0.0 }
  0xf1   :  { %347 = vst.msk [vmem:[%s671_s5 + $0x18] sm:$0xf] %vm340_vm1, %v395_v7  ;;  %v401_v16 = vpack.c.bf16 %v272_v9, %v272_v9  ;;  %v396_v17 = vpack.c.bf16 %v267_v10, %v267_v10  ;;  %v273_v18 = vmax.f32 %v249_v11, 0.0 }
  0xf2   :  { %355 = vst.msk [vmem:[%s671_s5 + $0x38] sm:$0xf] %vm340_vm1, %v403_v12  ;;  %345 = vst.msk [vmem:[%s671_s5 + $0x10] sm:$0xf] %vm340_vm1, %v393_v13  ;;  %v404_v19 = vpack.c.bf16 %v275_v14, %v275_v14  ;;  %v394_v2 = vpack.c.bf16 %v265_v15, %v265_v15 }
  0xf3   :  { %353 = vst.msk [vmem:[%s671_s5 + $0x30] sm:$0xf] %vm340_vm1, %v401_v16  ;;  %348 = vst.msk [vmem:[%s671_s5 + $0x1c] sm:$0xf] %vm340_vm1, %v396_v17  ;;  %v402_v20 = vpack.c.bf16 %v273_v18, %v273_v18 }
  0xf4   :  { %356 = vst.msk [vmem:[%s671_s5 + $0x3c] sm:$0xf] %vm340_vm1, %v404_v19  ;;  %346 = vst.msk [vmem:[%s671_s5 + $0x14] sm:$0xf] %vm340_vm1, %v394_v2 }
  0xf5   :  { %354 = vst.msk [vmem:[%s671_s5 + $0x34] sm:$0xf] %vm340_vm1, %v402_v20 }

// kernel: densenet_forward.28
= control target key start
LH: loop header
LB: loop body
LE: loop exit
PB: predicated region body
PF: predicated region fallthrough
CT: control target
= control target key end

     0   :  { %vm308_vm0 = vcmask 261120   ;;  %vm591_vm1 = vcmask 60416   ;;  %s1079_s1 = inlined_call_operand.vmem [shape: bf16[288,8], index: 1, kind: input, shape index: {}]   ;;  %s1080_s0 = inlined_call_operand.vmem [shape: bf16[128,288], index: 0, kind: input, shape index: {}]   ;;  %s1081_s2 = inlined_call_operand.vmem [shape: bf16[128,8], index: 2, kind: output, shape index: {}]  }
   0x1   :  { %v804_v0 = vld [vmem:[%s1079_s1 + $0x40] sm:$0xff]   ;;  %v806_v2 = vld [vmem:[%s1079_s1 + $0x48] sm:$0xff]   ;;  %v808_v4 = vld [vmem:[%s1079_s1 + $0x50] sm:$0xff]  }
   0x2   :  { %v805_v1 = vld [vmem:[%s1079_s1] sm:$0xff]   ;;  %694 = vmatprep.subr.bf16.mxu0 %v804_v0  ;;  %788 = vmatprep.subr.bf16.mxu1 %v804_v0  ;;  %v807_v3 = vld [vmem:[%s1079_s1 + $0x8] sm:$0xff]   ;;  %v809_v5 = vld [vmem:[%s1079_s1 + $0x10] sm:$0xff]  }
   0x3   :  { %695 = vmatpush3.bf16.msra.mxu0 %v805_v1  ;;  %796 = vmatpush3.bf16.msra.mxu1 %v805_v1  ;;  %v810_v6 = vld [vmem:[%s1079_s1 + $0x58] sm:$0xff]   ;;  %v812_v8 = vld [vmem:[%s1079_s1 + $0x60] sm:$0xff]   ;;  %v814_v10 = vld [vmem:[%s1079_s1 + $0x68] sm:$0xff]  }
   0x4   :  { %696 = vmatprep.subr.bf16.mxu0 %v806_v2  ;;  %789 = vmatprep.subr.bf16.mxu1 %v806_v2  ;;  %v811_v7 = vld [vmem:[%s1079_s1 + $0x18] sm:$0xff]   ;;  %v813_v9 = vld [vmem:[%s1079_s1 + $0x20] sm:$0xff]   ;;  %v815_v13 = vld [vmem:[%s1079_s1 + $0x28] sm:$0xff]  }
   0x5   :  { %v822_v11 = vld [vmem:[%s1080_s0 + $0x4] ss:$12 sps:$4 sm:$0xff]   ;;  %v825_v12 = vld [vmem:[%s1080_s0 + $0x94] ss:$12 sps:$4 sm:$0xff]   ;;  %v818_v16 = vld [vmem:[%s1079_s1 + $0x78] sm:$0xff]  }
   0x6   :  { %v816_v14 = vld [vmem:[%s1079_s1 + $0x70] sm:$0xff]   ;;  %365 = vmatprep.mubr.bf16.mxu0 %v822_v11  ;;  %413 = vmatprep.mubr.bf16.mxu1 %v825_v12  ;;  %v819_v17 = vld [vmem:[%s1079_s1 + $0x38] sm:$0xff]   ;;  %v820_v18 = vld [vmem:[%s1080_s0] ss:$12 sps:$4 sm:$0xff]  }
   0x7   :  { %697 = vmatpush3.bf16.msra.mxu0 %v807_v3  ;;  %797 = vmatpush3.bf16.msra.mxu1 %v807_v3  ;;  %v817_v15 = vld [vmem:[%s1079_s1 + $0x30] sm:$0xff]   ;;  %v826_v19 = vld [vmem:[%s1079_s1 + $0x80] sm:$0xff]   ;;  %v827_v21 = vld [vmem:[%s1080_s0 + $0x1c] ss:$12 sps:$4 sm:$0xff]  }
   0x8   :  { %698 = vmatprep.subr.bf16.mxu0 %v808_v4  ;;  %790 = vmatprep.subr.bf16.mxu1 %v808_v4  ;;  %v823_v20 = vld [vmem:[%s1080_s0 + $0x90] ss:$12 sps:$4 sm:$0xff]   ;;  %v829_v22 = vld [vmem:[%s1080_s0 + $0xac] ss:$12 sps:$4 sm:$0xff]   ;;  %v832_v25 = vld [vmem:[%s1080_s0 + $0xa8] ss:$12 sps:$4 sm:$0xff]  }
   0x9   :  { %v833_v23 = vld [vmem:[%s1079_s1 + $0x88] sm:$0xff]   ;;  %v831_v24 = vld [vmem:[%s1080_s0 + $0x18] ss:$12 sps:$4 sm:$0xff]   ;;  %v834_v26 = vld [vmem:[%s1080_s0 + $0x34] ss:$12 sps:$4 sm:$0xff]  }
   0xa   :  { %v836_v27 = vld [vmem:[%s1080_s0 + $0x8] ss:$12 sps:$4 sm:$0xff]   ;;  %v837_v28 = vld [vmem:[%s1080_s0 + $0x30] ss:$12 sps:$4 sm:$0xff]   ;;  %v838_v29 = vld [vmem:[%s1080_s0 + $0x20] ss:$12 sps:$4 sm:$0xff]  }
   0xb   :  { %699 = vmatpush3.bf16.msra.mxu0 %v809_v5  ;;  %798 = vmatpush3.bf16.msra.mxu1 %v809_v5  ;;  %v839_v30 = vld [vmem:[%s1080_s0 + $0x4c] ss:$12 sps:$4 sm:$0xff]   ;;  %v842_v32 = vld [vmem:[%s1080_s0 + $0x48] ss:$12 sps:$4 sm:$0xff]   ;;  %v843_v33 = vld [vmem:[%s1080_s0 + $0x50] ss:$12 sps:$4 sm:$0xff]  }
   0xc   :  { %700 = vmatprep.subr.bf16.mxu0 %v810_v6  ;;  %791 = vmatprep.subr.bf16.mxu1 %v810_v6  ;;  %v841_v31 = vld [vmem:[%s1080_s0 + $0x38] ss:$12 sps:$4 sm:$0xff]   ;;  %v846_v35 = vld [vmem:[%s1080_s0 + $0x68] ss:$12 sps:$4 sm:$0xff]   ;;  %v847_v36 = vld [vmem:[%s1080_s0 + $0x60] ss:$12 sps:$4 sm:$0xff]  }
   0xd   :  { %v844_v34 = vld [vmem:[%s1080_s0 + $0x64] ss:$12 sps:$4 sm:$0xff]   ;;  %v848_v37 = vld [vmem:[%s1080_s0 + $0x80] ss:$12 sps:$4 sm:$0xff]   ;;  %v849_v38 = vld [vmem:[%s1080_s0 + $0x7c] ss:$12 sps:$4 sm:$0xff]  }
   0xe   :  { %v851_v39 = vld [vmem:[%s1080_s0 + $0x98] ss:$12 sps:$4 sm:$0xff]   ;;  %v853_v41 = vld [vmem:[%s1080_s0 + $0xb0] ss:$12 sps:$4 sm:$0xff]  }
   0xf   :  { %701 = vmatpush3.bf16.msra.mxu0 %v811_v7  ;;  %799 = vmatpush3.bf16.msra.mxu1 %v811_v7  ;;  %v852_v40 = vld [vmem:[%s1080_s0 + $0x78] ss:$12 sps:$4 sm:$0xff]  }
  0x10   :  { %702 = vmatprep.subr.bf16.mxu0 %v812_v8  ;;  %792 = vmatprep.subr.bf16.mxu1 %v812_v8 }
  0x13   :  { %703 = vmatpush3.bf16.msra.mxu0 %v813_v9  ;;  %800 = vmatpush3.bf16.msra.mxu1 %v813_v9 }
  0x14   :  { %704 = vmatprep.subr.bf16.mxu0 %v814_v10  ;;  %793 = vmatprep.subr.bf16.mxu1 %v814_v10 }
  0x17   :  { %705 = vmatpush3.bf16.msra.mxu0 %v815_v13  ;;  %801 = vmatpush3.bf16.msra.mxu1 %v815_v13 }
  0x18   :  { %706 = vmatprep.subr.bf16.mxu0 %v816_v14  ;;  %794 = vmatprep.subr.bf16.mxu1 %v816_v14 }
  0x1b   :  { %707 = vmatpush3.bf16.msra.mxu0 %v817_v15  ;;  %802 = vmatpush3.bf16.msra.mxu1 %v817_v15 }
  0x1c   :  { %708 = vmatprep.subr.bf16.mxu0 %v818_v16  ;;  %795 = vmatprep.subr.bf16.mxu1 %v818_v16 }
  0x1f   :  { %709 = vmatpush3.bf16.msra.mxu0 %v819_v17  ;;  %803 = vmatpush3.bf16.msra.mxu1 %v819_v17 }
  0x20   :  { %768 = vmatprep.subr.bf16.mxu1 %v826_v19 }
  0x22   :  { %366 = vmatmul.mubr.bf16.vlgmr.msra.gmra.mrb[0].mxu0 %v820_v18  ;;  %414 = vmatmul.mubr.bf16.vlgmr.msra.gmra.mrb[0].mxu1 %v823_v20 }
  0x23   :  { %769 = vmatpush3.bf16.msra.mxu1 %v826_v19  ;;  %373 = vmatprep.mubr.bf16.mxu0 %v827_v21 }
  0x24   :  { %421 = vmatprep.mubr.bf16.mxu1 %v829_v22  ;;  %770 = vmatprep.subr.bf16.mxu1 %v833_v23 }
  0x27   :  { %771 = vmatpush3.bf16.msra.mxu1 %v833_v23 }
  0x2a   :  { %374 = vmatmul.mubr.bf16.gmra.mrb[4].mxu0 %v831_v24  ;;  %422 = vmatmul.mubr.bf16.gmra.mrb[4].mxu1 %v832_v25 }
  0x2b   :  { %381 = vmatprep.mubr.bf16.mxu0 %v834_v26  ;;  %772 = vmatprep.mubr.msk.bf16.mxu1 %vm308_vm0, %v836_v27 }
  0x32   :  { %382 = vmatmul.mubr.bf16.gmra.mrb[8].mxu0 %v837_v28  ;;  %773 = vmatmul.mubr.msk.bf16.vlgmr.msra.gmra.mrb[8].mxu1 %vm308_vm0, %v838_v29 }
  0x33   :  { %389 = vmatprep.mubr.bf16.mxu0 %v839_v30  ;;  %776 = vmatprep.mubr.msk.bf16.mxu1 %vm308_vm0, %v841_v31 }
  0x3a   :  { %390 = vmatmul.mubr.bf16.gmra.mrb[12].mxu0 %v842_v32  ;;  %777 = vmatmul.mubr.msk.bf16.gmra.mrb[12].mxu1 %vm308_vm0, %v843_v33 }
  0x3b   :  { %397 = vmatprep.mubr.bf16.mxu0 %v844_v34  ;;  %780 = vmatprep.mubr.msk.bf16.mxu1 %vm308_vm0, %v846_v35 }
  0x42   :  { %398 = vmatmul.mubr.bf16.gmra.mrb[16].mxu0 %v847_v36  ;;  %781 = vmatmul.mubr.msk.bf16.gmra.mrb[16].mxu1 %vm308_vm0, %v848_v37 }
  0x43   :  { %405 = vmatprep.mubr.bf16.mxu0 %v849_v38  ;;  %784 = vmatprep.mubr.msk.bf16.mxu1 %vm308_vm0, %v851_v39 }
  0x4a   :  { %406 = vmatmul.mubr.bf16.gmra.mrb[20].mxu0 %v852_v40  ;;  %785 = vmatmul.mubr.msk.bf16.gmra.mrb[20].mxu1 %vm308_vm0, %v853_v41 }
  0xf5   :  { %v710_v42 = vpop.f32.mrb[0].mxu0  ;;  %v746_v43 = vpop.f32.mrb[0].mxu1 }
  0xf6   :  { %v711_v44 = vpop.f32.mrb[1].mxu0  ;;  %v747_v45 = vpop.f32.mrb[1].mxu1 }
  0xf7   :  { %v712_v46 = vadd.f32 %v711_v44, %v710_v42  ;;  %v1003_v47 = vadd.f32 %v747_v45, %v746_v43  ;;  %v713_v48 = vpop.f32.mrb[2].mxu0  ;;  %v749_v49 = vpop.f32.mrb[2].mxu1 }
  0xf8   :  { %v714_v50 = vpop.f32.mrb[3].mxu0  ;;  %v750_v51 = vpop.f32.mrb[3].mxu1 }
  0xf9   :  { %v715_v52 = vadd.f32 %v714_v50, %v713_v48  ;;  %v1005_v53 = vadd.f32 %v750_v51, %v749_v49 }
  0xfd   :  { %v716_v54 = vpop.f32.mrb[4].mxu0  ;;  %v752_v55 = vpop.f32.mrb[4].mxu1 }
  0xfe   :  { %v717_v56 = vpop.f32.mrb[5].mxu0  ;;  %v753_v57 = vpop.f32.mrb[5].mxu1 }
  0xff   :  { %v718_v58 = vadd.f32 %v717_v56, %v716_v54  ;;  %v1007_v59 = vadd.f32 %v753_v57, %v752_v55  ;;  %v719_v60 = vpop.f32.mrb[6].mxu0  ;;  %v755_v61 = vpop.f32.mrb[6].mxu1 }
 0x100   :  { %v720_v62 = vpop.f32.mrb[7].mxu0  ;;  %v756_v63 = vpop.f32.mrb[7].mxu1 }
 0x101   :  { %v721_v0 = vadd.f32 %v720_v62, %v719_v60  ;;  %v1009_v1 = vadd.f32 %v756_v63, %v755_v61 }
 0x105   :  { %v722_v2 = vpop.f32.mrb[8].mxu0  ;;  %v774_v3 = vpop.f32.mrb[8].mxu1 }
 0x106   :  { %v473_v4 = vadd.f32 %v774_v3, %v718_v58  ;;  %v723_v5 = vpop.f32.mrb[9].mxu0  ;;  %v464_v6 = vpop.f32.mrb[9].mxu1 }
 0x107   :  { %v724_v7 = vadd.f32 %v723_v5, %v722_v2  ;;  %v465_v8 = vadd.f32 %v712_v46, %v464_v6  ;;  %v725_v9 = vpop.f32.mrb[10].mxu0  ;;  %v775_v10 = vpop.f32.mrb[10].mxu1 }
 0x108   :  { %v680_v11 = vpack.c.bf16 %v473_v4, %v473_v4  ;;  %v476_v12 = vadd.f32 %v775_v10, %v721_v0  ;;  %v726_v13 = vpop.f32.mrb[11].mxu0  ;;  %v467_v14 = vpop.f32.mrb[11].mxu1 }
 0x109   :  { %v678_v15 = vpack.c.bf16 %v465_v8, %v465_v8  ;;  %v727_v16 = vadd.f32 %v726_v13, %v725_v9  ;;  %v468_v17 = vadd.f32 %v715_v52, %v467_v14 }
 0x10a   :  { %594 = vst.msk [vmem:[%s1081_s2 + $0x8] sm:$0xf] %vm591_vm1, %v680_v11  ;;  %v681_v18 = vpack.c.bf16 %v476_v12, %v476_v12 }
 0x10b   :  { %592 = vst.msk [vmem:[%s1081_s2] sm:$0xf] %vm591_vm1, %v678_v15  ;;  %v679_v19 = vpack.c.bf16 %v468_v17, %v468_v17 }
 0x10c   :  { %595 = vst.msk [vmem:[%s1081_s2 + $0xc] sm:$0xf] %vm591_vm1, %v681_v18 }
 0x10d   :  { %593 = vst.msk [vmem:[%s1081_s2 + $0x4] sm:$0xf] %vm591_vm1, %v679_v19  ;;  %v728_v20 = vpop.f32.mrb[12].mxu0  ;;  %v778_v21 = vpop.f32.mrb[12].mxu1 }
 0x10e   :  { %v729_v22 = vpop.f32.mrb[13].mxu0  ;;  %v480_v23 = vpop.f32.mrb[13].mxu1 }
 0x10f   :  { %v730_v24 = vadd.f32 %v729_v22, %v728_v20  ;;  %v481_v25 = vadd.f32 %v724_v7, %v480_v23  ;;  %v731_v26 = vpop.f32.mrb[14].mxu0  ;;  %v779_v27 = vpop.f32.mrb[14].mxu1 }
 0x110   :  { %v732_v28 = vpop.f32.mrb[15].mxu0  ;;  %v483_v29 = vpop.f32.mrb[15].mxu1 }
 0x111   :  { %v489_v30 = vadd.f32 %v778_v21, %v730_v24  ;;  %v682_v31 = vpack.c.bf16 %v481_v25, %v481_v25  ;;  %v733_v32 = vadd.f32 %v732_v28, %v731_v26  ;;  %v484_v33 = vadd.f32 %v727_v16, %v483_v29 }
 0x113   :  { %v684_v34 = vpack.c.bf16 %v489_v30, %v489_v30  ;;  %596 = vst.msk [vmem:[%s1081_s2 + $0x10] sm:$0xf] %vm591_vm1, %v682_v31  ;;  %v492_v35 = vadd.f32 %v779_v27, %v733_v32  ;;  %v683_v36 = vpack.c.bf16 %v484_v33, %v484_v33 }
 0x115   :  { %598 = vst.msk [vmem:[%s1081_s2 + $0x18] sm:$0xf] %vm591_vm1, %v684_v34  ;;  %v685_v37 = vpack.c.bf16 %v492_v35, %v492_v35  ;;  %597 = vst.msk [vmem:[%s1081_s2 + $0x14] sm:$0xf] %vm591_vm1, %v683_v36  ;;  %v734_v38 = vpop.f32.mrb[16].mxu0  ;;  %v782_v39 = vpop.f32.mrb[16].mxu1 }
 0x116   :  { %v735_v40 = vpop.f32.mrb[17].mxu0  ;;  %v496_v41 = vpop.f32.mrb[17].mxu1 }
 0x117   :  { %599 = vst.msk [vmem:[%s1081_s2 + $0x1c] sm:$0xf] %vm591_vm1, %v685_v37  ;;  %v736_v42 = vadd.f32 %v735_v40, %v734_v38  ;;  %v737_v43 = vpop.f32.mrb[18].mxu0  ;;  %v783_v44 = vpop.f32.mrb[18].mxu1 }
 0x118   :  { %v738_v45 = vpop.f32.mrb[19].mxu0  ;;  %v499_v46 = vpop.f32.mrb[19].mxu1 }
 0x119   :  { %v497_v48 = vadd.f32 %v736_v42, %v496_v41  ;;  %v739_v49 = vadd.f32 %v738_v45, %v737_v43 }
 0x11b   :  { %v686_v50 = vpack.c.bf16 %v497_v48, %v497_v48  ;;  %v500_v51 = vadd.f32 %v739_v49, %v499_v46 }
 0x11d   :  { %600 = vst.msk [vmem:[%s1081_s2 + $0x20] sm:$0xf] %vm591_vm1, %v686_v50  ;;  %v687_v52 = vpack.c.bf16 %v500_v51, %v500_v51  ;;  %v740_v54 = vpop.f32.mrb[20].mxu0  ;;  %v786_v55 = vpop.f32.mrb[20].mxu1 }
 0x11e   :  { %v521_v56 = vadd.f32 %v786_v55, %v1007_v59  ;;  %v741_v57 = vpop.f32.mrb[21].mxu0  ;;  %v512_v58 = vpop.f32.mrb[21].mxu1 }
 0x11f   :  { %601 = vst.msk [vmem:[%s1081_s2 + $0x24] sm:$0xf] %vm591_vm1, %v687_v52  ;;  %v742_v60 = vadd.f32 %v741_v57, %v740_v54  ;;  %v513_v61 = vadd.f32 %v1003_v47, %v512_v58  ;;  %v743_v62 = vpop.f32.mrb[22].mxu0  ;;  %v787_v63 = vpop.f32.mrb[22].mxu1 }
 0x120   :  { %v692_v0 = vpack.c.bf16 %v521_v56, %v521_v56  ;;  %v524_v2 = vadd.f32 %v787_v63, %v1009_v1  ;;  %v744_v3 = vpop.f32.mrb[23].mxu0  ;;  %v515_v4 = vpop.f32.mrb[23].mxu1 }
 0x121   :  { %v505_v5 = vadd.f32 %v782_v39, %v742_v60  ;;  %v690_v6 = vpack.c.bf16 %v513_v61, %v513_v61  ;;  %v745_v59 = vadd.f32 %v744_v3, %v743_v62  ;;  %v516_v7 = vadd.f32 %v1005_v53, %v515_v4 }
 0x122   :  { %606 = vst.msk [vmem:[%s1081_s2 + $0x38] sm:$0xf] %vm591_vm1, %v692_v0  ;;  %v693_v8 = vpack.c.bf16 %v524_v2, %v524_v2 }
 0x123   :  { %v688_v9 = vpack.c.bf16 %v505_v5, %v505_v5  ;;  %604 = vst.msk [vmem:[%s1081_s2 + $0x30] sm:$0xf] %vm591_vm1, %v690_v6  ;;  %v508_v47 = vadd.f32 %v783_v44, %v745_v59  ;;  %v691_v1 = vpack.c.bf16 %v516_v7, %v516_v7 }
 0x124   :  { %607 = vst.msk [vmem:[%s1081_s2 + $0x3c] sm:$0xf] %vm591_vm1, %v693_v8 }
 0x125   :  { %602 = vst.msk [vmem:[%s1081_s2 + $0x28] sm:$0xf] %vm591_vm1, %v688_v9  ;;  %v689_v53 = vpack.c.bf16 %v508_v47, %v508_v47  ;;  %605 = vst.msk [vmem:[%s1081_s2 + $0x34] sm:$0xf] %vm591_vm1, %v691_v1 }
 0x127   :  { %603 = vst.msk [vmem:[%s1081_s2 + $0x2c] sm:$0xf] %vm591_vm1, %v689_v53 }

// kernel: densenet_forward.29
= control target key start
LH: loop header
LB: loop body
LE: loop exit
PB: predicated region body
PF: predicated region fallthrough
CT: control target
= control target key end

     0   :  { %vm167_vm0 = vcmask 1043456   ;;  %vm142_vm1 = vcmask 195584   ;;  %vm348_vm2 = vcmask 257024   ;;  %s689_s1 = inlined_call_operand.vmem [shape: bf16[24,32], index: 1, kind: input, shape index: {}]   ;;  %s690_s0 = inlined_call_operand.vmem [shape: bf16[128,24], index: 0, kind: input, shape index: {}]   ;;  %s691_s2 = inlined_call_operand.vmem [shape: f32[1,24], index: 2, kind: input, shape index: {}]   ;;  %s692_s3 = inlined_call_operand.vmem [shape: f32[1,24], index: 3, kind: input, shape index: {}]   ;;  %s693_s4 = inlined_call_operand.vmem [shape: f32[1,32], index: 4, kind: input, shape index: {}]   ;;  %s694_s5 = inlined_call_operand.vmem [shape: bf16[128,32], index: 5, kind: output, shape index: {}]  }
   0x1   :  { %v489_v0 = vld [vmem:[%s689_s1] sm:$0xff]   ;;  %v490_v1 = vld [vmem:[%s689_s1 + $0x8] ss:$0 sps:$4 sm:$0xff]   ;;  %v447_v17 = vld [vmem:[%s690_s0 + $0x10] sm:$0xff]  }
   0x2   :  { %v415_v2 = vld [vmem:[%s690_s0] sm:$0xff]   ;;  %463 = vmatprep.subr.bf16.mxu0 %v489_v0  ;;  %483 = vmatprep.subr.bf16.mxu1 %v489_v0  ;;  %v169_v7 = vsel %vm167_vm0, %v490_v1, 0  ;;  %v446_v11 = vld [vmem:[%s690_s0 + $0x8] sm:$0xff]   ;;  %v424_v29 = vunpack.c.l.bf16 %v447_v17  ;;  %v451_v38 = vld [vmem:[%s690_s0 + $0x30] sm:$0xff]   ;;  %v425_v42 = vunpack.c.h.bf16 %v447_v17 }
   0x3   :  { %v416_v3 = vunpack.c.l.bf16 %v415_v2  ;;  %v417_v4 = vunpack.c.h.bf16 %v415_v2  ;;  %v533_v5 = vld [vmem:[%s691_s2] ss:$0 sm:$0xff]  ;;  %464 = vmatpush3.bf16.msra.mxu0 %v489_v0  ;;  %485 = vmatpush3.bf16.msra.mxu1 %v489_v0  ;;  %v450_v12 = vld [vmem:[%s690_s0 + $0x28] sm:$0xff]   ;;  %v420_v15 = vunpack.c.l.bf16 %v446_v11  ;;  %v421_v16 = vunpack.c.h.bf16 %v446_v11  ;;  %v448_v43 = vld [vmem:[%s690_s0 + $0x18] sm:$0xff]  }
   0x4   :  { %v449_v6 = vld [vmem:[%s690_s0 + $0x20] sm:$0xff]   ;;  %487 = vmatprep.subr.msk.bf16.mxu0 %vm167_vm0, %v490_v1  ;;  %488 = vmatprep.subr.msk.bf16.mxu1 %vm167_vm0, %v490_v1  ;;  %v436_v20 = vunpack.c.l.bf16 %v450_v12  ;;  %v437_v21 = vunpack.c.h.bf16 %v450_v12  ;;  %v64_v47 = vmul.f32 %v424_v29, %v533_v5  ;;  %v452_v48 = vld [vmem:[%s690_s0 + $0x38] sm:$0xff]   ;;  %v65_v50 = vmul.f32 %v425_v42, %v533_v5 }
   0x5   :  { %v542_v8 = vld [vmem:[%s692_s3] ss:$0 sm:$0xff]  ;;  %v432_v9 = vunpack.c.l.bf16 %v449_v6  ;;  %v433_v10 = vunpack.c.h.bf16 %v449_v6  ;;  %v60_v13 = vmul.f32 %v416_v3, %v533_v5  ;;  %v61_v14 = vmul.f32 %v417_v4, %v533_v5 }
   0x6   :  { %v62_v24 = vmul.f32 %v420_v15, %v533_v5  ;;  %v63_v25 = vmul.f32 %v421_v16, %v533_v5  ;;  %v70_v28 = vmul.f32 %v436_v20, %v533_v5  ;;  %v71_v36 = vmul.f32 %v437_v21, %v533_v5 }
   0x7   :  { %v68_v18 = vmul.f32 %v432_v9, %v533_v5  ;;  %v69_v19 = vmul.f32 %v433_v10, %v533_v5  ;;  %v83_v22 = vadd.f32 %v542_v8, %v60_v13  ;;  %v84_v23 = vadd.f32 %v542_v8, %v61_v14  ;;  %466 = vmatpush3.bf16.msra.mxu0 %v169_v7 }
   0x8   :  { %486 = vmatpush3.bf16.msra.mxu1 %v169_v7  ;;  %v85_v32 = vadd.f32 %v542_v8, %v62_v24  ;;  %v86_v33 = vadd.f32 %v542_v8, %v63_v25  ;;  %v93_v37 = vadd.f32 %v542_v8, %v70_v28  ;;  %v94_v45 = vadd.f32 %v542_v8, %v71_v36 }
   0x9   :  { %v91_v26 = vadd.f32 %v542_v8, %v68_v18  ;;  %v92_v27 = vadd.f32 %v542_v8, %v69_v19  ;;  %v99_v30 = vmax.f32 %v83_v22, 0.0  ;;  %v100_v31 = vmax.f32 %v84_v23, 0.0 }
   0xa   :  { %v101_v40 = vmax.f32 %v85_v32, 0.0  ;;  %v102_v41 = vmax.f32 %v86_v33, 0.0  ;;  %v109_v46 = vmax.f32 %v93_v37, 0.0  ;;  %v440_v51 = vunpack.c.l.bf16 %v451_v38 }
   0xb   :  { %v107_v34 = vmax.f32 %v91_v26, 0.0  ;;  %v108_v35 = vmax.f32 %v92_v27, 0.0  ;;  %v115_v39 = vpack.c.bf16 %v100_v31, %v99_v30  ;;  %v441_v52 = vunpack.c.h.bf16 %v451_v38 }
   0xc   :  { %v116_v49 = vpack.c.bf16 %v102_v41, %v101_v40  ;;  %v110_v53 = vmax.f32 %v94_v45, 0.0  ;;  %v87_v54 = vadd.f32 %v542_v8, %v64_v47  ;;  %v428_v55 = vunpack.c.l.bf16 %v448_v43 }
   0xd   :  { %v119_v44 = vpack.c.bf16 %v108_v35, %v107_v34  ;;  %467 = vmatprep.mubr.msk.bf16.mxu0 %vm142_vm1, %v115_v39  ;;  %v429_v56 = vunpack.c.h.bf16 %v448_v43  ;;  %v88_v57 = vadd.f32 %v542_v8, %v65_v50  ;;  %v72_v58 = vmul.f32 %v440_v51, %v533_v5 }
   0xe   :  { %468 = vmatmul.mubr.msk.bf16.vlgmr.msra.gmra.mrb[0].mxu0 %vm142_vm1, %v116_v49  ;;  %v73_v59 = vmul.f32 %v441_v52, %v533_v5  ;;  %v444_v60 = vunpack.c.l.bf16 %v452_v48  ;;  %v120_v61 = vpack.c.bf16 %v110_v53, %v109_v46  ;;  %v103_v62 = vmax.f32 %v87_v54, 0.0 }
   0xf   :  { %475 = vmatprep.mubr.msk.bf16.mxu1 %vm142_vm1, %v119_v44  ;;  %v66_v63 = vmul.f32 %v428_v55, %v533_v5  ;;  %v67_v0 = vmul.f32 %v429_v56, %v533_v5  ;;  %v104_v1 = vmax.f32 %v88_v57, 0.0  ;;  %v95_v2 = vadd.f32 %v542_v8, %v72_v58 }
  0x10   :  { %v96_v3 = vadd.f32 %v542_v8, %v73_v59  ;;  %v445_v4 = vunpack.c.h.bf16 %v452_v48  ;;  %476 = vmatmul.mubr.msk.bf16.vlgmr.msra.gmra.mrb[0].mxu1 %vm142_vm1, %v120_v61  ;;  %v74_v9 = vmul.f32 %v444_v60, %v533_v5 }
  0x11   :  { %v89_v6 = vadd.f32 %v542_v8, %v66_v63  ;;  %v90_v7 = vadd.f32 %v542_v8, %v67_v0  ;;  %v117_v10 = vpack.c.bf16 %v104_v1, %v103_v62  ;;  %v111_v11 = vmax.f32 %v95_v2, 0.0 }
  0x12   :  { %v112_v12 = vmax.f32 %v96_v3, 0.0  ;;  %v75_v13 = vmul.f32 %v445_v4, %v533_v5  ;;  %v97_v16 = vadd.f32 %v542_v8, %v74_v9  ;;  %v607_v5 = vld [vmem:[%s693_s4] ss:$0 sm:$0xff] }
  0x13   :  { %v105_v14 = vmax.f32 %v89_v6, 0.0  ;;  %v106_v15 = vmax.f32 %v90_v7, 0.0  ;;  %471 = vmatprep.mubr.msk.bf16.mxu0 %vm142_vm1, %v117_v10 }
  0x14   :  { %v121_v17 = vpack.c.bf16 %v112_v12, %v111_v11  ;;  %v98_v18 = vadd.f32 %v542_v8, %v75_v13  ;;  %v113_v20 = vmax.f32 %v97_v16, 0.0 }
  0x15   :  { %v118_v19 = vpack.c.bf16 %v106_v15, %v105_v14 }
  0x16   :  { %479 = vmatprep.mubr.msk.bf16.mxu1 %vm142_vm1, %v121_v17  ;;  %v114_v21 = vmax.f32 %v98_v18, 0.0 }
  0x17   :  { %472 = vmatmul.mubr.msk.bf16.gmra.mrb[4].mxu0 %vm142_vm1, %v118_v19 }
  0x18   :  { %v122_v22 = vpack.c.bf16 %v114_v21, %v113_v20 }
  0x1a   :  { %480 = vmatmul.mubr.msk.bf16.gmra.mrb[4].mxu1 %vm142_vm1, %v122_v22 }
  0xe1   :  { %v469_v23 = vpop.f32.mrb[0].mxu0 }
  0xe2   :  { %v214_v24 = vadd.f32 %v469_v23, %v607_v5  ;;  %v205_v25 = vpop.f32.mrb[1].mxu0 }
  0xe3   :  { %v206_v8 = vadd.f32 %v607_v5, %v205_v25  ;;  %v470_v26 = vpop.f32.mrb[2].mxu0  ;;  %v477_v28 = vpop.f32.mrb[0].mxu1 }
  0xe4   :  { %v270_v27 = vmax.f32 %v214_v24, 0.0  ;;  %v217_v29 = vadd.f32 %v470_v26, %v607_v5  ;;  %v208_v30 = vpop.f32.mrb[3].mxu0  ;;  %v246_v31 = vadd.f32 %v477_v28, %v607_v5  ;;  %v237_v33 = vpop.f32.mrb[1].mxu1 }
  0xe5   :  { %v268_v32 = vmax.f32 %v206_v8, 0.0  ;;  %v209_v34 = vadd.f32 %v607_v5, %v208_v30  ;;  %v238_v36 = vadd.f32 %v607_v5, %v237_v33  ;;  %v478_v38 = vpop.f32.mrb[2].mxu1 }
  0xe6   :  { %v400_v35 = vpack.c.bf16 %v270_v27, %v270_v27  ;;  %v271_v37 = vmax.f32 %v217_v29, 0.0  ;;  %v278_v39 = vmax.f32 %v246_v31, 0.0  ;;  %v249_v41 = vadd.f32 %v478_v38, %v607_v5  ;;  %v240_v43 = vpop.f32.mrb[3].mxu1 }
  0xe7   :  { %v398_v40 = vpack.c.bf16 %v268_v32, %v268_v32  ;;  %v269_v42 = vmax.f32 %v209_v34, 0.0  ;;  %v276_v44 = vmax.f32 %v238_v36, 0.0  ;;  %v241_v46 = vadd.f32 %v607_v5, %v240_v43 }
  0xe8   :  { %351 = vst.msk [vmem:[%s694_s5 + $0x8] sm:$0xf] %vm348_vm2, %v400_v35  ;;  %v401_v45 = vpack.c.bf16 %v271_v37, %v271_v37  ;;  %v408_v47 = vpack.c.bf16 %v278_v39, %v278_v39  ;;  %v279_v48 = vmax.f32 %v249_v41, 0.0 }
  0xe9   :  { %349 = vst.msk [vmem:[%s694_s5] sm:$0xf] %vm348_vm2, %v398_v40  ;;  %v399_v49 = vpack.c.bf16 %v269_v42, %v269_v42  ;;  %v406_v50 = vpack.c.bf16 %v276_v44, %v276_v44  ;;  %v277_v51 = vmax.f32 %v241_v46, 0.0 }
  0xea   :  { %352 = vst.msk [vmem:[%s694_s5 + $0xc] sm:$0xf] %vm348_vm2, %v401_v45  ;;  %v473_v52 = vpop.f32.mrb[4].mxu0  ;;  %359 = vst.msk [vmem:[%s694_s5 + $0x28] sm:$0xf] %vm348_vm2, %v408_v47  ;;  %v409_v53 = vpack.c.bf16 %v279_v48, %v279_v48 }
  0xeb   :  { %350 = vst.msk [vmem:[%s694_s5 + $0x4] sm:$0xf] %vm348_vm2, %v399_v49  ;;  %v230_v54 = vadd.f32 %v473_v52, %v607_v5  ;;  %v221_v55 = vpop.f32.mrb[5].mxu0  ;;  %357 = vst.msk [vmem:[%s694_s5 + $0x20] sm:$0xf] %vm348_vm2, %v406_v50  ;;  %v407_v56 = vpack.c.bf16 %v277_v51, %v277_v51 }
  0xec   :  { %v222_v57 = vadd.f32 %v607_v5, %v221_v55  ;;  %v474_v58 = vpop.f32.mrb[6].mxu0  ;;  %360 = vst.msk [vmem:[%s694_s5 + $0x2c] sm:$0xf] %vm348_vm2, %v409_v53 }
  0xed   :  { %v274_v59 = vmax.f32 %v230_v54, 0.0  ;;  %v481_v60 = vpop.f32.mrb[4].mxu1  ;;  %v233_v61 = vadd.f32 %v474_v58, %v607_v5  ;;  %v224_v62 = vpop.f32.mrb[7].mxu0  ;;  %358 = vst.msk [vmem:[%s694_s5 + $0x24] sm:$0xf] %vm348_vm2, %v407_v56 }
  0xee   :  { %v262_v63 = vadd.f32 %v481_v60, %v607_v5  ;;  %v272_v0 = vmax.f32 %v222_v57, 0.0  ;;  %v253_v1 = vpop.f32.mrb[5].mxu1  ;;  %v225_v2 = vadd.f32 %v607_v5, %v224_v62 }
  0xef   :  { %v404_v3 = vpack.c.bf16 %v274_v59, %v274_v59  ;;  %v254_v4 = vadd.f32 %v607_v5, %v253_v1  ;;  %v275_v6 = vmax.f32 %v233_v61, 0.0  ;;  %v482_v7 = vpop.f32.mrb[6].mxu1 }
  0xf0   :  { %v282_v9 = vmax.f32 %v262_v63, 0.0  ;;  %v402_v10 = vpack.c.bf16 %v272_v0, %v272_v0  ;;  %v265_v11 = vadd.f32 %v482_v7, %v607_v5  ;;  %v273_v12 = vmax.f32 %v225_v2, 0.0  ;;  %v256_v13 = vpop.f32.mrb[7].mxu1 }
  0xf1   :  { %355 = vst.msk [vmem:[%s694_s5 + $0x18] sm:$0xf] %vm348_vm2, %v404_v3  ;;  %v280_v14 = vmax.f32 %v254_v4, 0.0  ;;  %v405_v15 = vpack.c.bf16 %v275_v6, %v275_v6  ;;  %v257_v16 = vadd.f32 %v607_v5, %v256_v13 }
  0xf2   :  { %v412_v17 = vpack.c.bf16 %v282_v9, %v282_v9  ;;  %353 = vst.msk [vmem:[%s694_s5 + $0x10] sm:$0xf] %vm348_vm2, %v402_v10  ;;  %v283_v18 = vmax.f32 %v265_v11, 0.0  ;;  %v403_v19 = vpack.c.bf16 %v273_v12, %v273_v12 }
  0xf3   :  { %v410_v20 = vpack.c.bf16 %v280_v14, %v280_v14  ;;  %356 = vst.msk [vmem:[%s694_s5 + $0x1c] sm:$0xf] %vm348_vm2, %v405_v15  ;;  %v281_v21 = vmax.f32 %v257_v16, 0.0 }
  0xf4   :  { %363 = vst.msk [vmem:[%s694_s5 + $0x38] sm:$0xf] %vm348_vm2, %v412_v17  ;;  %v413_v22 = vpack.c.bf16 %v283_v18, %v283_v18  ;;  %354 = vst.msk [vmem:[%s694_s5 + $0x14] sm:$0xf] %vm348_vm2, %v403_v19 }
  0xf5   :  { %361 = vst.msk [vmem:[%s694_s5 + $0x30] sm:$0xf] %vm348_vm2, %v410_v20  ;;  %v411_v5 = vpack.c.bf16 %v281_v21, %v281_v21 }
  0xf6   :  { %364 = vst.msk [vmem:[%s694_s5 + $0x3c] sm:$0xf] %vm348_vm2, %v413_v22 }
  0xf7   :  { %362 = vst.msk [vmem:[%s694_s5 + $0x34] sm:$0xf] %vm348_vm2, %v411_v5 }

// kernel: densenet_forward.31
= control target key start
LH: loop header
LB: loop body
LE: loop exit
PB: predicated region body
PF: predicated region fallthrough
CT: control target
= control target key end

     0   :  { %vm136_vm0 = vcmask 261120   ;;  %vm322_vm1 = vcmask 125952   ;;  %s631_s1 = inlined_call_operand.vmem [shape: bf16[32,16], index: 1, kind: input, shape index: {}]   ;;  %s632_s0 = inlined_call_operand.vmem [shape: bf16[128,32], index: 0, kind: input, shape index: {}]   ;;  %s633_s2 = inlined_call_operand.vmem [shape: f32[1,32], index: 2, kind: input, shape index: {}]   ;;  %s634_s3 = inlined_call_operand.vmem [shape: f32[1,32], index: 3, kind: input, shape index: {}]   ;;  %s635_s4 = inlined_call_operand.vmem [shape: bf16[128,16], index: 4, kind: output, shape index: {}]  }
   0x1   :  { %v460_v0 = vld [vmem:[%s631_s1] sm:$0xff]   ;;  %v461_v1 = vld [vmem:[%s631_s1 + $0x8] sm:$0xff]   ;;  %v420_v14 = vld [vmem:[%s632_s0 + $0x10] sm:$0xff]  }
   0x2   :  { %436 = vmatprep.subr.bf16.mxu0 %v460_v0  ;;  %456 = vmatprep.subr.bf16.mxu1 %v460_v0  ;;  %v388_v2 = vld [vmem:[%s632_s0] sm:$0xff]   ;;  %v419_v7 = vld [vmem:[%s632_s0 + $0x8] sm:$0xff]   ;;  %v397_v26 = vunpack.c.l.bf16 %v420_v14  ;;  %v424_v35 = vld [vmem:[%s632_s0 + $0x30] sm:$0xff]   ;;  %v398_v44 = vunpack.c.h.bf16 %v420_v14 }
   0x3   :  { %v499_v3 = vld [vmem:[%s633_s2] ss:$0 sm:$0xff]  ;;  %437 = vmatpush3.bf16.msra.mxu0 %v460_v0  ;;  %458 = vmatpush3.bf16.msra.mxu1 %v460_v0  ;;  %v389_v4 = vunpack.c.l.bf16 %v388_v2  ;;  %v390_v5 = vunpack.c.h.bf16 %v388_v2  ;;  %v423_v8 = vld [vmem:[%s632_s0 + $0x28] sm:$0xff]   ;;  %v393_v12 = vunpack.c.l.bf16 %v419_v7  ;;  %v394_v13 = vunpack.c.h.bf16 %v419_v7  ;;  %v421_v40 = vld [vmem:[%s632_s0 + $0x18] sm:$0xff]  }
   0x4   :  { %v422_v6 = vld [vmem:[%s632_s0 + $0x20] sm:$0xff]   ;;  %438 = vmatprep.subr.bf16.mxu0 %v461_v1  ;;  %457 = vmatprep.subr.bf16.mxu1 %v461_v1  ;;  %v409_v17 = vunpack.c.l.bf16 %v423_v8  ;;  %v410_v18 = vunpack.c.h.bf16 %v423_v8  ;;  %v425_v45 = vld [vmem:[%s632_s0 + $0x38] sm:$0xff]   ;;  %v61_v48 = vmul.f32 %v397_v26, %v499_v3  ;;  %v413_v49 = vunpack.c.l.bf16 %v424_v35 }
   0x5   :  { %v513_v9 = vld [vmem:[%s634_s3] ss:$0 sm:$0xff]  ;;  %v405_v10 = vunpack.c.l.bf16 %v422_v6  ;;  %v406_v11 = vunpack.c.h.bf16 %v422_v6  ;;  %v57_v15 = vmul.f32 %v389_v4, %v499_v3  ;;  %v58_v16 = vmul.f32 %v390_v5, %v499_v3 }
   0x6   :  { %v59_v21 = vmul.f32 %v393_v12, %v499_v3  ;;  %v60_v22 = vmul.f32 %v394_v13, %v499_v3  ;;  %v67_v25 = vmul.f32 %v409_v17, %v499_v3  ;;  %v68_v33 = vmul.f32 %v410_v18, %v499_v3 }
   0x7   :  { %v65_v19 = vmul.f32 %v405_v10, %v499_v3  ;;  %v66_v20 = vmul.f32 %v406_v11, %v499_v3  ;;  %439 = vmatpush3.bf16.msra.mxu0 %v461_v1  ;;  %459 = vmatpush3.bf16.msra.mxu1 %v461_v1  ;;  %v80_v23 = vadd.f32 %v513_v9, %v57_v15  ;;  %v414_v52 = vunpack.c.h.bf16 %v424_v35 }
   0x8   :  { %v81_v24 = vadd.f32 %v513_v9, %v58_v16  ;;  %v82_v29 = vadd.f32 %v513_v9, %v59_v21  ;;  %v83_v30 = vadd.f32 %v513_v9, %v60_v22  ;;  %v90_v34 = vadd.f32 %v513_v9, %v67_v25 }
   0x9   :  { %v88_v27 = vadd.f32 %v513_v9, %v65_v19  ;;  %v89_v28 = vadd.f32 %v513_v9, %v66_v20  ;;  %v96_v31 = vmax.f32 %v80_v23, 0.0  ;;  %v91_v42 = vadd.f32 %v513_v9, %v68_v33 }
   0xa   :  { %v97_v32 = vmax.f32 %v81_v24, 0.0  ;;  %v98_v38 = vmax.f32 %v82_v29, 0.0  ;;  %v99_v39 = vmax.f32 %v83_v30, 0.0  ;;  %v106_v43 = vmax.f32 %v90_v34, 0.0 }
   0xb   :  { %v104_v36 = vmax.f32 %v88_v27, 0.0  ;;  %v105_v37 = vmax.f32 %v89_v28, 0.0  ;;  %v107_v50 = vmax.f32 %v91_v42, 0.0  ;;  %v62_v51 = vmul.f32 %v398_v44, %v499_v3 }
   0xc   :  { %v112_v41 = vpack.c.bf16 %v97_v32, %v96_v31  ;;  %v113_v47 = vpack.c.bf16 %v99_v39, %v98_v38  ;;  %v401_v53 = vunpack.c.l.bf16 %v421_v40  ;;  %v84_v54 = vadd.f32 %v513_v9, %v61_v48 }
   0xd   :  { %v116_v46 = vpack.c.bf16 %v105_v37, %v104_v36  ;;  %v69_v55 = vmul.f32 %v413_v49, %v499_v3  ;;  %v402_v56 = vunpack.c.h.bf16 %v421_v40  ;;  %v417_v57 = vunpack.c.l.bf16 %v425_v45 }
   0xe   :  { %440 = vmatprep.mubr.msk.bf16.mxu0 %vm136_vm0, %v112_v41  ;;  %v117_v58 = vpack.c.bf16 %v107_v50, %v106_v43  ;;  %v85_v59 = vadd.f32 %v513_v9, %v62_v51  ;;  %v70_v60 = vmul.f32 %v414_v52, %v499_v3  ;;  %v63_v61 = vmul.f32 %v401_v53, %v499_v3 }
   0xf   :  { %448 = vmatprep.mubr.msk.bf16.mxu1 %vm136_vm0, %v116_v46  ;;  %441 = vmatmul.mubr.msk.bf16.vlgmr.msra.gmra.mrb[0].mxu0 %vm136_vm0, %v113_v47  ;;  %v100_v62 = vmax.f32 %v84_v54, 0.0  ;;  %v92_v63 = vadd.f32 %v513_v9, %v69_v55  ;;  %v64_v0 = vmul.f32 %v402_v56, %v499_v3  ;;  %v418_v1 = vunpack.c.h.bf16 %v425_v45 }
  0x10   :  { %449 = vmatmul.mubr.msk.bf16.vlgmr.msra.gmra.mrb[0].mxu1 %vm136_vm0, %v117_v58  ;;  %v101_v2 = vmax.f32 %v85_v59, 0.0  ;;  %v93_v4 = vadd.f32 %v513_v9, %v70_v60  ;;  %v86_v5 = vadd.f32 %v513_v9, %v63_v61  ;;  %v71_v6 = vmul.f32 %v417_v57, %v499_v3 }
  0x11   :  { %v108_v7 = vmax.f32 %v92_v63, 0.0  ;;  %v87_v8 = vadd.f32 %v513_v9, %v64_v0  ;;  %v72_v10 = vmul.f32 %v418_v1, %v499_v3 }
  0x12   :  { %v114_v11 = vpack.c.bf16 %v101_v2, %v100_v62  ;;  %v109_v12 = vmax.f32 %v93_v4, 0.0  ;;  %v102_v13 = vmax.f32 %v86_v5, 0.0  ;;  %v94_v14 = vadd.f32 %v513_v9, %v71_v6 }
  0x13   :  { %v103_v15 = vmax.f32 %v87_v8, 0.0  ;;  %v95_v16 = vadd.f32 %v513_v9, %v72_v10 }
  0x14   :  { %444 = vmatprep.mubr.msk.bf16.mxu0 %vm136_vm0, %v114_v11  ;;  %v118_v17 = vpack.c.bf16 %v109_v12, %v108_v7  ;;  %v110_v18 = vmax.f32 %v94_v14, 0.0 }
  0x15   :  { %v115_v19 = vpack.c.bf16 %v103_v15, %v102_v13  ;;  %v111_v20 = vmax.f32 %v95_v16, 0.0 }
  0x16   :  { %452 = vmatprep.mubr.msk.bf16.mxu1 %vm136_vm0, %v118_v17 }
  0x17   :  { %445 = vmatmul.mubr.msk.bf16.gmra.mrb[4].mxu0 %vm136_vm0, %v115_v19  ;;  %v119_v21 = vpack.c.bf16 %v111_v20, %v110_v18 }
  0x19   :  { %453 = vmatmul.mubr.msk.bf16.gmra.mrb[4].mxu1 %vm136_vm0, %v119_v21 }
  0xe2   :  { %v442_v3 = vpop.f32.mrb[0].mxu0 }
  0xe3   :  { %v373_v22 = vpack.c.bf16 %v442_v3, %v442_v3  ;;  %v195_v23 = vpop.f32.mrb[1].mxu0  ;;  %v450_v9 = vpop.f32.mrb[0].mxu1 }
  0xe4   :  { %v371_v24 = vpack.c.bf16 %v195_v23, %v195_v23  ;;  %v443_v25 = vpop.f32.mrb[2].mxu0  ;;  %v381_v28 = vpack.c.bf16 %v450_v9, %v450_v9  ;;  %v227_v29 = vpop.f32.mrb[1].mxu1 }
  0xe5   :  { %325 = vst.msk [vmem:[%s635_s4 + $0x8] sm:$0xf] %vm322_vm1, %v373_v22  ;;  %v374_v26 = vpack.c.bf16 %v443_v25, %v443_v25  ;;  %v198_v27 = vpop.f32.mrb[3].mxu0  ;;  %v379_v31 = vpack.c.bf16 %v227_v29, %v227_v29  ;;  %v451_v32 = vpop.f32.mrb[2].mxu1 }
  0xe6   :  { %323 = vst.msk [vmem:[%s635_s4] sm:$0xf] %vm322_vm1, %v371_v24  ;;  %v372_v30 = vpack.c.bf16 %v198_v27, %v198_v27  ;;  %333 = vst.msk [vmem:[%s635_s4 + $0x28] sm:$0xf] %vm322_vm1, %v381_v28  ;;  %v382_v33 = vpack.c.bf16 %v451_v32, %v451_v32  ;;  %v230_v34 = vpop.f32.mrb[3].mxu1 }
  0xe7   :  { %326 = vst.msk [vmem:[%s635_s4 + $0xc] sm:$0xf] %vm322_vm1, %v374_v26  ;;  %331 = vst.msk [vmem:[%s635_s4 + $0x20] sm:$0xf] %vm322_vm1, %v379_v31  ;;  %v380_v35 = vpack.c.bf16 %v230_v34, %v230_v34 }
  0xe8   :  { %324 = vst.msk [vmem:[%s635_s4 + $0x4] sm:$0xf] %vm322_vm1, %v372_v30  ;;  %334 = vst.msk [vmem:[%s635_s4 + $0x2c] sm:$0xf] %vm322_vm1, %v382_v33 }
  0xe9   :  { %332 = vst.msk [vmem:[%s635_s4 + $0x24] sm:$0xf] %vm322_vm1, %v380_v35 }
  0xea   :  { %v446_v36 = vpop.f32.mrb[4].mxu0 }
  0xeb   :  { %v377_v37 = vpack.c.bf16 %v446_v36, %v446_v36  ;;  %v211_v38 = vpop.f32.mrb[5].mxu0 }
  0xec   :  { %v454_v39 = vpop.f32.mrb[4].mxu1  ;;  %v375_v40 = vpack.c.bf16 %v211_v38, %v211_v38  ;;  %v447_v41 = vpop.f32.mrb[6].mxu0 }
  0xed   :  { %329 = vst.msk [vmem:[%s635_s4 + $0x18] sm:$0xf] %vm322_vm1, %v377_v37  ;;  %v385_v42 = vpack.c.bf16 %v454_v39, %v454_v39  ;;  %v243_v43 = vpop.f32.mrb[5].mxu1  ;;  %v378_v44 = vpack.c.bf16 %v447_v41, %v447_v41  ;;  %v214_v45 = vpop.f32.mrb[7].mxu0 }
  0xee   :  { %327 = vst.msk [vmem:[%s635_s4 + $0x10] sm:$0xf] %vm322_vm1, %v375_v40  ;;  %v383_v46 = vpack.c.bf16 %v243_v43, %v243_v43  ;;  %v455_v47 = vpop.f32.mrb[6].mxu1  ;;  %v376_v48 = vpack.c.bf16 %v214_v45, %v214_v45 }
  0xef   :  { %337 = vst.msk [vmem:[%s635_s4 + $0x38] sm:$0xf] %vm322_vm1, %v385_v42  ;;  %330 = vst.msk [vmem:[%s635_s4 + $0x1c] sm:$0xf] %vm322_vm1, %v378_v44  ;;  %v386_v49 = vpack.c.bf16 %v455_v47, %v455_v47  ;;  %v246_v50 = vpop.f32.mrb[7].mxu1 }
  0xf0   :  { %335 = vst.msk [vmem:[%s635_s4 + $0x30] sm:$0xf] %vm322_vm1, %v383_v46  ;;  %328 = vst.msk [vmem:[%s635_s4 + $0x14] sm:$0xf] %vm322_vm1, %v376_v48  ;;  %v384_v51 = vpack.c.bf16 %v246_v50, %v246_v50 }
  0xf1   :  { %338 = vst.msk [vmem:[%s635_s4 + $0x3c] sm:$0xf] %vm322_vm1, %v386_v49 }
  0xf2   :  { %336 = vst.msk [vmem:[%s635_s4 + $0x34] sm:$0xf] %vm322_vm1, %v384_v51 }

// kernel: densenet_forward.32
= control target key start
LH: loop header
LB: loop body
LE: loop exit
PB: predicated region body
PF: predicated region fallthrough
CT: control target
= control target key end

     0   :  { %vm72_vm0 = vcmask 130048   ;;  %vm148_vm1 = vcmask 257024   ;;  %s250_s1 = inlined_call_operand.vmem [shape: bf16[16,32], index: 1, kind: input, shape index: {}]   ;;  %s251_s0 = inlined_call_operand.vmem [shape: bf16[32,16], index: 0, kind: input, shape index: {}]   ;;  %s252_s2 = inlined_call_operand.vmem [shape: f32[1,16], index: 2, kind: input, shape index: {}]   ;;  %s253_s3 = inlined_call_operand.vmem [shape: f32[1,16], index: 3, kind: input, shape index: {}]   ;;  %s254_s4 = inlined_call_operand.vmem [shape: f32[1,32], index: 4, kind: input, shape index: {}]   ;;  %s255_s5 = inlined_call_operand.vmem [shape: bf16[32,32], index: 5, kind: output, shape index: {}]  }
   0x1   :  { %v189_v0 = vld [vmem:[%s250_s1] sm:$0xff]   ;;  %v179_v2 = vld [vmem:[%s251_s0 + $0x8] sm:$0xff]  }
   0x2   :  { %v172_v1 = vld [vmem:[%s251_s0] sm:$0xff]   ;;  %183 = vmatprep.subr.bf16.mxu0 %v189_v0  ;;  %v177_v6 = vunpack.c.l.bf16 %v179_v2  ;;  %v178_v7 = vunpack.c.h.bf16 %v179_v2 }
   0x3   :  { %v157_v3 = vld [vmem:[%s252_s2] ss:$0 sm:$0xff]  ;;  %v173_v4 = vunpack.c.l.bf16 %v172_v1  ;;  %v174_v5 = vunpack.c.h.bf16 %v172_v1  ;;  %184 = vmatpush3.bf16.msra.mxu0 %v189_v0 }
   0x4   :  { %v158_v8 = vld [vmem:[%s253_s3] ss:$0 sm:$0xff]  ;;  %v38_v11 = vmul.f32 %v177_v6, %v157_v3  ;;  %v39_v12 = vmul.f32 %v178_v7, %v157_v3 }
   0x5   :  { %v36_v9 = vmul.f32 %v173_v4, %v157_v3  ;;  %v37_v10 = vmul.f32 %v174_v5, %v157_v3  ;;  %v159_v23 = vld [vmem:[%s254_s4] ss:$0 sm:$0xff] }
   0x6   :  { %v49_v15 = vadd.f32 %v158_v8, %v38_v11  ;;  %v50_v16 = vadd.f32 %v158_v8, %v39_v12 }
   0x7   :  { %v47_v13 = vadd.f32 %v158_v8, %v36_v9  ;;  %v48_v14 = vadd.f32 %v158_v8, %v37_v10 }
   0x8   :  { %v53_v19 = vmax.f32 %v49_v15, 0.0  ;;  %v54_v20 = vmax.f32 %v50_v16, 0.0 }
   0x9   :  { %v51_v17 = vmax.f32 %v47_v13, 0.0  ;;  %v52_v18 = vmax.f32 %v48_v14, 0.0 }
   0xa   :  { %v56_v22 = vpack.c.bf16 %v54_v20, %v53_v19 }
   0xb   :  { %v55_v21 = vpack.c.bf16 %v52_v18, %v51_v17 }
   0xd   :  { %185 = vmatprep.mubr.msk.bf16.mxu0 %vm72_vm0, %v55_v21 }
   0xe   :  { %186 = vmatmul.mubr.msk.bf16.vlgmr.msra.gmra.mrb[0].mxu0 %vm72_vm0, %v56_v22 }
  0xe1   :  { %v187_v24 = vpop.f32.mrb[0].mxu0 }
  0xe2   :  { %v122_v25 = vadd.f32 %v187_v24, %v159_v23  ;;  %v113_v26 = vpop.f32.mrb[1].mxu0 }
  0xe3   :  { %v114_v27 = vadd.f32 %v159_v23, %v113_v26  ;;  %v188_v28 = vpop.f32.mrb[2].mxu0 }
  0xe4   :  { %v130_v29 = vmax.f32 %v122_v25, 0.0  ;;  %v125_v30 = vadd.f32 %v188_v28, %v159_v23  ;;  %v116_v31 = vpop.f32.mrb[3].mxu0 }
  0xe5   :  { %v128_v32 = vmax.f32 %v114_v27, 0.0  ;;  %v117_v33 = vadd.f32 %v159_v23, %v116_v31 }
  0xe6   :  { %v169_v34 = vpack.c.bf16 %v130_v29, %v130_v29  ;;  %v131_v35 = vmax.f32 %v125_v30, 0.0 }
  0xe7   :  { %v167_v36 = vpack.c.bf16 %v128_v32, %v128_v32  ;;  %v129_v37 = vmax.f32 %v117_v33, 0.0 }
  0xe8   :  { %151 = vst.msk [vmem:[%s255_s5 + $0x8] sm:$0xf] %vm148_vm1, %v169_v34  ;;  %v170_v38 = vpack.c.bf16 %v131_v35, %v131_v35 }
  0xe9   :  { %149 = vst.msk [vmem:[%s255_s5] sm:$0xf] %vm148_vm1, %v167_v36  ;;  %v168_v39 = vpack.c.bf16 %v129_v37, %v129_v37 }
  0xea   :  { %152 = vst.msk [vmem:[%s255_s5 + $0xc] sm:$0xf] %vm148_vm1, %v170_v38 }
  0xeb   :  { %150 = vst.msk [vmem:[%s255_s5 + $0x4] sm:$0xf] %vm148_vm1, %v168_v39 }

// kernel: densenet_forward.33
= control target key start
LH: loop header
LB: loop body
LE: loop exit
PB: predicated region body
PF: predicated region fallthrough
CT: control target
= control target key end

     0   :  { %vm194_vm0 = vcmask 261120   ;;  %vm315_vm1 = vcmask 60416   ;;  %s527_s1 = inlined_call_operand.vmem [shape: bf16[288,8], index: 1, kind: input, shape index: {}]   ;;  %s528_s0 = inlined_call_operand.vmem [shape: bf16[32,288], index: 0, kind: input, shape index: {}]   ;;  %s529_s2 = inlined_call_operand.vmem [shape: bf16[32,8], index: 2, kind: output, shape index: {}]  }
   0x1   :  { %v398_v0 = vld [vmem:[%s527_s1 + $0x40] sm:$0xff]   ;;  %v400_v2 = vld [vmem:[%s527_s1 + $0x48] sm:$0xff]   ;;  %v402_v4 = vld [vmem:[%s527_s1 + $0x50] sm:$0xff]  }
   0x2   :  { %v399_v1 = vld [vmem:[%s527_s1] sm:$0xff]   ;;  %358 = vmatprep.subr.bf16.mxu0 %v398_v0  ;;  %v401_v3 = vld [vmem:[%s527_s1 + $0x8] sm:$0xff]   ;;  %v403_v5 = vld [vmem:[%s527_s1 + $0x10] sm:$0xff]  }
   0x3   :  { %359 = vmatpush3.bf16.msra.mxu0 %v399_v1  ;;  %v404_v6 = vld [vmem:[%s527_s1 + $0x58] sm:$0xff]   ;;  %v406_v8 = vld [vmem:[%s527_s1 + $0x60] sm:$0xff]   ;;  %v408_v11 = vld [vmem:[%s527_s1 + $0x68] sm:$0xff]  }
   0x4   :  { %360 = vmatprep.subr.bf16.mxu0 %v400_v2  ;;  %v405_v7 = vld [vmem:[%s527_s1 + $0x18] sm:$0xff]   ;;  %v412_v9 = vld [vmem:[%s527_s1 + $0x80] sm:$0xff]   ;;  %v409_v12 = vld [vmem:[%s527_s1 + $0x28] sm:$0xff]  }
   0x5   :  { %v407_v10 = vld [vmem:[%s527_s1 + $0x20] sm:$0xff]   ;;  %390 = vmatprep.subr.bf16.mxu1 %v412_v9  ;;  %v415_v13 = vld [vmem:[%s527_s1 + $0x88] sm:$0xff]   ;;  %v410_v14 = vld [vmem:[%s527_s1 + $0x70] sm:$0xff]  }
   0x6   :  { %391 = vmatpush3.bf16.msra.mxu1 %v412_v9  ;;  %v418_v15 = vld [vmem:[%s528_s0 + $0x4] ss:$12 sps:$4 sm:$0xff]   ;;  %v419_v16 = vld [vmem:[%s528_s0 + $0x8] ss:$12 sps:$4 sm:$0xff]   ;;  %v420_v17 = vld [vmem:[%s528_s0 + $0x20] ss:$12 sps:$4 sm:$0xff]  }
   0x7   :  { %361 = vmatpush3.bf16.msra.mxu0 %v401_v3  ;;  %392 = vmatprep.subr.bf16.mxu1 %v415_v13  ;;  %v411_v18 = vld [vmem:[%s527_s1 + $0x30] sm:$0xff]   ;;  %v413_v19 = vld [vmem:[%s527_s1 + $0x78] sm:$0xff]   ;;  %v416_v21 = vld [vmem:[%s528_s0] ss:$12 sps:$4 sm:$0xff]  }
   0x8   :  { %362 = vmatprep.subr.bf16.mxu0 %v402_v4  ;;  %233 = vmatprep.mubr.bf16.mxu0 %v418_v15  ;;  %v414_v20 = vld [vmem:[%s527_s1 + $0x38] sm:$0xff]  }
   0x9   :  { %394 = vmatprep.mubr.msk.bf16.mxu1 %vm194_vm0, %v419_v16  ;;  %v421_v22 = vld [vmem:[%s528_s0 + $0x1c] ss:$12 sps:$4 sm:$0xff]   ;;  %v423_v23 = vld [vmem:[%s528_s0 + $0x18] ss:$12 sps:$4 sm:$0xff]  }
   0xa   :  { %393 = vmatpush3.bf16.msra.mxu1 %v415_v13 }
   0xb   :  { %363 = vmatpush3.bf16.msra.mxu0 %v403_v5 }
   0xc   :  { %364 = vmatprep.subr.bf16.mxu0 %v404_v6 }
   0xd   :  { %395 = vmatmul.mubr.msk.bf16.vlgmr.msra.gmra.mrb[0].mxu1 %vm194_vm0, %v420_v17 }
   0xf   :  { %365 = vmatpush3.bf16.msra.mxu0 %v405_v7 }
  0x10   :  { %366 = vmatprep.subr.bf16.mxu0 %v406_v8 }
  0x13   :  { %367 = vmatpush3.bf16.msra.mxu0 %v407_v10 }
  0x14   :  { %368 = vmatprep.subr.bf16.mxu0 %v408_v11 }
  0x17   :  { %369 = vmatpush3.bf16.msra.mxu0 %v409_v12 }
  0x18   :  { %370 = vmatprep.subr.bf16.mxu0 %v410_v14 }
  0x1b   :  { %371 = vmatpush3.bf16.msra.mxu0 %v411_v18 }
  0x1c   :  { %372 = vmatprep.subr.bf16.mxu0 %v413_v19 }
  0x1f   :  { %373 = vmatpush3.bf16.msra.mxu0 %v414_v20 }
  0x22   :  { %234 = vmatmul.mubr.bf16.vlgmr.msra.gmra.mrb[0].mxu0 %v416_v21 }
  0x23   :  { %241 = vmatprep.mubr.bf16.mxu0 %v421_v22 }
  0x2a   :  { %242 = vmatmul.mubr.bf16.gmra.mrb[4].mxu0 %v423_v23 }
  0xe0   :  { %v396_v24 = vpop.f32.mrb[0].mxu1 }
  0xe1   :  { %v284_v25 = vpop.f32.mrb[1].mxu1 }
  0xe2   :  { %v397_v26 = vpop.f32.mrb[2].mxu1 }
  0xe3   :  { %v287_v27 = vpop.f32.mrb[3].mxu1 }
  0xf5   :  { %v374_v28 = vpop.f32.mrb[0].mxu0 }
  0xf6   :  { %v375_v29 = vpop.f32.mrb[1].mxu0 }
  0xf7   :  { %v376_v30 = vadd.f32 %v375_v29, %v374_v28  ;;  %v377_v31 = vpop.f32.mrb[2].mxu0 }
  0xf8   :  { %v378_v32 = vpop.f32.mrb[3].mxu0 }
  0xf9   :  { %v379_v33 = vadd.f32 %v378_v32, %v377_v31  ;;  %v285_v34 = vadd.f32 %v376_v30, %v284_v25 }
  0xfb   :  { %v354_v35 = vpack.c.bf16 %v285_v34, %v285_v34  ;;  %v288_v36 = vadd.f32 %v379_v33, %v287_v27 }
  0xfd   :  { %316 = vst.msk [vmem:[%s529_s2] sm:$0xf] %vm315_vm1, %v354_v35  ;;  %v355_v37 = vpack.c.bf16 %v288_v36, %v288_v36  ;;  %v380_v38 = vpop.f32.mrb[4].mxu0 }
  0xfe   :  { %v381_v39 = vpop.f32.mrb[5].mxu0 }
  0xff   :  { %317 = vst.msk [vmem:[%s529_s2 + $0x4] sm:$0xf] %vm315_vm1, %v355_v37  ;;  %v382_v40 = vadd.f32 %v381_v39, %v380_v38  ;;  %v383_v41 = vpop.f32.mrb[6].mxu0 }
 0x100   :  { %v384_v42 = vpop.f32.mrb[7].mxu0 }
 0x101   :  { %v293_v43 = vadd.f32 %v396_v24, %v382_v40  ;;  %v385_v44 = vadd.f32 %v384_v42, %v383_v41 }
 0x103   :  { %v356_v45 = vpack.c.bf16 %v293_v43, %v293_v43  ;;  %v296_v46 = vadd.f32 %v397_v26, %v385_v44 }
 0x105   :  { %318 = vst.msk [vmem:[%s529_s2 + $0x8] sm:$0xf] %vm315_vm1, %v356_v45  ;;  %v357_v47 = vpack.c.bf16 %v296_v46, %v296_v46 }
 0x107   :  { %319 = vst.msk [vmem:[%s529_s2 + $0xc] sm:$0xf] %vm315_vm1, %v357_v47 }

// kernel: densenet_forward.34
= control target key start
LH: loop header
LB: loop body
LE: loop exit
PB: predicated region body
PF: predicated region fallthrough
CT: control target
= control target key end

     0   :  { %vm83_vm0 = vcmask 1043456   ;;  %vm76_vm1 = vcmask 195584   ;;  %vm156_vm2 = vcmask 257024   ;;  %s267_s1 = inlined_call_operand.vmem [shape: bf16[24,32], index: 1, kind: input, shape index: {}]   ;;  %s268_s0 = inlined_call_operand.vmem [shape: bf16[32,24], index: 0, kind: input, shape index: {}]   ;;  %s269_s2 = inlined_call_operand.vmem [shape: f32[1,24], index: 2, kind: input, shape index: {}]   ;;  %s270_s3 = inlined_call_operand.vmem [shape: f32[1,24], index: 3, kind: input, shape index: {}]   ;;  %s271_s4 = inlined_call_operand.vmem [shape: f32[1,32], index: 4, kind: input, shape index: {}]   ;;  %s272_s5 = inlined_call_operand.vmem [shape: bf16[32,32], index: 5, kind: output, shape index: {}]  }
   0x1   :  { %v202_v0 = vld [vmem:[%s267_s1] sm:$0xff]   ;;  %v203_v1 = vld [vmem:[%s267_s1 + $0x8] ss:$0 sps:$4 sm:$0xff]  }
   0x2   :  { %v181_v2 = vld [vmem:[%s268_s0] sm:$0xff]   ;;  %v188_v5 = vld [vmem:[%s268_s0 + $0x8] sm:$0xff]   ;;  %193 = vmatprep.subr.bf16.mxu0 %v202_v0  ;;  %v85_v12 = vsel %vm83_vm0, %v203_v1, 0 }
   0x3   :  { %v182_v3 = vunpack.c.l.bf16 %v181_v2  ;;  %v183_v4 = vunpack.c.h.bf16 %v181_v2  ;;  %v165_v6 = vld [vmem:[%s269_s2] ss:$0 sm:$0xff]  ;;  %v186_v7 = vunpack.c.l.bf16 %v188_v5  ;;  %v187_v8 = vunpack.c.h.bf16 %v188_v5  ;;  %194 = vmatpush3.bf16.msra.mxu0 %v202_v0 }
   0x4   :  { %v166_v9 = vld [vmem:[%s270_s3] ss:$0 sm:$0xff]  ;;  %201 = vmatprep.subr.msk.bf16.mxu0 %vm83_vm0, %v203_v1 }
   0x5   :  { %v36_v10 = vmul.f32 %v182_v3, %v165_v6  ;;  %v37_v11 = vmul.f32 %v183_v4, %v165_v6  ;;  %v38_v13 = vmul.f32 %v186_v7, %v165_v6  ;;  %v39_v14 = vmul.f32 %v187_v8, %v165_v6  ;;  %v167_v25 = vld [vmem:[%s271_s4] ss:$0 sm:$0xff] }
   0x7   :  { %v47_v15 = vadd.f32 %v166_v9, %v36_v10  ;;  %v48_v16 = vadd.f32 %v166_v9, %v37_v11  ;;  %v49_v17 = vadd.f32 %v166_v9, %v38_v13  ;;  %v50_v18 = vadd.f32 %v166_v9, %v39_v14  ;;  %196 = vmatpush3.bf16.msra.mxu0 %v85_v12 }
   0x9   :  { %v51_v19 = vmax.f32 %v47_v15, 0.0  ;;  %v52_v20 = vmax.f32 %v48_v16, 0.0  ;;  %v53_v21 = vmax.f32 %v49_v17, 0.0  ;;  %v54_v22 = vmax.f32 %v50_v18, 0.0 }
   0xb   :  { %v55_v23 = vpack.c.bf16 %v52_v20, %v51_v19  ;;  %v56_v24 = vpack.c.bf16 %v54_v22, %v53_v21 }
   0xd   :  { %197 = vmatprep.mubr.msk.bf16.mxu0 %vm76_vm1, %v55_v23 }
   0xe   :  { %198 = vmatmul.mubr.msk.bf16.vlgmr.msra.gmra.mrb[0].mxu0 %vm76_vm1, %v56_v24 }
  0xe1   :  { %v199_v26 = vpop.f32.mrb[0].mxu0 }
  0xe2   :  { %v130_v27 = vadd.f32 %v199_v26, %v167_v25  ;;  %v121_v28 = vpop.f32.mrb[1].mxu0 }
  0xe3   :  { %v122_v29 = vadd.f32 %v167_v25, %v121_v28  ;;  %v200_v30 = vpop.f32.mrb[2].mxu0 }
  0xe4   :  { %v138_v31 = vmax.f32 %v130_v27, 0.0  ;;  %v133_v32 = vadd.f32 %v200_v30, %v167_v25  ;;  %v124_v33 = vpop.f32.mrb[3].mxu0 }
  0xe5   :  { %v136_v34 = vmax.f32 %v122_v29, 0.0  ;;  %v125_v35 = vadd.f32 %v167_v25, %v124_v33 }
  0xe6   :  { %v178_v36 = vpack.c.bf16 %v138_v31, %v138_v31  ;;  %v139_v37 = vmax.f32 %v133_v32, 0.0 }
  0xe7   :  { %v176_v38 = vpack.c.bf16 %v136_v34, %v136_v34  ;;  %v137_v39 = vmax.f32 %v125_v35, 0.0 }
  0xe8   :  { %159 = vst.msk [vmem:[%s272_s5 + $0x8] sm:$0xf] %vm156_vm2, %v178_v36  ;;  %v179_v40 = vpack.c.bf16 %v139_v37, %v139_v37 }
  0xe9   :  { %157 = vst.msk [vmem:[%s272_s5] sm:$0xf] %vm156_vm2, %v176_v38  ;;  %v177_v41 = vpack.c.bf16 %v137_v39, %v137_v39 }
  0xea   :  { %160 = vst.msk [vmem:[%s272_s5 + $0xc] sm:$0xf] %vm156_vm2, %v179_v40 }
  0xeb   :  { %158 = vst.msk [vmem:[%s272_s5 + $0x4] sm:$0xf] %vm156_vm2, %v177_v41 }

// kernel: densenet_forward.36
= control target key start
LH: loop header
LB: loop body
LE: loop exit
PB: predicated region body
PF: predicated region fallthrough
CT: control target
= control target key end

     0   :  { %vm70_vm0 = vcmask 261120   ;;  %vm142_vm1 = vcmask 125952   ;;  %s243_s1 = inlined_call_operand.vmem [shape: bf16[32,16], index: 1, kind: input, shape index: {}]   ;;  %s244_s0 = inlined_call_operand.vmem [shape: bf16[32,32], index: 0, kind: input, shape index: {}]   ;;  %s245_s2 = inlined_call_operand.vmem [shape: f32[1,32], index: 2, kind: input, shape index: {}]   ;;  %s246_s3 = inlined_call_operand.vmem [shape: f32[1,32], index: 3, kind: input, shape index: {}]   ;;  %s247_s4 = inlined_call_operand.vmem [shape: bf16[32,16], index: 4, kind: output, shape index: {}]  }
   0x1   :  { %v186_v0 = vld [vmem:[%s243_s1] sm:$0xff]   ;;  %v187_v1 = vld [vmem:[%s243_s1 + $0x8] sm:$0xff]  }
   0x2   :  { %178 = vmatprep.subr.bf16.mxu0 %v186_v0  ;;  %v166_v2 = vld [vmem:[%s244_s0] sm:$0xff]   ;;  %v173_v3 = vld [vmem:[%s244_s0 + $0x8] sm:$0xff]  }
   0x3   :  { %v151_v4 = vld [vmem:[%s245_s2] ss:$0 sm:$0xff]  ;;  %179 = vmatpush3.bf16.msra.mxu0 %v186_v0  ;;  %v167_v5 = vunpack.c.l.bf16 %v166_v2  ;;  %v168_v6 = vunpack.c.h.bf16 %v166_v2  ;;  %v171_v7 = vunpack.c.l.bf16 %v173_v3  ;;  %v172_v8 = vunpack.c.h.bf16 %v173_v3 }
   0x4   :  { %180 = vmatprep.subr.bf16.mxu0 %v187_v1  ;;  %v152_v9 = vld [vmem:[%s246_s3] ss:$0 sm:$0xff] }
   0x5   :  { %v33_v10 = vmul.f32 %v167_v5, %v151_v4  ;;  %v34_v11 = vmul.f32 %v168_v6, %v151_v4  ;;  %v35_v12 = vmul.f32 %v171_v7, %v151_v4  ;;  %v36_v13 = vmul.f32 %v172_v8, %v151_v4 }
   0x7   :  { %181 = vmatpush3.bf16.msra.mxu0 %v187_v1  ;;  %v44_v14 = vadd.f32 %v152_v9, %v33_v10  ;;  %v45_v15 = vadd.f32 %v152_v9, %v34_v11  ;;  %v46_v16 = vadd.f32 %v152_v9, %v35_v12  ;;  %v47_v17 = vadd.f32 %v152_v9, %v36_v13 }
   0x9   :  { %v48_v18 = vmax.f32 %v44_v14, 0.0  ;;  %v49_v19 = vmax.f32 %v45_v15, 0.0  ;;  %v50_v20 = vmax.f32 %v46_v16, 0.0  ;;  %v51_v21 = vmax.f32 %v47_v17, 0.0 }
   0xb   :  { %v52_v22 = vpack.c.bf16 %v49_v19, %v48_v18  ;;  %v53_v23 = vpack.c.bf16 %v51_v21, %v50_v20 }
   0xd   :  { %182 = vmatprep.mubr.msk.bf16.mxu0 %vm70_vm0, %v52_v22 }
   0xe   :  { %183 = vmatmul.mubr.msk.bf16.vlgmr.msra.gmra.mrb[0].mxu0 %vm70_vm0, %v53_v23 }
  0xe1   :  { %v184_v24 = vpop.f32.mrb[0].mxu0 }
  0xe2   :  { %v163_v25 = vpack.c.bf16 %v184_v24, %v184_v24  ;;  %v111_v26 = vpop.f32.mrb[1].mxu0 }
  0xe3   :  { %v161_v27 = vpack.c.bf16 %v111_v26, %v111_v26  ;;  %v185_v28 = vpop.f32.mrb[2].mxu0 }
  0xe4   :  { %145 = vst.msk [vmem:[%s247_s4 + $0x8] sm:$0xf] %vm142_vm1, %v163_v25  ;;  %v164_v29 = vpack.c.bf16 %v185_v28, %v185_v28  ;;  %v114_v30 = vpop.f32.mrb[3].mxu0 }
  0xe5   :  { %143 = vst.msk [vmem:[%s247_s4] sm:$0xf] %vm142_vm1, %v161_v27  ;;  %v162_v31 = vpack.c.bf16 %v114_v30, %v114_v30 }
  0xe6   :  { %146 = vst.msk [vmem:[%s247_s4 + $0xc] sm:$0xf] %vm142_vm1, %v164_v29 }
  0xe7   :  { %144 = vst.msk [vmem:[%s247_s4 + $0x4] sm:$0xf] %vm142_vm1, %v162_v31 }

// kernel: densenet_forward.37
= control target key start
LH: loop header
LB: loop body
LE: loop exit
PB: predicated region body
PF: predicated region fallthrough
CT: control target
= control target key end

     0   :  { %v124_v0 = vmov 0.0   ;;  %vm125_vm0 = vmmov 0   ;;  %vm56_vm1 = vcmask 130048   ;;  %vm102_vm2 = vcmask 257024   ;;  %s174_s1 = inlined_call_operand.vmem [shape: bf16[16,32], index: 1, kind: input, shape index: {}]   ;;  %s175_s0 = inlined_call_operand.vmem [shape: bf16[8,16], index: 0, kind: input, shape index: {}]   ;;  %s176_s2 = inlined_call_operand.vmem [shape: f32[1,16], index: 2, kind: input, shape index: {}]   ;;  %s177_s3 = inlined_call_operand.vmem [shape: f32[1,16], index: 3, kind: input, shape index: {}]   ;;  %s178_s4 = inlined_call_operand.vmem [shape: f32[1,32], index: 4, kind: input, shape index: {}]   ;;  %s179_s5 = inlined_call_operand.vmem [shape: bf16[8,32], index: 5, kind: output, shape index: {}]  }
   0x1   :  { %115 = vmatprep.subr.bf16.mxu0 %v124_v0  ;;  %v123_v1 = vld [vmem:[%s174_s1] sm:$0xff]   ;;  %117 = vmatprep.mubr.msk.bf16.mxu0 %vm125_vm0, %v124_v0 }
   0x2   :  { %v21_v2 = vld [vmem:[%s175_s0] sm:$0xf]  ;;  %116 = vmatpush3.bf16.msra.mxu0 %v123_v1 }
   0x3   :  { %v108_v3 = vld [vmem:[%s176_s2] ss:$0 sm:$0xff]  ;;  %v22_v4 = vunpack.c.l.bf16 %v21_v2 }
   0x4   :  { %v109_v5 = vld [vmem:[%s177_s3] ss:$0 sm:$0xff] }
   0x5   :  { %v30_v6 = vmul.f32 %v108_v3, %v22_v4  ;;  %v110_v10 = vld [vmem:[%s178_s4] ss:$0 sm:$0xff] }
   0x7   :  { %v38_v7 = vadd.f32 %v109_v5, %v30_v6 }
   0x9   :  { %v39_v8 = vmax.f32 %v38_v7, 0.0 }
   0xb   :  { %v40_v9 = vpack.c.bf16 %v39_v8, %v39_v8 }
   0xd   :  { %118 = vmatmul.mubr.msk.bf16.vlgmr.msra.gmra.mrb[0].mxu0 %vm56_vm1, %v40_v9 }
  0xe0   :  { %v94_v11 = vpop.f32.mrb[0].mxu0 }
  0xe1   :  { %v95_v12 = vadd.f32 %v110_v10, %v94_v11  ;;  %v119_v13 = vpop.f32.mrb[1].mxu0 }
  0xe2   :  { %v97_v14 = vpop.f32.mrb[2].mxu0 }
  0xe3   :  { %v100_v15 = vmax.f32 %v95_v12, 0.0  ;;  %v120_v16 = vpop.f32.mrb[3].mxu0 }
  0xe5   :  { %v101_v17 = vpack.c.bf16 %v100_v15, %v100_v15 }
  0xe7   :  { %103 = vst.msk [vmem:[%s179_s5] sm:$0xf] %vm102_vm2, %v101_v17 }

// kernel: densenet_forward.38
= control target key start
LH: loop header
LB: loop body
LE: loop exit
PB: predicated region body
PF: predicated region fallthrough
CT: control target
= control target key end

     0   :  { %v337_v1 = vmov 0.0   ;;  %vm338_vm0 = vmmov 0   ;;  %vm168_vm1 = vcmask 261120   ;;  %vm253_vm2 = vcmask 60416   ;;  %s417_s1 = inlined_call_operand.vmem [shape: bf16[288,8], index: 1, kind: input, shape index: {}]   ;;  %s418_s0 = inlined_call_operand.vmem [shape: bf16[8,288], index: 0, kind: input, shape index: {}]   ;;  %s419_s2 = inlined_call_operand.vmem [shape: bf16[8,8], index: 2, kind: output, shape index: {}]  }
   0x1   :  { %v316_v0 = vld [vmem:[%s417_s1 + $0x40] sm:$0xff]   ;;  %306 = vmatprep.subr.bf16.mxu1 %v337_v1  ;;  %310 = vmatprep.mubr.msk.bf16.mxu1 %vm338_vm0, %v337_v1  ;;  %v318_v3 = vld [vmem:[%s417_s1 + $0x48] sm:$0xff]   ;;  %v320_v5 = vld [vmem:[%s417_s1 + $0x50] sm:$0xff]  }
   0x2   :  { %v317_v2 = vld [vmem:[%s417_s1] sm:$0xff]   ;;  %281 = vmatprep.subr.bf16.mxu0 %v316_v0  ;;  %v319_v4 = vld [vmem:[%s417_s1 + $0x8] sm:$0xff]   ;;  %v321_v6 = vld [vmem:[%s417_s1 + $0x10] sm:$0xff]  }
   0x3   :  { %282 = vmatpush3.bf16.msra.mxu0 %v317_v2  ;;  %v322_v7 = vld [vmem:[%s417_s1 + $0x58] sm:$0xff]   ;;  %v324_v9 = vld [vmem:[%s417_s1 + $0x60] sm:$0xff]   ;;  %v326_v12 = vld [vmem:[%s417_s1 + $0x68] sm:$0xff]  }
   0x4   :  { %283 = vmatprep.subr.bf16.mxu0 %v318_v3  ;;  %v323_v8 = vld [vmem:[%s417_s1 + $0x18] sm:$0xff]   ;;  %v330_v10 = vld [vmem:[%s417_s1 + $0x80] sm:$0xff]   ;;  %v333_v13 = vld [vmem:[%s417_s1 + $0x88] sm:$0xff]  }
   0x5   :  { %v325_v11 = vld [vmem:[%s417_s1 + $0x20] sm:$0xff]   ;;  %307 = vmatpush3.bf16.msra.mxu1 %v330_v10  ;;  %v327_v15 = vld [vmem:[%s417_s1 + $0x28] sm:$0xff]   ;;  %v328_v18 = vld [vmem:[%s417_s1 + $0x70] sm:$0xff]  }
   0x6   :  { %308 = vmatprep.subr.bf16.mxu1 %v337_v1  ;;  %v12_v14 = vld [vmem:[%s418_s0] sm:$0xff]  ;;  %v336_v17 = vld [vmem:[%s418_s0 + $0x8] ss:$0 sps:$4 sm:$0xff]   ;;  %v329_v19 = vld [vmem:[%s417_s1 + $0x30] sm:$0xff]  }
   0x7   :  { %284 = vmatpush3.bf16.msra.mxu0 %v319_v4  ;;  %v260_v16 = vcombine.high %v12_v14, %v12_v14  ;;  %v331_v20 = vld [vmem:[%s417_s1 + $0x78] sm:$0xff]   ;;  %v259_v22 = vcombine.low %v12_v14, %v12_v14 }
   0x8   :  { %285 = vmatprep.subr.bf16.mxu0 %v320_v5  ;;  %v332_v21 = vld [vmem:[%s417_s1 + $0x38] sm:$0xff]  }
   0x9   :  { %309 = vmatpush3.bf16.msra.mxu1 %v333_v13  ;;  %204 = vmatprep.mubr.bf16.mxu0 %v260_v16 }
   0xb   :  { %286 = vmatpush3.bf16.msra.mxu0 %v321_v6 }
   0xc   :  { %287 = vmatprep.subr.bf16.mxu0 %v322_v7  ;;  %311 = vmatmul.mubr.msk.bf16.vlgmr.msra.gmra.mrb[0].mxu1 %vm168_vm1, %v336_v17 }
   0xf   :  { %288 = vmatpush3.bf16.msra.mxu0 %v323_v8 }
  0x10   :  { %289 = vmatprep.subr.bf16.mxu0 %v324_v9 }
  0x13   :  { %290 = vmatpush3.bf16.msra.mxu0 %v325_v11 }
  0x14   :  { %291 = vmatprep.subr.bf16.mxu0 %v326_v12 }
  0x17   :  { %292 = vmatpush3.bf16.msra.mxu0 %v327_v15 }
  0x18   :  { %293 = vmatprep.subr.bf16.mxu0 %v328_v18 }
  0x1b   :  { %294 = vmatpush3.bf16.msra.mxu0 %v329_v19 }
  0x1c   :  { %295 = vmatprep.subr.bf16.mxu0 %v331_v20 }
  0x1f   :  { %296 = vmatpush3.bf16.msra.mxu0 %v332_v21 }
  0x22   :  { %205 = vmatmul.mubr.bf16.vlgmr.msra.gmra.mrb[0].mxu0 %v259_v22 }
  0xdf   :  { %v246_v23 = vpop.f32.mrb[0].mxu1 }
  0xe0   :  { %v312_v24 = vpop.f32.mrb[1].mxu1 }
  0xe1   :  { %v249_v25 = vpop.f32.mrb[2].mxu1 }
  0xe2   :  { %v313_v26 = vpop.f32.mrb[3].mxu1 }
  0xf5   :  { %v297_v27 = vpop.f32.mrb[0].mxu0 }
  0xf6   :  { %v298_v28 = vpop.f32.mrb[1].mxu0 }
  0xf7   :  { %v299_v29 = vadd.f32 %v298_v28, %v297_v27  ;;  %v300_v30 = vpop.f32.mrb[2].mxu0 }
  0xf8   :  { %v301_v31 = vpop.f32.mrb[3].mxu0 }
  0xf9   :  { %v247_v32 = vadd.f32 %v299_v29, %v246_v23 }
  0xfb   :  { %v252_v33 = vpack.c.bf16 %v247_v32, %v247_v32 }
  0xfd   :  { %254 = vst.msk [vmem:[%s419_s2] sm:$0xf] %vm253_vm2, %v252_v33 }

// kernel: densenet_forward.41
= control target key start
LH: loop header
LB: loop body
LE: loop exit
PB: predicated region body
PF: predicated region fallthrough
CT: control target
= control target key end

     0   :  { %s150_s0 = inlined_call_operand.vmem [shape: bf16[2,4,32], index: 0, kind: input, shape index: {}]   ;;  %s151_s1 = inlined_call_operand.vmem [shape: f32[1,1,32], index: 1, kind: input, shape index: {}]   ;;  %s152_s2 = inlined_call_operand.vmem [shape: f32[1,1,32], index: 2, kind: input, shape index: {}]   ;;  %s153_s3 = inlined_call_operand.hbm [shape: f32[2,32], index: 3, kind: output, shape index: {}]  }
   0x1   :  { %v15_v0 = vld [vmem:[%s150_s0] sm:$0x3]  ;;  %v16_v1 = vld [vmem:[%s150_s0 + $0x2] sm:$0x3] }
   0x2   :  { %v78_v2 = vld [vmem:[%s151_s1] ss:$0 sm:$0xff]  ;;  %v17_v3 = vunpack.c.l.bf16 %v15_v0  ;;  %v18_v4 = vunpack.c.l.bf16 %v16_v1 }
   0x3   :  { %8 = vsyncpa [#allocation3], 0  ;;  %v79_v5 = vld [vmem:[%s152_s2] ss:$0 sm:$0xff]  ;;  %vm39_vm0 = vcmask 257024   ;;  %s105_s0 = smov [#allocation2]  }
   0x4   :  { %v26_v6 = vmul.f32 %v78_v2, %v17_v3  ;;  %v27_v7 = vmul.f32 %v78_v2, %v18_v4  ;;  %s70_s1 = sshll.u32 %s105_s0, 4  ;;  %vm59_vm1 = vcmask 1041409   ;;  %vm62_vm2 = vcmask 254976   ;;  %s71_s1 = int_to_ptr.vmem [resolvable:$true] %s70_s1 }
   0x5   :  { %s81_s2 = scalar_lea.vmem %s71_s1, 32  ;;  %p86_p1 = scmp.lt.s32.totalorder %s71_s1, %s71_s1 }
   0x6   :  { %v35_v8 = vadd.f32 %v79_v5, %v26_v6  ;;  %v36_v9 = vadd.f32 %v79_v5, %v27_v7  ;;  %p82_p0 = scmp.ne.s32.totalorder %s71_s1, %s81_s2  ;;  %p87_p2 = scmp.lt.s32.totalorder %s81_s2, %s81_s2 }
   0x8   :  { %v37_v10 = vmax.f32 %v35_v8, 0.0  ;;  %v38_v11 = vmax.f32 %v36_v9, 0.0  ;;  %p88_p3 = por %p87_p2, %p86_p1 }
   0xa   :  { %v40_v12 = vsel %vm39_vm0, %v37_v10, 0.0  ;;  %v47_v13 = vsel %vm39_vm0, %v38_v11, 0.0  ;;  %p89_p4 = pnand %p88_p3, %p82_p0 }
   0xb   :  { %v41_v14 = vrot.slane %v40_v12, 4  ;;  %v48_v15 = vrot.slane %v47_v13, 4 }
   0xd   :  { %v42_v16 = vadd.f32 %v41_v14, %v40_v12  ;;  %v49_v17 = vadd.f32 %v48_v15, %v47_v13 }
   0xf   :  { %v43_v18 = vrot.slane %v42_v16, 2  ;;  %v50_v19 = vrot.slane %v49_v17, 2 }
  0x11   :  { %v44_v20 = vadd.f32 %v43_v18, %v42_v16  ;;  %v51_v21 = vadd.f32 %v50_v19, %v49_v17 }
  0x13   :  { %v45_v22 = vrot.slane %v44_v20, 1  ;;  %v52_v23 = vrot.slane %v51_v21, 1 }
  0x15   :  { %v46_v24 = vadd.f32 %v45_v22, %v44_v20  ;;  %v53_v25 = vadd.f32 %v52_v23, %v51_v21 }
  0x17   :  { %v55_v26 = vmul.f32 0.25, %v46_v24  ;;  %v56_v27 = vmul.f32 0.25, %v53_v25 }
  0x19   :  { %v60_v28 = vsel %vm59_vm1, %v56_v27, %v55_v26 }
  0x1a   :  { %63 = vst.msk [vmem:[#allocation2] sm:$0x3] %vm62_vm2, %v60_v28 }
  0x1b   :  { %92 = shalt.err (!%p89_p4)
}
  0x1c   :  { %s93_s22 = scalar_lea.hbm %s153_s3, 32 }
  0x1d   :  { %p94_p5 = scmp.ne.s32.totalorder %s153_s3, %s93_s22  ;;  %p97_p6 = scmp.lt.u32.totalorder %s93_s22, %s153_s3 }
  0x1f   :  { %p99_p7 = pnand %p97_p6, %p94_p5 }
  0x21   :  { %102 = shalt.err (!%p99_p7)
}
  0x22   :  { %73 = dma.vmem_to_hbm [thread:$0]  %s71_s1, 32, %s153_s3, [#allocation3]  }
  0x23   :  { %103 = dma.done.wait [#allocation3], 32  }
  0x24   :  { %104 = vsyncadd [#allocation3], 4294967264 }
  0x25   :  { %77 = vsyncpa [#allocation3], 1 }

// kernel: densenet_forward.39
= control target key start
LH: loop header
LB: loop body
LE: loop exit
PB: predicated region body
PF: predicated region fallthrough
CT: control target
= control target key end

     0   :  { %v137_v0 = vmov 0.0   ;;  %vm64_vm0 = vcmask 1043456   ;;  %vm138_vm1 = vmmov 0   ;;  %vm60_vm2 = vcmask 195584   ;;  %s190_s1 = inlined_call_operand.vmem [shape: bf16[24,32], index: 1, kind: input, shape index: {}]   ;;  %s191_s0 = inlined_call_operand.vmem [shape: bf16[8,24], index: 0, kind: input, shape index: {}]   ;;  %s192_s2 = inlined_call_operand.vmem [shape: f32[1,24], index: 2, kind: input, shape index: {}]   ;;  %s193_s3 = inlined_call_operand.vmem [shape: f32[1,24], index: 3, kind: input, shape index: {}]   ;;  %s194_s4 = inlined_call_operand.vmem [shape: f32[1,32], index: 4, kind: input, shape index: {}]   ;;  %s195_s5 = inlined_call_operand.vmem [shape: bf16[8,32], index: 5, kind: output, shape index: {}]  }
   0x1   :  { %125 = vmatprep.subr.bf16.mxu0 %v137_v0  ;;  %v135_v1 = vld [vmem:[%s190_s1] sm:$0xff]   ;;  %129 = vmatprep.mubr.msk.bf16.mxu0 %vm138_vm1, %v137_v0  ;;  %v136_v2 = vld [vmem:[%s190_s1 + $0x8] ss:$0 sps:$4 sm:$0xff]   ;;  %vm110_vm3 = vcmask 257024  }
   0x2   :  { %v21_v3 = vld [vmem:[%s191_s0] sm:$0xf]  ;;  %126 = vmatpush3.bf16.msra.mxu0 %v135_v1  ;;  %v66_v6 = vsel %vm64_vm0, %v136_v2, 0 }
   0x3   :  { %v22_v4 = vunpack.c.l.bf16 %v21_v3  ;;  %v116_v5 = vld [vmem:[%s192_s2] ss:$0 sm:$0xff]  ;;  %127 = vmatprep.subr.bf16.mxu0 %v137_v0 }
   0x4   :  { %v117_v7 = vld [vmem:[%s193_s3] ss:$0 sm:$0xff] }
   0x5   :  { %v30_v8 = vmul.f32 %v116_v5, %v22_v4  ;;  %v118_v12 = vld [vmem:[%s194_s4] ss:$0 sm:$0xff] }
   0x6   :  { %128 = vmatpush3.bf16.msra.mxu0 %v66_v6 }
   0x7   :  { %v38_v9 = vadd.f32 %v117_v7, %v30_v8 }
   0x9   :  { %v39_v10 = vmax.f32 %v38_v9, 0.0 }
   0xb   :  { %v40_v11 = vpack.c.bf16 %v39_v10, %v39_v10 }
   0xd   :  { %130 = vmatmul.mubr.msk.bf16.vlgmr.msra.gmra.mrb[0].mxu0 %vm60_vm2, %v40_v11 }
  0xe0   :  { %v102_v13 = vpop.f32.mrb[0].mxu0 }
  0xe1   :  { %v103_v14 = vadd.f32 %v118_v12, %v102_v13  ;;  %v131_v15 = vpop.f32.mrb[1].mxu0 }
  0xe2   :  { %v105_v16 = vpop.f32.mrb[2].mxu0 }
  0xe3   :  { %v108_v17 = vmax.f32 %v103_v14, 0.0  ;;  %v132_v18 = vpop.f32.mrb[3].mxu0 }
  0xe5   :  { %v109_v19 = vpack.c.bf16 %v108_v17, %v108_v17 }
  0xe7   :  { %111 = vst.msk [vmem:[%s195_s5] sm:$0xf] %vm110_vm3, %v109_v19 }

</bundles_post_ra>
